<compile_context>
chip_gen: v7x
topology: tpu7x:2x2x1
jax: 0.10.0
libtpu: 0.0.40
codegen_flags: <defaults>
</compile_context>

<pallas_src>
import functools
import numpy as np

import jax
import jax.numpy as jnp
from jax.experimental import pallas as pl
from jax.experimental.pallas import tpu as pltpu

F32 = jnp.float32
BF16 = jnp.bfloat16

_VMEM = pl.BlockSpec(memory_space=pltpu.MemorySpace.VMEM)


# --------------------------------------------------------------------------
# small in-kernel helpers
# --------------------------------------------------------------------------
def _bdot(a, b):
    """MXU matmul with bf16 operands, f32 accumulation (element-wise math stays f32)."""
    return jnp.dot(a.astype(BF16), b.astype(BF16), preferred_element_type=F32)


def _layernorm(x, g, b, eps=1e-5):
    mu = jnp.mean(x, axis=-1, keepdims=True)
    var = jnp.mean((x - mu) ** 2, axis=-1, keepdims=True)
    return (x - mu) * jax.lax.rsqrt(var + eps) * g + b


# --------------------------------------------------------------------------
# Kernel 1: fused graph branch (edge NNet + rebin + MPNN loop + readout)
# --------------------------------------------------------------------------
def _graph_kernel(e_ref, g_ref, h0_ref, jcol_ref,
                  bm_ref, ttile_ref, tilemat_ref, rsum_ref, ssum_ref, summat_ref,
                  mw0_ref, mw1_ref, mw2_ref, mw3_ref,
                  wi_ref, wh_ref,
                  r1w0_ref, r1w1_ref, r1w2_ref, r1w3_ref,
                  r2w0_ref, r2w1_ref, r2w2_ref, r2w3_ref,
                  bias_ref, o_ref, *, N, H, n_layers):
    biases = bias_ref[...]                         # (14, 256) packed bias rows

    def brow(k, w):
        return biases[k:k + 1, :w]

    def mlp(x, w_refs, b_base):
        for li, w_ref in enumerate(w_refs):
            w = w_ref[...]
            x = _bdot(x, w) + brow(b_base + li, w.shape[1])
            if li < len(w_refs) - 1:
                x = jnp.maximum(x, 0.0)
        return x

    # ---- 1) fused edge-message NNet (4 chained matmuls, output stays resident) ----
    E = mlp(e_ref[...], (mw0_ref, mw1_ref, mw2_ref, mw3_ref), 0)       # (B*N*N, Ms*H)

    # ---- 2) loop-invariant rebin: fold torch's h_w_rows expand/contiguous/view aliasing
    #         into per-destination-node block matrices bm[j] (bf16 0/1), computed once. ----
    jcol = jcol_ref[...]                                               # (B*N*N, 1) j index per edge row
    etil = jnp.zeros(E.shape, F32)
    for j in range(N):
        sel = jnp.where(jcol == float(j), 1.0, 0.0)
        etil = etil + _bdot(E * sel, bm_ref[j])                        # (B*N*N, Ms*H)

    ttile = ttile_ref[...]          # (H, Ms*H)     lane tiling of h
    tilemat = tilemat_ref[...]      # (B*N*N, B*N)  row replication of h
    rsum = rsum_ref[...]            # (Ms*H, Ms)    per-message chunk sum
    ssum = ssum_ref[...]            # (B*N, B*N*N)  adjacency-aware neighbor sum (0/1 part)
    gcol = g_ref[...]               # (B*N*N, 1)    adjacency values per edge row
    wi = wi_ref[...]                # (Ms, 3H) GRU gates [r|z|n] concatenated
    wh = wh_ref[...]                # (H, 3H)
    bi = brow(4, 3 * H)
    bh = brow(5, 3 * H)

    h0 = h0_ref[...]                                                   # (B*N, H)
    node_mask = (jnp.sum(h0, axis=1, keepdims=True) > 0.0).astype(F32)  # sum of padded h0 == sum of h_in

    # ---- 3) message passing + GRU, n_layers weight-tied iterations, fully in VMEM ----
    h = h0
    for _ in range(n_layers):
        htile = _bdot(h, ttile)                   # (B*N,  Ms*H)  lane-tiled h
        hexp = _bdot(tilemat, htile)              # (B*N*N, Ms*H) row-replicated per edge
        me = _bdot(etil * hexp, rsum)             # (B*N*N, Ms)   per-edge message
        m_agg = _bdot(ssum, me * gcol)            # (B*N,  Ms)    adjacency-masked neighbor sum
        gi = _bdot(m_agg, wi) + bi
        gh = _bdot(h, wh) + bh
        r = jax.nn.sigmoid(gi[:, :H] + gh[:, :H])
        z = jax.nn.sigmoid(gi[:, H:2 * H] + gh[:, H:2 * H])
        n = jnp.tanh(gi[:, 2 * H:] + r * gh[:, 2 * H:])
        h = node_mask * ((1.0 - z) * n + z * h)   # fused node mask
    hT = h

    # ---- 4) readout: both NNets + sigmoid gating + mask + per-graph sum + sigmoid ----
    a1 = mlp(jnp.concatenate([h0, hT], axis=1), (r1w0_ref, r1w1_ref, r1w2_ref, r1w3_ref), 6)
    a2 = mlp(hT, (r2w0_ref, r2w1_ref, r2w2_ref, r2w3_ref), 10)
    nn_res = jax.nn.sigmoid(a1) * a2 * node_mask                       # (B*N, T_pad)
    o_ref[...] = jax.nn.sigmoid(_bdot(summat_ref[...], nn_res))        # (B, T_pad)


# --------------------------------------------------------------------------
# Kernel 2: fused ViT branch (patch embed + all transformer layers + head)
# --------------------------------------------------------------------------
def _vit_kernel(img_ref, poscls_ref, sel_ref, attnb_ref, clssel_ref,
                wpe_ref, wqkv_ref, wout_ref, wff1_ref, wff2_ref, whead_ref,
                bias_ref, o_ref, *, depth, heads, dh, dim, mlp_dim, t_pad):
    inner = heads * dh
    scale = float(dh) ** -0.5
    biases = bias_ref[...]

    def brow(k, w):
        return biases[k:k + 1, :w]

    emb = _bdot(img_ref[...], wpe_ref[...]) + brow(0, dim)             # (B*P, dim)
    # tokens = [cls ; patches] + pos, batch stacked into rows via 0/1 selector
    x = _bdot(sel_ref[...], emb) + poscls_ref[...]                     # (B*(P+1), dim)
    attn_bias = attnb_ref[...]                                         # block-diag additive mask

    for l in range(depth):
        base = 2 + 7 * l
        # PreNorm + multi-head attention + residual
        y = _layernorm(x, brow(base + 0, dim), brow(base + 1, dim))
        qkv = _bdot(y, wqkv_ref[l])                                    # (rows, 3*inner)
        wout_l = wout_ref[l]
        attn_out = jnp.zeros(x.shape, F32)
        for hh in range(heads):
            qh = qkv[:, hh * dh:(hh + 1) * dh]
            kh = qkv[:, inner + hh * dh:inner + (hh + 1) * dh]
            vh = qkv[:, 2 * inner + hh * dh:2 * inner + (hh + 1) * dh]
            s = jax.lax.dot_general(qh.astype(BF16), kh.astype(BF16),
                                    (((1,), (1,)), ((), ())),
                                    preferred_element_type=F32) * scale + attn_bias
            s = s - jnp.max(s, axis=-1, keepdims=True)
            p = jnp.exp(s)
            p = p * pl.reciprocal(jnp.sum(p, axis=-1, keepdims=True), approx=True)
            # head output folded straight through the matching out-projection rows (no concat)
            attn_out = attn_out + _bdot(_bdot(p, vh), wout_l[hh * dh:(hh + 1) * dh, :])
        x = attn_out + brow(base + 4, dim) + x
        # PreNorm + FeedForward + residual
        y = _layernorm(x, brow(base + 2, dim), brow(base + 3, dim))
        # TODO(synk): PyTorch nn.GELU() is the exact erf form; tanh approximation used in-kernel.
        y = jax.nn.gelu(_bdot(y, wff1_ref[l]) + brow(base + 5, mlp_dim), approximate=True)
        x = _bdot(y, wff2_ref[l]) + brow(base + 6, dim) + x

    xc = _bdot(clssel_ref[...], x)                                     # (B, dim) 'cls' rows
    o_ref[...] = jax.nn.sigmoid(_bdot(xc, whead_ref[...]) + brow(1, t_pad))


# --------------------------------------------------------------------------
# Parameter init (deterministic, PyTorch-Linear-like uniform(-1/sqrt(fan_in), ..))
# --------------------------------------------------------------------------
def init_linear(key, n_in, n_out):
    kw, kb = jax.random.split(key)
    s = 1.0 / np.sqrt(n_in)
    return {"w": jax.random.uniform(kw, (n_in, n_out), F32, -s, s),
            "b": jax.random.uniform(kb, (n_out,), F32, -s, s)}


def init_nnet(key, n_in, n_out, hlayers=(128, 256, 128)):
    dims = [n_in] + list(hlayers) + [n_out]
    keys = jax.random.split(key, len(dims) - 1)
    return [init_linear(k, dims[i], dims[i + 1]) for i, k in enumerate(keys)]


def init_gru(key, in_size, hidden):
    ks = jax.random.split(key, 4)
    s = 1.0 / np.sqrt(hidden)
    u = lambda k, shape: jax.random.uniform(k, shape, F32, -s, s)
    return {"w_i": u(ks[0], (in_size, 3 * hidden)),     # gates [r|z|n] concatenated
            "w_h": u(ks[1], (hidden, 3 * hidden)),
            "b_i": u(ks[2], (1, 3 * hidden)),
            "b_h": u(ks[3], (1, 3 * hidden))}


def init_model(key, cfg):
    H, Ms, T = cfg["hidden_state_size"], cfg["message_size"], cfg["l_target"]
    dim, heads, dh = cfg["dim"], cfg["heads"], cfg["dim_head"]
    mlp, depth = cfg["mlp_dim"], cfg["depth"]
    inner = heads * dh
    patch_dim = cfg["time_size"] * cfg["fre_size"]
    P = cfg["image_size"]
    keys = iter(jax.random.split(key, 8 + 4 * depth))

    params = {}
    params["msg_nnet"] = init_nnet(next(keys), cfg["edge_feat"], H * Ms)      # edge_feat -> Ms*H
    params["gru"] = init_gru(next(keys), Ms, H)                               # GRU(message -> hidden)
    params["readout_nnet1"] = init_nnet(next(keys), 2 * H, T)
    params["readout_nnet2"] = init_nnet(next(keys), H, T)
    params["to_patch_embedding"] = init_linear(next(keys), patch_dim, dim)
    params["pos_embedding"] = jax.random.normal(next(keys), (1, P + 1, dim), F32)
    params["cls_token"] = jax.random.normal(next(keys), (1, 1, dim), F32)
    params["mlp_head"] = init_linear(next(keys), dim, T)

    sdim = 1.0 / np.sqrt(dim)
    w_qkv, w_out, b_out, w_ff1, b_ff1, w_ff2, b_ff2 = [], [], [], [], [], [], []
    for _ in range(depth):
        w_qkv.append(jax.random.uniform(next(keys), (dim, 3 * inner), F32, -sdim, sdim))  # no bias
        wo = init_linear(next(keys), inner, dim)
        w_out.append(wo["w"]); b_out.append(wo["b"].reshape(1, dim))
        f1 = init_linear(next(keys), dim, mlp)
        f2 = init_linear(next(keys), mlp, dim)
        w_ff1.append(f1["w"]); b_ff1.append(f1["b"].reshape(1, mlp))
        w_ff2.append(f2["w"]); b_ff2.append(f2["b"].reshape(1, dim))
    params["transformer"] = {
        "ln1_g": jnp.ones((depth, 1, dim), F32), "ln1_b": jnp.zeros((depth, 1, dim), F32),
        "ln2_g": jnp.ones((depth, 1, dim), F32), "ln2_b": jnp.zeros((depth, 1, dim), F32),
        "w_qkv": jnp.stack(w_qkv), "w_out": jnp.stack(w_out), "b_out": jnp.stack(b_out),
        "w_ff1": jnp.stack(w_ff1), "b_ff1": jnp.stack(b_ff1),
        "w_ff2": jnp.stack(w_ff2), "b_ff2": jnp.stack(b_ff2),
    }
    return params


# --------------------------------------------------------------------------
# Forward pass (faithful to MPNN_TRANS_LR.forward)
# --------------------------------------------------------------------------
def _pack_rows(vecs):
    """Pack many tiny bias/LN vectors into one lane-padded (n_rows, width) array."""
    width = max(int(np.prod(v.shape)) for v in vecs)
    width = ((width + 127) // 128) * 128
    rows = [jnp.pad(jnp.reshape(v, (1, -1)).astype(F32),
                    ((0, 0), (0, width - int(np.prod(v.shape))))) for v in vecs]
    return jnp.concatenate(rows, axis=0)


def mpnn_trans_lr_forward(params, cfg, g, h_in, e, din, img, mix_mask):
    del din  # unused by the PyTorch forward
    B, N, nf = h_in.shape
    H, Ms, T = cfg["hidden_state_size"], cfg["message_size"], cfg["l_target"]
    ef = e.shape[3]
    n_layers = cfg["n_layers"]
    T_pad = ((T + 127) // 128) * 128                 # lane-dense outputs, sliced back to T below

    # ================= graph / MPNN branch: ONE fused pallas_call =================
    h0 = jnp.concatenate([h_in, jnp.zeros((B, N, H - nf), F32)], axis=2).reshape(B * N, H)
    e_flat = e.reshape(B * N * N, ef)
    g_col = g.reshape(B * N * N, 1).astype(F32)

    # Structural 0/1 constants (trace-time numpy -> baked program constants, bf16-exact):
    idx = np.arange(B * N * N)
    jcol = (idx % N).astype(np.float32).reshape(-1, 1)                    # j index per edge row
    tilemat = np.equal.outer(idx // N, np.arange(B * N)).astype(np.float32)   # (BNN, BN) row replication
    ssum = np.zeros((B * N, B * N * N), np.float32)                       # (BN, BNN) sum over source i
    for b in range(B):
        for j in range(N):
            ssum[b * N + j, b * N * N + np.arange(N) * N + j] = 1.0
    ttile = np.tile(np.eye(H, dtype=np.float32), (1, Ms))                 # (H, Ms*H) lane tiling
    rsum = np.repeat(np.eye(Ms, dtype=np.float32), H, axis=0)             # (Ms*H, Ms) chunk sum
    summat = np.repeat(np.eye(B, dtype=np.float32), N, axis=1)            # (B, BN) per-graph node sum
    # rebin blocks: etil[e, m*H+r] = sum_{q:(j*H+q)//N==r} E[e, m*H+q]  (torch view aliasing)
    bm = np.zeros((N, Ms * H, Ms * H), np.float32)
    qv = np.arange(H)
    for j in range(N):
        r_of = (j * H + qv) // N
        for m in range(Ms):
            bm[j, m * H + qv, m * H + r_of] = 1.0

    mp = params["msg_nnet"]; r1 = params["readout_nnet1"]; r2 = params["readout_nnet2"]
    gp = params["gru"]
    r1w3 = jnp.pad(r1[3]["w"], ((0, 0), (0, T_pad - T)))
    r2w3 = jnp.pad(r2[3]["w"], ((0, 0), (0, T_pad - T)))
    graph_bias = _pack_rows(
        [mp[0]["b"], mp[1]["b"], mp[2]["b"], mp[3]["b"],
         gp["b_i"], gp["b_h"],
         r1[0]["b"], r1[1]["b"], r1[2]["b"], r1[3]["b"],
         r2[0]["b"], r2[1]["b"], r2[2]["b"], r2[3]["b"]])

    graph_args = [
        e_flat, g_col, h0, jnp.asarray(jcol),
        jnp.asarray(bm, dtype=BF16), jnp.asarray(ttile, dtype=BF16),
        jnp.asarray(tilemat, dtype=BF16), jnp.asarray(rsum, dtype=BF16),
        jnp.asarray(ssum, dtype=BF16), jnp.asarray(summat, dtype=BF16),
        mp[0]["w"], mp[1]["w"], mp[2]["w"], mp[3]["w"],
        gp["w_i"], gp["w_h"],
        r1[0]["w"], r1[1]["w"], r1[2]["w"], r1w3,
        r2[0]["w"], r2[1]["w"], r2[2]["w"], r2w3,
        graph_bias,
    ]
    res_pad = pl.pallas_call(
        functools.partial(_graph_kernel, N=N, H=H, n_layers=n_layers),
        out_shape=jax.ShapeDtypeStruct((B, T_pad), F32),
        in_specs=[_VMEM] * len(graph_args),
        out_specs=_VMEM,
    )(*graph_args)

    # ================= transformer (ViT) branch: ONE fused pallas_call =================
    P, dim, heads = cfg["image_size"], cfg["dim"], cfg["heads"]
    dh, depth, mlp_dim = cfg["dim_head"], cfg["depth"], cfg["mlp_dim"]
    n_tok = P + 1
    rows = B * n_tok
    tp = params["transformer"]; pe = params["to_patch_embedding"]; head = params["mlp_head"]

    img_flat = img.reshape(B * P, -1)
    # cls token folded into pos-embedding row 0; tiled over the stacked batch (exact f32)
    pos_cls = params["pos_embedding"][0, :n_tok] + jnp.concatenate(
        [params["cls_token"][0], jnp.zeros((P, dim), F32)], axis=0)
    poscls_tiled = jnp.tile(pos_cls, (B, 1))                              # (rows, dim)

    sel = np.zeros((rows, B * P), np.float32)                             # patch -> token row selector
    for b in range(B):
        sel[b * n_tok + 1 + np.arange(P), b * P + np.arange(P)] = 1.0
    tok_b = np.arange(rows) // n_tok
    attn_bias = np.where(np.equal.outer(tok_b, tok_b), 0.0, -1e9).astype(np.float32)
    cls_sel = np.zeros((B, rows), np.float32)
    cls_sel[np.arange(B), np.arange(B) * n_tok] = 1.0

    head_w = jnp.pad(head["w"], ((0, 0), (0, T_pad - T)))
    vit_bias_rows = [pe["b"], head["b"]]
    for l in range(depth):
        vit_bias_rows += [tp["ln1_g"][l, 0], tp["ln1_b"][l, 0],
                          tp["ln2_g"][l, 0], tp["ln2_b"][l, 0],
                          tp["b_out"][l, 0], tp["b_ff1"][l, 0], tp["b_ff2"][l, 0]]
    vit_bias = _pack_rows(vit_bias_rows)

    vit_args = [
        img_flat, poscls_tiled,
        jnp.asarray(sel, dtype=BF16), jnp.asarray(attn_bias), jnp.asarray(cls_sel, dtype=BF16),
        pe["w"], tp["w_qkv"], tp["w_out"], tp["w_ff1"], tp["w_ff2"], head_w,
        vit_bias,
    ]
    x_pad = pl.pallas_call(
        functools.partial(_vit_kernel, depth=depth, heads=heads, dh=dh,
                          dim=dim, mlp_dim=mlp_dim, t_pad=T_pad),
        out_shape=jax.ShapeDtypeStruct((B, T_pad), F32),
        in_specs=[_VMEM] * len(vit_args),
        out_specs=_VMEM,
    )(*vit_args)

    res = res_pad[:, :T]
    x_head = x_pad[:, :T]
    # TODO(synk): original draws np.random.randint(2, size=91) per call (non-deterministic);
    #             a fixed deterministic mask is passed in instead.
    return jnp.where(mix_mask[None, :] == 1, x_head, res)


# --------------------------------------------------------------------------
# Demo
# --------------------------------------------------------------------------
if __name__ == "__main__":
    cfg = dict(
        image_size=8, time_size=4, fre_size=4,          # num_patches=8, patch_dim=16
        dim=32, depth=2, heads=4, mlp_dim=64, dim_head=16,
        node_feat=3, edge_feat=4,                       # in_n = [3, 4]
        hidden_state_size=16, message_size=16, n_layers=2,
        l_target=91,                                    # forward hard-codes length 91
    )
    B, N = 2, 6

    key = jax.random.PRNGKey(0)
    kp, kg, kh, ke, ki = jax.random.split(key, 5)
    params = init_model(kp, cfg)

    g = jax.random.bernoulli(kg, 0.6, (B, N, N)).astype(F32)                    # adjacency
    h_in = jax.random.normal(kh, (B, N, cfg["node_feat"]), F32)
    h_in = h_in.at[0, N - 1, :].set(0.0)                                        # one "absent" node
    e = jax.random.normal(ke, (B, N, N, cfg["edge_feat"]), F32)
    din = jnp.zeros((B, 5), F32)                                                # unused by forward
    img = jax.random.normal(ki, (B, cfg["image_size"], cfg["time_size"] * cfg["fre_size"]), F32)
    mix_mask = jnp.asarray(np.random.RandomState(0).randint(2, size=cfg["l_target"]),
                           dtype=jnp.int32)

    fwd = jax.jit(lambda prm, g_, h_, e_, d_, img_, mm_:
                  mpnn_trans_lr_forward(prm, cfg, g_, h_, e_, d_, img_, mm_))
    out = jax.block_until_ready(fwd(params, g, h_in, e, din, img, mix_mask))

    assert out.shape == (B, cfg["l_target"]), out.shape
    assert out.dtype == jnp.float32
    assert bool(jnp.all(jnp.isfinite(out)))
    assert bool(jnp.all((out > 0.0) & (out < 1.0)))   # both branches end in a sigmoid
    print("KERNEL_OK")
</pallas_src>

<mosaic_0001>
module attributes {stable_mosaic.version = 11 : i64} {
  func.func @_graph_kernel(%arg0: memref<72x4xf32, #tpu.memory_space<vmem>>, %arg1: memref<72x1xf32, #tpu.memory_space<vmem>>, %arg2: memref<12x16xf32, #tpu.memory_space<vmem>>, %arg3: memref<72x1xf32, #tpu.memory_space<vmem>>, %arg4: memref<6x256x256xbf16, #tpu.memory_space<vmem>>, %arg5: memref<16x256xbf16, #tpu.memory_space<vmem>>, %arg6: memref<72x12xbf16, #tpu.memory_space<vmem>>, %arg7: memref<256x16xbf16, #tpu.memory_space<vmem>>, %arg8: memref<12x72xbf16, #tpu.memory_space<vmem>>, %arg9: memref<2x12xbf16, #tpu.memory_space<vmem>>, %arg10: memref<4x128xf32, #tpu.memory_space<vmem>>, %arg11: memref<128x256xf32, #tpu.memory_space<vmem>>, %arg12: memref<256x128xf32, #tpu.memory_space<vmem>>, %arg13: memref<128x256xf32, #tpu.memory_space<vmem>>, %arg14: memref<16x48xf32, #tpu.memory_space<vmem>>, %arg15: memref<16x48xf32, #tpu.memory_space<vmem>>, %arg16: memref<32x128xf32, #tpu.memory_space<vmem>>, %arg17: memref<128x256xf32, #tpu.memory_space<vmem>>, %arg18: memref<256x128xf32, #tpu.memory_space<vmem>>, %arg19: memref<128x128xf32, #tpu.memory_space<vmem>>, %arg20: memref<16x128xf32, #tpu.memory_space<vmem>>, %arg21: memref<128x256xf32, #tpu.memory_space<vmem>>, %arg22: memref<256x128xf32, #tpu.memory_space<vmem>>, %arg23: memref<128x128xf32, #tpu.memory_space<vmem>>, %arg24: memref<14x256xf32, #tpu.memory_space<vmem>>, %arg25: memref<2x128xf32, #tpu.memory_space<vmem>>) attributes {dimension_semantics = [], scalar_prefetch = 0 : i64, scratch_operands = 0 : i64, tpu.core_type = #tpu.core_type<tc>} {
    %c0 = arith.constant 0 : index
    %c0_0 = arith.constant 0 : index
    %0 = vector.load %arg24[%c0, %c0_0] : memref<14x256xf32, #tpu.memory_space<vmem>>, vector<14x256xf32>
    %c0_1 = arith.constant 0 : index
    %c0_2 = arith.constant 0 : index
    %1 = vector.load %arg0[%c0_1, %c0_2] : memref<72x4xf32, #tpu.memory_space<vmem>>, vector<72x4xf32>
    %c0_3 = arith.constant 0 : index
    %c0_4 = arith.constant 0 : index
    %2 = vector.load %arg10[%c0_3, %c0_4] : memref<4x128xf32, #tpu.memory_space<vmem>>, vector<4x128xf32>
    %3 = arith.truncf %1 : vector<72x4xf32> to vector<72x4xbf16>
    %4 = arith.truncf %2 : vector<4x128xf32> to vector<4x128xbf16>
    %cst = arith.constant dense<0.000000e+00> : vector<72x128xf32>
    %5 = tpu.matmul %3, %4, %cst {dimension_numbers = #tpu.dot_dimension_numbers<[1], [0], [0], [1], [0, 0, 1, 1], [], []>} : vector<72x4xbf16>, vector<4x128xbf16>, vector<72x128xf32> -> vector<72x128xf32>
    %6 = vector.extract_strided_slice %0 {offsets = [0, 0], sizes = [1, 128], strides = [1, 1]} : vector<14x256xf32> to vector<1x128xf32>
    %7 = vector.broadcast %6 : vector<1x128xf32> to vector<72x128xf32>
    %8 = arith.addf %5, %7 : vector<72x128xf32>
    %cst_5 = arith.constant 0.000000e+00 : f32
    %9 = vector.broadcast %cst_5 : f32 to vector<72x128xf32>
    %10 = arith.maximumf %8, %9 : vector<72x128xf32>
    %c0_6 = arith.constant 0 : index
    %c0_7 = arith.constant 0 : index
    %11 = vector.load %arg11[%c0_6, %c0_7] : memref<128x256xf32, #tpu.memory_space<vmem>>, vector<128x256xf32>
    %12 = arith.truncf %10 : vector<72x128xf32> to vector<72x128xbf16>
    %13 = arith.truncf %11 : vector<128x256xf32> to vector<128x256xbf16>
    %cst_8 = arith.constant dense<0.000000e+00> : vector<72x256xf32>
    %14 = tpu.matmul %12, %13, %cst_8 {dimension_numbers = #tpu.dot_dimension_numbers<[1], [0], [0], [1], [0, 0, 1, 1], [], []>} : vector<72x128xbf16>, vector<128x256xbf16>, vector<72x256xf32> -> vector<72x256xf32>
    %15 = vector.extract_strided_slice %0 {offsets = [1, 0], sizes = [1, 256], strides = [1, 1]} : vector<14x256xf32> to vector<1x256xf32>
    %16 = vector.broadcast %15 : vector<1x256xf32> to vector<72x256xf32>
    %17 = arith.addf %14, %16 : vector<72x256xf32>
    %cst_9 = arith.constant 0.000000e+00 : f32
    %18 = vector.broadcast %cst_9 : f32 to vector<72x256xf32>
    %19 = arith.maximumf %17, %18 : vector<72x256xf32>
    %c0_10 = arith.constant 0 : index
    %c0_11 = arith.constant 0 : index
    %20 = vector.load %arg12[%c0_10, %c0_11] : memref<256x128xf32, #tpu.memory_space<vmem>>, vector<256x128xf32>
    %21 = arith.truncf %19 : vector<72x256xf32> to vector<72x256xbf16>
    %22 = arith.truncf %20 : vector<256x128xf32> to vector<256x128xbf16>
    %cst_12 = arith.constant dense<0.000000e+00> : vector<72x128xf32>
    %23 = tpu.matmul %21, %22, %cst_12 {dimension_numbers = #tpu.dot_dimension_numbers<[1], [0], [0], [1], [0, 0, 1, 1], [], []>} : vector<72x256xbf16>, vector<256x128xbf16>, vector<72x128xf32> -> vector<72x128xf32>
    %24 = vector.extract_strided_slice %0 {offsets = [2, 0], sizes = [1, 128], strides = [1, 1]} : vector<14x256xf32> to vector<1x128xf32>
    %25 = vector.broadcast %24 : vector<1x128xf32> to vector<72x128xf32>
    %26 = arith.addf %23, %25 : vector<72x128xf32>
    %cst_13 = arith.constant 0.000000e+00 : f32
    %27 = vector.broadcast %cst_13 : f32 to vector<72x128xf32>
    %28 = arith.maximumf %26, %27 : vector<72x128xf32>
    %c0_14 = arith.constant 0 : index
    %c0_15 = arith.constant 0 : index
    %29 = vector.load %arg13[%c0_14, %c0_15] : memref<128x256xf32, #tpu.memory_space<vmem>>, vector<128x256xf32>
    %30 = arith.truncf %28 : vector<72x128xf32> to vector<72x128xbf16>
    %31 = arith.truncf %29 : vector<128x256xf32> to vector<128x256xbf16>
    %cst_16 = arith.constant dense<0.000000e+00> : vector<72x256xf32>
    %32 = tpu.matmul %30, %31, %cst_16 {dimension_numbers = #tpu.dot_dimension_numbers<[1], [0], [0], [1], [0, 0, 1, 1], [], []>} : vector<72x128xbf16>, vector<128x256xbf16>, vector<72x256xf32> -> vector<72x256xf32>
    %33 = vector.extract_strided_slice %0 {offsets = [3, 0], sizes = [1, 256], strides = [1, 1]} : vector<14x256xf32> to vector<1x256xf32>
    %34 = vector.broadcast %33 : vector<1x256xf32> to vector<72x256xf32>
    %35 = arith.addf %32, %34 : vector<72x256xf32>
    %c0_17 = arith.constant 0 : index
    %c0_18 = arith.constant 0 : index
    %36 = vector.load %arg3[%c0_17, %c0_18] : memref<72x1xf32, #tpu.memory_space<vmem>>, vector<72x1xf32>
    %cst_19 = arith.constant 0.000000e+00 : f32
    %37 = vector.broadcast %cst_19 : f32 to vector<72x256xf32>
    %cst_20 = arith.constant 0.000000e+00 : f32
    %38 = vector.broadcast %cst_20 : f32 to vector<72x1xf32>
    %39 = arith.cmpf oeq, %36, %38 : vector<72x1xf32>
    %cst_21 = arith.constant 1.000000e+00 : f32
    %cst_22 = arith.constant 0.000000e+00 : f32
    %40 = vector.broadcast %cst_21 : f32 to vector<72x1xf32>
    %41 = vector.broadcast %cst_22 : f32 to vector<72x1xf32>
    %42 = arith.select %39, %40, %41 : vector<72x1xi1>, vector<72x1xf32>
    %43 = vector.broadcast %42 : vector<72x1xf32> to vector<72x256xf32>
    %44 = arith.mulf %35, %43 : vector<72x256xf32>
    %c0_23 = arith.constant 0 : index
    %c0_24 = arith.constant 0 : index
    %c0_25 = arith.constant 0 : index
    %45 = vector.load %arg4[%c0_23, %c0_24, %c0_25] : memref<6x256x256xbf16, #tpu.memory_space<vmem>>, vector<1x256x256xbf16>
    %46 = vector.shape_cast %45 : vector<1x256x256xbf16> to vector<256x256xbf16>
    %47 = arith.truncf %44 : vector<72x256xf32> to vector<72x256xbf16>
    %cst_26 = arith.constant dense<0.000000e+00> : vector<72x256xf32>
    %48 = tpu.matmul %47, %46, %cst_26 {dimension_numbers = #tpu.dot_dimension_numbers<[1], [0], [0], [1], [0, 0, 1, 1], [], []>} : vector<72x256xbf16>, vector<256x256xbf16>, vector<72x256xf32> -> vector<72x256xf32>
    %49 = arith.addf %37, %48 : vector<72x256xf32>
    %cst_27 = arith.constant 1.000000e+00 : f32
    %50 = vector.broadcast %cst_27 : f32 to vector<72x1xf32>
    %51 = arith.cmpf oeq, %36, %50 : vector<72x1xf32>
    %cst_28 = arith.constant 1.000000e+00 : f32
    %cst_29 = arith.constant 0.000000e+00 : f32
    %52 = vector.broadcast %cst_28 : f32 to vector<72x1xf32>
    %53 = vector.broadcast %cst_29 : f32 to vector<72x1xf32>
    %54 = arith.select %51, %52, %53 : vector<72x1xi1>, vector<72x1xf32>
    %55 = vector.broadcast %54 : vector<72x1xf32> to vector<72x256xf32>
    %56 = arith.mulf %35, %55 : vector<72x256xf32>
    %c1 = arith.constant 1 : index
    %c0_30 = arith.constant 0 : index
    %c0_31 = arith.constant 0 : index
    %57 = vector.load %arg4[%c1, %c0_30, %c0_31] : memref<6x256x256xbf16, #tpu.memory_space<vmem>>, vector<1x256x256xbf16>
    %58 = vector.shape_cast %57 : vector<1x256x256xbf16> to vector<256x256xbf16>
    %59 = arith.truncf %56 : vector<72x256xf32> to vector<72x256xbf16>
    %cst_32 = arith.constant dense<0.000000e+00> : vector<72x256xf32>
    %60 = tpu.matmul %59, %58, %cst_32 {dimension_numbers = #tpu.dot_dimension_numbers<[1], [0], [0], [1], [0, 0, 1, 1], [], []>} : vector<72x256xbf16>, vector<256x256xbf16>, vector<72x256xf32> -> vector<72x256xf32>
    %61 = arith.addf %49, %60 : vector<72x256xf32>
    %cst_33 = arith.constant 2.000000e+00 : f32
    %62 = vector.broadcast %cst_33 : f32 to vector<72x1xf32>
    %63 = arith.cmpf oeq, %36, %62 : vector<72x1xf32>
    %cst_34 = arith.constant 1.000000e+00 : f32
    %cst_35 = arith.constant 0.000000e+00 : f32
    %64 = vector.broadcast %cst_34 : f32 to vector<72x1xf32>
    %65 = vector.broadcast %cst_35 : f32 to vector<72x1xf32>
    %66 = arith.select %63, %64, %65 : vector<72x1xi1>, vector<72x1xf32>
    %67 = vector.broadcast %66 : vector<72x1xf32> to vector<72x256xf32>
    %68 = arith.mulf %35, %67 : vector<72x256xf32>
    %c2 = arith.constant 2 : index
    %c0_36 = arith.constant 0 : index
    %c0_37 = arith.constant 0 : index
    %69 = vector.load %arg4[%c2, %c0_36, %c0_37] : memref<6x256x256xbf16, #tpu.memory_space<vmem>>, vector<1x256x256xbf16>
    %70 = vector.shape_cast %69 : vector<1x256x256xbf16> to vector<256x256xbf16>
    %71 = arith.truncf %68 : vector<72x256xf32> to vector<72x256xbf16>
    %cst_38 = arith.constant dense<0.000000e+00> : vector<72x256xf32>
    %72 = tpu.matmul %71, %70, %cst_38 {dimension_numbers = #tpu.dot_dimension_numbers<[1], [0], [0], [1], [0, 0, 1, 1], [], []>} : vector<72x256xbf16>, vector<256x256xbf16>, vector<72x256xf32> -> vector<72x256xf32>
    %73 = arith.addf %61, %72 : vector<72x256xf32>
    %cst_39 = arith.constant 3.000000e+00 : f32
    %74 = vector.broadcast %cst_39 : f32 to vector<72x1xf32>
    %75 = arith.cmpf oeq, %36, %74 : vector<72x1xf32>
    %cst_40 = arith.constant 1.000000e+00 : f32
    %cst_41 = arith.constant 0.000000e+00 : f32
    %76 = vector.broadcast %cst_40 : f32 to vector<72x1xf32>
    %77 = vector.broadcast %cst_41 : f32 to vector<72x1xf32>
    %78 = arith.select %75, %76, %77 : vector<72x1xi1>, vector<72x1xf32>
    %79 = vector.broadcast %78 : vector<72x1xf32> to vector<72x256xf32>
    %80 = arith.mulf %35, %79 : vector<72x256xf32>
    %c3 = arith.constant 3 : index
    %c0_42 = arith.constant 0 : index
    %c0_43 = arith.constant 0 : index
    %81 = vector.load %arg4[%c3, %c0_42, %c0_43] : memref<6x256x256xbf16, #tpu.memory_space<vmem>>, vector<1x256x256xbf16>
    %82 = vector.shape_cast %81 : vector<1x256x256xbf16> to vector<256x256xbf16>
    %83 = arith.truncf %80 : vector<72x256xf32> to vector<72x256xbf16>
    %cst_44 = arith.constant dense<0.000000e+00> : vector<72x256xf32>
    %84 = tpu.matmul %83, %82, %cst_44 {dimension_numbers = #tpu.dot_dimension_numbers<[1], [0], [0], [1], [0, 0, 1, 1], [], []>} : vector<72x256xbf16>, vector<256x256xbf16>, vector<72x256xf32> -> vector<72x256xf32>
    %85 = arith.addf %73, %84 : vector<72x256xf32>
    %cst_45 = arith.constant 4.000000e+00 : f32
    %86 = vector.broadcast %cst_45 : f32 to vector<72x1xf32>
    %87 = arith.cmpf oeq, %36, %86 : vector<72x1xf32>
    %cst_46 = arith.constant 1.000000e+00 : f32
    %cst_47 = arith.constant 0.000000e+00 : f32
    %88 = vector.broadcast %cst_46 : f32 to vector<72x1xf32>
    %89 = vector.broadcast %cst_47 : f32 to vector<72x1xf32>
    %90 = arith.select %87, %88, %89 : vector<72x1xi1>, vector<72x1xf32>
    %91 = vector.broadcast %90 : vector<72x1xf32> to vector<72x256xf32>
    %92 = arith.mulf %35, %91 : vector<72x256xf32>
    %c4 = arith.constant 4 : index
    %c0_48 = arith.constant 0 : index
    %c0_49 = arith.constant 0 : index
    %93 = vector.load %arg4[%c4, %c0_48, %c0_49] : memref<6x256x256xbf16, #tpu.memory_space<vmem>>, vector<1x256x256xbf16>
    %94 = vector.shape_cast %93 : vector<1x256x256xbf16> to vector<256x256xbf16>
    %95 = arith.truncf %92 : vector<72x256xf32> to vector<72x256xbf16>
    %cst_50 = arith.constant dense<0.000000e+00> : vector<72x256xf32>
    %96 = tpu.matmul %95, %94, %cst_50 {dimension_numbers = #tpu.dot_dimension_numbers<[1], [0], [0], [1], [0, 0, 1, 1], [], []>} : vector<72x256xbf16>, vector<256x256xbf16>, vector<72x256xf32> -> vector<72x256xf32>
    %97 = arith.addf %85, %96 : vector<72x256xf32>
    %cst_51 = arith.constant 5.000000e+00 : f32
    %98 = vector.broadcast %cst_51 : f32 to vector<72x1xf32>
    %99 = arith.cmpf oeq, %36, %98 : vector<72x1xf32>
    %cst_52 = arith.constant 1.000000e+00 : f32
    %cst_53 = arith.constant 0.000000e+00 : f32
    %100 = vector.broadcast %cst_52 : f32 to vector<72x1xf32>
    %101 = vector.broadcast %cst_53 : f32 to vector<72x1xf32>
    %102 = arith.select %99, %100, %101 : vector<72x1xi1>, vector<72x1xf32>
    %103 = vector.broadcast %102 : vector<72x1xf32> to vector<72x256xf32>
    %104 = arith.mulf %35, %103 : vector<72x256xf32>
    %c5 = arith.constant 5 : index
    %c0_54 = arith.constant 0 : index
    %c0_55 = arith.constant 0 : index
    %105 = vector.load %arg4[%c5, %c0_54, %c0_55] : memref<6x256x256xbf16, #tpu.memory_space<vmem>>, vector<1x256x256xbf16>
    %106 = vector.shape_cast %105 : vector<1x256x256xbf16> to vector<256x256xbf16>
    %107 = arith.truncf %104 : vector<72x256xf32> to vector<72x256xbf16>
    %cst_56 = arith.constant dense<0.000000e+00> : vector<72x256xf32>
    %108 = tpu.matmul %107, %106, %cst_56 {dimension_numbers = #tpu.dot_dimension_numbers<[1], [0], [0], [1], [0, 0, 1, 1], [], []>} : vector<72x256xbf16>, vector<256x256xbf16>, vector<72x256xf32> -> vector<72x256xf32>
    %109 = arith.addf %97, %108 : vector<72x256xf32>
    %c0_57 = arith.constant 0 : index
    %c0_58 = arith.constant 0 : index
    %110 = vector.load %arg5[%c0_57, %c0_58] : memref<16x256xbf16, #tpu.memory_space<vmem>>, vector<16x256xbf16>
    %c0_59 = arith.constant 0 : index
    %c0_60 = arith.constant 0 : index
    %111 = vector.load %arg6[%c0_59, %c0_60] : memref<72x12xbf16, #tpu.memory_space<vmem>>, vector<72x12xbf16>
    %c0_61 = arith.constant 0 : index
    %c0_62 = arith.constant 0 : index
    %112 = vector.load %arg7[%c0_61, %c0_62] : memref<256x16xbf16, #tpu.memory_space<vmem>>, vector<256x16xbf16>
    %c0_63 = arith.constant 0 : index
    %c0_64 = arith.constant 0 : index
    %113 = vector.load %arg8[%c0_63, %c0_64] : memref<12x72xbf16, #tpu.memory_space<vmem>>, vector<12x72xbf16>
    %c0_65 = arith.constant 0 : index
    %c0_66 = arith.constant 0 : index
    %114 = vector.load %arg1[%c0_65, %c0_66] : memref<72x1xf32, #tpu.memory_space<vmem>>, vector<72x1xf32>
    %c0_67 = arith.constant 0 : index
    %c0_68 = arith.constant 0 : index
    %115 = vector.load %arg14[%c0_67, %c0_68] : memref<16x48xf32, #tpu.memory_space<vmem>>, vector<16x48xf32>
    %c0_69 = arith.constant 0 : index
    %c0_70 = arith.constant 0 : index
    %116 = vector.load %arg15[%c0_69, %c0_70] : memref<16x48xf32, #tpu.memory_space<vmem>>, vector<16x48xf32>
    %117 = vector.extract_strided_slice %0 {offsets = [4, 0], sizes = [1, 48], strides = [1, 1]} : vector<14x256xf32> to vector<1x48xf32>
    %118 = vector.extract_strided_slice %0 {offsets = [5, 0], sizes = [1, 48], strides = [1, 1]} : vector<14x256xf32> to vector<1x48xf32>
    %c0_71 = arith.constant 0 : index
    %c0_72 = arith.constant 0 : index
    %119 = vector.load %arg2[%c0_71, %c0_72] : memref<12x16xf32, #tpu.memory_space<vmem>>, vector<12x16xf32>
    %cst_73 = arith.constant dense<0.000000e+00> : vector<12xf32>
    %120 = vector.multi_reduction <add>, %119, %cst_73 [1] : vector<12x16xf32> to vector<12xf32>
    %121 = vector.shape_cast %120 : vector<12xf32> to vector<12x1xf32>
    %cst_74 = arith.constant 0.000000e+00 : f32
    %122 = vector.broadcast %cst_74 : f32 to vector<12x1xf32>
    %123 = arith.cmpf ogt, %121, %122 : vector<12x1xf32>
    %124 = arith.extui %123 : vector<12x1xi1> to vector<12x1xi32>
    %125 = arith.sitofp %124 : vector<12x1xi32> to vector<12x1xf32>
    %126 = arith.truncf %119 : vector<12x16xf32> to vector<12x16xbf16>
    %cst_75 = arith.constant dense<0.000000e+00> : vector<12x256xf32>
    %127 = tpu.matmul %126, %110, %cst_75 {dimension_numbers = #tpu.dot_dimension_numbers<[1], [0], [0], [1], [0, 0, 1, 1], [], []>} : vector<12x16xbf16>, vector<16x256xbf16>, vector<12x256xf32> -> vector<12x256xf32>
    %128 = arith.truncf %127 : vector<12x256xf32> to vector<12x256xbf16>
    %cst_76 = arith.constant dense<0.000000e+00> : vector<72x256xf32>
    %129 = tpu.matmul %111, %128, %cst_76 {dimension_numbers = #tpu.dot_dimension_numbers<[1], [0], [0], [1], [0, 0, 1, 1], [], []>} : vector<72x12xbf16>, vector<12x256xbf16>, vector<72x256xf32> -> vector<72x256xf32>
    %130 = arith.mulf %109, %129 : vector<72x256xf32>
    %131 = arith.truncf %130 : vector<72x256xf32> to vector<72x256xbf16>
    %cst_77 = arith.constant dense<0.000000e+00> : vector<72x16xf32>
    %132 = tpu.matmul %131, %112, %cst_77 {dimension_numbers = #tpu.dot_dimension_numbers<[1], [0], [0], [1], [0, 0, 1, 1], [], []>} : vector<72x256xbf16>, vector<256x16xbf16>, vector<72x16xf32> -> vector<72x16xf32>
    %133 = vector.broadcast %114 : vector<72x1xf32> to vector<72x16xf32>
    %134 = arith.mulf %132, %133 : vector<72x16xf32>
    %135 = arith.truncf %134 : vector<72x16xf32> to vector<72x16xbf16>
    %cst_78 = arith.constant dense<0.000000e+00> : vector<12x16xf32>
    %136 = tpu.matmul %113, %135, %cst_78 {dimension_numbers = #tpu.dot_dimension_numbers<[1], [0], [0], [1], [0, 0, 1, 1], [], []>} : vector<12x72xbf16>, vector<72x16xbf16>, vector<12x16xf32> -> vector<12x16xf32>
    %137 = arith.truncf %136 : vector<12x16xf32> to vector<12x16xbf16>
    %138 = arith.truncf %115 : vector<16x48xf32> to vector<16x48xbf16>
    %cst_79 = arith.constant dense<0.000000e+00> : vector<12x48xf32>
    %139 = tpu.matmul %137, %138, %cst_79 {dimension_numbers = #tpu.dot_dimension_numbers<[1], [0], [0], [1], [0, 0, 1, 1], [], []>} : vector<12x16xbf16>, vector<16x48xbf16>, vector<12x48xf32> -> vector<12x48xf32>
    %140 = vector.broadcast %117 : vector<1x48xf32> to vector<12x48xf32>
    %141 = arith.addf %139, %140 : vector<12x48xf32>
    %142 = arith.truncf %119 : vector<12x16xf32> to vector<12x16xbf16>
    %143 = arith.truncf %116 : vector<16x48xf32> to vector<16x48xbf16>
    %cst_80 = arith.constant dense<0.000000e+00> : vector<12x48xf32>
    %144 = tpu.matmul %142, %143, %cst_80 {dimension_numbers = #tpu.dot_dimension_numbers<[1], [0], [0], [1], [0, 0, 1, 1], [], []>} : vector<12x16xbf16>, vector<16x48xbf16>, vector<12x48xf32> -> vector<12x48xf32>
    %145 = vector.broadcast %118 : vector<1x48xf32> to vector<12x48xf32>
    %146 = arith.addf %144, %145 : vector<12x48xf32>
    %147 = vector.extract_strided_slice %141 {offsets = [0, 0], sizes = [12, 16], strides = [1, 1]} : vector<12x48xf32> to vector<12x16xf32>
    %148 = vector.extract_strided_slice %146 {offsets = [0, 0], sizes = [12, 16], strides = [1, 1]} : vector<12x48xf32> to vector<12x16xf32>
    %149 = arith.addf %147, %148 : vector<12x16xf32>
    %150 = arith.negf %149 : vector<12x16xf32>
    %151 = math.exp %150 : vector<12x16xf32>
    %cst_81 = arith.constant 1.000000e+00 : f32
    %152 = vector.broadcast %cst_81 : f32 to vector<12x16xf32>
    %153 = arith.addf %152, %151 : vector<12x16xf32>
    %154 = arith.divf %152, %153 : vector<12x16xf32>
    %155 = vector.extract_strided_slice %141 {offsets = [0, 16], sizes = [12, 16], strides = [1, 1]} : vector<12x48xf32> to vector<12x16xf32>
    %156 = vector.extract_strided_slice %146 {offsets = [0, 16], sizes = [12, 16], strides = [1, 1]} : vector<12x48xf32> to vector<12x16xf32>
    %157 = arith.addf %155, %156 : vector<12x16xf32>
    %158 = arith.negf %157 : vector<12x16xf32>
    %159 = math.exp %158 : vector<12x16xf32>
    %cst_82 = arith.constant 1.000000e+00 : f32
    %160 = vector.broadcast %cst_82 : f32 to vector<12x16xf32>
    %161 = arith.addf %160, %159 : vector<12x16xf32>
    %162 = arith.divf %160, %161 : vector<12x16xf32>
    %163 = vector.extract_strided_slice %141 {offsets = [0, 32], sizes = [12, 16], strides = [1, 1]} : vector<12x48xf32> to vector<12x16xf32>
    %164 = vector.extract_strided_slice %146 {offsets = [0, 32], sizes = [12, 16], strides = [1, 1]} : vector<12x48xf32> to vector<12x16xf32>
    %165 = arith.mulf %154, %164 : vector<12x16xf32>
    %166 = arith.addf %163, %165 : vector<12x16xf32>
    %167 = math.tanh %166 : vector<12x16xf32>
    %cst_83 = arith.constant 1.000000e+00 : f32
    %168 = vector.broadcast %cst_83 : f32 to vector<12x16xf32>
    %169 = arith.subf %168, %162 : vector<12x16xf32>
    %170 = arith.mulf %169, %167 : vector<12x16xf32>
    %171 = arith.mulf %162, %119 : vector<12x16xf32>
    %172 = arith.addf %170, %171 : vector<12x16xf32>
    %173 = vector.broadcast %125 : vector<12x1xf32> to vector<12x16xf32>
    %174 = arith.mulf %173, %172 : vector<12x16xf32>
    %175 = arith.truncf %174 : vector<12x16xf32> to vector<12x16xbf16>
    %cst_84 = arith.constant dense<0.000000e+00> : vector<12x256xf32>
    %176 = tpu.matmul %175, %110, %cst_84 {dimension_numbers = #tpu.dot_dimension_numbers<[1], [0], [0], [1], [0, 0, 1, 1], [], []>} : vector<12x16xbf16>, vector<16x256xbf16>, vector<12x256xf32> -> vector<12x256xf32>
    %177 = arith.truncf %176 : vector<12x256xf32> to vector<12x256xbf16>
    %cst_85 = arith.constant dense<0.000000e+00> : vector<72x256xf32>
    %178 = tpu.matmul %111, %177, %cst_85 {dimension_numbers = #tpu.dot_dimension_numbers<[1], [0], [0], [1], [0, 0, 1, 1], [], []>} : vector<72x12xbf16>, vector<12x256xbf16>, vector<72x256xf32> -> vector<72x256xf32>
    %179 = arith.mulf %109, %178 : vector<72x256xf32>
    %180 = arith.truncf %179 : vector<72x256xf32> to vector<72x256xbf16>
    %cst_86 = arith.constant dense<0.000000e+00> : vector<72x16xf32>
    %181 = tpu.matmul %180, %112, %cst_86 {dimension_numbers = #tpu.dot_dimension_numbers<[1], [0], [0], [1], [0, 0, 1, 1], [], []>} : vector<72x256xbf16>, vector<256x16xbf16>, vector<72x16xf32> -> vector<72x16xf32>
    %182 = vector.broadcast %114 : vector<72x1xf32> to vector<72x16xf32>
    %183 = arith.mulf %181, %182 : vector<72x16xf32>
    %184 = arith.truncf %183 : vector<72x16xf32> to vector<72x16xbf16>
    %cst_87 = arith.constant dense<0.000000e+00> : vector<12x16xf32>
    %185 = tpu.matmul %113, %184, %cst_87 {dimension_numbers = #tpu.dot_dimension_numbers<[1], [0], [0], [1], [0, 0, 1, 1], [], []>} : vector<12x72xbf16>, vector<72x16xbf16>, vector<12x16xf32> -> vector<12x16xf32>
    %186 = arith.truncf %185 : vector<12x16xf32> to vector<12x16xbf16>
    %187 = arith.truncf %115 : vector<16x48xf32> to vector<16x48xbf16>
    %cst_88 = arith.constant dense<0.000000e+00> : vector<12x48xf32>
    %188 = tpu.matmul %186, %187, %cst_88 {dimension_numbers = #tpu.dot_dimension_numbers<[1], [0], [0], [1], [0, 0, 1, 1], [], []>} : vector<12x16xbf16>, vector<16x48xbf16>, vector<12x48xf32> -> vector<12x48xf32>
    %189 = vector.broadcast %117 : vector<1x48xf32> to vector<12x48xf32>
    %190 = arith.addf %188, %189 : vector<12x48xf32>
    %191 = arith.truncf %174 : vector<12x16xf32> to vector<12x16xbf16>
    %192 = arith.truncf %116 : vector<16x48xf32> to vector<16x48xbf16>
    %cst_89 = arith.constant dense<0.000000e+00> : vector<12x48xf32>
    %193 = tpu.matmul %191, %192, %cst_89 {dimension_numbers = #tpu.dot_dimension_numbers<[1], [0], [0], [1], [0, 0, 1, 1], [], []>} : vector<12x16xbf16>, vector<16x48xbf16>, vector<12x48xf32> -> vector<12x48xf32>
    %194 = vector.broadcast %118 : vector<1x48xf32> to vector<12x48xf32>
    %195 = arith.addf %193, %194 : vector<12x48xf32>
    %196 = vector.extract_strided_slice %190 {offsets = [0, 0], sizes = [12, 16], strides = [1, 1]} : vector<12x48xf32> to vector<12x16xf32>
    %197 = vector.extract_strided_slice %195 {offsets = [0, 0], sizes = [12, 16], strides = [1, 1]} : vector<12x48xf32> to vector<12x16xf32>
    %198 = arith.addf %196, %197 : vector<12x16xf32>
    %199 = arith.negf %198 : vector<12x16xf32>
    %200 = math.exp %199 : vector<12x16xf32>
    %cst_90 = arith.constant 1.000000e+00 : f32
    %201 = vector.broadcast %cst_90 : f32 to vector<12x16xf32>
    %202 = arith.addf %201, %200 : vector<12x16xf32>
    %203 = arith.divf %201, %202 : vector<12x16xf32>
    %204 = vector.extract_strided_slice %190 {offsets = [0, 16], sizes = [12, 16], strides = [1, 1]} : vector<12x48xf32> to vector<12x16xf32>
    %205 = vector.extract_strided_slice %195 {offsets = [0, 16], sizes = [12, 16], strides = [1, 1]} : vector<12x48xf32> to vector<12x16xf32>
    %206 = arith.addf %204, %205 : vector<12x16xf32>
    %207 = arith.negf %206 : vector<12x16xf32>
    %208 = math.exp %207 : vector<12x16xf32>
    %cst_91 = arith.constant 1.000000e+00 : f32
    %209 = vector.broadcast %cst_91 : f32 to vector<12x16xf32>
    %210 = arith.addf %209, %208 : vector<12x16xf32>
    %211 = arith.divf %209, %210 : vector<12x16xf32>
    %212 = vector.extract_strided_slice %190 {offsets = [0, 32], sizes = [12, 16], strides = [1, 1]} : vector<12x48xf32> to vector<12x16xf32>
    %213 = vector.extract_strided_slice %195 {offsets = [0, 32], sizes = [12, 16], strides = [1, 1]} : vector<12x48xf32> to vector<12x16xf32>
    %214 = arith.mulf %203, %213 : vector<12x16xf32>
    %215 = arith.addf %212, %214 : vector<12x16xf32>
    %216 = math.tanh %215 : vector<12x16xf32>
    %cst_92 = arith.constant 1.000000e+00 : f32
    %217 = vector.broadcast %cst_92 : f32 to vector<12x16xf32>
    %218 = arith.subf %217, %211 : vector<12x16xf32>
    %219 = arith.mulf %218, %216 : vector<12x16xf32>
    %220 = arith.mulf %211, %174 : vector<12x16xf32>
    %221 = arith.addf %219, %220 : vector<12x16xf32>
    %222 = vector.broadcast %125 : vector<12x1xf32> to vector<12x16xf32>
    %223 = arith.mulf %222, %221 : vector<12x16xf32>
    %224 = tpu.concatenate %119, %223 in 1 : vector<12x16xf32>, vector<12x16xf32> -> vector<12x32xf32>
    %c0_93 = arith.constant 0 : index
    %c0_94 = arith.constant 0 : index
    %225 = vector.load %arg16[%c0_93, %c0_94] : memref<32x128xf32, #tpu.memory_space<vmem>>, vector<32x128xf32>
    %226 = arith.truncf %224 : vector<12x32xf32> to vector<12x32xbf16>
    %227 = arith.truncf %225 : vector<32x128xf32> to vector<32x128xbf16>
    %cst_95 = arith.constant dense<0.000000e+00> : vector<12x128xf32>
    %228 = tpu.matmul %226, %227, %cst_95 {dimension_numbers = #tpu.dot_dimension_numbers<[1], [0], [0], [1], [0, 0, 1, 1], [], []>} : vector<12x32xbf16>, vector<32x128xbf16>, vector<12x128xf32> -> vector<12x128xf32>
    %229 = vector.extract_strided_slice %0 {offsets = [6, 0], sizes = [1, 128], strides = [1, 1]} : vector<14x256xf32> to vector<1x128xf32>
    %230 = vector.broadcast %229 : vector<1x128xf32> to vector<12x128xf32>
    %231 = arith.addf %228, %230 : vector<12x128xf32>
    %cst_96 = arith.constant 0.000000e+00 : f32
    %232 = vector.broadcast %cst_96 : f32 to vector<12x128xf32>
    %233 = arith.maximumf %231, %232 : vector<12x128xf32>
    %c0_97 = arith.constant 0 : index
    %c0_98 = arith.constant 0 : index
    %234 = vector.load %arg17[%c0_97, %c0_98] : memref<128x256xf32, #tpu.memory_space<vmem>>, vector<128x256xf32>
    %235 = arith.truncf %233 : vector<12x128xf32> to vector<12x128xbf16>
    %236 = arith.truncf %234 : vector<128x256xf32> to vector<128x256xbf16>
    %cst_99 = arith.constant dense<0.000000e+00> : vector<12x256xf32>
    %237 = tpu.matmul %235, %236, %cst_99 {dimension_numbers = #tpu.dot_dimension_numbers<[1], [0], [0], [1], [0, 0, 1, 1], [], []>} : vector<12x128xbf16>, vector<128x256xbf16>, vector<12x256xf32> -> vector<12x256xf32>
    %238 = vector.extract_strided_slice %0 {offsets = [7, 0], sizes = [1, 256], strides = [1, 1]} : vector<14x256xf32> to vector<1x256xf32>
    %239 = vector.broadcast %238 : vector<1x256xf32> to vector<12x256xf32>
    %240 = arith.addf %237, %239 : vector<12x256xf32>
    %cst_100 = arith.constant 0.000000e+00 : f32
    %241 = vector.broadcast %cst_100 : f32 to vector<12x256xf32>
    %242 = arith.maximumf %240, %241 : vector<12x256xf32>
    %c0_101 = arith.constant 0 : index
    %c0_102 = arith.constant 0 : index
    %243 = vector.load %arg18[%c0_101, %c0_102] : memref<256x128xf32, #tpu.memory_space<vmem>>, vector<256x128xf32>
    %244 = arith.truncf %242 : vector<12x256xf32> to vector<12x256xbf16>
    %245 = arith.truncf %243 : vector<256x128xf32> to vector<256x128xbf16>
    %cst_103 = arith.constant dense<0.000000e+00> : vector<12x128xf32>
    %246 = tpu.matmul %244, %245, %cst_103 {dimension_numbers = #tpu.dot_dimension_numbers<[1], [0], [0], [1], [0, 0, 1, 1], [], []>} : vector<12x256xbf16>, vector<256x128xbf16>, vector<12x128xf32> -> vector<12x128xf32>
    %247 = vector.extract_strided_slice %0 {offsets = [8, 0], sizes = [1, 128], strides = [1, 1]} : vector<14x256xf32> to vector<1x128xf32>
    %248 = vector.broadcast %247 : vector<1x128xf32> to vector<12x128xf32>
    %249 = arith.addf %246, %248 : vector<12x128xf32>
    %cst_104 = arith.constant 0.000000e+00 : f32
    %250 = vector.broadcast %cst_104 : f32 to vector<12x128xf32>
    %251 = arith.maximumf %249, %250 : vector<12x128xf32>
    %c0_105 = arith.constant 0 : index
    %c0_106 = arith.constant 0 : index
    %252 = vector.load %arg19[%c0_105, %c0_106] : memref<128x128xf32, #tpu.memory_space<vmem>>, vector<128x128xf32>
    %253 = arith.truncf %251 : vector<12x128xf32> to vector<12x128xbf16>
    %254 = arith.truncf %252 : vector<128x128xf32> to vector<128x128xbf16>
    %cst_107 = arith.constant dense<0.000000e+00> : vector<12x128xf32>
    %255 = tpu.matmul %253, %254, %cst_107 {dimension_numbers = #tpu.dot_dimension_numbers<[1], [0], [0], [1], [0, 0, 1, 1], [], []>} : vector<12x128xbf16>, vector<128x128xbf16>, vector<12x128xf32> -> vector<12x128xf32>
    %256 = vector.extract_strided_slice %0 {offsets = [9, 0], sizes = [1, 128], strides = [1, 1]} : vector<14x256xf32> to vector<1x128xf32>
    %257 = vector.broadcast %256 : vector<1x128xf32> to vector<12x128xf32>
    %258 = arith.addf %255, %257 : vector<12x128xf32>
    %c0_108 = arith.constant 0 : index
    %c0_109 = arith.constant 0 : index
    %259 = vector.load %arg20[%c0_108, %c0_109] : memref<16x128xf32, #tpu.memory_space<vmem>>, vector<16x128xf32>
    %260 = arith.truncf %223 : vector<12x16xf32> to vector<12x16xbf16>
    %261 = arith.truncf %259 : vector<16x128xf32> to vector<16x128xbf16>
    %cst_110 = arith.constant dense<0.000000e+00> : vector<12x128xf32>
    %262 = tpu.matmul %260, %261, %cst_110 {dimension_numbers = #tpu.dot_dimension_numbers<[1], [0], [0], [1], [0, 0, 1, 1], [], []>} : vector<12x16xbf16>, vector<16x128xbf16>, vector<12x128xf32> -> vector<12x128xf32>
    %263 = vector.extract_strided_slice %0 {offsets = [10, 0], sizes = [1, 128], strides = [1, 1]} : vector<14x256xf32> to vector<1x128xf32>
    %264 = vector.broadcast %263 : vector<1x128xf32> to vector<12x128xf32>
    %265 = arith.addf %262, %264 : vector<12x128xf32>
    %cst_111 = arith.constant 0.000000e+00 : f32
    %266 = vector.broadcast %cst_111 : f32 to vector<12x128xf32>
    %267 = arith.maximumf %265, %266 : vector<12x128xf32>
    %c0_112 = arith.constant 0 : index
    %c0_113 = arith.constant 0 : index
    %268 = vector.load %arg21[%c0_112, %c0_113] : memref<128x256xf32, #tpu.memory_space<vmem>>, vector<128x256xf32>
    %269 = arith.truncf %267 : vector<12x128xf32> to vector<12x128xbf16>
    %270 = arith.truncf %268 : vector<128x256xf32> to vector<128x256xbf16>
    %cst_114 = arith.constant dense<0.000000e+00> : vector<12x256xf32>
    %271 = tpu.matmul %269, %270, %cst_114 {dimension_numbers = #tpu.dot_dimension_numbers<[1], [0], [0], [1], [0, 0, 1, 1], [], []>} : vector<12x128xbf16>, vector<128x256xbf16>, vector<12x256xf32> -> vector<12x256xf32>
    %272 = vector.extract_strided_slice %0 {offsets = [11, 0], sizes = [1, 256], strides = [1, 1]} : vector<14x256xf32> to vector<1x256xf32>
    %273 = vector.broadcast %272 : vector<1x256xf32> to vector<12x256xf32>
    %274 = arith.addf %271, %273 : vector<12x256xf32>
    %cst_115 = arith.constant 0.000000e+00 : f32
    %275 = vector.broadcast %cst_115 : f32 to vector<12x256xf32>
    %276 = arith.maximumf %274, %275 : vector<12x256xf32>
    %c0_116 = arith.constant 0 : index
    %c0_117 = arith.constant 0 : index
    %277 = vector.load %arg22[%c0_116, %c0_117] : memref<256x128xf32, #tpu.memory_space<vmem>>, vector<256x128xf32>
    %278 = arith.truncf %276 : vector<12x256xf32> to vector<12x256xbf16>
    %279 = arith.truncf %277 : vector<256x128xf32> to vector<256x128xbf16>
    %cst_118 = arith.constant dense<0.000000e+00> : vector<12x128xf32>
    %280 = tpu.matmul %278, %279, %cst_118 {dimension_numbers = #tpu.dot_dimension_numbers<[1], [0], [0], [1], [0, 0, 1, 1], [], []>} : vector<12x256xbf16>, vector<256x128xbf16>, vector<12x128xf32> -> vector<12x128xf32>
    %281 = vector.extract_strided_slice %0 {offsets = [12, 0], sizes = [1, 128], strides = [1, 1]} : vector<14x256xf32> to vector<1x128xf32>
    %282 = vector.broadcast %281 : vector<1x128xf32> to vector<12x128xf32>
    %283 = arith.addf %280, %282 : vector<12x128xf32>
    %cst_119 = arith.constant 0.000000e+00 : f32
    %284 = vector.broadcast %cst_119 : f32 to vector<12x128xf32>
    %285 = arith.maximumf %283, %284 : vector<12x128xf32>
    %c0_120 = arith.constant 0 : index
    %c0_121 = arith.constant 0 : index
    %286 = vector.load %arg23[%c0_120, %c0_121] : memref<128x128xf32, #tpu.memory_space<vmem>>, vector<128x128xf32>
    %287 = arith.truncf %285 : vector<12x128xf32> to vector<12x128xbf16>
    %288 = arith.truncf %286 : vector<128x128xf32> to vector<128x128xbf16>
    %cst_122 = arith.constant dense<0.000000e+00> : vector<12x128xf32>
    %289 = tpu.matmul %287, %288, %cst_122 {dimension_numbers = #tpu.dot_dimension_numbers<[1], [0], [0], [1], [0, 0, 1, 1], [], []>} : vector<12x128xbf16>, vector<128x128xbf16>, vector<12x128xf32> -> vector<12x128xf32>
    %290 = vector.extract_strided_slice %0 {offsets = [13, 0], sizes = [1, 128], strides = [1, 1]} : vector<14x256xf32> to vector<1x128xf32>
    %291 = vector.broadcast %290 : vector<1x128xf32> to vector<12x128xf32>
    %292 = arith.addf %289, %291 : vector<12x128xf32>
    %293 = arith.negf %258 : vector<12x128xf32>
    %294 = math.exp %293 : vector<12x128xf32>
    %cst_123 = arith.constant 1.000000e+00 : f32
    %295 = vector.broadcast %cst_123 : f32 to vector<12x128xf32>
    %296 = arith.addf %295, %294 : vector<12x128xf32>
    %297 = arith.divf %295, %296 : vector<12x128xf32>
    %298 = arith.mulf %297, %292 : vector<12x128xf32>
    %299 = vector.broadcast %125 : vector<12x1xf32> to vector<12x128xf32>
    %300 = arith.mulf %298, %299 : vector<12x128xf32>
    %c0_124 = arith.constant 0 : index
    %c0_125 = arith.constant 0 : index
    %301 = vector.load %arg9[%c0_124, %c0_125] : memref<2x12xbf16, #tpu.memory_space<vmem>>, vector<2x12xbf16>
    %302 = arith.truncf %300 : vector<12x128xf32> to vector<12x128xbf16>
    %cst_126 = arith.constant dense<0.000000e+00> : vector<2x128xf32>
    %303 = tpu.matmul %301, %302, %cst_126 {dimension_numbers = #tpu.dot_dimension_numbers<[1], [0], [0], [1], [0, 0, 1, 1], [], []>} : vector<2x12xbf16>, vector<12x128xbf16>, vector<2x128xf32> -> vector<2x128xf32>
    %304 = arith.negf %303 : vector<2x128xf32>
    %305 = math.exp %304 : vector<2x128xf32>
    %cst_127 = arith.constant 1.000000e+00 : f32
    %306 = vector.broadcast %cst_127 : f32 to vector<2x128xf32>
    %307 = arith.addf %306, %305 : vector<2x128xf32>
    %308 = arith.divf %306, %307 : vector<2x128xf32>
    %c0_128 = arith.constant 0 : index
    %c0_129 = arith.constant 0 : index
    %309 = vector.load %arg25[%c0_128, %c0_129] : memref<2x128xf32, #tpu.memory_space<vmem>>, vector<2x128xf32>
    tpu.vector_store %arg25[%c0_128, %c0_129], %308 {strides = array<i32>} : memref<2x128xf32, #tpu.memory_space<vmem>>, vector<2x128xf32>,
    return
  }
}

module attributes {stable_mosaic.version = 11 : i64} {
  func.func @_vit_kernel(%arg0: memref<16x16xf32, #tpu.memory_space<vmem>>, %arg1: memref<18x32xf32, #tpu.memory_space<vmem>>, %arg2: memref<18x16xbf16, #tpu.memory_space<vmem>>, %arg3: memref<18x18xf32, #tpu.memory_space<vmem>>, %arg4: memref<2x18xbf16, #tpu.memory_space<vmem>>, %arg5: memref<16x32xf32, #tpu.memory_space<vmem>>, %arg6: memref<2x32x192xf32, #tpu.memory_space<vmem>>, %arg7: memref<2x64x32xf32, #tpu.memory_space<vmem>>, %arg8: memref<2x32x64xf32, #tpu.memory_space<vmem>>, %arg9: memref<2x64x32xf32, #tpu.memory_space<vmem>>, %arg10: memref<32x128xf32, #tpu.memory_space<vmem>>, %arg11: memref<16x128xf32, #tpu.memory_space<vmem>>, %arg12: memref<2x128xf32, #tpu.memory_space<vmem>>) attributes {dimension_semantics = [], scalar_prefetch = 0 : i64, scratch_operands = 0 : i64, tpu.core_type = #tpu.core_type<tc>} {
    %c0 = arith.constant 0 : index
    %c0_0 = arith.constant 0 : index
    %0 = vector.load %arg11[%c0, %c0_0] : memref<16x128xf32, #tpu.memory_space<vmem>>, vector<16x128xf32>
    %c0_1 = arith.constant 0 : index
    %c0_2 = arith.constant 0 : index
    %1 = vector.load %arg0[%c0_1, %c0_2] : memref<16x16xf32, #tpu.memory_space<vmem>>, vector<16x16xf32>
    %c0_3 = arith.constant 0 : index
    %c0_4 = arith.constant 0 : index
    %2 = vector.load %arg5[%c0_3, %c0_4] : memref<16x32xf32, #tpu.memory_space<vmem>>, vector<16x32xf32>
    %3 = arith.truncf %1 : vector<16x16xf32> to vector<16x16xbf16>
    %4 = arith.truncf %2 : vector<16x32xf32> to vector<16x32xbf16>
    %cst = arith.constant dense<0.000000e+00> : vector<16x32xf32>
    %5 = tpu.matmul %3, %4, %cst {dimension_numbers = #tpu.dot_dimension_numbers<[1], [0], [0], [1], [0, 0, 1, 1], [], []>} : vector<16x16xbf16>, vector<16x32xbf16>, vector<16x32xf32> -> vector<16x32xf32>
    %6 = vector.extract_strided_slice %0 {offsets = [0, 0], sizes = [1, 32], strides = [1, 1]} : vector<16x128xf32> to vector<1x32xf32>
    %7 = vector.broadcast %6 : vector<1x32xf32> to vector<16x32xf32>
    %8 = arith.addf %5, %7 : vector<16x32xf32>
    %c0_5 = arith.constant 0 : index
    %c0_6 = arith.constant 0 : index
    %9 = vector.load %arg2[%c0_5, %c0_6] : memref<18x16xbf16, #tpu.memory_space<vmem>>, vector<18x16xbf16>
    %10 = arith.truncf %8 : vector<16x32xf32> to vector<16x32xbf16>
    %cst_7 = arith.constant dense<0.000000e+00> : vector<18x32xf32>
    %11 = tpu.matmul %9, %10, %cst_7 {dimension_numbers = #tpu.dot_dimension_numbers<[1], [0], [0], [1], [0, 0, 1, 1], [], []>} : vector<18x16xbf16>, vector<16x32xbf16>, vector<18x32xf32> -> vector<18x32xf32>
    %c0_8 = arith.constant 0 : index
    %c0_9 = arith.constant 0 : index
    %12 = vector.load %arg1[%c0_8, %c0_9] : memref<18x32xf32, #tpu.memory_space<vmem>>, vector<18x32xf32>
    %13 = arith.addf %11, %12 : vector<18x32xf32>
    %c0_10 = arith.constant 0 : index
    %c0_11 = arith.constant 0 : index
    %14 = vector.load %arg3[%c0_10, %c0_11] : memref<18x18xf32, #tpu.memory_space<vmem>>, vector<18x18xf32>
    %15 = vector.extract_strided_slice %0 {offsets = [2, 0], sizes = [1, 32], strides = [1, 1]} : vector<16x128xf32> to vector<1x32xf32>
    %16 = vector.extract_strided_slice %0 {offsets = [3, 0], sizes = [1, 32], strides = [1, 1]} : vector<16x128xf32> to vector<1x32xf32>
    %cst_12 = arith.constant dense<0.000000e+00> : vector<18xf32>
    %17 = vector.multi_reduction <add>, %13, %cst_12 [1] : vector<18x32xf32> to vector<18xf32>
    %18 = vector.shape_cast %17 : vector<18xf32> to vector<18x1xf32>
    %cst_13 = arith.constant 3.200000e+01 : f32
    %19 = vector.broadcast %cst_13 : f32 to vector<18x1xf32>
    %20 = arith.divf %18, %19 : vector<18x1xf32>
    %21 = vector.broadcast %20 : vector<18x1xf32> to vector<18x32xf32>
    %22 = arith.subf %13, %21 : vector<18x32xf32>
    %23 = arith.mulf %22, %22 : vector<18x32xf32>
    %cst_14 = arith.constant dense<0.000000e+00> : vector<18xf32>
    %24 = vector.multi_reduction <add>, %23, %cst_14 [1] : vector<18x32xf32> to vector<18xf32>
    %25 = vector.shape_cast %24 : vector<18xf32> to vector<18x1xf32>
    %cst_15 = arith.constant 3.200000e+01 : f32
    %26 = vector.broadcast %cst_15 : f32 to vector<18x1xf32>
    %27 = arith.divf %25, %26 : vector<18x1xf32>
    %28 = vector.broadcast %20 : vector<18x1xf32> to vector<18x32xf32>
    %29 = arith.subf %13, %28 : vector<18x32xf32>
    %cst_16 = arith.constant 9.99999974E-6 : f32
    %30 = vector.broadcast %cst_16 : f32 to vector<18x1xf32>
    %31 = arith.addf %27, %30 : vector<18x1xf32>
    %32 = math.rsqrt %31 : vector<18x1xf32>
    %33 = vector.broadcast %32 : vector<18x1xf32> to vector<18x32xf32>
    %34 = arith.mulf %29, %33 : vector<18x32xf32>
    %35 = vector.broadcast %15 : vector<1x32xf32> to vector<18x32xf32>
    %36 = arith.mulf %34, %35 : vector<18x32xf32>
    %37 = vector.broadcast %16 : vector<1x32xf32> to vector<18x32xf32>
    %38 = arith.addf %36, %37 : vector<18x32xf32>
    %c0_17 = arith.constant 0 : index
    %c0_18 = arith.constant 0 : index
    %c0_19 = arith.constant 0 : index
    %39 = vector.load %arg6[%c0_17, %c0_18, %c0_19] : memref<2x32x192xf32, #tpu.memory_space<vmem>>, vector<1x32x192xf32>
    %40 = vector.shape_cast %39 : vector<1x32x192xf32> to vector<32x192xf32>
    %41 = arith.truncf %38 : vector<18x32xf32> to vector<18x32xbf16>
    %42 = arith.truncf %40 : vector<32x192xf32> to vector<32x192xbf16>
    %cst_20 = arith.constant dense<0.000000e+00> : vector<18x192xf32>
    %43 = tpu.matmul %41, %42, %cst_20 {dimension_numbers = #tpu.dot_dimension_numbers<[1], [0], [0], [1], [0, 0, 1, 1], [], []>} : vector<18x32xbf16>, vector<32x192xbf16>, vector<18x192xf32> -> vector<18x192xf32>
    %c0_21 = arith.constant 0 : index
    %c0_22 = arith.constant 0 : index
    %c0_23 = arith.constant 0 : index
    %44 = vector.load %arg7[%c0_21, %c0_22, %c0_23] : memref<2x64x32xf32, #tpu.memory_space<vmem>>, vector<1x64x32xf32>
    %45 = vector.shape_cast %44 : vector<1x64x32xf32> to vector<64x32xf32>
    %cst_24 = arith.constant 0.000000e+00 : f32
    %46 = vector.broadcast %cst_24 : f32 to vector<18x32xf32>
    %47 = vector.extract_strided_slice %43 {offsets = [0, 0], sizes = [18, 16], strides = [1, 1]} : vector<18x192xf32> to vector<18x16xf32>
    %48 = vector.extract_strided_slice %43 {offsets = [0, 64], sizes = [18, 16], strides = [1, 1]} : vector<18x192xf32> to vector<18x16xf32>
    %49 = vector.extract_strided_slice %43 {offsets = [0, 128], sizes = [18, 16], strides = [1, 1]} : vector<18x192xf32> to vector<18x16xf32>
    %50 = arith.truncf %47 : vector<18x16xf32> to vector<18x16xbf16>
    %51 = arith.truncf %48 : vector<18x16xf32> to vector<18x16xbf16>
    %cst_25 = arith.constant dense<0.000000e+00> : vector<18x18xf32>
    %52 = tpu.matmul %50, %51, %cst_25 {dimension_numbers = #tpu.dot_dimension_numbers<[1], [1], [0], [0], [0, 0, 1, 0], [], []>} : vector<18x16xbf16>, vector<18x16xbf16>, vector<18x18xf32> -> vector<18x18xf32>
    %cst_26 = arith.constant 2.500000e-01 : f32
    %53 = vector.broadcast %cst_26 : f32 to vector<18x18xf32>
    %54 = arith.mulf %52, %53 : vector<18x18xf32>
    %55 = arith.addf %54, %14 : vector<18x18xf32>
    %cst_27 = arith.constant dense<0xFF800000> : vector<18xf32>
    %56 = vector.multi_reduction <maximumf>, %55, %cst_27 [1] : vector<18x18xf32> to vector<18xf32>
    %57 = vector.shape_cast %56 : vector<18xf32> to vector<18x1xf32>
    %58 = vector.broadcast %57 : vector<18x1xf32> to vector<18x18xf32>
    %59 = arith.subf %55, %58 : vector<18x18xf32>
    %60 = math.exp %59 : vector<18x18xf32>
    %cst_28 = arith.constant dense<0.000000e+00> : vector<18xf32>
    %61 = vector.multi_reduction <add>, %60, %cst_28 [1] : vector<18x18xf32> to vector<18xf32>
    %62 = vector.shape_cast %61 : vector<18xf32> to vector<18x1xf32>
    %63 = tpu.reciprocal %62 {approx = true} : vector<18x1xf32> -> vector<18x1xf32>
    %64 = vector.broadcast %63 : vector<18x1xf32> to vector<18x18xf32>
    %65 = arith.mulf %60, %64 : vector<18x18xf32>
    %66 = arith.truncf %65 : vector<18x18xf32> to vector<18x18xbf16>
    %67 = arith.truncf %49 : vector<18x16xf32> to vector<18x16xbf16>
    %cst_29 = arith.constant dense<0.000000e+00> : vector<18x16xf32>
    %68 = tpu.matmul %66, %67, %cst_29 {dimension_numbers = #tpu.dot_dimension_numbers<[1], [0], [0], [1], [0, 0, 1, 1], [], []>} : vector<18x18xbf16>, vector<18x16xbf16>, vector<18x16xf32> -> vector<18x16xf32>
    %69 = vector.extract_strided_slice %45 {offsets = [0, 0], sizes = [16, 32], strides = [1, 1]} : vector<64x32xf32> to vector<16x32xf32>
    %70 = arith.truncf %68 : vector<18x16xf32> to vector<18x16xbf16>
    %71 = arith.truncf %69 : vector<16x32xf32> to vector<16x32xbf16>
    %cst_30 = arith.constant dense<0.000000e+00> : vector<18x32xf32>
    %72 = tpu.matmul %70, %71, %cst_30 {dimension_numbers = #tpu.dot_dimension_numbers<[1], [0], [0], [1], [0, 0, 1, 1], [], []>} : vector<18x16xbf16>, vector<16x32xbf16>, vector<18x32xf32> -> vector<18x32xf32>
    %73 = arith.addf %46, %72 : vector<18x32xf32>
    %74 = vector.extract_strided_slice %43 {offsets = [0, 16], sizes = [18, 16], strides = [1, 1]} : vector<18x192xf32> to vector<18x16xf32>
    %75 = vector.extract_strided_slice %43 {offsets = [0, 80], sizes = [18, 16], strides = [1, 1]} : vector<18x192xf32> to vector<18x16xf32>
    %76 = vector.extract_strided_slice %43 {offsets = [0, 144], sizes = [18, 16], strides = [1, 1]} : vector<18x192xf32> to vector<18x16xf32>
    %77 = arith.truncf %74 : vector<18x16xf32> to vector<18x16xbf16>
    %78 = arith.truncf %75 : vector<18x16xf32> to vector<18x16xbf16>
    %cst_31 = arith.constant dense<0.000000e+00> : vector<18x18xf32>
    %79 = tpu.matmul %77, %78, %cst_31 {dimension_numbers = #tpu.dot_dimension_numbers<[1], [1], [0], [0], [0, 0, 1, 0], [], []>} : vector<18x16xbf16>, vector<18x16xbf16>, vector<18x18xf32> -> vector<18x18xf32>
    %cst_32 = arith.constant 2.500000e-01 : f32
    %80 = vector.broadcast %cst_32 : f32 to vector<18x18xf32>
    %81 = arith.mulf %79, %80 : vector<18x18xf32>
    %82 = arith.addf %81, %14 : vector<18x18xf32>
    %cst_33 = arith.constant dense<0xFF800000> : vector<18xf32>
    %83 = vector.multi_reduction <maximumf>, %82, %cst_33 [1] : vector<18x18xf32> to vector<18xf32>
    %84 = vector.shape_cast %83 : vector<18xf32> to vector<18x1xf32>
    %85 = vector.broadcast %84 : vector<18x1xf32> to vector<18x18xf32>
    %86 = arith.subf %82, %85 : vector<18x18xf32>
    %87 = math.exp %86 : vector<18x18xf32>
    %cst_34 = arith.constant dense<0.000000e+00> : vector<18xf32>
    %88 = vector.multi_reduction <add>, %87, %cst_34 [1] : vector<18x18xf32> to vector<18xf32>
    %89 = vector.shape_cast %88 : vector<18xf32> to vector<18x1xf32>
    %90 = tpu.reciprocal %89 {approx = true} : vector<18x1xf32> -> vector<18x1xf32>
    %91 = vector.broadcast %90 : vector<18x1xf32> to vector<18x18xf32>
    %92 = arith.mulf %87, %91 : vector<18x18xf32>
    %93 = arith.truncf %92 : vector<18x18xf32> to vector<18x18xbf16>
    %94 = arith.truncf %76 : vector<18x16xf32> to vector<18x16xbf16>
    %cst_35 = arith.constant dense<0.000000e+00> : vector<18x16xf32>
    %95 = tpu.matmul %93, %94, %cst_35 {dimension_numbers = #tpu.dot_dimension_numbers<[1], [0], [0], [1], [0, 0, 1, 1], [], []>} : vector<18x18xbf16>, vector<18x16xbf16>, vector<18x16xf32> -> vector<18x16xf32>
    %96 = vector.extract_strided_slice %45 {offsets = [16, 0], sizes = [16, 32], strides = [1, 1]} : vector<64x32xf32> to vector<16x32xf32>
    %97 = arith.truncf %95 : vector<18x16xf32> to vector<18x16xbf16>
    %98 = arith.truncf %96 : vector<16x32xf32> to vector<16x32xbf16>
    %cst_36 = arith.constant dense<0.000000e+00> : vector<18x32xf32>
    %99 = tpu.matmul %97, %98, %cst_36 {dimension_numbers = #tpu.dot_dimension_numbers<[1], [0], [0], [1], [0, 0, 1, 1], [], []>} : vector<18x16xbf16>, vector<16x32xbf16>, vector<18x32xf32> -> vector<18x32xf32>
    %100 = arith.addf %73, %99 : vector<18x32xf32>
    %101 = vector.extract_strided_slice %43 {offsets = [0, 32], sizes = [18, 16], strides = [1, 1]} : vector<18x192xf32> to vector<18x16xf32>
    %102 = vector.extract_strided_slice %43 {offsets = [0, 96], sizes = [18, 16], strides = [1, 1]} : vector<18x192xf32> to vector<18x16xf32>
    %103 = vector.extract_strided_slice %43 {offsets = [0, 160], sizes = [18, 16], strides = [1, 1]} : vector<18x192xf32> to vector<18x16xf32>
    %104 = arith.truncf %101 : vector<18x16xf32> to vector<18x16xbf16>
    %105 = arith.truncf %102 : vector<18x16xf32> to vector<18x16xbf16>
    %cst_37 = arith.constant dense<0.000000e+00> : vector<18x18xf32>
    %106 = tpu.matmul %104, %105, %cst_37 {dimension_numbers = #tpu.dot_dimension_numbers<[1], [1], [0], [0], [0, 0, 1, 0], [], []>} : vector<18x16xbf16>, vector<18x16xbf16>, vector<18x18xf32> -> vector<18x18xf32>
    %cst_38 = arith.constant 2.500000e-01 : f32
    %107 = vector.broadcast %cst_38 : f32 to vector<18x18xf32>
    %108 = arith.mulf %106, %107 : vector<18x18xf32>
    %109 = arith.addf %108, %14 : vector<18x18xf32>
    %cst_39 = arith.constant dense<0xFF800000> : vector<18xf32>
    %110 = vector.multi_reduction <maximumf>, %109, %cst_39 [1] : vector<18x18xf32> to vector<18xf32>
    %111 = vector.shape_cast %110 : vector<18xf32> to vector<18x1xf32>
    %112 = vector.broadcast %111 : vector<18x1xf32> to vector<18x18xf32>
    %113 = arith.subf %109, %112 : vector<18x18xf32>
    %114 = math.exp %113 : vector<18x18xf32>
    %cst_40 = arith.constant dense<0.000000e+00> : vector<18xf32>
    %115 = vector.multi_reduction <add>, %114, %cst_40 [1] : vector<18x18xf32> to vector<18xf32>
    %116 = vector.shape_cast %115 : vector<18xf32> to vector<18x1xf32>
    %117 = tpu.reciprocal %116 {approx = true} : vector<18x1xf32> -> vector<18x1xf32>
    %118 = vector.broadcast %117 : vector<18x1xf32> to vector<18x18xf32>
    %119 = arith.mulf %114, %118 : vector<18x18xf32>
    %120 = arith.truncf %119 : vector<18x18xf32> to vector<18x18xbf16>
    %121 = arith.truncf %103 : vector<18x16xf32> to vector<18x16xbf16>
    %cst_41 = arith.constant dense<0.000000e+00> : vector<18x16xf32>
    %122 = tpu.matmul %120, %121, %cst_41 {dimension_numbers = #tpu.dot_dimension_numbers<[1], [0], [0], [1], [0, 0, 1, 1], [], []>} : vector<18x18xbf16>, vector<18x16xbf16>, vector<18x16xf32> -> vector<18x16xf32>
    %123 = vector.extract_strided_slice %45 {offsets = [32, 0], sizes = [16, 32], strides = [1, 1]} : vector<64x32xf32> to vector<16x32xf32>
    %124 = arith.truncf %122 : vector<18x16xf32> to vector<18x16xbf16>
    %125 = arith.truncf %123 : vector<16x32xf32> to vector<16x32xbf16>
    %cst_42 = arith.constant dense<0.000000e+00> : vector<18x32xf32>
    %126 = tpu.matmul %124, %125, %cst_42 {dimension_numbers = #tpu.dot_dimension_numbers<[1], [0], [0], [1], [0, 0, 1, 1], [], []>} : vector<18x16xbf16>, vector<16x32xbf16>, vector<18x32xf32> -> vector<18x32xf32>
    %127 = arith.addf %100, %126 : vector<18x32xf32>
    %128 = vector.extract_strided_slice %43 {offsets = [0, 48], sizes = [18, 16], strides = [1, 1]} : vector<18x192xf32> to vector<18x16xf32>
    %129 = vector.extract_strided_slice %43 {offsets = [0, 112], sizes = [18, 16], strides = [1, 1]} : vector<18x192xf32> to vector<18x16xf32>
    %130 = vector.extract_strided_slice %43 {offsets = [0, 176], sizes = [18, 16], strides = [1, 1]} : vector<18x192xf32> to vector<18x16xf32>
    %131 = arith.truncf %128 : vector<18x16xf32> to vector<18x16xbf16>
    %132 = arith.truncf %129 : vector<18x16xf32> to vector<18x16xbf16>
    %cst_43 = arith.constant dense<0.000000e+00> : vector<18x18xf32>
    %133 = tpu.matmul %131, %132, %cst_43 {dimension_numbers = #tpu.dot_dimension_numbers<[1], [1], [0], [0], [0, 0, 1, 0], [], []>} : vector<18x16xbf16>, vector<18x16xbf16>, vector<18x18xf32> -> vector<18x18xf32>
    %cst_44 = arith.constant 2.500000e-01 : f32
    %134 = vector.broadcast %cst_44 : f32 to vector<18x18xf32>
    %135 = arith.mulf %133, %134 : vector<18x18xf32>
    %136 = arith.addf %135, %14 : vector<18x18xf32>
    %cst_45 = arith.constant dense<0xFF800000> : vector<18xf32>
    %137 = vector.multi_reduction <maximumf>, %136, %cst_45 [1] : vector<18x18xf32> to vector<18xf32>
    %138 = vector.shape_cast %137 : vector<18xf32> to vector<18x1xf32>
    %139 = vector.broadcast %138 : vector<18x1xf32> to vector<18x18xf32>
    %140 = arith.subf %136, %139 : vector<18x18xf32>
    %141 = math.exp %140 : vector<18x18xf32>
    %cst_46 = arith.constant dense<0.000000e+00> : vector<18xf32>
    %142 = vector.multi_reduction <add>, %141, %cst_46 [1] : vector<18x18xf32> to vector<18xf32>
    %143 = vector.shape_cast %142 : vector<18xf32> to vector<18x1xf32>
    %144 = tpu.reciprocal %143 {approx = true} : vector<18x1xf32> -> vector<18x1xf32>
    %145 = vector.broadcast %144 : vector<18x1xf32> to vector<18x18xf32>
    %146 = arith.mulf %141, %145 : vector<18x18xf32>
    %147 = arith.truncf %146 : vector<18x18xf32> to vector<18x18xbf16>
    %148 = arith.truncf %130 : vector<18x16xf32> to vector<18x16xbf16>
    %cst_47 = arith.constant dense<0.000000e+00> : vector<18x16xf32>
    %149 = tpu.matmul %147, %148, %cst_47 {dimension_numbers = #tpu.dot_dimension_numbers<[1], [0], [0], [1], [0, 0, 1, 1], [], []>} : vector<18x18xbf16>, vector<18x16xbf16>, vector<18x16xf32> -> vector<18x16xf32>
    %150 = vector.extract_strided_slice %45 {offsets = [48, 0], sizes = [16, 32], strides = [1, 1]} : vector<64x32xf32> to vector<16x32xf32>
    %151 = arith.truncf %149 : vector<18x16xf32> to vector<18x16xbf16>
    %152 = arith.truncf %150 : vector<16x32xf32> to vector<16x32xbf16>
    %cst_48 = arith.constant dense<0.000000e+00> : vector<18x32xf32>
    %153 = tpu.matmul %151, %152, %cst_48 {dimension_numbers = #tpu.dot_dimension_numbers<[1], [0], [0], [1], [0, 0, 1, 1], [], []>} : vector<18x16xbf16>, vector<16x32xbf16>, vector<18x32xf32> -> vector<18x32xf32>
    %154 = arith.addf %127, %153 : vector<18x32xf32>
    %155 = vector.extract_strided_slice %0 {offsets = [6, 0], sizes = [1, 32], strides = [1, 1]} : vector<16x128xf32> to vector<1x32xf32>
    %156 = vector.broadcast %155 : vector<1x32xf32> to vector<18x32xf32>
    %157 = arith.addf %154, %156 : vector<18x32xf32>
    %158 = arith.addf %157, %13 : vector<18x32xf32>
    %159 = vector.extract_strided_slice %0 {offsets = [4, 0], sizes = [1, 32], strides = [1, 1]} : vector<16x128xf32> to vector<1x32xf32>
    %160 = vector.extract_strided_slice %0 {offsets = [5, 0], sizes = [1, 32], strides = [1, 1]} : vector<16x128xf32> to vector<1x32xf32>
    %cst_49 = arith.constant dense<0.000000e+00> : vector<18xf32>
    %161 = vector.multi_reduction <add>, %158, %cst_49 [1] : vector<18x32xf32> to vector<18xf32>
    %162 = vector.shape_cast %161 : vector<18xf32> to vector<18x1xf32>
    %cst_50 = arith.constant 3.200000e+01 : f32
    %163 = vector.broadcast %cst_50 : f32 to vector<18x1xf32>
    %164 = arith.divf %162, %163 : vector<18x1xf32>
    %165 = vector.broadcast %164 : vector<18x1xf32> to vector<18x32xf32>
    %166 = arith.subf %158, %165 : vector<18x32xf32>
    %167 = arith.mulf %166, %166 : vector<18x32xf32>
    %cst_51 = arith.constant dense<0.000000e+00> : vector<18xf32>
    %168 = vector.multi_reduction <add>, %167, %cst_51 [1] : vector<18x32xf32> to vector<18xf32>
    %169 = vector.shape_cast %168 : vector<18xf32> to vector<18x1xf32>
    %cst_52 = arith.constant 3.200000e+01 : f32
    %170 = vector.broadcast %cst_52 : f32 to vector<18x1xf32>
    %171 = arith.divf %169, %170 : vector<18x1xf32>
    %172 = vector.broadcast %164 : vector<18x1xf32> to vector<18x32xf32>
    %173 = arith.subf %158, %172 : vector<18x32xf32>
    %cst_53 = arith.constant 9.99999974E-6 : f32
    %174 = vector.broadcast %cst_53 : f32 to vector<18x1xf32>
    %175 = arith.addf %171, %174 : vector<18x1xf32>
    %176 = math.rsqrt %175 : vector<18x1xf32>
    %177 = vector.broadcast %176 : vector<18x1xf32> to vector<18x32xf32>
    %178 = arith.mulf %173, %177 : vector<18x32xf32>
    %179 = vector.broadcast %159 : vector<1x32xf32> to vector<18x32xf32>
    %180 = arith.mulf %178, %179 : vector<18x32xf32>
    %181 = vector.broadcast %160 : vector<1x32xf32> to vector<18x32xf32>
    %182 = arith.addf %180, %181 : vector<18x32xf32>
    %c0_54 = arith.constant 0 : index
    %c0_55 = arith.constant 0 : index
    %c0_56 = arith.constant 0 : index
    %183 = vector.load %arg8[%c0_54, %c0_55, %c0_56] : memref<2x32x64xf32, #tpu.memory_space<vmem>>, vector<1x32x64xf32>
    %184 = vector.shape_cast %183 : vector<1x32x64xf32> to vector<32x64xf32>
    %185 = arith.truncf %182 : vector<18x32xf32> to vector<18x32xbf16>
    %186 = arith.truncf %184 : vector<32x64xf32> to vector<32x64xbf16>
    %cst_57 = arith.constant dense<0.000000e+00> : vector<18x64xf32>
    %187 = tpu.matmul %185, %186, %cst_57 {dimension_numbers = #tpu.dot_dimension_numbers<[1], [0], [0], [1], [0, 0, 1, 1], [], []>} : vector<18x32xbf16>, vector<32x64xbf16>, vector<18x64xf32> -> vector<18x64xf32>
    %188 = vector.extract_strided_slice %0 {offsets = [7, 0], sizes = [1, 64], strides = [1, 1]} : vector<16x128xf32> to vector<1x64xf32>
    %189 = vector.broadcast %188 : vector<1x64xf32> to vector<18x64xf32>
    %190 = arith.addf %187, %189 : vector<18x64xf32>
    %191 = arith.mulf %190, %190 : vector<18x64xf32>
    %192 = arith.mulf %190, %191 : vector<18x64xf32>
    %cst_58 = arith.constant 4.471500e-02 : f32
    %193 = vector.broadcast %cst_58 : f32 to vector<18x64xf32>
    %194 = arith.mulf %193, %192 : vector<18x64xf32>
    %195 = arith.addf %190, %194 : vector<18x64xf32>
    %cst_59 = arith.constant 0.797884583 : f32
    %196 = vector.broadcast %cst_59 : f32 to vector<18x64xf32>
    %197 = arith.mulf %196, %195 : vector<18x64xf32>
    %198 = math.tanh %197 : vector<18x64xf32>
    %cst_60 = arith.constant 1.000000e+00 : f32
    %199 = vector.broadcast %cst_60 : f32 to vector<18x64xf32>
    %200 = arith.addf %199, %198 : vector<18x64xf32>
    %cst_61 = arith.constant 5.000000e-01 : f32
    %201 = vector.broadcast %cst_61 : f32 to vector<18x64xf32>
    %202 = arith.mulf %201, %200 : vector<18x64xf32>
    %203 = arith.mulf %190, %202 : vector<18x64xf32>
    %c0_62 = arith.constant 0 : index
    %c0_63 = arith.constant 0 : index
    %c0_64 = arith.constant 0 : index
    %204 = vector.load %arg9[%c0_62, %c0_63, %c0_64] : memref<2x64x32xf32, #tpu.memory_space<vmem>>, vector<1x64x32xf32>
    %205 = vector.shape_cast %204 : vector<1x64x32xf32> to vector<64x32xf32>
    %206 = arith.truncf %203 : vector<18x64xf32> to vector<18x64xbf16>
    %207 = arith.truncf %205 : vector<64x32xf32> to vector<64x32xbf16>
    %cst_65 = arith.constant dense<0.000000e+00> : vector<18x32xf32>
    %208 = tpu.matmul %206, %207, %cst_65 {dimension_numbers = #tpu.dot_dimension_numbers<[1], [0], [0], [1], [0, 0, 1, 1], [], []>} : vector<18x64xbf16>, vector<64x32xbf16>, vector<18x32xf32> -> vector<18x32xf32>
    %209 = vector.extract_strided_slice %0 {offsets = [8, 0], sizes = [1, 32], strides = [1, 1]} : vector<16x128xf32> to vector<1x32xf32>
    %210 = vector.broadcast %209 : vector<1x32xf32> to vector<18x32xf32>
    %211 = arith.addf %208, %210 : vector<18x32xf32>
    %212 = arith.addf %211, %158 : vector<18x32xf32>
    %213 = vector.extract_strided_slice %0 {offsets = [9, 0], sizes = [1, 32], strides = [1, 1]} : vector<16x128xf32> to vector<1x32xf32>
    %214 = vector.extract_strided_slice %0 {offsets = [10, 0], sizes = [1, 32], strides = [1, 1]} : vector<16x128xf32> to vector<1x32xf32>
    %cst_66 = arith.constant dense<0.000000e+00> : vector<18xf32>
    %215 = vector.multi_reduction <add>, %212, %cst_66 [1] : vector<18x32xf32> to vector<18xf32>
    %216 = vector.shape_cast %215 : vector<18xf32> to vector<18x1xf32>
    %cst_67 = arith.constant 3.200000e+01 : f32
    %217 = vector.broadcast %cst_67 : f32 to vector<18x1xf32>
    %218 = arith.divf %216, %217 : vector<18x1xf32>
    %219 = vector.broadcast %218 : vector<18x1xf32> to vector<18x32xf32>
    %220 = arith.subf %212, %219 : vector<18x32xf32>
    %221 = arith.mulf %220, %220 : vector<18x32xf32>
    %cst_68 = arith.constant dense<0.000000e+00> : vector<18xf32>
    %222 = vector.multi_reduction <add>, %221, %cst_68 [1] : vector<18x32xf32> to vector<18xf32>
    %223 = vector.shape_cast %222 : vector<18xf32> to vector<18x1xf32>
    %cst_69 = arith.constant 3.200000e+01 : f32
    %224 = vector.broadcast %cst_69 : f32 to vector<18x1xf32>
    %225 = arith.divf %223, %224 : vector<18x1xf32>
    %226 = vector.broadcast %218 : vector<18x1xf32> to vector<18x32xf32>
    %227 = arith.subf %212, %226 : vector<18x32xf32>
    %cst_70 = arith.constant 9.99999974E-6 : f32
    %228 = vector.broadcast %cst_70 : f32 to vector<18x1xf32>
    %229 = arith.addf %225, %228 : vector<18x1xf32>
    %230 = math.rsqrt %229 : vector<18x1xf32>
    %231 = vector.broadcast %230 : vector<18x1xf32> to vector<18x32xf32>
    %232 = arith.mulf %227, %231 : vector<18x32xf32>
    %233 = vector.broadcast %213 : vector<1x32xf32> to vector<18x32xf32>
    %234 = arith.mulf %232, %233 : vector<18x32xf32>
    %235 = vector.broadcast %214 : vector<1x32xf32> to vector<18x32xf32>
    %236 = arith.addf %234, %235 : vector<18x32xf32>
    %c1 = arith.constant 1 : index
    %c0_71 = arith.constant 0 : index
    %c0_72 = arith.constant 0 : index
    %237 = vector.load %arg6[%c1, %c0_71, %c0_72] : memref<2x32x192xf32, #tpu.memory_space<vmem>>, vector<1x32x192xf32>
    %238 = vector.shape_cast %237 : vector<1x32x192xf32> to vector<32x192xf32>
    %239 = arith.truncf %236 : vector<18x32xf32> to vector<18x32xbf16>
    %240 = arith.truncf %238 : vector<32x192xf32> to vector<32x192xbf16>
    %cst_73 = arith.constant dense<0.000000e+00> : vector<18x192xf32>
    %241 = tpu.matmul %239, %240, %cst_73 {dimension_numbers = #tpu.dot_dimension_numbers<[1], [0], [0], [1], [0, 0, 1, 1], [], []>} : vector<18x32xbf16>, vector<32x192xbf16>, vector<18x192xf32> -> vector<18x192xf32>
    %c1_74 = arith.constant 1 : index
    %c0_75 = arith.constant 0 : index
    %c0_76 = arith.constant 0 : index
    %242 = vector.load %arg7[%c1_74, %c0_75, %c0_76] : memref<2x64x32xf32, #tpu.memory_space<vmem>>, vector<1x64x32xf32>
    %243 = vector.shape_cast %242 : vector<1x64x32xf32> to vector<64x32xf32>
    %cst_77 = arith.constant 0.000000e+00 : f32
    %244 = vector.broadcast %cst_77 : f32 to vector<18x32xf32>
    %245 = vector.extract_strided_slice %241 {offsets = [0, 0], sizes = [18, 16], strides = [1, 1]} : vector<18x192xf32> to vector<18x16xf32>
    %246 = vector.extract_strided_slice %241 {offsets = [0, 64], sizes = [18, 16], strides = [1, 1]} : vector<18x192xf32> to vector<18x16xf32>
    %247 = vector.extract_strided_slice %241 {offsets = [0, 128], sizes = [18, 16], strides = [1, 1]} : vector<18x192xf32> to vector<18x16xf32>
    %248 = arith.truncf %245 : vector<18x16xf32> to vector<18x16xbf16>
    %249 = arith.truncf %246 : vector<18x16xf32> to vector<18x16xbf16>
    %cst_78 = arith.constant dense<0.000000e+00> : vector<18x18xf32>
    %250 = tpu.matmul %248, %249, %cst_78 {dimension_numbers = #tpu.dot_dimension_numbers<[1], [1], [0], [0], [0, 0, 1, 0], [], []>} : vector<18x16xbf16>, vector<18x16xbf16>, vector<18x18xf32> -> vector<18x18xf32>
    %cst_79 = arith.constant 2.500000e-01 : f32
    %251 = vector.broadcast %cst_79 : f32 to vector<18x18xf32>
    %252 = arith.mulf %250, %251 : vector<18x18xf32>
    %253 = arith.addf %252, %14 : vector<18x18xf32>
    %cst_80 = arith.constant dense<0xFF800000> : vector<18xf32>
    %254 = vector.multi_reduction <maximumf>, %253, %cst_80 [1] : vector<18x18xf32> to vector<18xf32>
    %255 = vector.shape_cast %254 : vector<18xf32> to vector<18x1xf32>
    %256 = vector.broadcast %255 : vector<18x1xf32> to vector<18x18xf32>
    %257 = arith.subf %253, %256 : vector<18x18xf32>
    %258 = math.exp %257 : vector<18x18xf32>
    %cst_81 = arith.constant dense<0.000000e+00> : vector<18xf32>
    %259 = vector.multi_reduction <add>, %258, %cst_81 [1] : vector<18x18xf32> to vector<18xf32>
    %260 = vector.shape_cast %259 : vector<18xf32> to vector<18x1xf32>
    %261 = tpu.reciprocal %260 {approx = true} : vector<18x1xf32> -> vector<18x1xf32>
    %262 = vector.broadcast %261 : vector<18x1xf32> to vector<18x18xf32>
    %263 = arith.mulf %258, %262 : vector<18x18xf32>
    %264 = arith.truncf %263 : vector<18x18xf32> to vector<18x18xbf16>
    %265 = arith.truncf %247 : vector<18x16xf32> to vector<18x16xbf16>
    %cst_82 = arith.constant dense<0.000000e+00> : vector<18x16xf32>
    %266 = tpu.matmul %264, %265, %cst_82 {dimension_numbers = #tpu.dot_dimension_numbers<[1], [0], [0], [1], [0, 0, 1, 1], [], []>} : vector<18x18xbf16>, vector<18x16xbf16>, vector<18x16xf32> -> vector<18x16xf32>
    %267 = vector.extract_strided_slice %243 {offsets = [0, 0], sizes = [16, 32], strides = [1, 1]} : vector<64x32xf32> to vector<16x32xf32>
    %268 = arith.truncf %266 : vector<18x16xf32> to vector<18x16xbf16>
    %269 = arith.truncf %267 : vector<16x32xf32> to vector<16x32xbf16>
    %cst_83 = arith.constant dense<0.000000e+00> : vector<18x32xf32>
    %270 = tpu.matmul %268, %269, %cst_83 {dimension_numbers = #tpu.dot_dimension_numbers<[1], [0], [0], [1], [0, 0, 1, 1], [], []>} : vector<18x16xbf16>, vector<16x32xbf16>, vector<18x32xf32> -> vector<18x32xf32>
    %271 = arith.addf %244, %270 : vector<18x32xf32>
    %272 = vector.extract_strided_slice %241 {offsets = [0, 16], sizes = [18, 16], strides = [1, 1]} : vector<18x192xf32> to vector<18x16xf32>
    %273 = vector.extract_strided_slice %241 {offsets = [0, 80], sizes = [18, 16], strides = [1, 1]} : vector<18x192xf32> to vector<18x16xf32>
    %274 = vector.extract_strided_slice %241 {offsets = [0, 144], sizes = [18, 16], strides = [1, 1]} : vector<18x192xf32> to vector<18x16xf32>
    %275 = arith.truncf %272 : vector<18x16xf32> to vector<18x16xbf16>
    %276 = arith.truncf %273 : vector<18x16xf32> to vector<18x16xbf16>
    %cst_84 = arith.constant dense<0.000000e+00> : vector<18x18xf32>
    %277 = tpu.matmul %275, %276, %cst_84 {dimension_numbers = #tpu.dot_dimension_numbers<[1], [1], [0], [0], [0, 0, 1, 0], [], []>} : vector<18x16xbf16>, vector<18x16xbf16>, vector<18x18xf32> -> vector<18x18xf32>
    %cst_85 = arith.constant 2.500000e-01 : f32
    %278 = vector.broadcast %cst_85 : f32 to vector<18x18xf32>
    %279 = arith.mulf %277, %278 : vector<18x18xf32>
    %280 = arith.addf %279, %14 : vector<18x18xf32>
    %cst_86 = arith.constant dense<0xFF800000> : vector<18xf32>
    %281 = vector.multi_reduction <maximumf>, %280, %cst_86 [1] : vector<18x18xf32> to vector<18xf32>
    %282 = vector.shape_cast %281 : vector<18xf32> to vector<18x1xf32>
    %283 = vector.broadcast %282 : vector<18x1xf32> to vector<18x18xf32>
    %284 = arith.subf %280, %283 : vector<18x18xf32>
    %285 = math.exp %284 : vector<18x18xf32>
    %cst_87 = arith.constant dense<0.000000e+00> : vector<18xf32>
    %286 = vector.multi_reduction <add>, %285, %cst_87 [1] : vector<18x18xf32> to vector<18xf32>
    %287 = vector.shape_cast %286 : vector<18xf32> to vector<18x1xf32>
    %288 = tpu.reciprocal %287 {approx = true} : vector<18x1xf32> -> vector<18x1xf32>
    %289 = vector.broadcast %288 : vector<18x1xf32> to vector<18x18xf32>
    %290 = arith.mulf %285, %289 : vector<18x18xf32>
    %291 = arith.truncf %290 : vector<18x18xf32> to vector<18x18xbf16>
    %292 = arith.truncf %274 : vector<18x16xf32> to vector<18x16xbf16>
    %cst_88 = arith.constant dense<0.000000e+00> : vector<18x16xf32>
    %293 = tpu.matmul %291, %292, %cst_88 {dimension_numbers = #tpu.dot_dimension_numbers<[1], [0], [0], [1], [0, 0, 1, 1], [], []>} : vector<18x18xbf16>, vector<18x16xbf16>, vector<18x16xf32> -> vector<18x16xf32>
    %294 = vector.extract_strided_slice %243 {offsets = [16, 0], sizes = [16, 32], strides = [1, 1]} : vector<64x32xf32> to vector<16x32xf32>
    %295 = arith.truncf %293 : vector<18x16xf32> to vector<18x16xbf16>
    %296 = arith.truncf %294 : vector<16x32xf32> to vector<16x32xbf16>
    %cst_89 = arith.constant dense<0.000000e+00> : vector<18x32xf32>
    %297 = tpu.matmul %295, %296, %cst_89 {dimension_numbers = #tpu.dot_dimension_numbers<[1], [0], [0], [1], [0, 0, 1, 1], [], []>} : vector<18x16xbf16>, vector<16x32xbf16>, vector<18x32xf32> -> vector<18x32xf32>
    %298 = arith.addf %271, %297 : vector<18x32xf32>
    %299 = vector.extract_strided_slice %241 {offsets = [0, 32], sizes = [18, 16], strides = [1, 1]} : vector<18x192xf32> to vector<18x16xf32>
    %300 = vector.extract_strided_slice %241 {offsets = [0, 96], sizes = [18, 16], strides = [1, 1]} : vector<18x192xf32> to vector<18x16xf32>
    %301 = vector.extract_strided_slice %241 {offsets = [0, 160], sizes = [18, 16], strides = [1, 1]} : vector<18x192xf32> to vector<18x16xf32>
    %302 = arith.truncf %299 : vector<18x16xf32> to vector<18x16xbf16>
    %303 = arith.truncf %300 : vector<18x16xf32> to vector<18x16xbf16>
    %cst_90 = arith.constant dense<0.000000e+00> : vector<18x18xf32>
    %304 = tpu.matmul %302, %303, %cst_90 {dimension_numbers = #tpu.dot_dimension_numbers<[1], [1], [0], [0], [0, 0, 1, 0], [], []>} : vector<18x16xbf16>, vector<18x16xbf16>, vector<18x18xf32> -> vector<18x18xf32>
    %cst_91 = arith.constant 2.500000e-01 : f32
    %305 = vector.broadcast %cst_91 : f32 to vector<18x18xf32>
    %306 = arith.mulf %304, %305 : vector<18x18xf32>
    %307 = arith.addf %306, %14 : vector<18x18xf32>
    %cst_92 = arith.constant dense<0xFF800000> : vector<18xf32>
    %308 = vector.multi_reduction <maximumf>, %307, %cst_92 [1] : vector<18x18xf32> to vector<18xf32>
    %309 = vector.shape_cast %308 : vector<18xf32> to vector<18x1xf32>
    %310 = vector.broadcast %309 : vector<18x1xf32> to vector<18x18xf32>
    %311 = arith.subf %307, %310 : vector<18x18xf32>
    %312 = math.exp %311 : vector<18x18xf32>
    %cst_93 = arith.constant dense<0.000000e+00> : vector<18xf32>
    %313 = vector.multi_reduction <add>, %312, %cst_93 [1] : vector<18x18xf32> to vector<18xf32>
    %314 = vector.shape_cast %313 : vector<18xf32> to vector<18x1xf32>
    %315 = tpu.reciprocal %314 {approx = true} : vector<18x1xf32> -> vector<18x1xf32>
    %316 = vector.broadcast %315 : vector<18x1xf32> to vector<18x18xf32>
    %317 = arith.mulf %312, %316 : vector<18x18xf32>
    %318 = arith.truncf %317 : vector<18x18xf32> to vector<18x18xbf16>
    %319 = arith.truncf %301 : vector<18x16xf32> to vector<18x16xbf16>
    %cst_94 = arith.constant dense<0.000000e+00> : vector<18x16xf32>
    %320 = tpu.matmul %318, %319, %cst_94 {dimension_numbers = #tpu.dot_dimension_numbers<[1], [0], [0], [1], [0, 0, 1, 1], [], []>} : vector<18x18xbf16>, vector<18x16xbf16>, vector<18x16xf32> -> vector<18x16xf32>
    %321 = vector.extract_strided_slice %243 {offsets = [32, 0], sizes = [16, 32], strides = [1, 1]} : vector<64x32xf32> to vector<16x32xf32>
    %322 = arith.truncf %320 : vector<18x16xf32> to vector<18x16xbf16>
    %323 = arith.truncf %321 : vector<16x32xf32> to vector<16x32xbf16>
    %cst_95 = arith.constant dense<0.000000e+00> : vector<18x32xf32>
    %324 = tpu.matmul %322, %323, %cst_95 {dimension_numbers = #tpu.dot_dimension_numbers<[1], [0], [0], [1], [0, 0, 1, 1], [], []>} : vector<18x16xbf16>, vector<16x32xbf16>, vector<18x32xf32> -> vector<18x32xf32>
    %325 = arith.addf %298, %324 : vector<18x32xf32>
    %326 = vector.extract_strided_slice %241 {offsets = [0, 48], sizes = [18, 16], strides = [1, 1]} : vector<18x192xf32> to vector<18x16xf32>
    %327 = vector.extract_strided_slice %241 {offsets = [0, 112], sizes = [18, 16], strides = [1, 1]} : vector<18x192xf32> to vector<18x16xf32>
    %328 = vector.extract_strided_slice %241 {offsets = [0, 176], sizes = [18, 16], strides = [1, 1]} : vector<18x192xf32> to vector<18x16xf32>
    %329 = arith.truncf %326 : vector<18x16xf32> to vector<18x16xbf16>
    %330 = arith.truncf %327 : vector<18x16xf32> to vector<18x16xbf16>
    %cst_96 = arith.constant dense<0.000000e+00> : vector<18x18xf32>
    %331 = tpu.matmul %329, %330, %cst_96 {dimension_numbers = #tpu.dot_dimension_numbers<[1], [1], [0], [0], [0, 0, 1, 0], [], []>} : vector<18x16xbf16>, vector<18x16xbf16>, vector<18x18xf32> -> vector<18x18xf32>
    %cst_97 = arith.constant 2.500000e-01 : f32
    %332 = vector.broadcast %cst_97 : f32 to vector<18x18xf32>
    %333 = arith.mulf %331, %332 : vector<18x18xf32>
    %334 = arith.addf %333, %14 : vector<18x18xf32>
    %cst_98 = arith.constant dense<0xFF800000> : vector<18xf32>
    %335 = vector.multi_reduction <maximumf>, %334, %cst_98 [1] : vector<18x18xf32> to vector<18xf32>
    %336 = vector.shape_cast %335 : vector<18xf32> to vector<18x1xf32>
    %337 = vector.broadcast %336 : vector<18x1xf32> to vector<18x18xf32>
    %338 = arith.subf %334, %337 : vector<18x18xf32>
    %339 = math.exp %338 : vector<18x18xf32>
    %cst_99 = arith.constant dense<0.000000e+00> : vector<18xf32>
    %340 = vector.multi_reduction <add>, %339, %cst_99 [1] : vector<18x18xf32> to vector<18xf32>
    %341 = vector.shape_cast %340 : vector<18xf32> to vector<18x1xf32>
    %342 = tpu.reciprocal %341 {approx = true} : vector<18x1xf32> -> vector<18x1xf32>
    %343 = vector.broadcast %342 : vector<18x1xf32> to vector<18x18xf32>
    %344 = arith.mulf %339, %343 : vector<18x18xf32>
    %345 = arith.truncf %344 : vector<18x18xf32> to vector<18x18xbf16>
    %346 = arith.truncf %328 : vector<18x16xf32> to vector<18x16xbf16>
    %cst_100 = arith.constant dense<0.000000e+00> : vector<18x16xf32>
    %347 = tpu.matmul %345, %346, %cst_100 {dimension_numbers = #tpu.dot_dimension_numbers<[1], [0], [0], [1], [0, 0, 1, 1], [], []>} : vector<18x18xbf16>, vector<18x16xbf16>, vector<18x16xf32> -> vector<18x16xf32>
    %348 = vector.extract_strided_slice %243 {offsets = [48, 0], sizes = [16, 32], strides = [1, 1]} : vector<64x32xf32> to vector<16x32xf32>
    %349 = arith.truncf %347 : vector<18x16xf32> to vector<18x16xbf16>
    %350 = arith.truncf %348 : vector<16x32xf32> to vector<16x32xbf16>
    %cst_101 = arith.constant dense<0.000000e+00> : vector<18x32xf32>
    %351 = tpu.matmul %349, %350, %cst_101 {dimension_numbers = #tpu.dot_dimension_numbers<[1], [0], [0], [1], [0, 0, 1, 1], [], []>} : vector<18x16xbf16>, vector<16x32xbf16>, vector<18x32xf32> -> vector<18x32xf32>
    %352 = arith.addf %325, %351 : vector<18x32xf32>
    %353 = vector.extract_strided_slice %0 {offsets = [13, 0], sizes = [1, 32], strides = [1, 1]} : vector<16x128xf32> to vector<1x32xf32>
    %354 = vector.broadcast %353 : vector<1x32xf32> to vector<18x32xf32>
    %355 = arith.addf %352, %354 : vector<18x32xf32>
    %356 = arith.addf %355, %212 : vector<18x32xf32>
    %357 = vector.extract_strided_slice %0 {offsets = [11, 0], sizes = [1, 32], strides = [1, 1]} : vector<16x128xf32> to vector<1x32xf32>
    %358 = vector.extract_strided_slice %0 {offsets = [12, 0], sizes = [1, 32], strides = [1, 1]} : vector<16x128xf32> to vector<1x32xf32>
    %cst_102 = arith.constant dense<0.000000e+00> : vector<18xf32>
    %359 = vector.multi_reduction <add>, %356, %cst_102 [1] : vector<18x32xf32> to vector<18xf32>
    %360 = vector.shape_cast %359 : vector<18xf32> to vector<18x1xf32>
    %cst_103 = arith.constant 3.200000e+01 : f32
    %361 = vector.broadcast %cst_103 : f32 to vector<18x1xf32>
    %362 = arith.divf %360, %361 : vector<18x1xf32>
    %363 = vector.broadcast %362 : vector<18x1xf32> to vector<18x32xf32>
    %364 = arith.subf %356, %363 : vector<18x32xf32>
    %365 = arith.mulf %364, %364 : vector<18x32xf32>
    %cst_104 = arith.constant dense<0.000000e+00> : vector<18xf32>
    %366 = vector.multi_reduction <add>, %365, %cst_104 [1] : vector<18x32xf32> to vector<18xf32>
    %367 = vector.shape_cast %366 : vector<18xf32> to vector<18x1xf32>
    %cst_105 = arith.constant 3.200000e+01 : f32
    %368 = vector.broadcast %cst_105 : f32 to vector<18x1xf32>
    %369 = arith.divf %367, %368 : vector<18x1xf32>
    %370 = vector.broadcast %362 : vector<18x1xf32> to vector<18x32xf32>
    %371 = arith.subf %356, %370 : vector<18x32xf32>
    %cst_106 = arith.constant 9.99999974E-6 : f32
    %372 = vector.broadcast %cst_106 : f32 to vector<18x1xf32>
    %373 = arith.addf %369, %372 : vector<18x1xf32>
    %374 = math.rsqrt %373 : vector<18x1xf32>
    %375 = vector.broadcast %374 : vector<18x1xf32> to vector<18x32xf32>
    %376 = arith.mulf %371, %375 : vector<18x32xf32>
    %377 = vector.broadcast %357 : vector<1x32xf32> to vector<18x32xf32>
    %378 = arith.mulf %376, %377 : vector<18x32xf32>
    %379 = vector.broadcast %358 : vector<1x32xf32> to vector<18x32xf32>
    %380 = arith.addf %378, %379 : vector<18x32xf32>
    %c1_107 = arith.constant 1 : index
    %c0_108 = arith.constant 0 : index
    %c0_109 = arith.constant 0 : index
    %381 = vector.load %arg8[%c1_107, %c0_108, %c0_109] : memref<2x32x64xf32, #tpu.memory_space<vmem>>, vector<1x32x64xf32>
    %382 = vector.shape_cast %381 : vector<1x32x64xf32> to vector<32x64xf32>
    %383 = arith.truncf %380 : vector<18x32xf32> to vector<18x32xbf16>
    %384 = arith.truncf %382 : vector<32x64xf32> to vector<32x64xbf16>
    %cst_110 = arith.constant dense<0.000000e+00> : vector<18x64xf32>
    %385 = tpu.matmul %383, %384, %cst_110 {dimension_numbers = #tpu.dot_dimension_numbers<[1], [0], [0], [1], [0, 0, 1, 1], [], []>} : vector<18x32xbf16>, vector<32x64xbf16>, vector<18x64xf32> -> vector<18x64xf32>
    %386 = vector.extract_strided_slice %0 {offsets = [14, 0], sizes = [1, 64], strides = [1, 1]} : vector<16x128xf32> to vector<1x64xf32>
    %387 = vector.broadcast %386 : vector<1x64xf32> to vector<18x64xf32>
    %388 = arith.addf %385, %387 : vector<18x64xf32>
    %389 = arith.mulf %388, %388 : vector<18x64xf32>
    %390 = arith.mulf %388, %389 : vector<18x64xf32>
    %cst_111 = arith.constant 4.471500e-02 : f32
    %391 = vector.broadcast %cst_111 : f32 to vector<18x64xf32>
    %392 = arith.mulf %391, %390 : vector<18x64xf32>
    %393 = arith.addf %388, %392 : vector<18x64xf32>
    %cst_112 = arith.constant 0.797884583 : f32
    %394 = vector.broadcast %cst_112 : f32 to vector<18x64xf32>
    %395 = arith.mulf %394, %393 : vector<18x64xf32>
    %396 = math.tanh %395 : vector<18x64xf32>
    %cst_113 = arith.constant 1.000000e+00 : f32
    %397 = vector.broadcast %cst_113 : f32 to vector<18x64xf32>
    %398 = arith.addf %397, %396 : vector<18x64xf32>
    %cst_114 = arith.constant 5.000000e-01 : f32
    %399 = vector.broadcast %cst_114 : f32 to vector<18x64xf32>
    %400 = arith.mulf %399, %398 : vector<18x64xf32>
    %401 = arith.mulf %388, %400 : vector<18x64xf32>
    %c1_115 = arith.constant 1 : index
    %c0_116 = arith.constant 0 : index
    %c0_117 = arith.constant 0 : index
    %402 = vector.load %arg9[%c1_115, %c0_116, %c0_117] : memref<2x64x32xf32, #tpu.memory_space<vmem>>, vector<1x64x32xf32>
    %403 = vector.shape_cast %402 : vector<1x64x32xf32> to vector<64x32xf32>
    %404 = arith.truncf %401 : vector<18x64xf32> to vector<18x64xbf16>
    %405 = arith.truncf %403 : vector<64x32xf32> to vector<64x32xbf16>
    %cst_118 = arith.constant dense<0.000000e+00> : vector<18x32xf32>
    %406 = tpu.matmul %404, %405, %cst_118 {dimension_numbers = #tpu.dot_dimension_numbers<[1], [0], [0], [1], [0, 0, 1, 1], [], []>} : vector<18x64xbf16>, vector<64x32xbf16>, vector<18x32xf32> -> vector<18x32xf32>
    %407 = vector.extract_strided_slice %0 {offsets = [15, 0], sizes = [1, 32], strides = [1, 1]} : vector<16x128xf32> to vector<1x32xf32>
    %408 = vector.broadcast %407 : vector<1x32xf32> to vector<18x32xf32>
    %409 = arith.addf %406, %408 : vector<18x32xf32>
    %410 = arith.addf %409, %356 : vector<18x32xf32>
    %c0_119 = arith.constant 0 : index
    %c0_120 = arith.constant 0 : index
    %411 = vector.load %arg4[%c0_119, %c0_120] : memref<2x18xbf16, #tpu.memory_space<vmem>>, vector<2x18xbf16>
    %412 = arith.truncf %410 : vector<18x32xf32> to vector<18x32xbf16>
    %cst_121 = arith.constant dense<0.000000e+00> : vector<2x32xf32>
    %413 = tpu.matmul %411, %412, %cst_121 {dimension_numbers = #tpu.dot_dimension_numbers<[1], [0], [0], [1], [0, 0, 1, 1], [], []>} : vector<2x18xbf16>, vector<18x32xbf16>, vector<2x32xf32> -> vector<2x32xf32>
    %c0_122 = arith.constant 0 : index
    %c0_123 = arith.constant 0 : index
    %414 = vector.load %arg10[%c0_122, %c0_123] : memref<32x128xf32, #tpu.memory_space<vmem>>, vector<32x128xf32>
    %415 = arith.truncf %413 : vector<2x32xf32> to vector<2x32xbf16>
    %416 = arith.truncf %414 : vector<32x128xf32> to vector<32x128xbf16>
    %cst_124 = arith.constant dense<0.000000e+00> : vector<2x128xf32>
    %417 = tpu.matmul %415, %416, %cst_124 {dimension_numbers = #tpu.dot_dimension_numbers<[1], [0], [0], [1], [0, 0, 1, 1], [], []>} : vector<2x32xbf16>, vector<32x128xbf16>, vector<2x128xf32> -> vector<2x128xf32>
    %418 = vector.extract_strided_slice %0 {offsets = [1, 0], sizes = [1, 128], strides = [1, 1]} : vector<16x128xf32> to vector<1x128xf32>
    %419 = vector.broadcast %418 : vector<1x128xf32> to vector<2x128xf32>
    %420 = arith.addf %417, %419 : vector<2x128xf32>
    %421 = arith.negf %420 : vector<2x128xf32>
    %422 = math.exp %421 : vector<2x128xf32>
    %cst_125 = arith.constant 1.000000e+00 : f32
    %423 = vector.broadcast %cst_125 : f32 to vector<2x128xf32>
    %424 = arith.addf %423, %422 : vector<2x128xf32>
    %425 = arith.divf %423, %424 : vector<2x128xf32>
    %c0_126 = arith.constant 0 : index
    %c0_127 = arith.constant 0 : index
    %426 = vector.load %arg12[%c0_126, %c0_127] : memref<2x128xf32, #tpu.memory_space<vmem>>, vector<2x128xf32>
    tpu.vector_store %arg12[%c0_126, %c0_127], %425 {strides = array<i32>} : memref<2x128xf32, #tpu.memory_space<vmem>>, vector<2x128xf32>,
    return
  }
}

</mosaic_0001>

<bundles_post_ra>
// kernel: tile.9
= control target key start
LH: loop header
LB: loop body
LE: loop exit
PB: predicated region body
PF: predicated region fallthrough
CT: control target
= control target key end

     0   :  { %vm3_vm0 = vcmask 261120   ;;  %s6_s6 = smov 3  ;;  %s48_s0 = inlined_call_operand.vmem [shape: f32[2,9,32], index: 0, kind: input, shape index: {}]   ;;  %s49_s1 = inlined_call_operand.vmem [shape: f32[18,32], index: 1, kind: output, shape index: {}]  }
   0x1   :  { %v2_v0 = vld [vmem:[%s48_s0] sm:$0xff]   ;;  %v18_v2 = vld [vmem:[%s48_s0 + $0x11] sm:$0xff]  }
   0x2   :  { %v16_v1 = vld [vmem:[%s48_s0 + $0x8] ss:$8 sm:%s6_s6]   ;;  %4 = vst.msk [vmem:[%s49_s1] sm:$0xff] %vm3_vm0, %v2_v0   ;;  %19 = vst.msk [vmem:[%s49_s1 + $0xa] sm:$0xff] %vm3_vm0, %v18_v2  }
   0x3   :  { %17 = vst.msk [vmem:[%s49_s1 + $0x8] sm:$0x3] %vm3_vm0, %v16_v1  }

// kernel: _lambda_.2
= control target key start
LH: loop header
LB: loop body
LE: loop exit
PB: predicated region body
PF: predicated region fallthrough
CT: control target
= control target key end

     0   :  { %v9283_v0 = vmov 0.0   ;;  %vm121_vm0 = vcmask 1041408   ;;  %vm6187_vm1 = vmmov 0   ;;  %vm105_vm2 = vcmask 31744   ;;  %s9246_s10 = inlined_call_operand.vmem [shape: f32[4,128], index: 10, kind: input, shape index: {}]   ;;  %s9247_s0 = inlined_call_operand.vmem [shape: f32[72,4], index: 0, kind: input, shape index: {}]   ;;  %s9248_s11 = inlined_call_operand.vmem [shape: f32[128,256], index: 11, kind: input, shape index: {}]   ;;  %s9249_s12 = inlined_call_operand.vmem [shape: f32[256,128], index: 12, kind: input, shape index: {}]   ;;  %s9250_s24 = inlined_call_operand.vmem [shape: f32[14,256], index: 24, kind: input, shape index: {}]   ;;  %s9251_s13 = inlined_call_operand.vmem [shape: f32[128,256], index: 13, kind: input, shape index: {}]   ;;  %s9252_s3 = inlined_call_operand.vmem [shape: f32[72,1], index: 3, kind: input, shape index: {}]   ;;  %s9253_s4 = inlined_call_operand.vmem [shape: bf16[6,256,256], index: 4, kind: input, shape index: {}]   ;;  %s9254_s1 = inlined_call_operand.vmem [shape: f32[72,1], index: 1, kind: input, shape index: {}]   ;;  %s9255_s5 = inlined_call_operand.vmem [shape: bf16[16,256], index: 5, kind: input, shape index: {}]   ;;  %s9256_s2 = inlined_call_operand.vmem [shape: f32[12,16], index: 2, kind: input, shape index: {}]   ;;  %s9257_s6 = inlined_call_operand.vmem [shape: bf16[72,12], index: 6, kind: input, shape index: {}]   ;;  %s9258_s7 = inlined_call_operand.vmem [shape: bf16[256,16], index: 7, kind: input, shape index: {}]   ;;  %s9259_s8 = inlined_call_operand.vmem [shape: bf16[12,72], index: 8, kind: input, shape index: {}]   ;;  %s9260_s14 = inlined_call_operand.vmem [shape: f32[16,48], index: 14, kind: input, shape index: {}]   ;;  %s9261_s15 = inlined_call_operand.vmem [shape: f32[16,48], index: 15, kind: input, shape index: {}]   ;;  %s9262_s16 = inlined_call_operand.vmem [shape: f32[32,128], index: 16, kind: input, shape index: {}]   ;;  %s9263_s17 = inlined_call_operand.vmem [shape: f32[128,256], index: 17, kind: input, shape index: {}]   ;;  %s9264_s18 = inlined_call_operand.vmem [shape: f32[256,128], index: 18, kind: input, shape index: {}]   ;;  %s9265_s19 = inlined_call_operand.vmem [shape: f32[128,128], index: 19, kind: input, shape index: {}]   ;;  %s9266_s21 = inlined_call_operand.vmem [shape: f32[128,256], index: 21, kind: input, shape index: {}]   ;;  %s9267_s20 = inlined_call_operand.vmem [shape: f32[16,128], index: 20, kind: input, shape index: {}]   ;;  %s9268_s22 = inlined_call_operand.vmem [shape: f32[256,128], index: 22, kind: input, shape index: {}]   ;;  %s9269_s23 = inlined_call_operand.vmem [shape: f32[128,128], index: 23, kind: input, shape index: {}]   ;;  %s9270_s9 = inlined_call_operand.vmem [shape: bf16[2,12], index: 9, kind: input, shape index: {}]   ;;  %s9271_s25 = inlined_call_operand.vmem [shape: f32[2,128], index: 25, kind: output, shape index: {}]  }
   0x1   :  { %9351 = sst [smem:[#allocation44_spill]] %s9246_s10  ;;  %5465 = vmatprep.subr.bf16.mxu1 %v9283_v0  ;;  %5467 = vmatprep.mubr.msk.bf16.mxu1 %vm6187_vm1, %v9283_v0 }
   0x2   :  { %9352 = sst [smem:[#allocation45_spill]] %s9247_s0 }
   0x3   :  { %9353 = sst [smem:[#allocation46_spill]] %s9248_s11  ;;  %s9361_s11 = sld [smem:[#allocation44_spill]] }
   0x4   :  { %9354 = sst [smem:[#allocation47_spill]] %s9249_s12  ;;  %s9362_s12 = sld [smem:[#allocation45_spill]] }
   0x5   :  { %9355 = sst [smem:[#allocation48_spill]] %s9250_s24  ;;  %s9364_s27 = sld [smem:[#allocation47_spill]] }
   0x6   :  { %9356 = sst [smem:[#allocation49_spill]] %s9251_s13  ;;  %s9366_s13 = sld [smem:[#allocation48_spill]] }
   0x7   :  { %9357 = sst [smem:[#allocation50_spill]] %s9252_s3  ;;  %s9367_s0 = sld [smem:[#allocation49_spill]] }
   0x8   :  { %9358 = sst [smem:[#allocation51_spill]] %s9253_s4  ;;  %s9369_s24 = sld [smem:[#allocation50_spill]] }
   0x9   :  { %9359 = sst [smem:[#allocation52_spill]] %s9254_s1  ;;  %v94_v1 = vld [vmem:[%s9361_s11] sm:$0xf]  ;;  %s9370_s10 = sld [smem:[#allocation51_spill]] }
   0xa   :  { %9360 = sst [smem:[#allocation53_spill]] %s9255_s5  ;;  %v85_v2 = vld [vmem:[%s9362_s12] sm:$0xff]  ;;  %v86_v3 = vld [vmem:[%s9362_s12 + $0x8] sm:$0xff]  ;;  %v100_v4 = vpack.c.bf16 %v94_v1, %v94_v1  ;;  %s9363_s5 = sld [smem:[#allocation46_spill]]  ;;  %v87_v20 = vld [vmem:[%s9362_s12 + $0x10] sm:$0xff] }
   0xb   :  { %v95_v6 = vpack.c.bf16 %v86_v3, %v85_v2  ;;  %v88_v21 = vld [vmem:[%s9362_s12 + $0x18] sm:$0xff]  ;;  %v89_v35 = vld [vmem:[%s9362_s12 + $0x20] sm:$0xff]  ;;  %v90_v36 = vld [vmem:[%s9362_s12 + $0x28] sm:$0xff]  ;;  %v9285_v3 = vmov 0   ;;  %s9371_s28 = sld [smem:[#allocation52_spill]]  ;;  %s6190_s4 = smov 32  }
   0xc   :  { %v123_v5 = vsel %vm121_vm0, %v100_v4, 0  ;;  %v96_v28 = vpack.c.bf16 %v88_v21, %v87_v20  ;;  %v97_v43 = vpack.c.bf16 %v90_v36, %v89_v35  ;;  %v91_v48 = vld [vmem:[%s9362_s12 + $0x30] sm:$0xff]  ;;  %v92_v49 = vld [vmem:[%s9362_s12 + $0x38] sm:$0xff]  ;;  %v93_v52 = vld [vmem:[%s9362_s12 + $0x40] sm:$0xff]  ;;  %5706 = vset.pattern.permute.xlu0 %v9285_v3  ;;  %5717 = vset.pattern.permute.xlu1 %v9285_v3  ;;  %s9372_s12 = sld [smem:[#allocation53_spill]] }
   0xd   :  { %5466 = vmatpush3.bf16.msra.mxu1 %v123_v5  ;;  %v98_v51 = vpack.c.bf16 %v92_v49, %v91_v48  ;;  %v99_v53 = vpack.c.bf16 %v93_v52, %v93_v52  ;;  %v382_v4 = vld [vmem:[%s9364_s27 + $0x80] sm:$0xff]  ;;  %v383_v5 = vld [vmem:[%s9364_s27 + $0x88] sm:$0xff]  ;;  %v388_v21 = vld [vmem:[%s9364_s27 + $0xb0] sm:$0xff] }
   0xe   :  { %v371_v20 = vld [vmem:[%s9364_s27 + $0x28] sm:$0xff] }
  0x10   :  { %v207_v7 = vld [vmem:[%s9363_s5 + $0x8] sm:$0xff]  ;;  %v209_v8 = vld [vmem:[%s9363_s5 + $0x18] sm:$0xff]  ;;  %v206_v10 = vld [vmem:[%s9363_s5] sm:$0xff]  ;;  %5468 = vmatmul.mubr.msk.bf16.vlgmr.msra.gmra.mrb[0].mxu1 %vm105_vm2, %v95_v6 }
  0x11   :  { %v244_v9 = vpack.c.bf16 %v209_v8, %v207_v7  ;;  %v208_v11 = vld [vmem:[%s9363_s5 + $0x10] sm:$0xff]  ;;  %v211_v12 = vld [vmem:[%s9363_s5 + $0x28] sm:$0xff]  ;;  %v213_v14 = vld [vmem:[%s9363_s5 + $0x38] sm:$0xff]  ;;  %5471 = vmatprep.mubr.msk.bf16.mxu1 %vm6187_vm1, %v9283_v0  ;;  %v416_v7 = vpack.c.bf16 %v383_v5, %v382_v4 }
  0x12   :  { %v243_v13 = vpack.c.bf16 %v208_v11, %v206_v10  ;;  %v210_v15 = vld [vmem:[%s9363_s5 + $0x20] sm:$0xff]  ;;  %v212_v16 = vld [vmem:[%s9363_s5 + $0x30] sm:$0xff]  ;;  %v246_v17 = vpack.c.bf16 %v213_v14, %v211_v12  ;;  %v215_v18 = vld [vmem:[%s9363_s5 + $0x48] sm:$0xff] }
  0x13   :  { %267 = vmatprep.subr.bf16.mxu1 %v244_v9  ;;  %v217_v19 = vld [vmem:[%s9363_s5 + $0x58] sm:$0xff]  ;;  %v245_v22 = vpack.c.bf16 %v212_v16, %v210_v15  ;;  %v214_v24 = vld [vmem:[%s9363_s5 + $0x40] sm:$0xff]  ;;  %v216_v25 = vld [vmem:[%s9363_s5 + $0x50] sm:$0xff]  ;;  %5238 = vmatprep.subr.bf16.mxu0 %v416_v7 }
  0x14   :  { %268 = vmatpush1.bf16.msra.mxu1 %v243_v13  ;;  %v248_v23 = vpack.c.bf16 %v217_v19, %v215_v18  ;;  %v219_v26 = vld [vmem:[%s9363_s5 + $0x68] sm:$0xff]  ;;  %v221_v27 = vld [vmem:[%s9363_s5 + $0x78] sm:$0xff]  ;;  %v247_v29 = vpack.c.bf16 %v216_v25, %v214_v24  ;;  %v218_v31 = vld [vmem:[%s9363_s5 + $0x60] sm:$0xff] }
  0x15   :  { %269 = vmatprep.subr.bf16.mxu1 %v246_v17  ;;  %v250_v30 = vpack.c.bf16 %v221_v27, %v219_v26  ;;  %v220_v32 = vld [vmem:[%s9363_s5 + $0x70] sm:$0xff]  ;;  %v223_v33 = vld [vmem:[%s9363_s5 + $0x88] sm:$0xff]  ;;  %v225_v34 = vld [vmem:[%s9363_s5 + $0x98] sm:$0xff] }
  0x16   :  { %v249_v37 = vpack.c.bf16 %v220_v32, %v218_v31  ;;  %v252_v38 = vpack.c.bf16 %v225_v34, %v223_v33  ;;  %v222_v39 = vld [vmem:[%s9363_s5 + $0x80] sm:$0xff]  ;;  %v224_v40 = vld [vmem:[%s9363_s5 + $0x90] sm:$0xff]  ;;  %v227_v41 = vld [vmem:[%s9363_s5 + $0xa8] sm:$0xff] }
  0x17   :  { %v229_v42 = vld [vmem:[%s9363_s5 + $0xb8] sm:$0xff]  ;;  %v251_v44 = vpack.c.bf16 %v224_v40, %v222_v39  ;;  %v226_v46 = vld [vmem:[%s9363_s5 + $0xa0] sm:$0xff]  ;;  %v228_v47 = vld [vmem:[%s9363_s5 + $0xb0] sm:$0xff] }
  0x18   :  { %270 = vmatpush1.bf16.msra.mxu1 %v245_v22  ;;  %v254_v45 = vpack.c.bf16 %v229_v42, %v227_v41  ;;  %v253_v50 = vpack.c.bf16 %v228_v47, %v226_v46  ;;  %v231_v54 = vld [vmem:[%s9363_s5 + $0xc8] sm:$0xff]  ;;  %v233_v55 = vld [vmem:[%s9363_s5 + $0xd8] sm:$0xff]  ;;  %v230_v57 = vld [vmem:[%s9363_s5 + $0xc0] sm:$0xff] }
  0x19   :  { %271 = vmatprep.subr.bf16.mxu1 %v248_v23  ;;  %5472 = vmatmul.mubr.msk.bf16.gmra.mrb[4].mxu1 %vm105_vm2, %v96_v28  ;;  %v256_v56 = vpack.c.bf16 %v233_v55, %v231_v54  ;;  %v232_v58 = vld [vmem:[%s9363_s5 + $0xd0] sm:$0xff]  ;;  %v235_v60 = vld [vmem:[%s9363_s5 + $0xe8] sm:$0xff]  ;;  %v237_v61 = vld [vmem:[%s9363_s5 + $0xf8] sm:$0xff] }
  0x1a   :  { %5475 = vmatprep.mubr.msk.bf16.mxu1 %vm6187_vm1, %v9283_v0  ;;  %v255_v59 = vpack.c.bf16 %v232_v58, %v230_v57  ;;  %v258_v62 = vpack.c.bf16 %v237_v61, %v235_v60  ;;  %v234_v63 = vld [vmem:[%s9363_s5 + $0xe0] sm:$0xff]  ;;  %v236_v1 = vld [vmem:[%s9363_s5 + $0xf0] sm:$0xff]  ;;  %v367_v8 = vld [vmem:[%s9364_s27 + $0x8] sm:$0xff] }
  0x1b   :  { %v257_v2 = vpack.c.bf16 %v236_v1, %v234_v63  ;;  %v366_v6 = vld [vmem:[%s9364_s27] sm:$0xff]  ;;  %v384_v9 = vld [vmem:[%s9364_s27 + $0x90] sm:$0xff]  ;;  %v385_v10 = vld [vmem:[%s9364_s27 + $0x98] sm:$0xff] }
  0x1c   :  { %272 = vmatpush1.bf16.msra.mxu1 %v247_v29  ;;  %v408_v11 = vpack.c.bf16 %v367_v8, %v366_v6  ;;  %v417_v12 = vpack.c.bf16 %v385_v10, %v384_v9  ;;  %v368_v13 = vld [vmem:[%s9364_s27 + $0x10] sm:$0xff]  ;;  %v369_v14 = vld [vmem:[%s9364_s27 + $0x18] sm:$0xff]  ;;  %v386_v15 = vld [vmem:[%s9364_s27 + $0xa0] sm:$0xff] }
  0x1d   :  { %273 = vmatprep.subr.bf16.mxu1 %v250_v30  ;;  %v387_v16 = vld [vmem:[%s9364_s27 + $0xa8] sm:$0xff]  ;;  %v409_v17 = vpack.c.bf16 %v369_v14, %v368_v13  ;;  %v370_v19 = vld [vmem:[%s9364_s27 + $0x20] sm:$0xff]  ;;  %v389_v22 = vld [vmem:[%s9364_s27 + $0xb8] sm:$0xff] }
  0x1e   :  { %5239 = vmatpush3.bf16.msra.mxu0 %v408_v11  ;;  %v418_v18 = vpack.c.bf16 %v387_v16, %v386_v15  ;;  %v410_v23 = vpack.c.bf16 %v371_v20, %v370_v19  ;;  %v419_v24 = vpack.c.bf16 %v389_v22, %v388_v21  ;;  %v372_v25 = vld [vmem:[%s9364_s27 + $0x30] sm:$0xff]  ;;  %v373_v26 = vld [vmem:[%s9364_s27 + $0x38] sm:$0xff]  ;;  %v390_v27 = vld [vmem:[%s9364_s27 + $0xc0] sm:$0xff] }
  0x1f   :  { %5240 = vmatprep.subr.bf16.mxu0 %v417_v12  ;;  %v391_v28 = vld [vmem:[%s9364_s27 + $0xc8] sm:$0xff]  ;;  %v411_v29 = vpack.c.bf16 %v373_v26, %v372_v25  ;;  %v374_v31 = vld [vmem:[%s9364_s27 + $0x40] sm:$0xff]  ;;  %v392_v33 = vld [vmem:[%s9364_s27 + $0xd0] sm:$0xff] }
  0x20   :  { %274 = vmatpush1.bf16.msra.mxu1 %v249_v37  ;;  %v420_v30 = vpack.c.bf16 %v391_v28, %v390_v27  ;;  %v375_v32 = vld [vmem:[%s9364_s27 + $0x48] sm:$0xff]  ;;  %v393_v34 = vld [vmem:[%s9364_s27 + $0xd8] sm:$0xff]  ;;  %v101_v37 = vlaneseq  ;;  %v6540_v40 = vld [vmem:[%s9366_s13] sm:$0xff] }
  0x21   :  { %275 = vmatprep.subr.bf16.mxu1 %v252_v38  ;;  %5476 = vmatmul.mubr.msk.bf16.gmra.mrb[8].mxu1 %vm105_vm2, %v97_v43  ;;  %v412_v35 = vpack.c.bf16 %v375_v32, %v374_v31  ;;  %v421_v36 = vpack.c.bf16 %v393_v34, %v392_v33  ;;  %v394_v26 = vld [vmem:[%s9364_s27 + $0xe0] sm:$0xff]  ;;  %v395_v27 = vld [vmem:[%s9364_s27 + $0xe8] sm:$0xff]  ;;  %v396_v32 = vld [vmem:[%s9364_s27 + $0xf0] sm:$0xff] }
  0x22   :  { %5479 = vmatprep.mubr.msk.bf16.mxu1 %vm6187_vm1, %v9283_v0  ;;  %5241 = vmatpush3.bf16.msra.mxu0 %v409_v17  ;;  %v6534_v38 = vshrl.u32 %v101_v37, 7  ;;  %v422_v28 = vpack.c.bf16 %v395_v27, %v394_v26  ;;  %v397_v33 = vld [vmem:[%s9364_s27 + $0xf8] sm:$0xff] }
  0x23   :  { %5242 = vmatprep.subr.bf16.mxu0 %v418_v18  ;;  %v423_v34 = vpack.c.bf16 %v397_v33, %v396_v32 }
  0x24   :  { %276 = vmatpush1.bf16.msra.mxu1 %v251_v44  ;;  %9365 = vst [vmem:[#allocation2_spill] sm:$0xff] %v6534_v38  ;;  %v9282_v39 = vsub.s32 0, %v6534_v38 }
  0x25   :  { %277 = vmatprep.subr.bf16.mxu1 %v254_v45 }
  0x26   :  { %5243 = vmatpush3.bf16.msra.mxu0 %v410_v23  ;;  %v104_v41 = vrot.slane %v6540_v40, %v9282_v39  ;;  %v376_v23 = vld [vmem:[%s9364_s27 + $0x50] sm:$0xff] }
  0x27   :  { %5244 = vmatprep.subr.bf16.mxu0 %v419_v24  ;;  %v377_v24 = vld [vmem:[%s9364_s27 + $0x58] sm:$0xff] }
  0x28   :  { %278 = vmatpush1.bf16.msra.mxu1 %v253_v50  ;;  %v413_v25 = vpack.c.bf16 %v377_v24, %v376_v23 }
  0x29   :  { %5480 = vmatmul.mubr.msk.bf16.gmra.mrb[12].mxu1 %vm105_vm2, %v98_v51  ;;  %279 = vmatprep.subr.bf16.mxu1 %v256_v56 }
  0x2a   :  { %5483 = vmatprep.mubr.msk.bf16.mxu1 %vm6187_vm1, %v9283_v0  ;;  %5245 = vmatpush3.bf16.msra.mxu0 %v411_v29  ;;  %v378_v29 = vld [vmem:[%s9364_s27 + $0x60] sm:$0xff] }
  0x2b   :  { %5246 = vmatprep.subr.bf16.mxu0 %v420_v30  ;;  %v379_v30 = vld [vmem:[%s9364_s27 + $0x68] sm:$0xff] }
  0x2c   :  { %280 = vmatpush1.bf16.msra.mxu1 %v255_v59  ;;  %v414_v31 = vpack.c.bf16 %v379_v30, %v378_v29 }
  0x2d   :  { %281 = vmatprep.subr.bf16.mxu1 %v258_v62 }
  0x2e   :  { %5247 = vmatpush3.bf16.msra.mxu0 %v412_v35  ;;  %v380_v35 = vld [vmem:[%s9364_s27 + $0x70] sm:$0xff] }
  0x2f   :  { %5248 = vmatprep.subr.bf16.mxu0 %v421_v36  ;;  %v381_v36 = vld [vmem:[%s9364_s27 + $0x78] sm:$0xff] }
  0x30   :  { %282 = vmatpush1.bf16.msra.mxu1 %v257_v2  ;;  %v415_v37 = vpack.c.bf16 %v381_v36, %v380_v35 }
  0x31   :  { %5484 = vmatmul.mubr.msk.bf16.gmra.mrb[16].mxu1 %vm105_vm2, %v99_v53 }
  0x32   :  { %299 = vmatprep.mubr.bf16.mxu1 %v9285_v3  ;;  %5249 = vmatpush3.bf16.msra.mxu0 %v413_v25 }
  0x33   :  { %5250 = vmatprep.subr.bf16.mxu0 %v422_v28 }
  0x36   :  { %5251 = vmatpush3.bf16.msra.mxu0 %v414_v31 }
  0x37   :  { %5252 = vmatprep.subr.bf16.mxu0 %v423_v34 }
  0x3a   :  { %5253 = vmatpush3.bf16.msra.mxu0 %v415_v37 }
  0xe3   :  { %v159_v42 = vpop.f32.mrb[0].mxu1 }
  0xe4   :  { %v160_v43 = vadd.f32 %v159_v42, %v104_v41  ;;  %v5469_v44 = vpop.f32.mrb[1].mxu1  ;;  %v512_v42 = vld [vmem:[%s9367_s0 + $0x18] sm:$0xff] }
  0xe5   :  { %v162_v45 = vpop.f32.mrb[2].mxu1 }
  0xe6   :  { %v163_v46 = vadd.f32 %v162_v45, %v104_v41  ;;  %v5470_v47 = vpop.f32.mrb[3].mxu1  ;;  %v197_v48 = vmax.f32 %v160_v43, 0.0  ;;  %v509_v43 = vld [vmem:[%s9367_s0] sm:$0xff]  ;;  %v511_v45 = vld [vmem:[%s9367_s0 + $0x10] sm:$0xff] }
  0xe7   :  { %v516_v47 = vld [vmem:[%s9367_s0 + $0x38] sm:$0xff] }
  0xe8   :  { %v198_v49 = vmax.f32 %v163_v46, 0.0  ;;  %v514_v46 = vld [vmem:[%s9367_s0 + $0x28] sm:$0xff] }
  0xea   :  { %v238_v50 = vpack.c.bf16 %v198_v49, %v197_v48  ;;  %v546_v48 = vpack.c.bf16 %v511_v45, %v509_v43  ;;  %v549_v49 = vpack.c.bf16 %v516_v47, %v514_v46 }
  0xec   :  { %v167_v51 = vpop.f32.mrb[4].mxu1  ;;  %300 = vmatmul.mubr.bf16.vlgmr.msra.gmra.mrb[20].mxu1 %v238_v50  ;;  %v513_v50 = vld [vmem:[%s9367_s0 + $0x20] sm:$0xff] }
  0xed   :  { %v168_v52 = vadd.f32 %v167_v51, %v104_v41  ;;  %v5473_v53 = vpop.f32.mrb[5].mxu1  ;;  %309 = vmatprep.mubr.bf16.mxu1 %v9285_v3  ;;  %v515_v51 = vld [vmem:[%s9367_s0 + $0x30] sm:$0xff] }
  0xee   :  { %v170_v54 = vpop.f32.mrb[6].mxu1  ;;  %v520_v53 = vld [vmem:[%s9367_s0 + $0x58] sm:$0xff] }
  0xef   :  { %v199_v55 = vmax.f32 %v168_v52, 0.0  ;;  %v171_v56 = vadd.f32 %v170_v54, %v104_v41  ;;  %v5474_v57 = vpop.f32.mrb[7].mxu1  ;;  %v518_v52 = vld [vmem:[%s9367_s0 + $0x48] sm:$0xff]  ;;  %v548_v54 = vpack.c.bf16 %v515_v51, %v513_v50 }
  0xf0   :  { %v519_v57 = vld [vmem:[%s9367_s0 + $0x50] sm:$0xff] }
  0xf1   :  { %v200_v58 = vmax.f32 %v171_v56, 0.0  ;;  %v517_v56 = vld [vmem:[%s9367_s0 + $0x40] sm:$0xff] }
  0xf3   :  { %v239_v59 = vpack.c.bf16 %v200_v58, %v199_v55  ;;  %v551_v55 = vpack.c.bf16 %v520_v53, %v518_v52  ;;  %v522_v58 = vld [vmem:[%s9367_s0 + $0x68] sm:$0xff] }
  0xf4   :  { %v175_v60 = vpop.f32.mrb[8].mxu1 }
  0xf5   :  { %v176_v61 = vadd.f32 %v175_v60, %v104_v41  ;;  %v5477_v62 = vpop.f32.mrb[9].mxu1  ;;  %310 = vmatmul.mubr.bf16.gmra.mrb[24].mxu1 %v239_v59  ;;  %v524_v59 = vld [vmem:[%s9367_s0 + $0x78] sm:$0xff]  ;;  %v550_v60 = vpack.c.bf16 %v519_v57, %v517_v56 }
  0xf6   :  { %v178_v63 = vpop.f32.mrb[10].mxu1  ;;  %319 = vmatprep.mubr.bf16.mxu1 %v9285_v3  ;;  %v521_v62 = vld [vmem:[%s9367_s0 + $0x60] sm:$0xff] }
  0xf7   :  { %v201_v1 = vmax.f32 %v176_v61, 0.0  ;;  %v179_v2 = vadd.f32 %v178_v63, %v104_v41  ;;  %v5478_v4 = vpop.f32.mrb[11].mxu1  ;;  %v553_v61 = vpack.c.bf16 %v524_v59, %v522_v58  ;;  %v523_v63 = vld [vmem:[%s9367_s0 + $0x70] sm:$0xff] }
  0xf8   :  { %v552_v4 = vpack.c.bf16 %v523_v63, %v521_v62 }
  0xf9   :  { %v202_v5 = vmax.f32 %v179_v2, 0.0  ;;  %v528_v2 = vld [vmem:[%s9367_s0 + $0x98] sm:$0xff] }
  0xfb   :  { %v240_v6 = vpack.c.bf16 %v202_v5, %v201_v1  ;;  %v526_v1 = vld [vmem:[%s9367_s0 + $0x88] sm:$0xff] }
  0xfc   :  { %v183_v7 = vpop.f32.mrb[12].mxu1  ;;  %v555_v5 = vpack.c.bf16 %v528_v2, %v526_v1 }
  0xfd   :  { %v184_v8 = vadd.f32 %v183_v7, %v104_v41  ;;  %v5481_v9 = vpop.f32.mrb[13].mxu1  ;;  %320 = vmatmul.mubr.bf16.gmra.mrb[28].mxu1 %v240_v6  ;;  %v525_v6 = vld [vmem:[%s9367_s0 + $0x80] sm:$0xff]  ;;  %v527_v7 = vld [vmem:[%s9367_s0 + $0x90] sm:$0xff] }
  0xfe   :  { %v186_v10 = vpop.f32.mrb[14].mxu1  ;;  %329 = vmatprep.mubr.bf16.mxu1 %v9285_v3  ;;  %v6641_v9 = vsub.s32 1, %v6534_v38 }
  0xff   :  { %v203_v11 = vmax.f32 %v184_v8, 0.0  ;;  %v187_v12 = vadd.f32 %v186_v10, %v104_v41  ;;  %v5482_v13 = vpop.f32.mrb[15].mxu1  ;;  %v554_v8 = vpack.c.bf16 %v527_v7, %v525_v6  ;;  %v82_v10 = vld [vmem:[%s9366_s13 + $0x8] sm:$0xff] }
 0x100   :  { %9368 = vst [vmem:[#allocation3_spill] sm:$0xff] %v6641_v9 }
 0x101   :  { %v204_v14 = vmax.f32 %v187_v12, 0.0  ;;  %v6651_v12 = vrot.slane %v82_v10, %v6641_v9 }
 0x103   :  { %v241_v15 = vpack.c.bf16 %v204_v14, %v203_v11  ;;  %v6648_v11 = vrot.slane %v6540_v40, %v6641_v9 }
 0x104   :  { %v191_v16 = vpop.f32.mrb[16].mxu1 }
 0x105   :  { %330 = vmatmul.mubr.bf16.gmra.mrb[32].mxu1 %v241_v15  ;;  %v192_v17 = vadd.f32 %v191_v16, %v104_v41  ;;  %v5485_v18 = vpop.f32.mrb[17].mxu1  ;;  %v510_v41 = vld [vmem:[%s9367_s0 + $0x8] sm:$0xff] }
 0x106   :  { %339 = vmatprep.mubr.bf16.mxu1 %v9285_v3  ;;  %v194_v19 = vpop.f32.mrb[18].mxu1  ;;  %v547_v44 = vpack.c.bf16 %v512_v42, %v510_v41 }
 0x107   :  { %v205_v20 = vmax.f32 %v192_v17, 0.0  ;;  %v5486_v21 = vpop.f32.mrb[19].mxu1 }
 0x108   :  { %570 = vmatprep.subr.bf16.mxu1 %v547_v44 }
 0x109   :  { %v242_v22 = vpack.c.bf16 %v205_v20, %v205_v20  ;;  %571 = vmatpush1.bf16.msra.mxu1 %v546_v48 }
 0x10a   :  { %572 = vmatprep.subr.bf16.mxu1 %v549_v49 }
 0x10d   :  { %340 = vmatmul.mubr.bf16.gmra.mrb[36].mxu1 %v242_v22 }
 0x10e   :  { %602 = vmatprep.mubr.bf16.mxu1 %v9285_v3  ;;  %573 = vmatpush1.bf16.msra.mxu1 %v548_v54 }
 0x10f   :  { %574 = vmatprep.subr.bf16.mxu1 %v551_v55 }
 0x112   :  { %575 = vmatpush1.bf16.msra.mxu1 %v550_v60 }
 0x113   :  { %576 = vmatprep.subr.bf16.mxu1 %v553_v61 }
 0x116   :  { %577 = vmatpush1.bf16.msra.mxu1 %v552_v4 }
 0x117   :  { %578 = vmatprep.subr.bf16.mxu1 %v555_v5 }
 0x11a   :  { %579 = vmatpush1.bf16.msra.mxu1 %v554_v8 }
 0x1bf   :  { %v301_v13 = vpop.f32.mrb[20].mxu1 }
 0x1c0   :  { %v302_v14 = vadd.f32 %v301_v13, %v6648_v11  ;;  %v303_v15 = vpop.f32.mrb[21].mxu1 }
 0x1c1   :  { %v304_v16 = vadd.f32 %v303_v15, %v6651_v12  ;;  %v305_v17 = vpop.f32.mrb[22].mxu1 }
 0x1c2   :  { %v306_v18 = vadd.f32 %v305_v17, %v6648_v11  ;;  %v307_v19 = vpop.f32.mrb[23].mxu1  ;;  %v348_v21 = vmax.f32 %v302_v14, 0.0 }
 0x1c3   :  { %v308_v20 = vadd.f32 %v307_v19, %v6651_v12  ;;  %v349_v23 = vmax.f32 %v304_v16, 0.0 }
 0x1c4   :  { %v350_v22 = vmax.f32 %v306_v18, 0.0 }
 0x1c5   :  { %v351_v40 = vmax.f32 %v308_v20, 0.0 }
 0x1c6   :  { %v398_v24 = vpack.c.bf16 %v350_v22, %v348_v21  ;;  %v530_v22 = vld [vmem:[%s9367_s0 + $0xa8] sm:$0xff] }
 0x1c7   :  { %v399_v26 = vpack.c.bf16 %v351_v40, %v349_v23  ;;  %v531_v40 = vld [vmem:[%s9367_s0 + $0xb0] sm:$0xff] }
 0x1c8   :  { %v311_v25 = vpop.f32.mrb[24].mxu1 }
 0x1c9   :  { %v312_v27 = vadd.f32 %v311_v25, %v6648_v11  ;;  %v313_v28 = vpop.f32.mrb[25].mxu1  ;;  %460 = vmatprep.mubr.bf16.mxu0 %v399_v26  ;;  %v534_v25 = vld [vmem:[%s9367_s0 + $0xc8] sm:$0xff]  ;;  %v536_v26 = vld [vmem:[%s9367_s0 + $0xd8] sm:$0xff] }
 0x1ca   :  { %v314_v29 = vadd.f32 %v313_v28, %v6651_v12  ;;  %v315_v30 = vpop.f32.mrb[26].mxu1  ;;  %461 = vmatmul.mubr.bf16.vlgmr.msra.gmra.mrb[0].mxu0 %v398_v24  ;;  %v533_v28 = vld [vmem:[%s9367_s0 + $0xc0] sm:$0xff] }
 0x1cb   :  { %v352_v31 = vmax.f32 %v312_v27, 0.0  ;;  %v316_v32 = vadd.f32 %v315_v30, %v6648_v11  ;;  %v317_v33 = vpop.f32.mrb[27].mxu1  ;;  %v559_v27 = vpack.c.bf16 %v536_v26, %v534_v25  ;;  %v5831_v26 = vld [vmem:[%s9370_s10 + $0x110] ss:$8 sps:$4 sm:$0xff]  }
 0x1cc   :  { %v353_v34 = vmax.f32 %v314_v29, 0.0  ;;  %v318_v35 = vadd.f32 %v317_v33, %v6651_v12  ;;  %v535_v29 = vld [vmem:[%s9367_s0 + $0xd0] sm:$0xff] }
 0x1cd   :  { %v354_v36 = vmax.f32 %v316_v32, 0.0  ;;  %v558_v30 = vpack.c.bf16 %v535_v29, %v533_v28  ;;  %v540_v32 = vld [vmem:[%s9367_s0 + $0xf8] sm:$0xff] }
 0x1ce   :  { %v355_v37 = vmax.f32 %v318_v35, 0.0  ;;  %v539_v35 = vld [vmem:[%s9367_s0 + $0xf0] sm:$0xff] }
 0x1cf   :  { %v400_v41 = vpack.c.bf16 %v354_v36, %v352_v31  ;;  %v538_v31 = vld [vmem:[%s9367_s0 + $0xe8] sm:$0xff] }
 0x1d0   :  { %v401_v42 = vpack.c.bf16 %v355_v37, %v353_v34  ;;  %v321_v43 = vpop.f32.mrb[28].mxu1  ;;  %v561_v33 = vpack.c.bf16 %v540_v32, %v538_v31  ;;  %v537_v34 = vld [vmem:[%s9367_s0 + $0xe0] sm:$0xff] }
 0x1d1   :  { %v322_v44 = vadd.f32 %v321_v43, %v6648_v11  ;;  %v323_v45 = vpop.f32.mrb[29].mxu1  ;;  %v560_v36 = vpack.c.bf16 %v539_v35, %v537_v34  ;;  %v6710_v37 = vld [vmem:[%s9369_s24] sm:$0xff] }
 0x1d2   :  { %v324_v46 = vadd.f32 %v323_v45, %v6651_v12  ;;  %v325_v47 = vpop.f32.mrb[30].mxu1  ;;  %468 = vmatprep.mubr.bf16.mxu0 %v401_v42  ;;  %vm783_vm3 = vcmp.eq.f32.partialorder %v6710_v37, 1.0  ;;  %v6724_v45 = vld [vmem:[%s9369_s24 + $0x10] sm:$0xff]  ;;  %vm1389_vm12 = vcmp.eq.f32.partialorder %v6710_v37, 2.0  ;;  %v5834_v32 = vld [vmem:[%s9370_s10 + $0x120] ss:$8 sps:$4 sm:$0xff]  }
 0x1d3   :  { %v356_v48 = vmax.f32 %v322_v44, 0.0  ;;  %v326_v49 = vadd.f32 %v325_v47, %v6648_v11  ;;  %v327_v50 = vpop.f32.mrb[31].mxu1  ;;  %469 = vmatmul.mubr.bf16.gmra.mrb[4].mxu0 %v400_v41  ;;  %v6715_v41 = vld [vmem:[%s9369_s24 + $0x8] sm:$0xff]  ;;  %v792_v42 = vsel %vm783_vm3, 1.0, %v9283_v0  ;;  %vm785_vm5 = vcmp.eq.f32.partialorder %v6724_v45, 1.0 }
 0x1d4   :  { %v357_v51 = vmax.f32 %v324_v46, 0.0  ;;  %v328_v52 = vadd.f32 %v327_v50, %v6651_v12  ;;  %vm784_vm4 = vcmp.eq.f32.partialorder %v6715_v41, 1.0  ;;  %v6729_v46 = vld [vmem:[%s9369_s24 + $0x18] sm:$0xff]  ;;  %v794_v47 = vsel %vm785_vm5, 1.0, %v9283_v0  ;;  %v6738_v50 = vld [vmem:[%s9369_s24 + $0x40] sm:$0xff] }
 0x1d5   :  { %v358_v53 = vmax.f32 %v326_v49, 0.0  ;;  %v793_v43 = vsel %vm784_vm4, 1.0, %v9283_v0  ;;  %vm786_vm6 = vcmp.eq.f32.partialorder %v6729_v46, 1.0  ;;  %vm791_vm7 = vcmp.eq.f32.partialorder %v6738_v50, 1.0 }
 0x1d6   :  { %v359_v54 = vmax.f32 %v328_v52, 0.0  ;;  %v5707_v44 = vpack.i.bf16 %v793_v43, %v792_v42  ;;  %vm662_vm8 = vcmp.eq.f32.partialorder %v6724_v45, 0.0  ;;  %vm663_vm9 = vcmp.eq.f32.partialorder %v6729_v46, 0.0 }
 0x1d7   :  { %v402_v55 = vpack.c.bf16 %v358_v53, %v356_v48  ;;  %v795_v48 = vsel %vm786_vm6, 1.0, %v9283_v0  ;;  %v671_v52 = vsel %vm662_vm8, 1.0, %v9283_v0  ;;  %v672_v53 = vsel %vm663_vm9, 1.0, %v9283_v0 }
 0x1d8   :  { %v403_v56 = vpack.c.bf16 %v359_v54, %v357_v51  ;;  %v331_v57 = vpop.f32.mrb[32].mxu1  ;;  %5708 = vperm.xlu0 %5706, %v5707_v44   ;;  %v5712_v49 = vpack.i.bf16 %v795_v48, %v794_v47  ;;  %v800_v51 = vsel %vm791_vm7, 1.0, %v9283_v0  ;;  %v5733_v54 = vpack.i.bf16 %v672_v53, %v671_v52  ;;  %v5837_v47 = vld [vmem:[%s9370_s10 + $0x130] ss:$8 sps:$4 sm:$0xff]   ;;  %v5842_v48 = vld [vmem:[%s9370_s10 + $0x144] ss:$8 sps:$4 sm:$0xff]  }
 0x1d9   :  { %v332_v58 = vadd.f32 %v331_v57, %v6648_v11  ;;  %v333_v59 = vpop.f32.mrb[33].mxu1  ;;  %vm1390_vm13 = vcmp.eq.f32.partialorder %v6715_v41, 2.0  ;;  %vm1397_vm3 = vcmp.eq.f32.partialorder %v6738_v50, 2.0  ;;  %vm1774_vm6 = vcmp.eq.f32.partialorder %v6724_v45, 3.0 }
 0x1da   :  { %v334_v60 = vadd.f32 %v333_v59, %v6651_v12  ;;  %v335_v61 = vpop.f32.mrb[34].mxu1  ;;  %476 = vmatprep.mubr.bf16.mxu0 %v403_v56  ;;  %v6754_v56 = vld [vmem:[%s9369_s24 + $0x38] sm:$0xff]  ;;  %vm1775_vm7 = vcmp.eq.f32.partialorder %v6729_v46, 3.0  ;;  %vm660_vm8 = vcmp.eq.f32.partialorder %v6710_v37, 0.0  ;;  %vm661_vm9 = vcmp.eq.f32.partialorder %v6715_v41, 0.0 }
 0x1db   :  { %v360_v62 = vmax.f32 %v332_v58, 0.0  ;;  %v336_v63 = vadd.f32 %v335_v61, %v6648_v11  ;;  %v337_v1 = vpop.f32.mrb[35].mxu1  ;;  %477 = vmatmul.mubr.bf16.gmra.mrb[8].mxu0 %v402_v55  ;;  %v6749_v55 = vld [vmem:[%s9369_s24 + $0x30] sm:$0xff]  ;;  %vm667_vm11 = vcmp.eq.f32.partialorder %v6754_v56, 0.0  ;;  %v1399_v61 = vsel %vm1390_vm13, 1.0, %v9283_v0 }
 0x1dc   :  { %v361_v2 = vmax.f32 %v334_v60, 0.0  ;;  %v338_v4 = vadd.f32 %v337_v1, %v6651_v12  ;;  %5713 = vperm.xlu0 %5706, %v5712_v49   ;;  %vm666_vm10 = vcmp.eq.f32.partialorder %v6749_v55, 0.0  ;;  %v676_v58 = vsel %vm667_vm11, 1.0, %v9283_v0  ;;  %v6772_v1 = vld [vmem:[%s9369_s24 + $0x28] sm:$0xff] }
 0x1dd   :  { %v362_v5 = vmax.f32 %v336_v63, 0.0  ;;  %v675_v57 = vsel %vm666_vm10, 1.0, %v9283_v0  ;;  %v1398_v60 = vsel %vm1389_vm12, 1.0, %v9283_v0  ;;  %v6767_v63 = vld [vmem:[%s9369_s24 + $0x20] sm:$0xff]  ;;  %vm1394_vm15 = vcmp.eq.f32.partialorder %v6772_v1, 2.0  ;;  %s6192_s24 = smov 16  }
 0x1de   :  { %v363_v6 = vmax.f32 %v338_v4, 0.0  ;;  %v5743_v59 = vpack.i.bf16 %v676_v58, %v675_v57  ;;  %vm1393_vm14 = vcmp.eq.f32.partialorder %v6767_v63, 2.0  ;;  %v1403_v4 = vsel %vm1394_vm15, 1.0, %v9283_v0  ;;  %v5845_v57 = vld [vmem:[%s9370_s10 + $0x154] ss:$8 sps:$4 sm:$0xff]  }
 0x1df   :  { %v404_v7 = vpack.c.bf16 %v362_v5, %v360_v62  ;;  %v5748_v62 = vpack.i.bf16 %v1399_v61, %v1398_v60  ;;  %vm787_vm0 = vcmp.eq.f32.partialorder %v6767_v63, 1.0  ;;  %vm788_vm2 = vcmp.eq.f32.partialorder %v6772_v1, 1.0 }
 0x1e0   :  { %v405_v8 = vpack.c.bf16 %v363_v6, %v361_v2  ;;  %v341_v10 = vpop.f32.mrb[36].mxu1  ;;  %843 = vperm.xlu0 %5706, %v800_v51   ;;  %v1402_v2 = vsel %vm1393_vm14, 1.0, %v9283_v0  ;;  %v796_v6 = vsel %vm787_vm0, 1.0, %v9283_v0  ;;  %vm789_vm4 = vcmp.eq.f32.partialorder %v6749_v55, 1.0 }
 0x1e1   :  { %v342_v13 = vadd.f32 %v341_v10, %v6648_v11  ;;  %v343_v14 = vpop.f32.mrb[37].mxu1  ;;  %v532_v11 = vld [vmem:[%s9367_s0 + $0xb8] sm:$0xff]  ;;  %v5758_v5 = vpack.i.bf16 %v1403_v4, %v1402_v2  ;;  %v1406_v10 = vsel %vm1397_vm3, 1.0, %v9283_v0  ;;  %vm790_vm5 = vcmp.eq.f32.partialorder %v6754_v56, 1.0 }
 0x1e2   :  { %484 = vmatprep.mubr.bf16.mxu0 %v405_v8  ;;  %v344_v15 = vadd.f32 %v343_v14, %v6651_v12  ;;  %v345_v16 = vpop.f32.mrb[38].mxu1  ;;  %v557_v23 = vpack.c.bf16 %v532_v11, %v530_v22  ;;  %v529_v12 = vld [vmem:[%s9367_s0 + $0xa0] sm:$0xff]  ;;  %v799_v14 = vsel %vm790_vm5, 1.0, %v9283_v0  ;;  %vm1778_vm10 = vcmp.eq.f32.partialorder %v6749_v55, 3.0  ;;  %v5843_v4 = vld [vmem:[%s9370_s10 + $0x150] ss:$8 sps:$4 sm:$0xff]  }
 0x1e3   :  { %485 = vmatmul.mubr.bf16.gmra.mrb[12].mxu0 %v404_v7  ;;  %v364_v17 = vmax.f32 %v342_v13, 0.0  ;;  %v346_v18 = vpop.f32.mrb[39].mxu1  ;;  %v556_v24 = vpack.c.bf16 %v531_v40, %v529_v12  ;;  %v797_v7 = vsel %vm788_vm2, 1.0, %v9283_v0  ;;  %v798_v13 = vsel %vm789_vm4, 1.0, %v9283_v0  ;;  %s6191_s0 = smov 112  }
 0x1e4   :  { %v365_v19 = vmax.f32 %v344_v15, 0.0  ;;  %580 = vmatprep.subr.bf16.mxu1 %v557_v23  ;;  %5734 = vperm.xlu0 %5706, %v5733_v54   ;;  %v5718_v8 = vpack.i.bf16 %v797_v7, %v796_v6  ;;  %v5723_v15 = vpack.i.bf16 %v799_v14, %v798_v13  ;;  %v1783_v16 = vsel %vm1774_vm6, 1.0, %v9283_v0  ;;  %v5840_v54 = vld [vmem:[%s9370_s10 + $0x140] ss:$8 sps:$4 sm:$0xff]   ;;  %v5848_v6 = vld [vmem:[%s9370_s10 + $0x164] ss:$8 sps:$4 sm:$0xff]  }
 0x1e5   :  { %v406_v21 = vpack.c.bf16 %v364_v17, %v364_v17  ;;  %581 = vmatpush1.bf16.msra.mxu1 %v556_v24  ;;  %v1784_v17 = vsel %vm1775_vm7, 1.0, %v9283_v0  ;;  %v669_v18 = vsel %vm660_vm8, 1.0, %v9283_v0  ;;  %vm1779_vm11 = vcmp.eq.f32.partialorder %v6754_v56, 3.0  ;;  %v5833_v24 = vld [vmem:[%s9370_s10 + $0x114] ss:$8 sps:$4 sm:$0xff]  }
 0x1e6   :  { %v407_v20 = vpack.c.bf16 %v365_v19, %v365_v19  ;;  %582 = vmatprep.subr.bf16.mxu1 %v559_v27  ;;  %5719 = vperm.xlu1 %5717, %v5718_v8   ;;  %v5828_v19 = vld [vmem:[%s9370_s10 + $0x100] ss:$8 sps:$4 sm:$0xff]   ;;  %vm664_vm12 = vcmp.eq.f32.partialorder %v6767_v63, 0.0  ;;  %v5773_v22 = vpack.i.bf16 %v1784_v17, %v1783_v16  ;;  %vm665_vm13 = vcmp.eq.f32.partialorder %v6772_v1, 0.0  ;;  %v5836_v27 = vld [vmem:[%s9370_s10 + $0x124] ss:$8 sps:$4 sm:$0xff]  }
 0x1e7   :  { %v1787_v23 = vsel %vm1778_vm10, 1.0, %v9283_v0  ;;  %v1788_v12 = vsel %vm1779_vm11, 1.0, %v9283_v0  ;;  %v673_v40 = vsel %vm664_vm12, 1.0, %v9283_v0  ;;  %v674_v25 = vsel %vm665_vm13, 1.0, %v9283_v0  ;;  %v5846_v14 = vld [vmem:[%s9370_s10 + $0x160] ss:$8 sps:$4 sm:$0xff]  }
 0x1e8   :  { %492 = vmatprep.mubr.bf16.mxu0 %v407_v20  ;;  %5744 = vperm.xlu0 %5706, %v5743_v59   ;;  %v670_v20 = vsel %vm661_vm9, 1.0, %v9283_v0  ;;  %vm2155_vm14 = vcmp.eq.f32.partialorder %v6710_v37, 4.0  ;;  %vm2156_vm15 = vcmp.eq.f32.partialorder %v6715_v41, 4.0  ;;  %v5783_v28 = vpack.i.bf16 %v1788_v12, %v1787_v23  ;;  %v5857_v23 = vld [vmem:[%s9370_s10 + $0x194] ss:$8 sps:$4 sm:$0xff]  }
 0x1e9   :  { %583 = vmatpush1.bf16.msra.mxu1 %v558_v30  ;;  %v5728_v11 = vpack.i.bf16 %v670_v20, %v669_v18  ;;  %v5738_v29 = vpack.i.bf16 %v674_v25, %v673_v40  ;;  %v2164_v30 = vsel %vm2155_vm14, 1.0, %v9283_v0  ;;  %v2165_v31 = vsel %vm2156_vm15, 1.0, %v9283_v0  ;;  %v5849_v20 = vld [vmem:[%s9370_s10 + $0x170] ss:$8 sps:$4 sm:$0xff]  }
 0x1ea   :  { %584 = vmatprep.subr.bf16.mxu1 %v561_v33  ;;  %5724 = vperm.xlu1 %5717, %v5723_v15   ;;  %vm668_vm0 = vcmp.eq.f32.partialorder %v6738_v50, 0.0  ;;  %vm2159_vm2 = vcmp.eq.f32.partialorder %v6767_v63, 4.0  ;;  %vm2160_vm3 = vcmp.eq.f32.partialorder %v6772_v1, 4.0  ;;  %vm1391_vm4 = vcmp.eq.f32.partialorder %v6724_v45, 2.0  ;;  %v5839_v33 = vld [vmem:[%s9370_s10 + $0x134] ss:$8 sps:$4 sm:$0xff]  }
 0x1eb   :  { %493 = vmatmul.mubr.bf16.gmra.mrb[16].mxu0 %v406_v21  ;;  %v5830_v21 = vld [vmem:[%s9370_s10 + $0x104] ss:$8 sps:$4 sm:$0xff]   ;;  %vm1392_vm5 = vcmp.eq.f32.partialorder %v6729_v46, 2.0  ;;  %v5788_v34 = vpack.i.bf16 %v2165_v31, %v2164_v30  ;;  %v677_v35 = vsel %vm668_vm0, 1.0, %v9283_v0  ;;  %v2169_v42 = vsel %vm2160_vm3, 1.0, %v9283_v0  ;;  %v2972_v31 = vld [vmem:[%s9371_s28 + $0x30] sm:$0xff] }
 0x1ec   :  { %5749 = vperm.xlu0 %5706, %v5748_v62   ;;  %1067 = vmatprep.subr.bf16.mxu0 %v5830_v21  ;;  %v1400_v43 = vsel %vm1391_vm4, 1.0, %v9283_v0  ;;  %vm1395_vm6 = vcmp.eq.f32.partialorder %v6749_v55, 2.0  ;;  %v1401_v44 = vsel %vm1392_vm5, 1.0, %v9283_v0  ;;  %vm1396_vm7 = vcmp.eq.f32.partialorder %v6754_v56, 2.0  ;;  %v5851_v15 = vld [vmem:[%s9370_s10 + $0x174] ss:$8 sps:$4 sm:$0xff]  }
 0x1ed   :  { %585 = vmatpush1.bf16.msra.mxu1 %v560_v36  ;;  %1068 = vmatpush1.bf16.msra.mxu0 %v5828_v19  ;;  %v2168_v36 = vsel %vm2159_vm2, 1.0, %v9283_v0  ;;  %vm2163_vm8 = vcmp.eq.f32.partialorder %v6738_v50, 4.0  ;;  %v1404_v51 = vsel %vm1395_vm6, 1.0, %v9283_v0  ;;  %v5753_v52 = vpack.i.bf16 %v1401_v44, %v1400_v43  ;;  %v5854_v21 = vld [vmem:[%s9370_s10 + $0x184] ss:$8 sps:$4 sm:$0xff]  }
 0x1ee   :  { %1069 = vmatprep.subr.bf16.mxu0 %v5833_v24  ;;  %5729 = vperm.xlu1 %5717, %v5728_v11   ;;  %v5798_v49 = vpack.i.bf16 %v2169_v42, %v2168_v36  ;;  %v1405_v53 = vsel %vm1396_vm7, 1.0, %v9283_v0  ;;  %vm2540_vm9 = vcmp.eq.f32.partialorder %v6724_v45, 5.0  ;;  %vm2541_vm10 = vcmp.eq.f32.partialorder %v6729_v46, 5.0  ;;  %v5852_v11 = vld [vmem:[%s9370_s10 + $0x180] ss:$8 sps:$4 sm:$0xff]  }
 0x1ef   :  { %vm1772_vm11 = vcmp.eq.f32.partialorder %v6710_v37, 3.0  ;;  %vm2538_vm12 = vcmp.eq.f32.partialorder %v6710_v37, 5.0  ;;  %v2172_v58 = vsel %vm2163_vm8, 1.0, %v9283_v0  ;;  %vm1773_vm13 = vcmp.eq.f32.partialorder %v6715_v41, 3.0  ;;  %v5863_v30 = vld [vmem:[%s9370_s10 + $0x1b4] ss:$8 sps:$4 sm:$0xff]  }
 0x1f0   :  { %5759 = vperm.xlu0 %5706, %v5758_v5   ;;  %vm2539_vm14 = vcmp.eq.f32.partialorder %v6715_v41, 5.0  ;;  %v5763_v59 = vpack.i.bf16 %v1405_v53, %v1404_v51  ;;  %v2549_v60 = vsel %vm2540_vm9, 1.0, %v9283_v0  ;;  %v6865_v61 = vsel %vm2538_vm12, 1.0, %v9283_v0  ;;  %v5869_v42 = vld [vmem:[%s9370_s10 + $0x1d4] ss:$8 sps:$4 sm:$0xff]   ;;  %v6986_v53 = vld [vmem:[%s9366_s13] sm:$0xff] }
 0x1f1   :  { %1070 = vmatpush1.bf16.msra.mxu0 %v5831_v26  ;;  %v6868_v37 = vsel %vm2539_vm14, 1.0, %v9283_v0  ;;  %v2550_v62 = vsel %vm2541_vm10, 1.0, %v9283_v0  ;;  %v1781_v2 = vsel %vm1772_vm11, 1.0, %v9283_v0  ;;  %vm2544_vm15 = vcmp.eq.f32.partialorder %v6749_v55, 5.0  ;;  %v5860_v26 = vld [vmem:[%s9370_s10 + $0x1a4] ss:$8 sps:$4 sm:$0xff]  }
 0x1f2   :  { %1071 = vmatprep.subr.bf16.mxu0 %v5836_v27  ;;  %5739 = vperm.xlu1 %5717, %v5738_v29   ;;  %v5808_v41 = vpack.i.bf16 %v6868_v37, %v6865_v61  ;;  %v1782_v5 = vsel %vm1773_vm13, 1.0, %v9283_v0  ;;  %vm2545_vm0 = vcmp.eq.f32.partialorder %v6754_v56, 5.0  ;;  %vm1776_vm2 = vcmp.eq.f32.partialorder %v6767_v63, 3.0  ;;  %v2970_v27 = vld [vmem:[%s9371_s28 + $0x20] sm:$0xff]  ;;  %v5867_v43 = vld [vmem:[%s9370_s10 + $0x1d0] ss:$8 sps:$4 sm:$0xff]  }
 0x1f3   :  { %vm1777_vm3 = vcmp.eq.f32.partialorder %v6772_v1, 3.0  ;;  %v5813_v7 = vpack.i.bf16 %v2550_v62, %v2549_v60  ;;  %v2553_v8 = vsel %vm2544_vm15, 1.0, %v9283_v0  ;;  %v2554_v13 = vsel %vm2545_vm0, 1.0, %v9283_v0  ;;  %v5858_v29 = vld [vmem:[%s9370_s10 + $0x1a0] ss:$8 sps:$4 sm:$0xff]  }
 0x1f4   :  { %1449 = vperm.xlu0 %5706, %v1406_v10   ;;  %v5768_v10 = vpack.i.bf16 %v1782_v5, %v1781_v2  ;;  %v1785_v16 = vsel %vm1776_vm2, 1.0, %v9283_v0  ;;  %v1786_v17 = vsel %vm1777_vm3, 1.0, %v9283_v0  ;;  %v5823_v18 = vpack.i.bf16 %v2554_v13, %v2553_v8 }
 0x1f5   :  { %1072 = vmatpush1.bf16.msra.mxu0 %v5834_v32  ;;  %v5778_v19 = vpack.i.bf16 %v1786_v17, %v1785_v16  ;;  %vm1780_vm4 = vcmp.eq.f32.partialorder %v6738_v50, 3.0  ;;  %vm2157_vm5 = vcmp.eq.f32.partialorder %v6724_v45, 4.0  ;;  %vm2158_vm6 = vcmp.eq.f32.partialorder %v6729_v46, 4.0  ;;  %v2968_v45 = vld [vmem:[%s9371_s28 + $0x10] sm:$0xff] }
 0x1f6   :  { %1073 = vmatprep.subr.bf16.mxu0 %v5839_v33  ;;  %720 = vperm.xlu1 %5717, %v677_v35   ;;  %v1789_v12 = vsel %vm1780_vm4, 1.0, %v9283_v0  ;;  %v2166_v40 = vsel %vm2157_vm5, 1.0, %v9283_v0  ;;  %v2167_v24 = vsel %vm2158_vm6, 1.0, %v9283_v0  ;;  %vm2161_vm7 = vcmp.eq.f32.partialorder %v6749_v55, 4.0  ;;  %v5855_v46 = vld [vmem:[%s9370_s10 + $0x190] ss:$8 sps:$4 sm:$0xff]  }
 0x1f7   :  { %vm2162_vm8 = vcmp.eq.f32.partialorder %v6754_v56, 4.0  ;;  %v5793_v25 = vpack.i.bf16 %v2167_v24, %v2166_v40  ;;  %v2170_v55 = vsel %vm2161_vm7, 1.0, %v9283_v0  ;;  %vm2542_vm9 = vcmp.eq.f32.partialorder %v6767_v63, 5.0  ;;  %v5861_v32 = vld [vmem:[%s9370_s10 + $0x1b0] ss:$8 sps:$4 sm:$0xff]   ;;  %v2974_v63 = vld [vmem:[%s9371_s28 + $0x40] sm:$0xff] }
 0x1f8   :  { %5774 = vperm.xlu0 %5706, %v5773_v22   ;;  %v2966_v22 = vld [vmem:[%s9371_s28] sm:$0xff]  ;;  %v2171_v56 = vsel %vm2162_vm8, 1.0, %v9283_v0  ;;  %vm2543_vm10 = vcmp.eq.f32.partialorder %v6772_v1, 5.0  ;;  %vm2546_vm11 = vcmp.eq.f32.partialorder %v6738_v50, 5.0  ;;  %v2969_v50 = vld [vmem:[%s9371_s28 + $0x18] sm:$0xff]  ;;  %v9281_v51 = vsub.s32 2, %v6534_v38 }
 0x1f9   :  { %1074 = vmatpush1.bf16.msra.mxu0 %v5837_v47  ;;  %v5866_v33 = vld [vmem:[%s9370_s10 + $0x1c4] ss:$8 sps:$4 sm:$0xff]   ;;  %v2552_v35 = vsel %vm2543_vm10, 1.0, %v9283_v0  ;;  %v5864_v1 = vld [vmem:[%s9370_s10 + $0x1c0] ss:$8 sps:$4 sm:$0xff]   ;;  %v2555_v44 = vsel %vm2546_vm11, 1.0, %v9283_v0 }
 0x1fa   :  { %1075 = vmatprep.subr.bf16.mxu0 %v5842_v48  ;;  %5754 = vperm.xlu1 %5717, %v5753_v52   ;;  %v2967_v47 = vld [vmem:[%s9371_s28 + $0x8] sm:$0xff]  ;;  %vm2981_vm12 = vcmask 130048   ;;  %vm3093_vm13 = vcmask 1045504   ;;  %vm3077_vm14 = vcmask 97280   ;;  %vm3445_vm15 = vcmask 1043456  }
 0x1fb   :  { %v2971_v48 = vld [vmem:[%s9371_s28 + $0x28] sm:$0xff]  ;;  %vm3441_vm0 = vcmask 588800   ;;  %vm2985_vm2 = vcmask 125952   ;;  %vm4098_vm5 = vcmask 261120  }
 0x1fc   :  { %5784 = vperm.xlu0 %5706, %v5783_v28   ;;  %v5803_v28 = vpack.i.bf16 %v2171_v56, %v2170_v55 }
 0x1fd   :  { %1076 = vmatpush1.bf16.msra.mxu0 %v5840_v54  ;;  %v427_v54 = vrot.slane %v6986_v53, %v9281_v51 }
 0x1fe   :  { %1077 = vmatprep.subr.bf16.mxu0 %v5845_v57  ;;  %5764 = vperm.xlu1 %5717, %v5763_v59  }
 0x200   :  { %5789 = vperm.xlu0 %5706, %v5788_v34   ;;  %v2551_v34 = vsel %vm2542_vm9, 1.0, %v9283_v0 }
 0x201   :  { %1078 = vmatpush1.bf16.msra.mxu0 %v5843_v4  ;;  %v5818_v36 = vpack.i.bf16 %v2552_v35, %v2551_v34 }
 0x202   :  { %1079 = vmatprep.subr.bf16.mxu0 %v5848_v6  ;;  %5769 = vperm.xlu1 %5717, %v5768_v10  }
 0x204   :  { %5799 = vperm.xlu0 %5706, %v5798_v49   ;;  %v2973_v49 = vld [vmem:[%s9371_s28 + $0x38] sm:$0xff] }
 0x205   :  { %1080 = vmatpush1.bf16.msra.mxu0 %v5846_v14 }
 0x206   :  { %1081 = vmatprep.subr.bf16.mxu0 %v5851_v15  ;;  %5779 = vperm.xlu1 %5717, %v5778_v19  }
 0x208   :  { %2215 = vperm.xlu0 %5706, %v2172_v58  }
 0x209   :  { %1082 = vmatpush1.bf16.msra.mxu0 %v5849_v20 }
 0x20a   :  { %1083 = vmatprep.subr.bf16.mxu0 %v5854_v21  ;;  %1832 = vperm.xlu1 %5717, %v1789_v12  }
 0x20c   :  { %5814 = vperm.xlu0 %5706, %v5813_v7  }
 0x20d   :  { %1084 = vmatpush1.bf16.msra.mxu0 %v5852_v11 }
 0x20e   :  { %1085 = vmatprep.subr.bf16.mxu0 %v5857_v23  ;;  %5794 = vperm.xlu1 %5717, %v5793_v25  }
 0x210   :  { %5824 = vperm.xlu0 %5706, %v5823_v18  }
 0x211   :  { %1086 = vmatpush1.bf16.msra.mxu0 %v5855_v46 }
 0x212   :  { %1087 = vmatprep.subr.bf16.mxu0 %v5860_v26  ;;  %5804 = vperm.xlu1 %5717, %v5803_v28  }
 0x214   :  { %3379 = vperm.xlu0 %5706, %v2966_v22  }
 0x215   :  { %1088 = vmatpush1.bf16.msra.mxu0 %v5858_v29 }
 0x216   :  { %1089 = vmatprep.subr.bf16.mxu0 %v5863_v30  ;;  %5809 = vperm.xlu1 %5717, %v5808_v41  }
 0x218   :  { %3389 = vperm.xlu0 %5706, %v2968_v45  }
 0x219   :  { %1090 = vmatpush1.bf16.msra.mxu0 %v5861_v32 }
 0x21a   :  { %1091 = vmatprep.subr.bf16.mxu0 %v5866_v33  ;;  %5819 = vperm.xlu1 %5717, %v5818_v36  }
 0x21c   :  { %3399 = vperm.xlu0 %5706, %v2970_v27  }
 0x21d   :  { %1092 = vmatpush1.bf16.msra.mxu0 %v5864_v1 }
 0x21e   :  { %1093 = vmatprep.subr.bf16.mxu0 %v5869_v42  ;;  %2598 = vperm.xlu1 %5717, %v2555_v44  }
 0x220   :  { %3409 = vperm.xlu0 %5706, %v2972_v31  }
 0x221   :  { %1094 = vmatpush1.bf16.msra.mxu0 %v5867_v43 }
 0x222   :  { %3384 = vperm.xlu1 %5717, %v2967_v47   ;;  %v5872_v47 = vld [vmem:[%s9370_s10 + $0x1e4] ss:$8 sps:$4 sm:$0xff]  }
 0x223   :  { %1095 = vmatprep.subr.bf16.mxu0 %v5872_v47 }
 0x224   :  { %3419 = vperm.xlu0 %5706, %v2974_v63  }
 0x226   :  { %3394 = vperm.xlu1 %5717, %v2969_v50   ;;  %v5870_v50 = vld [vmem:[%s9370_s10 + $0x1e0] ss:$8 sps:$4 sm:$0xff]  }
 0x227   :  { %1096 = vmatpush1.bf16.msra.mxu0 %v5870_v50 }
 0x22a   :  { %3404 = vperm.xlu1 %5717, %v2971_v48   ;;  %v5873_v48 = vld [vmem:[%s9370_s10 + $0x1f0] ss:$8 sps:$4 sm:$0xff]  }
 0x22e   :  { %3414 = vperm.xlu1 %5717, %v2973_v49   ;;  %v5875_v49 = vld [vmem:[%s9370_s10 + $0x1f4] ss:$8 sps:$4 sm:$0xff]  }
 0x22f   :  { %1097 = vmatprep.subr.bf16.mxu0 %v5875_v49 }
 0x230   :  { %1098 = vmatpush1.bf16.msra.mxu0 %v5873_v48 }
 0x29d   :  { %v5254_v52 = vpop.f32.mrb[0].mxu0 }
 0x29e   :  { %v5255_v57 = vpop.f32.mrb[1].mxu0 }
 0x29f   :  { %v5256_v58 = vadd.f32 %v5255_v57, %v5254_v52  ;;  %v5257_v59 = vpop.f32.mrb[2].mxu0  ;;  %v5878_v52 = vld [vmem:[%s9370_s10 + $0x4] ss:$8 sps:$4 sm:$0xff]  }
 0x2a0   :  { %v5258_v60 = vpop.f32.mrb[3].mxu0  ;;  %1308 = vmatprep.subr.bf16.mxu0 %v5878_v52 }
 0x2a1   :  { %v463_v61 = vadd.f32 %v5256_v58, %v427_v54  ;;  %v5259_v37 = vadd.f32 %v5258_v60, %v5257_v59  ;;  %v7015_v58 = vpop.permute.xlu1 %5719  ;;  %v5927_v59 = vld [vmem:[%s9372_s12] ss:$8 sps:$4 sm:$0xff]   ;;  %v5929_v60 = vld [vmem:[%s9372_s12 + $0x4] ss:$8 sps:$4 sm:$0xff]  }
 0x2a2   :  { %3009 = vmatprep.subr.bf16.mxu1 %v5929_v60 }
 0x2a3   :  { %v466_v62 = vadd.f32 %v5259_v37, %v427_v54  ;;  %v500_v2 = vmax.f32 %v463_v61, 0.0 }
 0x2a5   :  { %v501_v41 = vmax.f32 %v466_v62, 0.0  ;;  %v7025_v37 = vpop.permute.xlu1 %5724 }
 0x2a6   :  { %v5260_v4 = vpop.f32.mrb[4].mxu0 }
 0x2a7   :  { %v5261_v5 = vpop.f32.mrb[5].mxu0  ;;  %v541_v6 = vpack.c.bf16 %v501_v41, %v500_v2 }
 0x2a8   :  { %v5262_v7 = vadd.f32 %v5261_v5, %v5260_v4  ;;  %v5263_v8 = vpop.f32.mrb[6].mxu0 }
 0x2a9   :  { %v5264_v10 = vpop.f32.mrb[7].mxu0  ;;  %603 = vmatmul.mubr.bf16.vlgmr.msra.gmra.mrb[40].mxu1 %v541_v6  ;;  %v7029_v2 = vpop.permute.xlu1 %5729 }
 0x2aa   :  { %v471_v13 = vadd.f32 %v5262_v7, %v427_v54  ;;  %v5265_v14 = vadd.f32 %v5264_v10, %v5263_v8  ;;  %612 = vmatprep.mubr.bf16.mxu1 %v9285_v3  ;;  %3010 = vmatpush1.bf16.msra.mxu1 %v5927_v59  ;;  %v2979_v8 = vld [vmem:[%s9256_s2] sm:$0xff]  ;;  %v2980_v10 = vld [vmem:[%s9256_s2 + $0x8] sm:$0xf] }
 0x2ac   :  { %v502_v15 = vmax.f32 %v471_v13, 0.0  ;;  %v474_v16 = vadd.f32 %v5265_v14, %v427_v54  ;;  %v7047_v13 = vpack.c.bf16 %v2980_v10, %v2979_v8 }
 0x2ad   :  { %v7033_v4 = vpop.permute.xlu1 %5739 }
 0x2ae   :  { %v503_v17 = vmax.f32 %v474_v16, 0.0  ;;  %v5266_v18 = vpop.f32.mrb[8].mxu0  ;;  %9373 = vst [vmem:[#allocation4_spill] sm:$0xff] %v7047_v13 }
 0x2af   :  { %v5267_v19 = vpop.f32.mrb[9].mxu0 }
 0x2b0   :  { %v5268_v20 = vadd.f32 %v5267_v19, %v5266_v18  ;;  %v5269_v21 = vpop.f32.mrb[10].mxu0  ;;  %v542_v22 = vpack.c.bf16 %v503_v17, %v502_v15  ;;  %v7063_v19 = vsub.s32 3, %v6534_v38 }
 0x2b1   :  { %v5270_v11 = vpop.f32.mrb[11].mxu0  ;;  %v7037_v6 = vpop.permute.xlu1 %720 }
 0x2b2   :  { %v479_v23 = vadd.f32 %v5268_v20, %v427_v54  ;;  %v5271_v12 = vadd.f32 %v5270_v11, %v5269_v21  ;;  %613 = vmatmul.mubr.bf16.gmra.mrb[44].mxu1 %v542_v22  ;;  %9375 = vst [vmem:[#allocation6_spill] sm:$0xff] %v7063_v19  ;;  %v7071_v11 = vrot.slane %v6986_v53, %v7063_v19 }
 0x2b3   :  { %622 = vmatprep.mubr.bf16.mxu1 %v9285_v3 }
 0x2b4   :  { %v504_v40 = vmax.f32 %v479_v23, 0.0  ;;  %v482_v24 = vadd.f32 %v5271_v12, %v427_v54 }
 0x2b5   :  { %v7049_v14 = vpop.permute.xlu1 %5754 }
 0x2b6   :  { %v505_v45 = vmax.f32 %v482_v24, 0.0  ;;  %v5272_v46 = vpop.f32.mrb[12].mxu0  ;;  %v5757_v49 = vunpack.i.h.bf16 %v7049_v14  ;;  %v5756_v60 = vunpack.i.l.bf16 %v7049_v14 }
 0x2b7   :  { %v5273_v25 = vpop.f32.mrb[13].mxu0 }
 0x2b8   :  { %v5274_v26 = vadd.f32 %v5273_v25, %v5272_v46  ;;  %v5275_v55 = vpop.f32.mrb[14].mxu0  ;;  %v543_v56 = vpack.c.bf16 %v505_v45, %v504_v40 }
 0x2b9   :  { %v5276_v27 = vpop.f32.mrb[15].mxu0  ;;  %v7056_v16 = vpop.permute.xlu1 %5764 }
 0x2ba   :  { %v487_v28 = vadd.f32 %v5274_v26, %v427_v54  ;;  %v5277_v29 = vadd.f32 %v5276_v27, %v5275_v55  ;;  %623 = vmatmul.mubr.bf16.gmra.mrb[48].mxu1 %v543_v56 }
 0x2bb   :  { %632 = vmatprep.mubr.bf16.mxu1 %v9285_v3 }
 0x2bc   :  { %v506_v30 = vmax.f32 %v487_v28, 0.0  ;;  %v490_v31 = vadd.f32 %v5277_v29, %v427_v54 }
 0x2bd   :  { %v7060_v18 = vpop.permute.xlu1 %5769 }
 0x2be   :  { %v507_v32 = vmax.f32 %v490_v31, 0.0  ;;  %v5278_v33 = vpop.f32.mrb[16].mxu0  ;;  %v5771_v52 = vunpack.i.l.bf16 %v7060_v18 }
 0x2bf   :  { %v5279_v34 = vpop.f32.mrb[17].mxu0 }
 0x2c0   :  { %v5280_v35 = vadd.f32 %v5279_v34, %v5278_v33  ;;  %v544_v63 = vpack.c.bf16 %v507_v32, %v506_v30  ;;  %v5281_v1 = vpop.f32.mrb[18].mxu0  ;;  %v6178_v32 = vld [vmem:[%s9366_s13 + $0x8] sm:$0xff] }
 0x2c1   :  { %v5282_v36 = vpop.f32.mrb[19].mxu0  ;;  %v7081_v55 = vpop.permute.xlu1 %5779  ;;  %v7094_v33 = vrot.slane %v6178_v32, %v7063_v19 }
 0x2c2   :  { %v495_v42 = vadd.f32 %v5280_v35, %v427_v54  ;;  %633 = vmatmul.mubr.bf16.gmra.mrb[52].mxu1 %v544_v63  ;;  %v7011_v54 = vpop.permute.xlu0 %5708  ;;  %v5732_v35 = vunpack.i.h.bf16 %v7029_v2  ;;  %v5731_v63 = vunpack.i.l.bf16 %v7029_v2 }
 0x2c3   :  { %642 = vmatprep.mubr.bf16.mxu1 %v9285_v3  ;;  %v5711_v21 = vunpack.i.h.bf16 %v7011_v54  ;;  %v5710_v22 = vunpack.i.l.bf16 %v7011_v54 }
 0x2c4   :  { %v508_v43 = vmax.f32 %v495_v42, 0.0 }
 0x2c5   :  { %v7115_v8 = vpop.permute.xlu1 %1832 }
 0x2c6   :  { %v545_v44 = vpack.c.bf16 %v508_v43, %v508_v43  ;;  %v7013_v57 = vpop.permute.xlu0 %5713  ;;  %9376 = vst [vmem:[#allocation7_spill] sm:$0xff] %v7115_v8 }
 0x2c7   :  { %v5716_v23 = vunpack.i.h.bf16 %v7013_v57  ;;  %v5715_v12 = vunpack.i.l.bf16 %v7013_v57 }
 0x2c9   :  { %v7165_v43 = vpop.permute.xlu1 %5794 }
 0x2ca   :  { %643 = vmatmul.mubr.bf16.gmra.mrb[56].mxu1 %v545_v44  ;;  %v7023_v61 = vpop.permute.xlu0 %843 }
 0x2cb   :  { %3041 = vmatprep.mubr.bf16.mxu1 %v9285_v3 }
 0x2ce   :  { %v7027_v62 = vpop.permute.xlu0 %5734 }
 0x2cf   :  { %v5737_v40 = vunpack.i.h.bf16 %v7027_v62  ;;  %v5736_v24 = vunpack.i.l.bf16 %v7027_v62 }
 0x2d2   :  { %v7031_v41 = vpop.permute.xlu0 %5744  ;;  %5180 = vmatmul.mubr.msk.bf16.vlgmr.msra.gmra.mrb[60].mxu1 %vm2981_vm12, %v7047_v13 }
 0x2d3   :  { %3132 = vmatprep.mubr.bf16.mxu1 %v9285_v3 }
 0x2d6   :  { %v7035_v5 = vpop.permute.xlu0 %5749 }
 0x2d7   :  { %v5752_v25 = vunpack.i.h.bf16 %v7035_v5  ;;  %v5751_v26 = vunpack.i.l.bf16 %v7035_v5  ;;  %v5772_v5 = vunpack.i.h.bf16 %v7060_v18 }
 0x2da   :  { %v7039_v7 = vpop.permute.xlu0 %5759 }
 0x2de   :  { %v7054_v15 = vpop.permute.xlu0 %1449 }
 0x2df   :  { %9374 = vst [vmem:[#allocation5_spill] sm:$0xff] %v7054_v15 }
 0x2e2   :  { %v7058_v17 = vpop.permute.xlu0 %5774 }
 0x2e3   :  { %v9392_v19 = vunpack.i.l.bf16 %v7058_v17  ;;  %v9394_v62 = vunpack.i.h.bf16 %v7058_v17 }
 0x2e6   :  { %v7065_v20 = vpop.permute.xlu0 %5784 }
 0x2ea   :  { %v7100_v36 = vpop.permute.xlu0 %5789 }
 0x2eb   :  { %v5792_v47 = vunpack.i.h.bf16 %v7100_v36  ;;  %v9287_v48 = vunpack.i.l.bf16 %v7100_v36 }
 0x37c   :  { %v604_v50 = vpop.f32.mrb[40].mxu1 }
 0x37d   :  { %v7110_v54 = vadd.f32 %v604_v50, %v7071_v11  ;;  %v606_v59 = vpop.f32.mrb[41].mxu1 }
 0x37e   :  { %v7118_v10 = vadd.f32 %v606_v59, %v7094_v33  ;;  %v608_v32 = vpop.f32.mrb[42].mxu1 }
 0x37f   :  { %v7121_v51 = vadd.f32 %v608_v32, %v7071_v11  ;;  %v610_v39 = vpop.f32.mrb[43].mxu1  ;;  %v846_v50 = vmul.f32 %v5710_v22, %v7110_v54  ;;  %v7125_v0 = vmul.f32 %v5731_v63, %v7110_v54  ;;  %v7128_v3 = vmul.f32 %v5751_v26, %v7110_v54 }
 0x380   :  { %v7131_v18 = vadd.f32 %v610_v39, %v7094_v33  ;;  %v847_v1 = vmul.f32 %v5710_v22, %v7118_v10  ;;  %v7135_v59 = vmul.f32 %v5731_v63, %v7118_v10  ;;  %v7138_v32 = vmul.f32 %v5751_v26, %v7118_v10 }
 0x381   :  { %9377 = vst [vmem:[#allocation8_spill] sm:$0xff] %v7128_v3  ;;  %v848_v42 = vmul.f32 %v5711_v21, %v7121_v51  ;;  %v7142_v2 = vmul.f32 %v5732_v35, %v7121_v51  ;;  %v7145_v45 = vmul.f32 %v5752_v25, %v7121_v51  ;;  %v7148_v29 = vmul.f32 %v5771_v52, %v7118_v10 }
 0x382   :  { %9378 = vst [vmem:[#allocation9_spill] sm:$0xff] %v7138_v32  ;;  %v849_v39 = vmul.f32 %v5711_v21, %v7131_v18  ;;  %v7152_v22 = vmul.f32 %v5732_v35, %v7131_v18  ;;  %v7155_v63 = vmul.f32 %v5752_v25, %v7131_v18  ;;  %v7158_v26 = vmul.f32 %v5772_v5, %v7131_v18  ;;  %v5876_v25 = vld [vmem:[%s9370_s10] ss:$8 sps:$4 sm:$0xff]  }
 0x383   :  { %9379 = vst [vmem:[#allocation10_spill] sm:$0xff] %v7145_v45  ;;  %9380 = vst [vmem:[#allocation11_spill] sm:$0xff] %v7148_v29  ;;  %v897_v30 = vpack.c.bf16 %v848_v42, %v846_v50  ;;  %v7187_v27 = vmul.f32 %v5772_v5, %v7121_v51  ;;  %v7198_v53 = vmul.f32 %v5792_v47, %v7131_v18 }
 0x384   :  { %9381 = vst [vmem:[#allocation12_spill] sm:$0xff] %v7155_v63  ;;  %9382 = vst [vmem:[#allocation13_spill] sm:$0xff] %v7158_v26  ;;  %v898_v35 = vpack.c.bf16 %v849_v39, %v847_v1  ;;  %v5881_v1 = vld [vmem:[%s9370_s10 + $0x14] ss:$8 sps:$4 sm:$0xff]   ;;  %v7184_v39 = vmul.f32 %v5771_v52, %v7110_v54  ;;  %v7201_v44 = vmul.f32 %v5792_v47, %v7121_v51 }
 0x385   :  { %v614_v21 = vpop.f32.mrb[44].mxu1  ;;  %9384 = vst [vmem:[#allocation15_spill] sm:$0xff] %v7187_v27  ;;  %9386 = vst [vmem:[#allocation17_spill] sm:$0xff] %v7198_v53 }
 0x386   :  { %v7178_v56 = vadd.f32 %v614_v21, %v7071_v11  ;;  %v616_v46 = vpop.f32.mrb[45].mxu1  ;;  %9383 = vst [vmem:[#allocation14_spill] sm:$0xff] %v7184_v39  ;;  %1099 = vmatprep.mubr.bf16.mxu0 %v898_v35  ;;  %v7195_v21 = vmul.f32 %v9287_v48, %v7118_v10  ;;  %9387 = vst [vmem:[#allocation18_spill] sm:$0xff] %v7201_v44 }
 0x387   :  { %v7190_v42 = vadd.f32 %v616_v46, %v7094_v33  ;;  %v618_v50 = vpop.f32.mrb[46].mxu1  ;;  %1100 = vmatmul.mubr.bf16.vlgmr.msra.gmra.mrb[20].mxu0 %v897_v30  ;;  %v5879_v30 = vld [vmem:[%s9370_s10 + $0x10] ss:$8 sps:$4 sm:$0xff]  }
 0x388   :  { %9385 = vst [vmem:[#allocation16_spill] sm:$0xff] %v7195_v21  ;;  %v7204_v52 = vadd.f32 %v618_v50, %v7071_v11  ;;  %v620_v5 = vpop.f32.mrb[47].mxu1  ;;  %v850_v46 = vmul.f32 %v5715_v12, %v7178_v56  ;;  %v7212_v35 = vmul.f32 %v5736_v24, %v7178_v56  ;;  %v7215_v28 = vmul.f32 %v5756_v60, %v7178_v56 }
 0x389   :  { %v7218_v47 = vadd.f32 %v620_v5, %v7094_v33  ;;  %1309 = vmatpush1.bf16.msra.mxu0 %v5876_v25  ;;  %v851_v50 = vmul.f32 %v5715_v12, %v7190_v42  ;;  %v7229_v48 = vmul.f32 %v5736_v24, %v7190_v42  ;;  %v7232_v31 = vmul.f32 %v5756_v60, %v7190_v42  ;;  %v5884_v25 = vld [vmem:[%s9370_s10 + $0x24] ss:$8 sps:$4 sm:$0xff]  }
 0x38a   :  { %9388 = vst [vmem:[#allocation19_spill] sm:$0xff] %v7215_v28  ;;  %1310 = vmatprep.subr.bf16.mxu0 %v5881_v1  ;;  %v852_v5 = vmul.f32 %v5716_v23, %v7204_v52  ;;  %v7243_v12 = vmul.f32 %v5737_v40, %v7204_v52  ;;  %v7248_v24 = vmul.f32 %v5757_v49, %v7204_v52 }
 0x38b   :  { %9389 = vst [vmem:[#allocation20_spill] sm:$0xff] %v7232_v31  ;;  %v853_v1 = vmul.f32 %v5716_v23, %v7218_v47  ;;  %v7258_v34 = vmul.f32 %v5737_v40, %v7218_v47  ;;  %v7263_v9 = vmul.f32 %v5757_v49, %v7218_v47  ;;  %v7268_v38 = vmul.f32 %v9392_v19, %v7190_v42  ;;  %v5882_v19 = vld [vmem:[%s9370_s10 + $0x20] ss:$8 sps:$4 sm:$0xff]  }
 0x38c   :  { %9390 = vst [vmem:[#allocation21_spill] sm:$0xff] %v7248_v24  ;;  %v899_v60 = vpack.c.bf16 %v852_v5, %v850_v46  ;;  %v7277_v40 = vmul.f32 %v9394_v62, %v7218_v47  ;;  %v9396_v23 = vunpack.i.l.bf16 %v7100_v36  ;;  %v5782_v36 = vunpack.i.h.bf16 %v7081_v55  ;;  %v7406_v24 = vpop.permute.xlu0 %5799 }
 0x38d   :  { %9391 = vst [vmem:[#allocation22_spill] sm:$0xff] %v7263_v9  ;;  %9393 = vst [vmem:[#allocation23_spill] sm:$0xff] %v7268_v38  ;;  %1311 = vmatpush1.bf16.msra.mxu0 %v5879_v30  ;;  %v624_v14 = vpop.f32.mrb[48].mxu1  ;;  %v900_v49 = vpack.c.bf16 %v853_v1, %v851_v50  ;;  %v5887_v1 = vld [vmem:[%s9370_s10 + $0x34] ss:$8 sps:$4 sm:$0xff]   ;;  %v9398_v5 = vunpack.i.l.bf16 %v7015_v58 }
 0x38e   :  { %9395 = vst [vmem:[#allocation24_spill] sm:$0xff] %v7277_v40  ;;  %v7289_v57 = vmul.f32 %v9396_v23, %v7110_v54  ;;  %v7293_v30 = vadd.f32 %v624_v14, %v7071_v11  ;;  %v626_v50 = vpop.f32.mrb[49].mxu1  ;;  %1312 = vmatprep.subr.bf16.mxu0 %v5884_v25  ;;  %v5781_v23 = vunpack.i.l.bf16 %v7081_v55  ;;  %v9399_v55 = vunpack.i.l.bf16 %v7033_v4 }
 0x38f   :  { %v7305_v62 = vadd.f32 %v626_v50, %v7094_v33  ;;  %v628_v14 = vpop.f32.mrb[50].mxu1  ;;  %1109 = vmatprep.mubr.bf16.mxu0 %v900_v49  ;;  %v9400_v49 = vunpack.i.l.bf16 %v7058_v17 }
 0x390   :  { %9397 = vst [vmem:[#allocation25_spill] sm:$0xff] %v7289_v57  ;;  %v7310_v13 = vadd.f32 %v628_v14, %v7071_v11  ;;  %v630_v8 = vpop.f32.mrb[51].mxu1  ;;  %1110 = vmatmul.mubr.bf16.gmra.mrb[24].mxu0 %v899_v60  ;;  %v854_v46 = vmul.f32 %v9398_v5, %v7293_v30  ;;  %v7318_v21 = vmul.f32 %v9399_v55, %v7293_v30  ;;  %v5885_v60 = vld [vmem:[%s9370_s10 + $0x30] ss:$8 sps:$4 sm:$0xff]   ;;  %v7503_v63 = vpop.permute.xlu0 %2215 }
 0x391   :  { %v7323_v50 = vmul.f32 %v9400_v49, %v7178_v56  ;;  %v7326_v25 = vadd.f32 %v630_v8, %v7094_v33  ;;  %1313 = vmatpush1.bf16.msra.mxu0 %v5882_v19  ;;  %v855_v14 = vmul.f32 %v9398_v5, %v7305_v62  ;;  %v7337_v57 = vmul.f32 %v9399_v55, %v7305_v62  ;;  %v5890_v8 = vld [vmem:[%s9370_s10 + $0x44] ss:$8 sps:$4 sm:$0xff]  }
 0x392   :  { %v9402_v49 = vunpack.i.h.bf16 %v7058_v17  ;;  %1314 = vmatprep.subr.bf16.mxu0 %v5887_v1  ;;  %v9404_v19 = vunpack.i.h.bf16 %v7015_v58  ;;  %v9405_v5 = vunpack.i.h.bf16 %v7033_v4  ;;  %v9406_v55 = vunpack.i.l.bf16 %v7165_v43  ;;  %9434 = vst [vmem:[#allocation38_spill] sm:$0xff] %v7503_v63 }
 0x393   :  { %9401 = vst [vmem:[#allocation26_spill] sm:$0xff] %v7323_v50  ;;  %v9408_v1 = vunpack.i.h.bf16 %v7165_v43  ;;  %v7420_v58 = vmul.f32 %v5782_v36, %v7326_v25 }
 0x394   :  { %v7342_v44 = vmul.f32 %v9402_v49, %v7204_v52  ;;  %v856_v53 = vmul.f32 %v9404_v19, %v7310_v13  ;;  %v7353_v38 = vmul.f32 %v9405_v5, %v7310_v13  ;;  %v7358_v17 = vmul.f32 %v9406_v55, %v7190_v42 }
 0x395   :  { %v7363_v49 = vmul.f32 %v9408_v1, %v7218_v47  ;;  %v9410_v40 = vmov %v9404_v19  ;;  %v9411_v19 = vmov %v9405_v5  ;;  %v9412_v5 = vunpack.i.l.bf16 %v7039_v7  ;;  %v7383_v1 = vpop.permute.xlu1 %5804  ;;  %1315 = vmatpush1.bf16.msra.mxu0 %v5885_v60  ;;  %v634_v28 = vpop.f32.mrb[52].mxu1  ;;  %9421 = vst [vmem:[#allocation35_spill] sm:$0xff] %v7420_v58 }
 0x396   :  { %9403 = vst [vmem:[#allocation27_spill] sm:$0xff] %v7342_v44  ;;  %9407 = vst [vmem:[#allocation28_spill] sm:$0xff] %v7358_v17  ;;  %v857_v39 = vmul.f32 %v9410_v40, %v7326_v25  ;;  %v7371_v27 = vmul.f32 %v9411_v19, %v7326_v25  ;;  %v9414_v55 = vunpack.i.h.bf16 %v7039_v7  ;;  %v901_v15 = vpack.c.bf16 %v856_v53, %v854_v46  ;;  %v5888_v53 = vld [vmem:[%s9370_s10 + $0x40] ss:$8 sps:$4 sm:$0xff]   ;;  %v636_v60 = vpop.f32.mrb[53].mxu1 }
 0x397   :  { %9409 = vst [vmem:[#allocation29_spill] sm:$0xff] %v7363_v49  ;;  %v7376_v29 = vmul.f32 %v9412_v5, %v7305_v62  ;;  %v9416_v4 = vmov %v9412_v5  ;;  %v7409_v7 = vadd.f32 %v634_v28, %v7071_v11  ;;  %1316 = vmatprep.subr.bf16.mxu0 %v5890_v8  ;;  %v638_v28 = vpop.f32.mrb[54].mxu1  ;;  %v7426_v8 = vmul.f32 %v5781_v23, %v7293_v30 }
 0x398   :  { %v7381_v26 = vmul.f32 %v9414_v55, %v7326_v25  ;;  %v7390_v40 = vmul.f32 %v9416_v4, %v7293_v30  ;;  %v9418_v19 = vmov %v9414_v55  ;;  %v902_v55 = vpack.c.bf16 %v857_v39, %v855_v14  ;;  %v5893_v39 = vld [vmem:[%s9370_s10 + $0x54] ss:$8 sps:$4 sm:$0xff]   ;;  %v640_v44 = vpop.f32.mrb[55].mxu1 }
 0x399   :  { %9413 = vst [vmem:[#allocation30_spill] sm:$0xff] %v7376_v29  ;;  %v7395_v5 = vmul.f32 %v9418_v19, %v7310_v13  ;;  %v7417_v19 = vmul.f32 %v5781_v23, %v7305_v62  ;;  %v7423_v4 = vadd.f32 %v636_v60, %v7094_v33  ;;  %9422 = vst [vmem:[#allocation36_spill] sm:$0xff] %v7426_v8  ;;  %v9424_v60 = vunpack.i.l.bf16 %v7025_v37 }
 0x39a   :  { %9415 = vst [vmem:[#allocation31_spill] sm:$0xff] %v7381_v26  ;;  %9417 = vst [vmem:[#allocation32_spill] sm:$0xff] %v7390_v40  ;;  %1119 = vmatprep.mubr.bf16.mxu0 %v902_v55  ;;  %v7429_v46 = vmul.f32 %v5782_v36, %v7310_v13  ;;  %v7434_v50 = vadd.f32 %v638_v28, %v7071_v11  ;;  %v9425_v55 = vunpack.i.l.bf16 %v7031_v41  ;;  %v9426_v36 = vunpack.i.l.bf16 %v7056_v16 }
 0x39b   :  { %9419 = vst [vmem:[#allocation33_spill] sm:$0xff] %v7395_v5  ;;  %9420 = vst [vmem:[#allocation34_spill] sm:$0xff] %v7417_v19  ;;  %1120 = vmatmul.mubr.bf16.gmra.mrb[28].mxu0 %v901_v15  ;;  %v858_v40 = vmul.f32 %v9424_v60, %v7409_v7  ;;  %v7450_v14 = vadd.f32 %v640_v44, %v7094_v33  ;;  %v5891_v15 = vld [vmem:[%s9370_s10 + $0x50] ss:$8 sps:$4 sm:$0xff]   ;;  %v9427_v28 = vmov %v9424_v60  ;;  %v7468_v44 = vpop.permute.xlu1 %5809 }
 0x39c   :  { %9423 = vst [vmem:[#allocation37_spill] sm:$0xff] %v7429_v46  ;;  %v7442_v23 = vmul.f32 %v9425_v55, %v7409_v7  ;;  %v7447_v5 = vmul.f32 %v9426_v36, %v7409_v7  ;;  %1317 = vmatpush1.bf16.msra.mxu0 %v5888_v53  ;;  %v859_v60 = vmul.f32 %v9427_v28, %v7423_v4  ;;  %v5896_v53 = vld [vmem:[%s9370_s10 + $0x64] ss:$8 sps:$4 sm:$0xff]   ;;  %v9428_v28 = vunpack.i.h.bf16 %v7025_v37 }
 0x39d   :  { %v7461_v17 = vmul.f32 %v9425_v55, %v7423_v4  ;;  %v7466_v49 = vmul.f32 %v9426_v36, %v7423_v4  ;;  %1318 = vmatprep.subr.bf16.mxu0 %v5893_v39  ;;  %v9429_v55 = vunpack.i.h.bf16 %v7031_v41  ;;  %v9430_v36 = vunpack.i.h.bf16 %v7056_v16  ;;  %v644_v16 = vpop.f32.mrb[56].mxu1 }
 0x39e   :  { %v860_v29 = vmul.f32 %v9428_v28, %v7434_v50  ;;  %v9431_v9 = vmov %v9428_v28  ;;  %v9435_v41 = vunpack.i.l.bf16 %v7065_v20 }
 0x39f   :  { %v7479_v26 = vmul.f32 %v9429_v55, %v7434_v50  ;;  %v7484_v31 = vmul.f32 %v9430_v36, %v7434_v50  ;;  %v861_v3 = vmul.f32 %v9431_v9, %v7450_v14  ;;  %v9432_v28 = vmov %v9429_v55 }
 0x3a0   :  { %v7494_v45 = vmul.f32 %v9432_v28, %v7450_v14  ;;  %v9433_v55 = vmov %v9430_v36  ;;  %v903_v39 = vpack.c.bf16 %v860_v29, %v858_v40  ;;  %v7512_v28 = vmul.f32 %v9435_v41, %v7423_v4  ;;  %1319 = vmatpush1.bf16.msra.mxu0 %v5891_v15  ;;  %v5894_v36 = vld [vmem:[%s9370_s10 + $0x60] ss:$8 sps:$4 sm:$0xff]   ;;  %v5820_v15 = vpop.permute.xlu1 %5819  ;;  %v5899_v29 = vld [vmem:[%s9370_s10 + $0x74] ss:$8 sps:$4 sm:$0xff]  }
 0x3a1   :  { %v7499_v32 = vmul.f32 %v9433_v55, %v7450_v14  ;;  %v904_v55 = vpack.c.bf16 %v861_v3, %v859_v60  ;;  %v9437_v9 = vunpack.i.h.bf16 %v7065_v20  ;;  %v5811_v41 = vunpack.i.l.bf16 %v7468_v44  ;;  %v646_v60 = vpop.f32.mrb[57].mxu1  ;;  %1320 = vmatprep.subr.bf16.mxu0 %v5896_v53 }
 0x3a2   :  { %9436 = vst [vmem:[#allocation39_spill] sm:$0xff] %v7512_v28  ;;  %v7528_v3 = vadd.f32 %v644_v16, %v7071_v11  ;;  %v9438_v40 = vunpack.i.l.bf16 %v7065_v20  ;;  %v5822_v46 = vunpack.i.h.bf16 %v5820_v15  ;;  %v5821_v19 = vunpack.i.l.bf16 %v5820_v15  ;;  %v648_v53 = vpop.f32.mrb[58].mxu1 }
 0x3a3   :  { %v7524_v37 = vmul.f32 %v9437_v9, %v7450_v14  ;;  %v7541_v8 = vmul.f32 %v9437_v9, %v7434_v50  ;;  %v7544_v11 = vadd.f32 %v646_v60, %v7094_v33  ;;  %1129 = vmatprep.mubr.bf16.mxu0 %v904_v55  ;;  %v649_v58 = vpop.f32.mrb[59].mxu1  ;;  %v9441_v20 = vunpack.i.l.bf16 %v7165_v43 }
 0x3a4   :  { %v7536_v63 = vmul.f32 %v9438_v40, %v7409_v7  ;;  %1130 = vmatmul.mubr.bf16.gmra.mrb[32].mxu0 %v903_v39  ;;  %v9443_v15 = vunpack.i.h.bf16 %v7165_v43  ;;  %v5802_v55 = vunpack.i.h.bf16 %v7406_v24  ;;  %v5807_v60 = vunpack.i.h.bf16 %v7383_v1  ;;  %v5897_v58 = vld [vmem:[%s9370_s10 + $0x70] ss:$8 sps:$4 sm:$0xff]   ;;  %v5815_v40 = vpop.permute.xlu0 %5814 }
 0x3a5   :  { %9440 = vst [vmem:[#allocation41_spill] sm:$0xff] %v7541_v8  ;;  %v7553_v9 = vmul.f32 %v9441_v20, %v7178_v56  ;;  %v5806_v39 = vunpack.i.l.bf16 %v7383_v1  ;;  %1321 = vmatpush1.bf16.msra.mxu0 %v5894_v36  ;;  %v863_v53 = vmul.f32 %v7023_v61, %v7544_v11  ;;  %v5801_v20 = vunpack.i.l.bf16 %v7406_v24 }
 0x3a6   :  { %9439 = vst [vmem:[#allocation40_spill] sm:$0xff] %v7536_v63  ;;  %v7558_v33 = vmul.f32 %v9443_v15, %v7204_v52  ;;  %v5812_v43 = vunpack.i.h.bf16 %v7468_v44  ;;  %1322 = vmatprep.subr.bf16.mxu0 %v5899_v29  ;;  %v5902_v15 = vld [vmem:[%s9370_s10 + $0x84] ss:$8 sps:$4 sm:$0xff]   ;;  %v862_v1 = vmul.f32 %v7023_v61, %v7528_v3  ;;  %v7576_v36 = vmul.f32 %v5811_v41, %v7118_v10 }
 0x3a7   :  { %9442 = vst [vmem:[#allocation42_spill] sm:$0xff] %v7553_v9  ;;  %v7579_v16 = vmul.f32 %v5821_v19, %v7293_v30  ;;  %v7582_v63 = vmul.f32 %v5821_v19, %v7305_v62  ;;  %v7585_v24 = vmul.f32 %v5822_v46, %v7310_v13  ;;  %v906_v44 = vpack.c.bf16 %v863_v53, %v863_v53  ;;  %v5900_v19 = vld [vmem:[%s9370_s10 + $0x80] ss:$8 sps:$4 sm:$0xff]  }
 0x3a8   :  { %9444 = vst [vmem:[#allocation43_spill] sm:$0xff] %v7558_v33  ;;  %v7590_v8 = vmul.f32 %v5801_v20, %v7305_v62  ;;  %v7593_v61 = vmul.f32 %v5802_v55, %v7326_v25  ;;  %v7596_v10 = vmul.f32 %v5801_v20, %v7293_v30  ;;  %v5816_v28 = vunpack.i.l.bf16 %v5815_v40  ;;  %v5905_v30 = vld [vmem:[%s9370_s10 + $0x94] ss:$8 sps:$4 sm:$0xff]  }
 0x3a9   :  { %1323 = vmatpush1.bf16.msra.mxu0 %v5897_v58  ;;  %1139 = vmatprep.mubr.bf16.mxu0 %v906_v44  ;;  %v7602_v53 = vmul.f32 %v5802_v55, %v7310_v13  ;;  %v7605_v29 = vmul.f32 %v5806_v39, %v7423_v4  ;;  %v7608_v62 = vmul.f32 %v5807_v60, %v7450_v14  ;;  %v5817_v33 = vunpack.i.h.bf16 %v5815_v40  ;;  %v5825_v58 = vpop.permute.xlu0 %5824 }
 0x3aa   :  { %1324 = vmatprep.subr.bf16.mxu0 %v5902_v15  ;;  %v905_v9 = vpack.c.bf16 %v862_v1, %v862_v1  ;;  %v7616_v20 = vmul.f32 %v5806_v39, %v7409_v7  ;;  %v7619_v13 = vmul.f32 %v5807_v60, %v7434_v50  ;;  %v7622_v55 = vmul.f32 %v5822_v46, %v7326_v25 }
 0x3ab   :  { %v7629_v44 = vmul.f32 %v5812_v43, %v7131_v18  ;;  %v7634_v60 = vmul.f32 %v5811_v41, %v7110_v54  ;;  %v7637_v25 = vmul.f32 %v5812_v43, %v7121_v51  ;;  %v5827_v46 = vunpack.i.h.bf16 %v5825_v58  ;;  %v5903_v18 = vld [vmem:[%s9370_s10 + $0x90] ss:$8 sps:$4 sm:$0xff]   ;;  %v5908_v51 = vld [vmem:[%s9370_s10 + $0xa4] ss:$8 sps:$4 sm:$0xff]  }
 0x3ac   :  { %1140 = vmatmul.mubr.bf16.gmra.mrb[36].mxu0 %v905_v9  ;;  %v2275_v39 = vpack.c.bf16 %v7619_v13, %v7616_v20  ;;  %v5826_v15 = vunpack.i.l.bf16 %v5825_v58  ;;  %v9445_v1 = vpack.c.bf16 %v7152_v22, %v7135_v59  ;;  %v7648_v54 = vmul.f32 %v5816_v28, %v7190_v42  ;;  %v5914_v58 = vld [vmem:[%s9370_s10 + $0xc4] ss:$8 sps:$4 sm:$0xff]   ;;  %v6095_v20 = vld [vmem:[%s9370_s10 + $0x580] ss:$8 sps:$4 sm:$0xff]  }
 0x3ad   :  { %1325 = vmatpush1.bf16.msra.mxu0 %v5900_v19  ;;  %v2653_v40 = vpack.c.bf16 %v7629_v44, %v7576_v36  ;;  %v2652_v41 = vpack.c.bf16 %v7637_v25, %v7634_v60  ;;  %v7656_v59 = vmul.f32 %v5817_v33, %v7218_v47  ;;  %v7659_v22 = vmul.f32 %v5816_v28, %v7178_v56  ;;  %v6106_v36 = vld [vmem:[%s9370_s10 + $0x5b4] ss:$8 sps:$4 sm:$0xff]   ;;  %v6104_v44 = vld [vmem:[%s9370_s10 + $0x5b0] ss:$8 sps:$4 sm:$0xff]   ;;  %v2599_v60 = vpop.permute.xlu1 %2598 }
 0x3ae   :  { %1340 = vmatprep.mubr.bf16.mxu0 %v9445_v1  ;;  %1326 = vmatprep.subr.bf16.mxu0 %v5905_v30  ;;  %v7662_v9 = vmul.f32 %v5817_v33, %v7204_v52  ;;  %v2657_v42 = vpack.c.bf16 %v7622_v55, %v7582_v63  ;;  %v2656_v43 = vpack.c.bf16 %v7585_v24, %v7579_v16  ;;  %v5911_v33 = vld [vmem:[%s9370_s10 + $0xb4] ss:$8 sps:$4 sm:$0xff]  }
 0x3af   :  { %v7669_v19 = vmul.f32 %v5826_v15, %v7423_v4  ;;  %v7672_v30 = vmul.f32 %v5827_v46, %v7450_v14  ;;  %v2655_v47 = vpack.c.bf16 %v7656_v59, %v7648_v54  ;;  %v7679_v52 = vmul.f32 %v5826_v15, %v7409_v7  ;;  %v5906_v4 = vld [vmem:[%s9370_s10 + $0xa0] ss:$8 sps:$4 sm:$0xff]   ;;  %v5917_v1 = vld [vmem:[%s9370_s10 + $0xd4] ss:$8 sps:$4 sm:$0xff]  }
 0x3b0   :  { %v2654_v56 = vpack.c.bf16 %v7662_v9, %v7659_v22  ;;  %v7682_v28 = vmul.f32 %v5827_v46, %v7434_v50  ;;  %v5909_v50 = vld [vmem:[%s9370_s10 + $0xb0] ss:$8 sps:$4 sm:$0xff]   ;;  %v5912_v15 = vld [vmem:[%s9370_s10 + $0xc0] ss:$8 sps:$4 sm:$0xff]   ;;  %v2618_v25 = vmul.f32 %v2599_v60, %v7544_v11  ;;  %v2617_v63 = vmul.f32 %v2599_v60, %v7528_v3 }
 0x3b1   :  { %1327 = vmatpush1.bf16.msra.mxu0 %v5903_v18  ;;  %v2659_v14 = vpack.c.bf16 %v7672_v30, %v7669_v19  ;;  %v5915_v46 = vld [vmem:[%s9370_s10 + $0xd0] ss:$8 sps:$4 sm:$0xff]   ;;  %v5920_v18 = vld [vmem:[%s9370_s10 + $0xe4] ss:$8 sps:$4 sm:$0xff]  }
 0x3b2   :  { %1328 = vmatprep.subr.bf16.mxu0 %v5908_v51  ;;  %v2658_v7 = vpack.c.bf16 %v7682_v28, %v7679_v52  ;;  %v5918_v51 = vld [vmem:[%s9370_s10 + $0xe0] ss:$8 sps:$4 sm:$0xff]   ;;  %v2661_v54 = vpack.c.bf16 %v2618_v25, %v2618_v25  ;;  %v2660_v55 = vpack.c.bf16 %v2617_v63, %v2617_v63  ;;  %v8354_v59 = vld [vmem:[%s9258_s7 + $0x70] sm:$0xff]   ;;  %v8371_v9 = vld [vmem:[%s9258_s7 + $0x38] sm:$0xff]  }
 0x3b3   :  { %v8360_v22 = vld [vmem:[%s9258_s7 + $0x30] sm:$0xff]  }
 0x3b5   :  { %1329 = vmatpush1.bf16.msra.mxu0 %v5906_v4  ;;  %v5923_v4 = vld [vmem:[%s9370_s10 + $0xf4] ss:$8 sps:$4 sm:$0xff]  }
 0x3b6   :  { %1330 = vmatprep.subr.bf16.mxu0 %v5911_v33  ;;  %v5921_v33 = vld [vmem:[%s9370_s10 + $0xf0] ss:$8 sps:$4 sm:$0xff]  }
 0x3b9   :  { %1331 = vmatpush1.bf16.msra.mxu0 %v5909_v50  ;;  %v5926_v50 = vld [vmem:[%s9370_s10 + $0x204] ss:$8 sps:$4 sm:$0xff]  }
 0x3ba   :  { %1332 = vmatprep.subr.bf16.mxu0 %v5914_v58  ;;  %v5924_v58 = vld [vmem:[%s9370_s10 + $0x200] ss:$8 sps:$4 sm:$0xff]  }
 0x3bd   :  { %1333 = vmatpush1.bf16.msra.mxu0 %v5912_v15  ;;  %v5932_v15 = vld [vmem:[%s9370_s10 + $0x214] ss:$8 sps:$4 sm:$0xff]  }
 0x3be   :  { %1334 = vmatprep.subr.bf16.mxu0 %v5917_v1  ;;  %v9446_v1 = vpack.c.bf16 %v7142_v2, %v7125_v0  ;;  %v5933_v0 = vld [vmem:[%s9370_s10 + $0x220] ss:$8 sps:$4 sm:$0xff]   ;;  %v9449_v2 = vpack.c.bf16 %v7371_v27, %v7337_v57  ;;  %v5944_v27 = vld [vmem:[%s9370_s10 + $0x254] ss:$8 sps:$4 sm:$0xff]   ;;  %v9451_v57 = vpack.c.bf16 %v7494_v45, %v7461_v17  ;;  %v9452_v17 = vpack.c.bf16 %v7479_v26, %v7442_v23 }
 0x3bf   :  { %v5950_v45 = vld [vmem:[%s9370_s10 + $0x274] ss:$8 sps:$4 sm:$0xff]   ;;  %v5951_v26 = vld [vmem:[%s9370_s10 + $0x280] ss:$8 sps:$4 sm:$0xff]  }
 0x3c1   :  { %1335 = vmatpush1.bf16.msra.mxu0 %v5915_v46  ;;  %v9447_v46 = vpack.c.bf16 %v7258_v34, %v7229_v48  ;;  %v5938_v34 = vld [vmem:[%s9370_s10 + $0x234] ss:$8 sps:$4 sm:$0xff]   ;;  %v9448_v48 = vpack.c.bf16 %v7243_v12, %v7212_v35  ;;  %v5939_v35 = vld [vmem:[%s9370_s10 + $0x240] ss:$8 sps:$4 sm:$0xff]   ;;  %v9450_v12 = vpack.c.bf16 %v7353_v38, %v7318_v21 }
 0x3c2   :  { %1336 = vmatprep.subr.bf16.mxu0 %v5920_v18  ;;  %v5930_v18 = vld [vmem:[%s9370_s10 + $0x210] ss:$8 sps:$4 sm:$0xff]   ;;  %v5945_v38 = vld [vmem:[%s9370_s10 + $0x260] ss:$8 sps:$4 sm:$0xff]  }
 0x3c5   :  { %1337 = vmatpush1.bf16.msra.mxu0 %v5918_v51  ;;  %v5935_v51 = vld [vmem:[%s9370_s10 + $0x224] ss:$8 sps:$4 sm:$0xff]  }
 0x3c6   :  { %1338 = vmatprep.subr.bf16.mxu0 %v5923_v4  ;;  %v5936_v4 = vld [vmem:[%s9370_s10 + $0x230] ss:$8 sps:$4 sm:$0xff]  }
 0x3c9   :  { %1339 = vmatpush1.bf16.msra.mxu0 %v5921_v33  ;;  %v5941_v33 = vld [vmem:[%s9370_s10 + $0x244] ss:$8 sps:$4 sm:$0xff]  }
 0x3ca   :  { %1673 = vmatprep.subr.bf16.mxu0 %v5926_v50  ;;  %v5942_v50 = vld [vmem:[%s9370_s10 + $0x250] ss:$8 sps:$4 sm:$0xff]  }
 0x3cc   :  { %1341 = vmatmul.mubr.bf16.vlgmr.msra.gmra.mrb[20].mxu0 %v9446_v1  ;;  %v5948_v1 = vld [vmem:[%s9370_s10 + $0x270] ss:$8 sps:$4 sm:$0xff]  }
 0x3cd   :  { %1350 = vmatprep.mubr.bf16.mxu0 %v9447_v46  ;;  %1674 = vmatpush1.bf16.msra.mxu0 %v5924_v58  ;;  %v5947_v58 = vld [vmem:[%s9370_s10 + $0x264] ss:$8 sps:$4 sm:$0xff]   ;;  %v739_v46 = vmul.f32 %v7037_v6, %v7528_v3 }
 0x3ce   :  { %1675 = vmatprep.subr.bf16.mxu0 %v5932_v15  ;;  %v740_v15 = vmul.f32 %v7037_v6, %v7544_v11 }
 0x3cf   :  { %v781_v23 = vpack.c.bf16 %v739_v46, %v739_v46  ;;  %v9456_v46 = vld [vmem:[#allocation10_spill] sm:$0xff] }
 0x3d0   :  { %v782_v21 = vpack.c.bf16 %v740_v15, %v740_v15  ;;  %v5969_v15 = vld [vmem:[%s9370_s10 + $0x2e0] ss:$8 sps:$4 sm:$0xff]  }
 0x3d1   :  { %1676 = vmatpush1.bf16.msra.mxu0 %v5930_v18  ;;  %v5953_v18 = vld [vmem:[%s9370_s10 + $0x284] ss:$8 sps:$4 sm:$0xff]  }
 0x3d2   :  { %1677 = vmatprep.subr.bf16.mxu0 %v5935_v51  ;;  %v5956_v51 = vld [vmem:[%s9370_s10 + $0x294] ss:$8 sps:$4 sm:$0xff]  }
 0x3d4   :  { %1351 = vmatmul.mubr.bf16.gmra.mrb[24].mxu0 %v9448_v48  ;;  %v5954_v48 = vld [vmem:[%s9370_s10 + $0x290] ss:$8 sps:$4 sm:$0xff]  }
 0x3d5   :  { %1360 = vmatprep.mubr.bf16.mxu0 %v9449_v2  ;;  %1678 = vmatpush1.bf16.msra.mxu0 %v5933_v0  ;;  %v9453_v0 = vld [vmem:[#allocation12_spill] sm:$0xff]  ;;  %v5959_v2 = vld [vmem:[%s9370_s10 + $0x2a4] ss:$8 sps:$4 sm:$0xff]  }
 0x3d6   :  { %1679 = vmatprep.subr.bf16.mxu0 %v5938_v34  ;;  %v9454_v34 = vld [vmem:[#allocation9_spill] sm:$0xff] }
 0x3d7   :  { %v9455_v6 = vpack.c.bf16 %v9453_v0, %v9454_v34  ;;  %v5978_v34 = vld [vmem:[%s9370_s10 + $0x310] ss:$8 sps:$4 sm:$0xff]  }
 0x3d9   :  { %1680 = vmatpush1.bf16.msra.mxu0 %v5936_v4  ;;  %v5957_v4 = vld [vmem:[%s9370_s10 + $0x2a0] ss:$8 sps:$4 sm:$0xff]  }
 0x3da   :  { %1681 = vmatprep.subr.bf16.mxu0 %v5941_v33  ;;  %v5962_v33 = vld [vmem:[%s9370_s10 + $0x2b4] ss:$8 sps:$4 sm:$0xff]  }
 0x3dc   :  { %1361 = vmatmul.mubr.bf16.gmra.mrb[28].mxu0 %v9450_v12  ;;  %v5963_v12 = vld [vmem:[%s9370_s10 + $0x2c0] ss:$8 sps:$4 sm:$0xff]  }
 0x3dd   :  { %1370 = vmatprep.mubr.bf16.mxu0 %v9451_v57  ;;  %1682 = vmatpush1.bf16.msra.mxu0 %v5939_v35  ;;  %v5960_v35 = vld [vmem:[%s9370_s10 + $0x2b0] ss:$8 sps:$4 sm:$0xff]   ;;  %v5968_v57 = vld [vmem:[%s9370_s10 + $0x2d4] ss:$8 sps:$4 sm:$0xff]  }
 0x3de   :  { %1683 = vmatprep.subr.bf16.mxu0 %v5944_v27  ;;  %v5965_v27 = vld [vmem:[%s9370_s10 + $0x2c4] ss:$8 sps:$4 sm:$0xff]  }
 0x3e1   :  { %1684 = vmatpush1.bf16.msra.mxu0 %v5942_v50  ;;  %v5966_v50 = vld [vmem:[%s9370_s10 + $0x2d0] ss:$8 sps:$4 sm:$0xff]  }
 0x3e2   :  { %1685 = vmatprep.subr.bf16.mxu0 %v5947_v58  ;;  %v5971_v58 = vld [vmem:[%s9370_s10 + $0x2e4] ss:$8 sps:$4 sm:$0xff]  }
 0x3e4   :  { %1371 = vmatmul.mubr.bf16.gmra.mrb[32].mxu0 %v9452_v17  ;;  %v5975_v17 = vld [vmem:[%s9370_s10 + $0x300] ss:$8 sps:$4 sm:$0xff]  }
 0x3e5   :  { %1380 = vmatprep.mubr.bf16.mxu0 %v782_v21  ;;  %1686 = vmatpush1.bf16.msra.mxu0 %v5945_v38  ;;  %v5974_v38 = vld [vmem:[%s9370_s10 + $0x2f4] ss:$8 sps:$4 sm:$0xff]   ;;  %v5977_v21 = vld [vmem:[%s9370_s10 + $0x304] ss:$8 sps:$4 sm:$0xff]  }
 0x3e6   :  { %1687 = vmatprep.subr.bf16.mxu0 %v5950_v45  ;;  %v5972_v45 = vld [vmem:[%s9370_s10 + $0x2f0] ss:$8 sps:$4 sm:$0xff]  }
 0x3e9   :  { %1688 = vmatpush1.bf16.msra.mxu0 %v5948_v1  ;;  %v5980_v1 = vld [vmem:[%s9370_s10 + $0x314] ss:$8 sps:$4 sm:$0xff]  }
 0x3ea   :  { %1689 = vmatprep.subr.bf16.mxu0 %v5953_v18  ;;  %v9457_v18 = vld [vmem:[#allocation8_spill] sm:$0xff] }
 0x3ec   :  { %1381 = vmatmul.mubr.bf16.gmra.mrb[36].mxu0 %v781_v23  ;;  %v9459_v23 = vld [vmem:[#allocation22_spill] sm:$0xff] }
 0x3ed   :  { %1690 = vmatpush1.bf16.msra.mxu0 %v5951_v26  ;;  %1705 = vmatprep.mubr.bf16.mxu0 %v9455_v6  ;;  %v9458_v26 = vpack.c.bf16 %v9456_v46, %v9457_v18  ;;  %v5983_v6 = vld [vmem:[%s9370_s10 + $0x324] ss:$8 sps:$4 sm:$0xff]   ;;  %v5990_v46 = vld [vmem:[%s9370_s10 + $0x350] ss:$8 sps:$4 sm:$0xff]  }
 0x3ee   :  { %1691 = vmatprep.subr.bf16.mxu0 %v5956_v51  ;;  %v9460_v51 = vld [vmem:[#allocation20_spill] sm:$0xff]  ;;  %v5995_v18 = vld [vmem:[%s9370_s10 + $0x364] ss:$8 sps:$4 sm:$0xff]  }
 0x3ef   :  { %v9461_v0 = vpack.c.bf16 %v9459_v23, %v9460_v51  ;;  %v5993_v51 = vld [vmem:[%s9370_s10 + $0x360] ss:$8 sps:$4 sm:$0xff]  }
 0x3f1   :  { %1692 = vmatpush1.bf16.msra.mxu0 %v5954_v48  ;;  %v5981_v48 = vld [vmem:[%s9370_s10 + $0x320] ss:$8 sps:$4 sm:$0xff]  }
 0x3f2   :  { %1693 = vmatprep.subr.bf16.mxu0 %v5959_v2  ;;  %v5986_v2 = vld [vmem:[%s9370_s10 + $0x334] ss:$8 sps:$4 sm:$0xff]  }
 0x3f5   :  { %1694 = vmatpush1.bf16.msra.mxu0 %v5957_v4  ;;  %v9462_v4 = vld [vmem:[#allocation21_spill] sm:$0xff] }
 0x3f6   :  { %1695 = vmatprep.subr.bf16.mxu0 %v5962_v33  ;;  %v9463_v33 = vld [vmem:[#allocation19_spill] sm:$0xff] }
 0x3f9   :  { %1696 = vmatpush1.bf16.msra.mxu0 %v5960_v35  ;;  %v9464_v35 = vpack.c.bf16 %v9462_v4, %v9463_v33  ;;  %v9474_v4 = vld [vmem:[#allocation13_spill] sm:$0xff]  ;;  %v9475_v33 = vld [vmem:[#allocation11_spill] sm:$0xff] }
 0x3fa   :  { %1697 = vmatprep.subr.bf16.mxu0 %v5965_v27  ;;  %v9465_v27 = vld [vmem:[#allocation31_spill] sm:$0xff] }
 0x3fd   :  { %1698 = vmatpush1.bf16.msra.mxu0 %v5963_v12  ;;  %v9466_v12 = vld [vmem:[#allocation30_spill] sm:$0xff] }
 0x3fe   :  { %1699 = vmatprep.subr.bf16.mxu0 %v5968_v57  ;;  %v9467_v57 = vpack.c.bf16 %v9465_v27, %v9466_v12  ;;  %v6002_v27 = vld [vmem:[%s9370_s10 + $0x390] ss:$8 sps:$4 sm:$0xff]   ;;  %v6007_v12 = vld [vmem:[%s9370_s10 + $0x3a4] ss:$8 sps:$4 sm:$0xff]  }
 0x401   :  { %1700 = vmatpush1.bf16.msra.mxu0 %v5966_v50  ;;  %v5984_v50 = vld [vmem:[%s9370_s10 + $0x330] ss:$8 sps:$4 sm:$0xff]  }
 0x402   :  { %1701 = vmatprep.subr.bf16.mxu0 %v5971_v58  ;;  %v5989_v58 = vld [vmem:[%s9370_s10 + $0x344] ss:$8 sps:$4 sm:$0xff]  }
 0x405   :  { %1702 = vmatpush1.bf16.msra.mxu0 %v5969_v15  ;;  %v5987_v15 = vld [vmem:[%s9370_s10 + $0x340] ss:$8 sps:$4 sm:$0xff]  }
 0x406   :  { %1703 = vmatprep.subr.bf16.mxu0 %v5974_v38  ;;  %v5992_v38 = vld [vmem:[%s9370_s10 + $0x354] ss:$8 sps:$4 sm:$0xff]  }
 0x409   :  { %1704 = vmatpush1.bf16.msra.mxu0 %v5972_v45  ;;  %v9468_v45 = vld [vmem:[#allocation33_spill] sm:$0xff] }
 0x40a   :  { %2056 = vmatprep.subr.bf16.mxu0 %v5977_v21  ;;  %v9469_v21 = vld [vmem:[#allocation32_spill] sm:$0xff] }
 0x40c   :  { %1706 = vmatmul.mubr.bf16.vlgmr.msra.gmra.mrb[20].mxu0 %v9458_v26  ;;  %v9472_v26 = vld [vmem:[#allocation5_spill] sm:$0xff] }
 0x40d   :  { %1715 = vmatprep.mubr.bf16.mxu0 %v9461_v0  ;;  %2057 = vmatpush1.bf16.msra.mxu0 %v5975_v17  ;;  %v9470_v17 = vpack.c.bf16 %v9468_v45, %v9469_v21  ;;  %v1469_v23 = vmul.f32 %v9472_v26, %v7544_v11  ;;  %v9473_v0 = vpack.c.bf16 %v7484_v31, %v7447_v5  ;;  %v5999_v31 = vld [vmem:[%s9370_s10 + $0x380] ss:$8 sps:$4 sm:$0xff]   ;;  %v6016_v45 = vld [vmem:[%s9370_s10 + $0x3d4] ss:$8 sps:$4 sm:$0xff]   ;;  %v6014_v21 = vld [vmem:[%s9370_s10 + $0x3d0] ss:$8 sps:$4 sm:$0xff]  }
 0x40e   :  { %2058 = vmatprep.subr.bf16.mxu0 %v5980_v1  ;;  %v9471_v1 = vpack.c.bf16 %v7499_v32, %v7466_v49  ;;  %v5998_v32 = vld [vmem:[%s9370_s10 + $0x374] ss:$8 sps:$4 sm:$0xff]  }
 0x40f   :  { %v1512_v49 = vpack.c.bf16 %v1469_v23, %v1469_v23  ;;  %v6022_v23 = vld [vmem:[%s9370_s10 + $0x3f4] ss:$8 sps:$4 sm:$0xff]  }
 0x411   :  { %2059 = vmatpush1.bf16.msra.mxu0 %v5978_v34  ;;  %v5996_v34 = vld [vmem:[%s9370_s10 + $0x370] ss:$8 sps:$4 sm:$0xff]  }
 0x412   :  { %2060 = vmatprep.subr.bf16.mxu0 %v5983_v6  ;;  %v1468_v6 = vmul.f32 %v9472_v26, %v7528_v3 }
 0x414   :  { %1716 = vmatmul.mubr.bf16.gmra.mrb[24].mxu0 %v9464_v35  ;;  %v1511_v5 = vpack.c.bf16 %v1468_v6, %v1468_v6  ;;  %v9476_v35 = vpack.c.bf16 %v9474_v4, %v9475_v33  ;;  %v6025_v6 = vld [vmem:[%s9370_s10 + $0x404] ss:$8 sps:$4 sm:$0xff]  }
 0x415   :  { %1725 = vmatprep.mubr.bf16.mxu0 %v9467_v57  ;;  %2061 = vmatpush1.bf16.msra.mxu0 %v5981_v48  ;;  %v6001_v48 = vld [vmem:[%s9370_s10 + $0x384] ss:$8 sps:$4 sm:$0xff]   ;;  %v6005_v57 = vld [vmem:[%s9370_s10 + $0x3a0] ss:$8 sps:$4 sm:$0xff]  }
 0x416   :  { %2062 = vmatprep.subr.bf16.mxu0 %v5986_v2  ;;  %v6004_v2 = vld [vmem:[%s9370_s10 + $0x394] ss:$8 sps:$4 sm:$0xff]   ;;  %v9478_v4 = vld [vmem:[#allocation14_spill] sm:$0xff] }
 0x419   :  { %2063 = vmatpush1.bf16.msra.mxu0 %v5984_v50  ;;  %v6010_v50 = vld [vmem:[%s9370_s10 + $0x3b4] ss:$8 sps:$4 sm:$0xff]  }
 0x41a   :  { %2064 = vmatprep.subr.bf16.mxu0 %v5989_v58  ;;  %v6008_v58 = vld [vmem:[%s9370_s10 + $0x3b0] ss:$8 sps:$4 sm:$0xff]  }
 0x41c   :  { %1726 = vmatmul.mubr.bf16.gmra.mrb[28].mxu0 %v9470_v17  ;;  %v6019_v17 = vld [vmem:[%s9370_s10 + $0x3e4] ss:$8 sps:$4 sm:$0xff]  }
 0x41d   :  { %1735 = vmatprep.mubr.bf16.mxu0 %v9471_v1  ;;  %2065 = vmatpush1.bf16.msra.mxu0 %v5987_v15  ;;  %v6013_v15 = vld [vmem:[%s9370_s10 + $0x3c4] ss:$8 sps:$4 sm:$0xff]   ;;  %v3043_v1 = vpop.f32.mrb[60].mxu1 }
 0x41e   :  { %2066 = vmatprep.subr.bf16.mxu0 %v5992_v38  ;;  %v6011_v38 = vld [vmem:[%s9370_s10 + $0x3c0] ss:$8 sps:$4 sm:$0xff]  }
 0x421   :  { %2067 = vmatpush1.bf16.msra.mxu0 %v5990_v46  ;;  %v3045_v46 = vpop.f32.mrb[61].mxu1 }
 0x422   :  { %2068 = vmatprep.subr.bf16.mxu0 %v5995_v18  ;;  %v6017_v18 = vld [vmem:[%s9370_s10 + $0x3e0] ss:$8 sps:$4 sm:$0xff]   ;;  %v3047_v26 = vpop.f32.mrb[62].mxu1 }
 0x424   :  { %1736 = vmatmul.mubr.bf16.gmra.mrb[32].mxu0 %v9473_v0 }
 0x425   :  { %1745 = vmatprep.mubr.bf16.mxu0 %v1512_v49  ;;  %2069 = vmatpush1.bf16.msra.mxu0 %v5993_v51  ;;  %v3052_v51 = vpack.c.bf16 %v3047_v26, %v3043_v1 }
 0x426   :  { %2070 = vmatprep.subr.bf16.mxu0 %v5998_v32  ;;  %v3049_v32 = vpop.f32.mrb[63].mxu1 }
 0x427   :  { %v3053_v49 = vpack.c.bf16 %v3049_v32, %v3045_v46  ;;  %v3095_v0 = vsel %vm3093_vm13, %v3052_v51, 0  ;;  %v9487_v46 = vld [vmem:[#allocation35_spill] sm:$0xff]  ;;  %v8026_v32 = vld [vmem:[%s9257_s6 + $0x10] sm:$0xff]  }
 0x428   :  { %v6037_v51 = vld [vmem:[%s9370_s10 + $0x444] ss:$8 sps:$4 sm:$0xff]  }
 0x429   :  { %2071 = vmatpush1.bf16.msra.mxu0 %v5996_v34  ;;  %v6020_v34 = vld [vmem:[%s9370_s10 + $0x3f0] ss:$8 sps:$4 sm:$0xff]   ;;  %5186 = vmatprep.subr.msk.bf16.mxu1 %vm3093_vm13, %v3053_v49  ;;  %v6035_v49 = vld [vmem:[%s9370_s10 + $0x440] ss:$8 sps:$4 sm:$0xff]  }
 0x42a   :  { %2072 = vmatprep.subr.bf16.mxu0 %v6001_v48  ;;  %3101 = vmatpush1.bf16.msra.mxu1 %v3095_v0  ;;  %v6023_v48 = vld [vmem:[%s9370_s10 + $0x400] ss:$8 sps:$4 sm:$0xff]   ;;  %v6040_v0 = vld [vmem:[%s9370_s10 + $0x454] ss:$8 sps:$4 sm:$0xff]  }
 0x42c   :  { %1746 = vmatmul.mubr.bf16.gmra.mrb[36].mxu0 %v1511_v5  ;;  %v6119_v5 = vld [vmem:[%s9257_s6] sm:$0xff]  }
 0x42d   :  { %2073 = vmatpush1.bf16.msra.mxu0 %v5999_v31  ;;  %2088 = vmatprep.mubr.bf16.mxu0 %v9476_v35  ;;  %v6028_v31 = vld [vmem:[%s9370_s10 + $0x414] ss:$8 sps:$4 sm:$0xff]  }
 0x42e   :  { %2074 = vmatprep.subr.bf16.mxu0 %v6004_v2  ;;  %v9477_v2 = vld [vmem:[#allocation15_spill] sm:$0xff]  ;;  %5187 = vmatmul.mubr.msk.bf16.vlgmr.msra.gmra.mrb[64].mxu1 %vm3077_vm14, %v6119_v5  ;;  %v9480_v35 = vld [vmem:[#allocation24_spill] sm:$0xff] }
 0x42f   :  { %v9479_v33 = vpack.c.bf16 %v9477_v2, %v9478_v4  ;;  %v6038_v2 = vld [vmem:[%s9370_s10 + $0x450] ss:$8 sps:$4 sm:$0xff]   ;;  %v6043_v4 = vld [vmem:[%s9370_s10 + $0x464] ss:$8 sps:$4 sm:$0xff]  }
 0x431   :  { %2075 = vmatpush1.bf16.msra.mxu0 %v6002_v27  ;;  %v9481_v27 = vld [vmem:[#allocation23_spill] sm:$0xff] }
 0x432   :  { %2076 = vmatprep.subr.bf16.mxu0 %v6007_v12  ;;  %v9482_v12 = vpack.c.bf16 %v9480_v35, %v9481_v27  ;;  %v6041_v27 = vld [vmem:[%s9370_s10 + $0x460] ss:$8 sps:$4 sm:$0xff]  }
 0x435   :  { %2077 = vmatpush1.bf16.msra.mxu0 %v6005_v57  ;;  %v6026_v57 = vld [vmem:[%s9370_s10 + $0x410] ss:$8 sps:$4 sm:$0xff]  }
 0x436   :  { %2078 = vmatprep.subr.bf16.mxu0 %v6010_v50  ;;  %v6031_v50 = vld [vmem:[%s9370_s10 + $0x424] ss:$8 sps:$4 sm:$0xff]  }
 0x439   :  { %2079 = vmatpush1.bf16.msra.mxu0 %v6008_v58  ;;  %v9483_v58 = vmov 0  }
 0x43a   :  { %2080 = vmatprep.subr.bf16.mxu0 %v6013_v15  ;;  %3142 = vmatprep.mubr.bf16.mxu1 %v9483_v58  ;;  %v8000_v15 = vld [vmem:[%s9257_s6 + $0x8] sm:$0xff]  }
 0x43b   :  { %5188 = vmatmul.mubr.msk.bf16.gmra.mrb[68].mxu1 %vm3077_vm14, %v8000_v15 }
 0x43c   :  { %3152 = vmatprep.mubr.bf16.mxu1 %v9483_v58 }
 0x43d   :  { %2081 = vmatpush1.bf16.msra.mxu0 %v6011_v38  ;;  %v6029_v38 = vld [vmem:[%s9370_s10 + $0x420] ss:$8 sps:$4 sm:$0xff]  }
 0x43e   :  { %2082 = vmatprep.subr.bf16.mxu0 %v6016_v45  ;;  %v6034_v45 = vld [vmem:[%s9370_s10 + $0x434] ss:$8 sps:$4 sm:$0xff]  }
 0x441   :  { %2083 = vmatpush1.bf16.msra.mxu0 %v6014_v21  ;;  %v9484_v21 = vld [vmem:[#allocation27_spill] sm:$0xff] }
 0x442   :  { %2084 = vmatprep.subr.bf16.mxu0 %v6019_v17  ;;  %v9485_v17 = vld [vmem:[#allocation26_spill] sm:$0xff] }
 0x443   :  { %v9486_v1 = vpack.c.bf16 %v9484_v21, %v9485_v17  ;;  %5189 = vmatmul.mubr.msk.bf16.gmra.mrb[72].mxu1 %vm3077_vm14, %v8026_v32  ;;  %v6044_v21 = vld [vmem:[%s9370_s10 + $0x470] ss:$8 sps:$4 sm:$0xff]  }
 0x444   :  { %3162 = vmatprep.mubr.bf16.mxu1 %v9483_v58 }
 0x445   :  { %2085 = vmatpush1.bf16.msra.mxu0 %v6017_v18  ;;  %v9488_v18 = vld [vmem:[#allocation34_spill] sm:$0xff] }
 0x446   :  { %2086 = vmatprep.subr.bf16.mxu0 %v6022_v23  ;;  %v9489_v26 = vpack.c.bf16 %v9487_v46, %v9488_v18  ;;  %v6032_v23 = vld [vmem:[%s9370_s10 + $0x430] ss:$8 sps:$4 sm:$0xff]   ;;  %v8079_v46 = vld [vmem:[%s9257_s6 + $0x20] ss:$0 sps:$4 sm:$0xff]  }
 0x447   :  { %v6047_v18 = vld [vmem:[%s9370_s10 + $0x480] ss:$8 sps:$4 sm:$0xff]  }
 0x449   :  { %2087 = vmatpush1.bf16.msra.mxu0 %v6020_v34  ;;  %v9490_v34 = vld [vmem:[#allocation37_spill] sm:$0xff] }
 0x44a   :  { %2439 = vmatprep.subr.bf16.mxu0 %v6025_v6  ;;  %v9491_v6 = vld [vmem:[#allocation36_spill] sm:$0xff] }
 0x44c   :  { %2089 = vmatmul.mubr.bf16.vlgmr.msra.gmra.mrb[20].mxu0 %v9479_v33  ;;  %v9495_v33 = vld [vmem:[#allocation7_spill] sm:$0xff] }
 0x44d   :  { %2098 = vmatprep.mubr.bf16.mxu0 %v9482_v12  ;;  %2440 = vmatpush1.bf16.msra.mxu0 %v6023_v48  ;;  %v9492_v48 = vpack.c.bf16 %v9490_v34, %v9491_v6  ;;  %v1852_v35 = vmul.f32 %v9495_v33, %v7544_v11  ;;  %v6046_v12 = vld [vmem:[%s9370_s10 + $0x474] ss:$8 sps:$4 sm:$0xff]   ;;  %v1851_v17 = vmul.f32 %v9495_v33, %v7528_v3 }
 0x44e   :  { %2441 = vmatprep.subr.bf16.mxu0 %v6028_v31  ;;  %v9493_v31 = vld [vmem:[#allocation39_spill] sm:$0xff]  ;;  %v9500_v34 = vld [vmem:[#allocation16_spill] sm:$0xff] }
 0x44f   :  { %v9494_v5 = vpack.c.bf16 %v7524_v37, %v9493_v31  ;;  %v8054_v37 = vld [vmem:[%s9257_s6 + $0x18] sm:$0xff]   ;;  %v8106_v31 = vld [vmem:[%s9258_s7] sm:$0xff]   ;;  %v8127_v33 = vld [vmem:[%s9258_s7 + $0x50] sm:$0xff]  }
 0x450   :  { %5190 = vmatmul.mubr.msk.bf16.gmra.mrb[76].mxu1 %vm3077_vm14, %v8054_v37 }
 0x451   :  { %2442 = vmatpush1.bf16.msra.mxu0 %v6026_v57  ;;  %v1895_v57 = vpack.c.bf16 %v1852_v35, %v1852_v35  ;;  %3172 = vmatprep.mubr.bf16.mxu1 %v9483_v58  ;;  %v6058_v35 = vld [vmem:[%s9370_s10 + $0x4b4] ss:$8 sps:$4 sm:$0xff]  }
 0x452   :  { %2443 = vmatprep.subr.bf16.mxu0 %v6031_v50  ;;  %v9496_v50 = vld [vmem:[#allocation41_spill] sm:$0xff] }
 0x454   :  { %2099 = vmatmul.mubr.bf16.gmra.mrb[24].mxu0 %v9486_v1  ;;  %v6049_v1 = vld [vmem:[%s9370_s10 + $0x484] ss:$8 sps:$4 sm:$0xff]  }
 0x455   :  { %2108 = vmatprep.mubr.bf16.mxu0 %v9489_v26  ;;  %2444 = vmatpush1.bf16.msra.mxu0 %v6029_v38  ;;  %v9497_v38 = vld [vmem:[#allocation40_spill] sm:$0xff]  ;;  %v1894_v26 = vpack.c.bf16 %v1851_v17, %v1851_v17 }
 0x456   :  { %2445 = vmatprep.subr.bf16.mxu0 %v6034_v45  ;;  %v9498_v45 = vpack.c.bf16 %v9496_v50, %v9497_v38  ;;  %v8148_v50 = vld [vmem:[%s9258_s7 + $0x58] sm:$0xff]  }
 0x457   :  { %v8153_v38 = vld [vmem:[%s9258_s7 + $0x18] sm:$0xff]  }
 0x458   :  { %5191 = vmatmul.mubr.msk.bf16.gmra.mrb[80].mxu1 %vm3077_vm14, %v8079_v46  ;;  %v6064_v17 = vld [vmem:[%s9370_s10 + $0x4d4] ss:$8 sps:$4 sm:$0xff]  }
 0x459   :  { %2446 = vmatpush1.bf16.msra.mxu0 %v6032_v23  ;;  %v6052_v23 = vld [vmem:[%s9370_s10 + $0x494] ss:$8 sps:$4 sm:$0xff]  }
 0x45a   :  { %2447 = vmatprep.subr.bf16.mxu0 %v6037_v51  ;;  %v6050_v51 = vld [vmem:[%s9370_s10 + $0x490] ss:$8 sps:$4 sm:$0xff]  }
 0x45c   :  { %2109 = vmatmul.mubr.bf16.gmra.mrb[28].mxu0 %v9492_v48  ;;  %v8101_v48 = vld [vmem:[%s9258_s7 + $0x40] sm:$0xff]  }
 0x45d   :  { %2118 = vmatprep.mubr.bf16.mxu0 %v9494_v5  ;;  %2448 = vmatpush1.bf16.msra.mxu0 %v6035_v49  ;;  %v6055_v49 = vld [vmem:[%s9370_s10 + $0x4a4] ss:$8 sps:$4 sm:$0xff]   ;;  %v6053_v5 = vld [vmem:[%s9370_s10 + $0x4a0] ss:$8 sps:$4 sm:$0xff]  }
 0x45e   :  { %2449 = vmatprep.subr.bf16.mxu0 %v6040_v0  ;;  %v9499_v0 = vld [vmem:[#allocation17_spill] sm:$0xff]  ;;  %5284 = vmatprep.subr.bf16.mxu1 %v8101_v48 }
 0x45f   :  { %v9501_v6 = vpack.c.bf16 %v9499_v0, %v9500_v34  ;;  %5285 = vmatpush3.bf16.msra.mxu1 %v8106_v31  ;;  %v6073_v0 = vld [vmem:[%s9370_s10 + $0x504] ss:$8 sps:$4 sm:$0xff]   ;;  %v6071_v34 = vld [vmem:[%s9370_s10 + $0x500] ss:$8 sps:$4 sm:$0xff]  }
 0x461   :  { %2450 = vmatpush1.bf16.msra.mxu0 %v6038_v2  ;;  %v8115_v2 = vld [vmem:[%s9258_s7 + $0x48] sm:$0xff]  }
 0x462   :  { %2451 = vmatprep.subr.bf16.mxu0 %v6043_v4  ;;  %v8121_v4 = vld [vmem:[%s9258_s7 + $0x8] sm:$0xff]   ;;  %5286 = vmatprep.subr.bf16.mxu1 %v8115_v2 }
 0x463   :  { %5287 = vmatpush3.bf16.msra.mxu1 %v8121_v4 }
 0x464   :  { %2119 = vmatmul.mubr.bf16.gmra.mrb[32].mxu0 %v9498_v45  ;;  %5288 = vmatprep.subr.bf16.mxu1 %v8127_v33  ;;  %v6059_v45 = vld [vmem:[%s9370_s10 + $0x4c0] ss:$8 sps:$4 sm:$0xff]  }
 0x465   :  { %2128 = vmatprep.mubr.bf16.mxu0 %v1895_v57  ;;  %2452 = vmatpush1.bf16.msra.mxu0 %v6041_v27  ;;  %v6056_v27 = vld [vmem:[%s9370_s10 + $0x4b0] ss:$8 sps:$4 sm:$0xff]  }
 0x466   :  { %2453 = vmatprep.subr.bf16.mxu0 %v6046_v12  ;;  %v6061_v12 = vld [vmem:[%s9370_s10 + $0x4c4] ss:$8 sps:$4 sm:$0xff]   ;;  %v8142_v57 = vld [vmem:[%s9258_s7 + $0x10] sm:$0xff]  }
 0x467   :  { %5289 = vmatpush3.bf16.msra.mxu1 %v8142_v57 }
 0x468   :  { %5290 = vmatprep.subr.bf16.mxu1 %v8148_v50 }
 0x469   :  { %2454 = vmatpush1.bf16.msra.mxu0 %v6044_v21  ;;  %v8161_v21 = vld [vmem:[%s9258_s7 + $0x60] sm:$0xff]  }
 0x46a   :  { %2455 = vmatprep.subr.bf16.mxu0 %v6049_v1  ;;  %v8172_v1 = vld [vmem:[%s9258_s7 + $0x20] sm:$0xff]  }
 0x46b   :  { %5291 = vmatpush3.bf16.msra.mxu1 %v8153_v38 }
 0x46c   :  { %2129 = vmatmul.mubr.bf16.gmra.mrb[36].mxu0 %v1894_v26  ;;  %5292 = vmatprep.subr.bf16.mxu1 %v8161_v21  ;;  %v6067_v26 = vld [vmem:[%s9370_s10 + $0x4e4] ss:$8 sps:$4 sm:$0xff]  }
 0x46d   :  { %2456 = vmatpush1.bf16.msra.mxu0 %v6047_v18  ;;  %2471 = vmatprep.mubr.bf16.mxu0 %v9501_v6  ;;  %v6062_v18 = vld [vmem:[%s9370_s10 + $0x4d0] ss:$8 sps:$4 sm:$0xff]   ;;  %v6076_v6 = vld [vmem:[%s9370_s10 + $0x514] ss:$8 sps:$4 sm:$0xff]  }
 0x46e   :  { %2457 = vmatprep.subr.bf16.mxu0 %v6052_v23  ;;  %v6065_v23 = vld [vmem:[%s9370_s10 + $0x4e0] ss:$8 sps:$4 sm:$0xff]  }
 0x46f   :  { %5293 = vmatpush3.bf16.msra.mxu1 %v8172_v1 }
 0x471   :  { %2458 = vmatpush1.bf16.msra.mxu0 %v6050_v51  ;;  %v6070_v51 = vld [vmem:[%s9370_s10 + $0x4f4] ss:$8 sps:$4 sm:$0xff]  }
 0x472   :  { %2459 = vmatprep.subr.bf16.mxu0 %v6055_v49  ;;  %v6068_v49 = vld [vmem:[%s9370_s10 + $0x4f0] ss:$8 sps:$4 sm:$0xff]  }
 0x475   :  { %2460 = vmatpush1.bf16.msra.mxu0 %v6053_v5  ;;  %v9502_v5 = vld [vmem:[#allocation18_spill] sm:$0xff] }
 0x476   :  { %2461 = vmatprep.subr.bf16.mxu0 %v6058_v35  ;;  %v9503_v35 = vld [vmem:[#allocation25_spill] sm:$0xff] }
 0x479   :  { %2462 = vmatpush1.bf16.msra.mxu0 %v6056_v27  ;;  %v9504_v27 = vpack.c.bf16 %v9502_v5, %v9503_v35  ;;  %v6080_v5 = vld [vmem:[%s9370_s10 + $0x530] ss:$8 sps:$4 sm:$0xff]   ;;  %v6085_v35 = vld [vmem:[%s9370_s10 + $0x544] ss:$8 sps:$4 sm:$0xff]  }
 0x47a   :  { %2463 = vmatprep.subr.bf16.mxu0 %v6061_v12  ;;  %v9505_v12 = vld [vmem:[#allocation29_spill] sm:$0xff] }
 0x47d   :  { %2464 = vmatpush1.bf16.msra.mxu0 %v6059_v45  ;;  %v9506_v45 = vld [vmem:[#allocation28_spill] sm:$0xff] }
 0x47e   :  { %2465 = vmatprep.subr.bf16.mxu0 %v6064_v17  ;;  %v9507_v17 = vpack.c.bf16 %v9505_v12, %v9506_v45  ;;  %v9513_v12 = vpack.c.bf16 %v7608_v62, %v7605_v29  ;;  %v6086_v45 = vld [vmem:[%s9370_s10 + $0x550] ss:$8 sps:$4 sm:$0xff]   ;;  %v8258_v29 = vld [vmem:[%s9258_s7 + $0x28] sm:$0xff]   ;;  %v6094_v62 = vld [vmem:[%s9370_s10 + $0x574] ss:$8 sps:$4 sm:$0xff]  }
 0x481   :  { %2466 = vmatpush1.bf16.msra.mxu0 %v6062_v18  ;;  %v6074_v18 = vld [vmem:[%s9370_s10 + $0x510] ss:$8 sps:$4 sm:$0xff]  }
 0x482   :  { %2467 = vmatprep.subr.bf16.mxu0 %v6067_v26  ;;  %v6079_v26 = vld [vmem:[%s9370_s10 + $0x524] ss:$8 sps:$4 sm:$0xff]  }
 0x485   :  { %2468 = vmatpush1.bf16.msra.mxu0 %v6065_v23  ;;  %v6077_v23 = vld [vmem:[%s9370_s10 + $0x520] ss:$8 sps:$4 sm:$0xff]  }
 0x486   :  { %2469 = vmatprep.subr.bf16.mxu0 %v6070_v51  ;;  %v6082_v51 = vld [vmem:[%s9370_s10 + $0x534] ss:$8 sps:$4 sm:$0xff]  }
 0x489   :  { %2470 = vmatpush1.bf16.msra.mxu0 %v6068_v49  ;;  %v9508_v49 = vld [vmem:[#allocation43_spill] sm:$0xff] }
 0x48a   :  { %2822 = vmatprep.subr.bf16.mxu0 %v6073_v0  ;;  %v9509_v0 = vld [vmem:[#allocation42_spill] sm:$0xff] }
 0x48c   :  { %2472 = vmatmul.mubr.bf16.vlgmr.msra.gmra.mrb[20].mxu0 %v9504_v27  ;;  %v6083_v27 = vld [vmem:[%s9370_s10 + $0x540] ss:$8 sps:$4 sm:$0xff]  }
 0x48d   :  { %2481 = vmatprep.mubr.bf16.mxu0 %v9507_v17  ;;  %2823 = vmatpush1.bf16.msra.mxu0 %v6071_v34  ;;  %v9510_v34 = vpack.c.bf16 %v9508_v49, %v9509_v0  ;;  %v6091_v17 = vld [vmem:[%s9370_s10 + $0x564] ss:$8 sps:$4 sm:$0xff]  }
 0x48e   :  { %2824 = vmatprep.subr.bf16.mxu0 %v6076_v6  ;;  %v9511_v6 = vpack.c.bf16 %v7593_v61, %v7590_v8  ;;  %v6088_v8 = vld [vmem:[%s9370_s10 + $0x554] ss:$8 sps:$4 sm:$0xff]   ;;  %v9512_v61 = vpack.c.bf16 %v7602_v53, %v7596_v10  ;;  %v8253_v10 = vld [vmem:[%s9258_s7 + $0x68] sm:$0xff]  }
 0x48f   :  { %v6089_v53 = vld [vmem:[%s9370_s10 + $0x560] ss:$8 sps:$4 sm:$0xff]   ;;  %5294 = vmatprep.subr.bf16.mxu1 %v8253_v10  ;;  %v6097_v0 = vld [vmem:[%s9370_s10 + $0x584] ss:$8 sps:$4 sm:$0xff]  }
 0x490   :  { %5295 = vmatpush3.bf16.msra.mxu1 %v8258_v29 }
 0x491   :  { %2825 = vmatpush1.bf16.msra.mxu0 %v6074_v18  ;;  %v9514_v18 = vld [vmem:[#allocation38_spill] sm:$0xff]  ;;  %5296 = vmatprep.subr.bf16.mxu1 %v8354_v59 }
 0x492   :  { %2826 = vmatprep.subr.bf16.mxu0 %v6079_v26  ;;  %v2235_v26 = vmul.f32 %v9514_v18, %v7544_v11  ;;  %v2234_v49 = vmul.f32 %v9514_v18, %v7528_v3  ;;  %v8365_v3 = vld [vmem:[%s9258_s7 + $0x78] sm:$0xff]  }
 0x494   :  { %2482 = vmatmul.mubr.bf16.gmra.mrb[24].mxu0 %v9510_v34  ;;  %v2277_v13 = vpack.c.bf16 %v2234_v49, %v2234_v49  ;;  %v6098_v34 = vld [vmem:[%s9370_s10 + $0x590] ss:$8 sps:$4 sm:$0xff]   ;;  %5297 = vmatpush3.bf16.msra.mxu1 %v8360_v22 }
 0x495   :  { %2491 = vmatprep.mubr.bf16.mxu0 %v9511_v6  ;;  %2827 = vmatpush1.bf16.msra.mxu0 %v6077_v23  ;;  %v2278_v23 = vpack.c.bf16 %v2235_v26, %v2235_v26  ;;  %v6103_v6 = vld [vmem:[%s9370_s10 + $0x5a4] ss:$8 sps:$4 sm:$0xff]  }
 0x496   :  { %2828 = vmatprep.subr.bf16.mxu0 %v6082_v51  ;;  %v6092_v51 = vld [vmem:[%s9370_s10 + $0x570] ss:$8 sps:$4 sm:$0xff]   ;;  %5298 = vmatprep.subr.bf16.mxu1 %v8365_v3 }
 0x498   :  { %5299 = vmatpush3.bf16.msra.mxu1 %v8371_v9 }
 0x499   :  { %2829 = vmatpush1.bf16.msra.mxu0 %v6080_v5  ;;  %v6101_v5 = vld [vmem:[%s9370_s10 + $0x5a0] ss:$8 sps:$4 sm:$0xff]  }
 0x49a   :  { %2830 = vmatprep.subr.bf16.mxu0 %v6085_v35  ;;  %v6107_v35 = vld [vmem:[%s9370_s10 + $0x5c0] ss:$8 sps:$4 sm:$0xff]  }
 0x49c   :  { %2492 = vmatmul.mubr.bf16.gmra.mrb[28].mxu0 %v9512_v61  ;;  %v6115_v61 = vld [vmem:[%s9370_s10 + $0x5e4] ss:$8 sps:$4 sm:$0xff]  }
 0x49d   :  { %2501 = vmatprep.mubr.bf16.mxu0 %v9513_v12  ;;  %2831 = vmatpush1.bf16.msra.mxu0 %v6083_v27  ;;  %v6112_v27 = vld [vmem:[%s9370_s10 + $0x5d4] ss:$8 sps:$4 sm:$0xff]   ;;  %v6113_v12 = vld [vmem:[%s9370_s10 + $0x5e0] ss:$8 sps:$4 sm:$0xff]  }
 0x49e   :  { %2832 = vmatprep.subr.bf16.mxu0 %v6088_v8  ;;  %v6110_v8 = vld [vmem:[%s9370_s10 + $0x5d0] ss:$8 sps:$4 sm:$0xff]  }
 0x4a1   :  { %2833 = vmatpush1.bf16.msra.mxu0 %v6086_v45  ;;  %v6118_v45 = vld [vmem:[%s9370_s10 + $0x5f4] ss:$8 sps:$4 sm:$0xff]  }
 0x4a2   :  { %2834 = vmatprep.subr.bf16.mxu0 %v6091_v17  ;;  %v6116_v17 = vld [vmem:[%s9370_s10 + $0x5f0] ss:$8 sps:$4 sm:$0xff]  }
 0x4a4   :  { %2502 = vmatmul.mubr.bf16.gmra.mrb[32].mxu0 %v2275_v39  ;;  %v6100_v39 = vld [vmem:[%s9370_s10 + $0x594] ss:$8 sps:$4 sm:$0xff]  }
 0x4a5   :  { %2511 = vmatprep.mubr.bf16.mxu0 %v2278_v23  ;;  %2835 = vmatpush1.bf16.msra.mxu0 %v6089_v53 }
 0x4a6   :  { %2836 = vmatprep.subr.bf16.mxu0 %v6094_v62 }
 0x4a9   :  { %2837 = vmatpush1.bf16.msra.mxu0 %v6092_v51 }
 0x4aa   :  { %2838 = vmatprep.subr.bf16.mxu0 %v6097_v0 }
 0x4ac   :  { %2512 = vmatmul.mubr.bf16.gmra.mrb[36].mxu0 %v2277_v13 }
 0x4ad   :  { %2839 = vmatpush1.bf16.msra.mxu0 %v6095_v20  ;;  %2854 = vmatprep.mubr.bf16.mxu0 %v2653_v40  ;;  %v6109_v40 = vld [vmem:[%s9370_s10 + $0x5c4] ss:$8 sps:$4 sm:$0xff]  }
 0x4ae   :  { %2840 = vmatprep.subr.bf16.mxu0 %v6100_v39 }
 0x4b1   :  { %2841 = vmatpush1.bf16.msra.mxu0 %v6098_v34 }
 0x4b2   :  { %2842 = vmatprep.subr.bf16.mxu0 %v6103_v6 }
 0x4b5   :  { %2843 = vmatpush1.bf16.msra.mxu0 %v6101_v5 }
 0x4b6   :  { %2844 = vmatprep.subr.bf16.mxu0 %v6106_v36 }
 0x4b9   :  { %2845 = vmatpush1.bf16.msra.mxu0 %v6104_v44 }
 0x4ba   :  { %2846 = vmatprep.subr.bf16.mxu0 %v6109_v40 }
 0x4bd   :  { %2847 = vmatpush1.bf16.msra.mxu0 %v6107_v35 }
 0x4be   :  { %2848 = vmatprep.subr.bf16.mxu0 %v6112_v27 }
 0x4c1   :  { %2849 = vmatpush1.bf16.msra.mxu0 %v6110_v8 }
 0x4c2   :  { %2850 = vmatprep.subr.bf16.mxu0 %v6115_v61 }
 0x4c5   :  { %2851 = vmatpush1.bf16.msra.mxu0 %v6113_v12 }
 0x4c6   :  { %2852 = vmatprep.subr.bf16.mxu0 %v6118_v45 }
 0x4c9   :  { %2853 = vmatpush1.bf16.msra.mxu0 %v6116_v17 }
 0x4cc   :  { %2855 = vmatmul.mubr.bf16.vlgmr.msra.gmra.mrb[20].mxu0 %v2652_v41 }
 0x4cd   :  { %2864 = vmatprep.mubr.bf16.mxu0 %v2655_v47  ;;  %v9515_v47 = vmov 0.0  }
 0x4ce   :  { %5487 = vmatprep.subr.bf16.mxu1 %v9515_v47 }
 0x4d4   :  { %2865 = vmatmul.mubr.bf16.gmra.mrb[24].mxu0 %v2654_v56 }
 0x4d5   :  { %2874 = vmatprep.mubr.bf16.mxu0 %v2657_v42 }
 0x4dc   :  { %2875 = vmatmul.mubr.bf16.gmra.mrb[28].mxu0 %v2656_v43 }
 0x4dd   :  { %2884 = vmatprep.mubr.bf16.mxu0 %v2659_v14 }
 0x4e4   :  { %2885 = vmatmul.mubr.bf16.gmra.mrb[32].mxu0 %v2658_v7 }
 0x4e5   :  { %2894 = vmatprep.mubr.bf16.mxu0 %v2661_v54 }
 0x4ec   :  { %2895 = vmatmul.mubr.bf16.gmra.mrb[36].mxu0 %v2660_v55 }
 0x4ed   :  { %4562 = vmatprep.mubr.bf16.mxu0 %v9483_v58 }
 0x501   :  { %v3134_v16 = vpop.f32.mrb[64].mxu1 }
 0x502   :  { %v3136_v24 = vpop.f32.mrb[65].mxu1 }
 0x503   :  { %v3138_v41 = vpop.f32.mrb[66].mxu1 }
 0x504   :  { %v3140_v11 = vpop.f32.mrb[67].mxu1 }
 0x50e   :  { %v3144_v42 = vpop.f32.mrb[68].mxu1 }
 0x50f   :  { %v3146_v43 = vpop.f32.mrb[69].mxu1 }
 0x510   :  { %v3148_v19 = vpop.f32.mrb[70].mxu1 }
 0x511   :  { %v3150_v30 = vpop.f32.mrb[71].mxu1 }
 0x516   :  { %v3154_v56 = vpop.f32.mrb[72].mxu1 }
 0x517   :  { %v3156_v52 = vpop.f32.mrb[73].mxu1 }
 0x518   :  { %v3158_v28 = vpop.f32.mrb[74].mxu1 }
 0x519   :  { %v3160_v14 = vpop.f32.mrb[75].mxu1 }
 0x523   :  { %v3164_v7 = vpop.f32.mrb[76].mxu1 }
 0x524   :  { %v3166_v18 = vpop.f32.mrb[77].mxu1 }
 0x525   :  { %v3168_v26 = vpop.f32.mrb[78].mxu1 }
 0x526   :  { %v3170_v53 = vpop.f32.mrb[79].mxu1 }
 0x52b   :  { %v3174_v62 = vpop.f32.mrb[80].mxu1 }
 0x52c   :  { %v3176_v23 = vpop.f32.mrb[81].mxu1 }
 0x52d   :  { %v3178_v51 = vpop.f32.mrb[82].mxu1 }
 0x52e   :  { %v3179_v49 = vpop.f32.mrb[83].mxu1 }
 0x59f   :  { %v8376_v0 = vpop.f32.mrb[20].mxu0 }
 0x5a0   :  { %v3181_v20 = vmul.f32 %v3134_v16, %v8376_v0  ;;  %v8379_v13 = vpop.f32.mrb[21].mxu0 }
 0x5a1   :  { %v3182_v39 = vmul.f32 %v3136_v24, %v8379_v13  ;;  %v8382_v34 = vpop.f32.mrb[22].mxu0 }
 0x5a2   :  { %v3183_v6 = vmul.f32 %v3138_v41, %v8382_v34  ;;  %v8385_v5 = vpop.f32.mrb[23].mxu0 }
 0x5a3   :  { %v3184_v36 = vmul.f32 %v3140_v11, %v8385_v5 }
 0x5a4   :  { %v3199_v44 = vpack.c.bf16 %v3183_v6, %v3181_v20 }
 0x5a5   :  { %v3200_v40 = vpack.c.bf16 %v3184_v36, %v3182_v39 }
 0x5a7   :  { %v8388_v35 = vpop.f32.mrb[24].mxu0  ;;  %3337 = vmatprep.mubr.bf16.mxu1 %v3200_v40 }
 0x5a8   :  { %v3185_v27 = vmul.f32 %v3144_v42, %v8388_v35  ;;  %v8391_v8 = vpop.f32.mrb[25].mxu0  ;;  %3338 = vmatmul.mubr.bf16.vlgmr.msra.gmra.mrb[84].mxu1 %v3199_v44 }
 0x5a9   :  { %v3186_v61 = vmul.f32 %v3146_v43, %v8391_v8  ;;  %v8394_v12 = vpop.f32.mrb[26].mxu0 }
 0x5aa   :  { %v3187_v45 = vmul.f32 %v3148_v19, %v8394_v12  ;;  %v8397_v17 = vpop.f32.mrb[27].mxu0 }
 0x5ab   :  { %v3188_v60 = vmul.f32 %v3150_v30, %v8397_v17 }
 0x5ac   :  { %v3201_v25 = vpack.c.bf16 %v3187_v45, %v3185_v27 }
 0x5ad   :  { %v3202_v54 = vpack.c.bf16 %v3188_v60, %v3186_v61 }
 0x5af   :  { %v8400_v63 = vpop.f32.mrb[28].mxu0  ;;  %3345 = vmatprep.mubr.bf16.mxu1 %v3202_v54 }
 0x5b0   :  { %v3189_v55 = vmul.f32 %v3154_v56, %v8400_v63  ;;  %v8403_v16 = vpop.f32.mrb[29].mxu0  ;;  %3346 = vmatmul.mubr.bf16.gmra.mrb[88].mxu1 %v3201_v25 }
 0x5b1   :  { %v3190_v24 = vmul.f32 %v3156_v52, %v8403_v16  ;;  %v8406_v41 = vpop.f32.mrb[30].mxu0 }
 0x5b2   :  { %v3191_v11 = vmul.f32 %v3158_v28, %v8406_v41  ;;  %v8409_v42 = vpop.f32.mrb[31].mxu0 }
 0x5b3   :  { %v3192_v43 = vmul.f32 %v3160_v14, %v8409_v42 }
 0x5b4   :  { %v3203_v19 = vpack.c.bf16 %v3191_v11, %v3189_v55  ;;  %v8434_v11 = vpop.permute.xlu1 %3384 }
 0x5b5   :  { %v3204_v30 = vpack.c.bf16 %v3192_v43, %v3190_v24  ;;  %v8432_v24 = vpop.permute.xlu0 %3379 }
 0x5b7   :  { %v8412_v51 = vpop.f32.mrb[32].mxu0  ;;  %3353 = vmatprep.mubr.bf16.mxu1 %v3204_v30 }
 0x5b8   :  { %v3193_v56 = vmul.f32 %v3164_v7, %v8412_v51  ;;  %v8415_v49 = vpop.f32.mrb[33].mxu0  ;;  %3354 = vmatmul.mubr.bf16.gmra.mrb[92].mxu1 %v3203_v19 }
 0x5b9   :  { %v3194_v52 = vmul.f32 %v3166_v18, %v8415_v49  ;;  %v8418_v20 = vpop.f32.mrb[34].mxu0 }
 0x5ba   :  { %v3195_v28 = vmul.f32 %v3168_v26, %v8418_v20  ;;  %v8421_v39 = vpop.f32.mrb[35].mxu0 }
 0x5bb   :  { %v3196_v14 = vmul.f32 %v3170_v53, %v8421_v39 }
 0x5bc   :  { %v3205_v6 = vpack.c.bf16 %v3195_v28, %v3193_v56 }
 0x5bd   :  { %v3206_v36 = vpack.c.bf16 %v3196_v14, %v3194_v52 }
 0x5bf   :  { %v8424_v44 = vpop.f32.mrb[36].mxu0  ;;  %3361 = vmatprep.mubr.bf16.mxu1 %v3206_v36  ;;  %v8439_v36 = vpop.permute.xlu0 %3389 }
 0x5c0   :  { %v3197_v7 = vmul.f32 %v3174_v62, %v8424_v44  ;;  %v8427_v40 = vpop.f32.mrb[37].mxu0  ;;  %3362 = vmatmul.mubr.bf16.gmra.mrb[96].mxu1 %v3205_v6 }
 0x5c1   :  { %v3198_v18 = vmul.f32 %v3176_v23, %v8427_v40  ;;  %v2900_v27 = vpop.f32.mrb[38].mxu0 }
 0x5c2   :  { %v2901_v61 = vpop.f32.mrb[39].mxu0  ;;  %v3207_v26 = vpack.c.bf16 %v3197_v7, %v3197_v7  ;;  %v8441_v7 = vpop.permute.xlu1 %3394 }
 0x5c3   :  { %v3208_v45 = vpack.c.bf16 %v3198_v18, %v3198_v18 }
 0x5c5   :  { %3369 = vmatprep.mubr.bf16.mxu1 %v3208_v45 }
 0x5c8   :  { %3370 = vmatmul.mubr.bf16.gmra.mrb[100].mxu1 %v3207_v26 }
 0x5c9   :  { %5497 = vmatprep.mubr.msk.bf16.mxu1 %vm6187_vm1, %v9515_v47 }
 0x67b   :  { %v5300_v53 = vpop.f32.mrb[84].mxu1 }
 0x67c   :  { %v5301_v60 = vpop.f32.mrb[85].mxu1 }
 0x67d   :  { %v5302_v25 = vadd.f32 %v5301_v60, %v5300_v53  ;;  %v5303_v54 = vpop.f32.mrb[86].mxu1 }
 0x67e   :  { %v5304_v55 = vpop.f32.mrb[87].mxu1 }
 0x67f   :  { %v5305_v62 = vadd.f32 %v5304_v55, %v5303_v54  ;;  %v3422_v23 = vmul.f32 %v5302_v25, %v8432_v24  ;;  %v8446_v55 = vpop.permute.xlu0 %3399 }
 0x680   :  { %9516 = vst [vmem:[#allocation12_spill] sm:$0xff] %v8446_v55 }
 0x681   :  { %v3423_v43 = vmul.f32 %v5305_v62, %v8434_v11  ;;  %v8448_v62 = vpop.permute.xlu1 %3404 }
 0x682   :  { %9517 = vst [vmem:[#allocation9_spill] sm:$0xff] %v8448_v62 }
 0x683   :  { %v3431_v19 = vpack.c.bf16 %v3423_v43, %v3422_v23  ;;  %v5306_v30 = vpop.f32.mrb[88].mxu1 }
 0x684   :  { %v5307_v56 = vpop.f32.mrb[89].mxu1 }
 0x685   :  { %v5308_v52 = vadd.f32 %v5307_v56, %v5306_v30  ;;  %v5309_v28 = vpop.f32.mrb[90].mxu1  ;;  %5488 = vmatpush3.bf16.msra.mxu1 %v3431_v19 }
 0x686   :  { %v5310_v14 = vpop.f32.mrb[91].mxu1  ;;  %5489 = vmatprep.subr.bf16.mxu1 %v9515_v47 }
 0x687   :  { %v5311_v6 = vadd.f32 %v5310_v14, %v5309_v28  ;;  %v3424_v18 = vmul.f32 %v5308_v52, %v8439_v36 }
 0x689   :  { %v3425_v27 = vmul.f32 %v5311_v6, %v8441_v7 }
 0x68b   :  { %v3432_v61 = vpack.c.bf16 %v3425_v27, %v3424_v18  ;;  %v5312_v45 = vpop.f32.mrb[92].mxu1  ;;  %v8453_v18 = vpop.permute.xlu0 %3409 }
 0x68c   :  { %v5313_v26 = vpop.f32.mrb[93].mxu1  ;;  %9518 = vst [vmem:[#allocation10_spill] sm:$0xff] %v8453_v18  ;;  %v8455_v27 = vpop.permute.xlu1 %3414 }
 0x68d   :  { %v5314_v53 = vadd.f32 %v5313_v26, %v5312_v45  ;;  %v5315_v60 = vpop.f32.mrb[94].mxu1  ;;  %5490 = vmatpush3.bf16.msra.mxu1 %v3432_v61  ;;  %9519 = vst [vmem:[#allocation8_spill] sm:$0xff] %v8455_v27 }
 0x68e   :  { %v5316_v25 = vpop.f32.mrb[95].mxu1  ;;  %5491 = vmatprep.subr.bf16.mxu1 %v9515_v47 }
 0x68f   :  { %v5317_v54 = vadd.f32 %v5316_v25, %v5315_v60  ;;  %v3426_v23 = vmul.f32 %v5314_v53, %v8446_v55 }
 0x691   :  { %v3427_v43 = vmul.f32 %v5317_v54, %v8448_v62 }
 0x693   :  { %v3433_v19 = vpack.c.bf16 %v3427_v43, %v3426_v23  ;;  %v5318_v30 = vpop.f32.mrb[96].mxu1  ;;  %v8459_v23 = vpop.permute.xlu0 %3419 }
 0x694   :  { %v5319_v56 = vpop.f32.mrb[97].mxu1  ;;  %9520 = vst [vmem:[#allocation22_spill] sm:$0xff] %v8459_v23 }
 0x695   :  { %v5320_v52 = vadd.f32 %v5319_v56, %v5318_v30  ;;  %v5321_v28 = vpop.f32.mrb[98].mxu1  ;;  %5492 = vmatpush3.bf16.msra.mxu1 %v3433_v19 }
 0x696   :  { %v5322_v14 = vpop.f32.mrb[99].mxu1  ;;  %5493 = vmatprep.subr.bf16.mxu1 %v9515_v47 }
 0x697   :  { %v5323_v6 = vadd.f32 %v5322_v14, %v5321_v28  ;;  %v3428_v61 = vmul.f32 %v5320_v52, %v8453_v18  ;;  %v8467_v52 = vld [vmem:[%s9259_s8] sm:$0x3f]   ;;  %v2976_v14 = vld [vmem:[%s9260_s14 + $0x8] sm:$0xff] }
 0x698   :  { %9521 = vst [vmem:[#allocation20_spill] sm:$0xff] %v8467_v52  ;;  %v2975_v28 = vld [vmem:[%s9260_s14] sm:$0xff] }
 0x699   :  { %v3429_v45 = vmul.f32 %v5323_v6, %v8455_v27  ;;  %v8480_v6 = vpack.c.bf16 %v2976_v14, %v2975_v28 }
 0x69b   :  { %v3434_v26 = vpack.c.bf16 %v3429_v45, %v3428_v61  ;;  %v5324_v53 = vpop.f32.mrb[100].mxu1  ;;  %9522 = vst [vmem:[#allocation21_spill] sm:$0xff] %v8480_v6  ;;  %v2977_v61 = vld [vmem:[%s9261_s15] sm:$0xff]  ;;  %v2978_v45 = vld [vmem:[%s9261_s15 + $0x8] sm:$0xff] }
 0x69c   :  { %v5325_v60 = vpop.f32.mrb[101].mxu1 }
 0x69d   :  { %v5326_v25 = vadd.f32 %v5325_v60, %v5324_v53  ;;  %v5327_v54 = vpop.f32.mrb[102].mxu1  ;;  %5494 = vmatpush3.bf16.msra.mxu1 %v3434_v26 }
 0x69e   :  { %v5328_v43 = vpop.f32.mrb[103].mxu1  ;;  %5495 = vmatprep.subr.bf16.mxu1 %v9515_v47 }
 0x69f   :  { %v3430_v19 = vmul.f32 %v5326_v25, %v8459_v23  ;;  %v8490_v25 = vpack.c.bf16 %v2978_v45, %v2977_v61  ;;  %v9525_v61 = vld [vmem:[#allocation2_spill] sm:$0xff] }
 0x6a0   :  { %v9333_v45 = vsub.s32 5, %v9525_v61 }
 0x6a1   :  { %v3435_v30 = vpack.c.bf16 %v3430_v19, %v3430_v19  ;;  %9523 = vst [vmem:[#allocation19_spill] sm:$0xff] %v8490_v25  ;;  %v6179_v19 = vld [vmem:[%s9372_s12 + $0x4] ss:$8 sps:$4 sm:$0xff]  }
 0x6a3   :  { %v3447_v56 = vsel %vm3445_vm15, %v3435_v30, 0  ;;  %v9524_v30 = vld [vmem:[#allocation4_spill] sm:$0xff] }
 0x6a4   :  { %5496 = vmatpush3.bf16.msra.mxu1 %v3447_v56  ;;  %v6180_v56 = vld [vmem:[%s9372_s12] ss:$8 sps:$4 sm:$0xff]   ;;  %s6189_s12 = smov 96  }
 0x6a5   :  { %5501 = vmatprep.subr.bf16.mxu1 %v9515_v47 }
 0x6a7   :  { %5498 = vmatmul.mubr.msk.bf16.vlgmr.msra.gmra.mrb[104].mxu1 %vm3441_vm0, %v8467_v52 }
 0x6a8   :  { %5503 = vmatprep.mubr.msk.bf16.mxu1 %vm6187_vm1, %v9515_v47  ;;  %5502 = vmatpush3.bf16.msra.mxu1 %v8480_v6 }
 0x6a9   :  { %5507 = vmatprep.subr.bf16.mxu1 %v9515_v47 }
 0x77a   :  { %v3483_v26 = vpop.f32.mrb[104].mxu1 }
 0x77b   :  { %v5499_v53 = vpop.f32.mrb[105].mxu1 }
 0x77c   :  { %v3486_v60 = vpop.f32.mrb[106].mxu1 }
 0x77d   :  { %v3490_v54 = vpack.c.bf16 %v3486_v60, %v3483_v26  ;;  %v5500_v43 = vpop.f32.mrb[107].mxu1  ;;  %v8509_v60 = vld [vmem:[%s9366_s13] sm:$0xff] }
 0x77e   :  { %9526 = vst [vmem:[#allocation31_spill] sm:$0xff] %v8509_v60 }
 0x77f   :  { %5504 = vmatmul.mubr.msk.bf16.vlgmr.msra.gmra.mrb[108].mxu1 %vm2981_vm12, %v3490_v54  ;;  %v8514_v54 = vrot.slane %v8509_v60, %v9333_v45 }
 0x780   :  { %5508 = vmatpush3.bf16.msra.mxu1 %v8490_v25  ;;  %5509 = vmatprep.mubr.msk.bf16.mxu1 %vm6187_vm1, %v9515_v47  ;;  %v9343_v25 = vsub.s32 4, %v9525_v61 }
 0x781   :  { %3655 = vmatprep.subr.bf16.mxu1 %v6179_v19  ;;  %9527 = vst [vmem:[#allocation30_spill] sm:$0xff] %v8514_v54 }
 0x782   :  { %v8524_v45 = vrot.slane %v8509_v60, %v9343_v25 }
 0x784   :  { %9528 = vst [vmem:[#allocation33_spill] sm:$0xff] %v8524_v45 }
 0x787   :  { %5510 = vmatmul.mubr.msk.bf16.vlgmr.msra.gmra.mrb[112].mxu1 %vm2981_vm12, %v9524_v30 }
 0x788   :  { %3656 = vmatpush1.bf16.msra.mxu1 %v6180_v56  ;;  %3687 = vmatprep.mubr.bf16.mxu1 %v9483_v58 }
 0x852   :  { %v3533_v28 = vpop.f32.mrb[108].mxu1 }
 0x853   :  { %v5505_v14 = vpop.f32.mrb[109].mxu1  ;;  %v3534_v6 = vadd.f32 %v3533_v28, %v8524_v45 }
 0x854   :  { %v3536_v26 = vpop.f32.mrb[110].mxu1 }
 0x855   :  { %v5506_v53 = vpop.f32.mrb[111].mxu1 }
 0x85a   :  { %v3579_v43 = vpop.f32.mrb[112].mxu1 }
 0x85b   :  { %v3580_v19 = vadd.f32 %v3579_v43, %v8514_v54  ;;  %v5511_v30 = vpop.f32.mrb[113].mxu1  ;;  %v3537_v43 = vadd.f32 %v3536_v26, %v8524_v45 }
 0x85c   :  { %v3582_v56 = vpop.f32.mrb[114].mxu1 }
 0x85d   :  { %v3583_v14 = vadd.f32 %v3582_v56, %v8514_v54  ;;  %3602 = vrot.lane.b32.xlu1 %v3580_v19, %s6189_s12  ;;  %v5512_v53 = vpop.f32.mrb[115].mxu1  ;;  %v3586_v30 = vadd.f32 %v3580_v19, %v3534_v6 }
 0x85f   :  { %3604 = vrot.lane.b32.xlu0 %v3583_v14, %s6189_s12  ;;  %v3587_v52 = vadd.f32 %v3583_v14, %v3537_v43  ;;  %v5212_v56 = vmul.f32 -1.442695, %v3586_v30 }
 0x861   :  { %v5213_v54 = vmul.f32 -1.442695, %v3587_v52  ;;  %6141 = vpow2.f32 %v5212_v56  ;;  %v8533_v52 = vld [vmem:[%s9256_s2 + $0x8] sm:$0xf] }
 0x862   :  { %9529 = vst [vmem:[#allocation32_spill] sm:$0xff] %v8533_v52 }
 0x863   :  { %6143 = vpow2.f32 %v5213_v54 }
 0x86b   :  { %v6142_v53 = vpop.eup %6141 }
 0x86c   :  { %v3594_v27 = vadd.f32 1.0, %v6142_v53 }
 0x86d   :  { %v6144_v23 = vpop.eup %6143 }
 0x86e   :  { %v3595_v18 = vadd.f32 1.0, %v6144_v23  ;;  %6145 = vrcp.f32 %v3594_v27  ;;  %v2986_v27 = vsel %vm2985_vm2, %v8533_v52, 0.0 }
 0x870   :  { %6147 = vrcp.f32 %v3595_v18 }
 0x878   :  { %v6146_v61 = vpop.eup %6145 }
 0x87a   :  { %v6148_v60 = vpop.eup %6147 }
 0x87b   :  { %v3623_v53 = vsub.f32 1.0, %v6148_v60 }
 0x8cf   :  { %v3603_v62 = vpop.permute.xlu1 %3602 }
 0x8d0   :  { %v3608_v25 = vmul.f32 %v6146_v61, %v3603_v62  ;;  %v8539_v62 = vld [vmem:[%s9256_s2] sm:$0xff] }
 0x8d1   :  { %v3605_v55 = vpop.permute.xlu0 %3604  ;;  %9530 = vst [vmem:[#allocation5_spill] sm:$0xff] %v8539_v62 }
 0x8d2   :  { %v3609_v28 = vmul.f32 %v6148_v60, %v3605_v55  ;;  %3612 = vrot.lane.b32.xlu1 %v3608_v25, %s6190_s4  ;;  %v2982_v55 = vsel %vm2981_vm12, %v8539_v62, 0.0 }
 0x8d4   :  { %3614 = vrot.lane.b32.xlu0 %v3609_v28, %s6190_s4 }
 0x8f3   :  { %2987 = vadd.xlane.f32.xlu0 %v2986_v27 }
 0x8f6   :  { %2983 = vadd.xlane.f32.xlu1 %v2982_v55 }
 0x944   :  { %v3613_v18 = vpop.permute.xlu1 %3612 }
 0x945   :  { %v3618_v23 = vadd.f32 %v3613_v18, %v3534_v6 }
 0x946   :  { %v3615_v25 = vpop.permute.xlu0 %3614 }
 0x947   :  { %6149 = vtanh.f32 %v3618_v23  ;;  %v3619_v26 = vadd.f32 %v3615_v25, %v3537_v43  ;;  %v3622_v43 = vsub.f32 1.0, %v6146_v61 }
 0x949   :  { %6151 = vtanh.f32 %v3619_v26 }
 0x951   :  { %v6150_v54 = vpop.eup %6149 }
 0x952   :  { %3626 = vrot.lane.b32.xlu0 %v6150_v54, %s6191_s0 }
 0x953   :  { %v6152_v19 = vpop.eup %6151 }
 0x954   :  { %3628 = vrot.lane.b32.xlu1 %v6152_v19, %s6191_s0 }
 0x956   :  { %3638 = vrot.lane.b32.xlu0 %v8533_v52, %s6192_s24 }
 0x958   :  { %3636 = vrot.lane.b32.xlu1 %v8539_v62, %s6192_s24 }
 0x980   :  { %v2988_v14 = vpop.xlane.xlu0 %2987 }
 0x981   :  { %vm2990_vm3 = vcmp.gt.f32.partialorder %v2988_v14, 0.0 }
 0x982   :  { %v8548_v19 = vsel %vm2990_vm3, 1.0, %v9515_v47 }
 0x983   :  { %v2984_v30 = vpop.xlane.xlu1 %2983 }
 0x984   :  { %vm2989_vm4 = vcmp.gt.f32.partialorder %v2984_v30, 0.0 }
 0x985   :  { %v8551_v52 = vsel %vm2989_vm4, 1.0, %v9515_v47 }
 0x9c4   :  { %v3627_v56 = vpop.permute.xlu0 %3626 }
 0x9c5   :  { %v3632_v23 = vmul.f32 %v3627_v56, %v3622_v43 }
 0x9c6   :  { %v3629_v6 = vpop.permute.xlu1 %3628 }
 0x9c7   :  { %v3633_v27 = vmul.f32 %v3629_v6, %v3623_v53 }
 0x9c8   :  { %v3639_v28 = vpop.permute.xlu0 %3638 }
 0x9c9   :  { %v3643_v55 = vmul.f32 %v6148_v60, %v3639_v28 }
 0x9ca   :  { %v3637_v18 = vpop.permute.xlu1 %3636 }
 0x9cb   :  { %v3645_v25 = vadd.f32 %v3643_v55, %v3633_v27  ;;  %v3642_v26 = vmul.f32 %v6146_v61, %v3637_v18  ;;  %v6184_v27 = vld [vmem:[%s9257_s6] sm:$0xff]  }
 0x9cd   :  { %v3644_v54 = vadd.f32 %v3642_v26, %v3632_v23  ;;  %v8554_v62 = vmul.f32 %v8548_v19, %v3645_v25 }
 0x9cf   :  { %v8557_v45 = vmul.f32 %v8551_v52, %v3644_v54 }
 0x9d1   :  { %v3648_v60 = vpack.c.bf16 %v8554_v62, %v8557_v45 }
 0x9d3   :  { %3650 = vrot.lane.b32.xlu1 %v3648_v60, %s6191_s0 }
 0xa45   :  { %v8562_v14 = vpop.permute.xlu1 %3650 }
 0xa46   :  { %5214 = vmatmul.mubr.msk.bf16.vlgmr.msra.gmra.mrb[116].mxu1 %vm2981_vm12, %v8562_v14 }
 0xa47   :  { %3738 = vmatprep.mubr.bf16.mxu1 %v9483_v58 }
 0xb19   :  { %v3689_v61 = vpop.f32.mrb[116].mxu1 }
 0xb1a   :  { %v3691_v30 = vpop.f32.mrb[117].mxu1 }
 0xb1b   :  { %v3693_v56 = vpop.f32.mrb[118].mxu1 }
 0xb1c   :  { %v3698_v6 = vpack.c.bf16 %v3693_v56, %v3689_v61  ;;  %v3695_v53 = vpop.f32.mrb[119].mxu1 }
 0xb1d   :  { %v3699_v28 = vpack.c.bf16 %v3695_v53, %v3691_v30 }
 0xb1e   :  { %v3701_v43 = vsel %vm3093_vm13, %v3698_v6, 0 }
 0xb1f   :  { %5215 = vmatprep.subr.msk.bf16.mxu1 %vm3093_vm13, %v3699_v28 }
 0xb20   :  { %3707 = vmatpush1.bf16.msra.mxu1 %v3701_v43 }
 0xb21   :  { %5340 = vmatprep.subr.bf16.mxu1 %v8101_v48 }
 0xb23   :  { %5216 = vmatmul.mubr.msk.bf16.vlgmr.msra.gmra.mrb[120].mxu1 %vm3077_vm14, %v6184_v27 }
 0xb24   :  { %3748 = vmatprep.mubr.bf16.mxu1 %v9483_v58  ;;  %5341 = vmatpush3.bf16.msra.mxu1 %v8106_v31 }
 0xb25   :  { %5342 = vmatprep.subr.bf16.mxu1 %v8115_v2 }
 0xb28   :  { %5343 = vmatpush3.bf16.msra.mxu1 %v8121_v4 }
 0xb29   :  { %5344 = vmatprep.subr.bf16.mxu1 %v8127_v33 }
 0xb2b   :  { %5217 = vmatmul.mubr.msk.bf16.gmra.mrb[124].mxu1 %vm3077_vm14, %v8000_v15 }
 0xb2c   :  { %3758 = vmatprep.mubr.bf16.mxu1 %v9483_v58  ;;  %5345 = vmatpush3.bf16.msra.mxu1 %v8142_v57 }
 0xb2d   :  { %5346 = vmatprep.subr.bf16.mxu1 %v8148_v50 }
 0xb30   :  { %5347 = vmatpush3.bf16.msra.mxu1 %v8153_v38 }
 0xb31   :  { %5348 = vmatprep.subr.bf16.mxu1 %v8161_v21 }
 0xb33   :  { %5218 = vmatmul.mubr.msk.bf16.gmra.mrb[128].mxu1 %vm3077_vm14, %v8026_v32 }
 0xb34   :  { %3768 = vmatprep.mubr.bf16.mxu1 %v9483_v58  ;;  %5349 = vmatpush3.bf16.msra.mxu1 %v8172_v1 }
 0xb35   :  { %5350 = vmatprep.subr.bf16.mxu1 %v8253_v10 }
 0xb38   :  { %5351 = vmatpush3.bf16.msra.mxu1 %v8258_v29 }
 0xb39   :  { %5352 = vmatprep.subr.bf16.mxu1 %v8354_v59 }
 0xb3b   :  { %5219 = vmatmul.mubr.msk.bf16.gmra.mrb[132].mxu1 %vm3077_vm14, %v8054_v37 }
 0xb3c   :  { %3778 = vmatprep.mubr.bf16.mxu1 %v9483_v58  ;;  %5353 = vmatpush3.bf16.msra.mxu1 %v8360_v22 }
 0xb3d   :  { %5354 = vmatprep.subr.bf16.mxu1 %v8365_v3 }
 0xb40   :  { %5355 = vmatpush3.bf16.msra.mxu1 %v8371_v9 }
 0xb41   :  { %5513 = vmatprep.subr.bf16.mxu1 %v9515_v47 }
 0xb43   :  { %5220 = vmatmul.mubr.msk.bf16.gmra.mrb[136].mxu1 %vm3077_vm14, %v8079_v46 }
 0xbf6   :  { %v3740_v15 = vpop.f32.mrb[120].mxu1 }
 0xbf7   :  { %v3787_v32 = vmul.f32 %v3740_v15, %v8376_v0  ;;  %v3742_v48 = vpop.f32.mrb[121].mxu1 }
 0xbf8   :  { %v3788_v31 = vmul.f32 %v3742_v48, %v8379_v13  ;;  %v3744_v37 = vpop.f32.mrb[122].mxu1 }
 0xbf9   :  { %v3789_v2 = vmul.f32 %v3744_v37, %v8382_v34  ;;  %v3746_v4 = vpop.f32.mrb[123].mxu1 }
 0xbfa   :  { %v3790_v33 = vmul.f32 %v3746_v4, %v8385_v5 }
 0xbfb   :  { %v3805_v57 = vpack.c.bf16 %v3789_v2, %v3787_v32 }
 0xbfc   :  { %v3806_v50 = vpack.c.bf16 %v3790_v33, %v3788_v31 }
 0xbfe   :  { %v3750_v38 = vpop.f32.mrb[124].mxu1  ;;  %3847 = vmatprep.mubr.bf16.mxu1 %v3806_v50 }
 0xbff   :  { %v3791_v21 = vmul.f32 %v3750_v38, %v8388_v35  ;;  %v3752_v1 = vpop.f32.mrb[125].mxu1  ;;  %3848 = vmatmul.mubr.bf16.vlgmr.msra.gmra.mrb[140].mxu1 %v3805_v57 }
 0xc00   :  { %v3792_v46 = vmul.f32 %v3752_v1, %v8391_v8  ;;  %v3754_v10 = vpop.f32.mrb[126].mxu1 }
 0xc01   :  { %v3793_v29 = vmul.f32 %v3754_v10, %v8394_v12  ;;  %v3756_v59 = vpop.f32.mrb[127].mxu1 }
 0xc02   :  { %v3794_v22 = vmul.f32 %v3756_v59, %v8397_v17 }
 0xc03   :  { %v3807_v3 = vpack.c.bf16 %v3793_v29, %v3791_v21 }
 0xc04   :  { %v3808_v9 = vpack.c.bf16 %v3794_v22, %v3792_v46  ;;  %v9531_v22 = vld [vmem:[#allocation12_spill] sm:$0xff] }
 0xc06   :  { %v3760_v0 = vpop.f32.mrb[128].mxu1  ;;  %3855 = vmatprep.mubr.bf16.mxu1 %v3808_v9  ;;  %v9532_v9 = vld [vmem:[#allocation9_spill] sm:$0xff] }
 0xc07   :  { %v3795_v13 = vmul.f32 %v3760_v0, %v8400_v63  ;;  %v3762_v34 = vpop.f32.mrb[129].mxu1  ;;  %3856 = vmatmul.mubr.bf16.gmra.mrb[144].mxu1 %v3807_v3 }
 0xc08   :  { %v3796_v5 = vmul.f32 %v3762_v34, %v8403_v16  ;;  %v3764_v35 = vpop.f32.mrb[130].mxu1 }
 0xc09   :  { %v3797_v55 = vmul.f32 %v3764_v35, %v8406_v41  ;;  %v3766_v8 = vpop.f32.mrb[131].mxu1 }
 0xc0a   :  { %v3798_v18 = vmul.f32 %v3766_v8, %v8409_v42  ;;  %v9533_v8 = vld [vmem:[#allocation10_spill] sm:$0xff] }
 0xc0b   :  { %v3809_v12 = vpack.c.bf16 %v3797_v55, %v3795_v13 }
 0xc0c   :  { %v3810_v23 = vpack.c.bf16 %v3798_v18, %v3796_v5 }
 0xc0e   :  { %v3770_v25 = vpop.f32.mrb[132].mxu1  ;;  %3863 = vmatprep.mubr.bf16.mxu1 %v3810_v23 }
 0xc0f   :  { %v3799_v17 = vmul.f32 %v3770_v25, %v8412_v51  ;;  %v3772_v26 = vpop.f32.mrb[133].mxu1  ;;  %3864 = vmatmul.mubr.bf16.gmra.mrb[148].mxu1 %v3809_v12  ;;  %v9534_v12 = vld [vmem:[#allocation8_spill] sm:$0xff] }
 0xc10   :  { %v3800_v63 = vmul.f32 %v3772_v26, %v8415_v49  ;;  %v3774_v54 = vpop.f32.mrb[134].mxu1 }
 0xc11   :  { %v3801_v60 = vmul.f32 %v3774_v54, %v8418_v20  ;;  %v3776_v16 = vpop.f32.mrb[135].mxu1 }
 0xc12   :  { %v3802_v61 = vmul.f32 %v3776_v16, %v8421_v39  ;;  %v9535_v16 = vld [vmem:[#allocation22_spill] sm:$0xff] }
 0xc13   :  { %v3811_v41 = vpack.c.bf16 %v3801_v60, %v3799_v17 }
 0xc14   :  { %v3812_v30 = vpack.c.bf16 %v3802_v61, %v3800_v63 }
 0xc16   :  { %v3780_v56 = vpop.f32.mrb[136].mxu1  ;;  %3871 = vmatprep.mubr.bf16.mxu1 %v3812_v30 }
 0xc17   :  { %v3803_v42 = vmul.f32 %v3780_v56, %v8424_v44  ;;  %v3782_v6 = vpop.f32.mrb[137].mxu1  ;;  %3872 = vmatmul.mubr.bf16.gmra.mrb[152].mxu1 %v3811_v41  ;;  %v9536_v56 = vld [vmem:[#allocation20_spill] sm:$0xff] }
 0xc18   :  { %v3804_v51 = vmul.f32 %v3782_v6, %v8427_v40  ;;  %v3784_v53 = vpop.f32.mrb[138].mxu1 }
 0xc19   :  { %v3785_v28 = vpop.f32.mrb[139].mxu1  ;;  %v3813_v49 = vpack.c.bf16 %v3803_v42, %v3803_v42  ;;  %v9537_v42 = vld [vmem:[#allocation21_spill] sm:$0xff] }
 0xc1a   :  { %v3814_v43 = vpack.c.bf16 %v3804_v51, %v3804_v51 }
 0xc1c   :  { %3879 = vmatprep.mubr.bf16.mxu1 %v3814_v43 }
 0xc1f   :  { %3880 = vmatmul.mubr.bf16.gmra.mrb[156].mxu1 %v3813_v49  ;;  %v9538_v49 = vld [vmem:[#allocation19_spill] sm:$0xff] }
 0xc20   :  { %5523 = vmatprep.mubr.msk.bf16.mxu1 %vm6187_vm1, %v9515_v47 }
 0xcd2   :  { %v5356_v20 = vpop.f32.mrb[140].mxu1 }
 0xcd3   :  { %v5357_v39 = vpop.f32.mrb[141].mxu1 }
 0xcd4   :  { %v5358_v27 = vadd.f32 %v5357_v39, %v5356_v20  ;;  %v5359_v15 = vpop.f32.mrb[142].mxu1 }
 0xcd5   :  { %v5360_v32 = vpop.f32.mrb[143].mxu1 }
 0xcd6   :  { %v5361_v48 = vadd.f32 %v5360_v32, %v5359_v15  ;;  %v3887_v44 = vmul.f32 %v5358_v27, %v8432_v24 }
 0xcd8   :  { %v3888_v31 = vmul.f32 %v5361_v48, %v8434_v11  ;;  %v9539_v48 = vld [vmem:[#allocation30_spill] sm:$0xff] }
 0xcda   :  { %v3896_v40 = vpack.c.bf16 %v3888_v31, %v3887_v44  ;;  %v5362_v37 = vpop.f32.mrb[144].mxu1 }
 0xcdb   :  { %v5363_v2 = vpop.f32.mrb[145].mxu1 }
 0xcdc   :  { %v5364_v4 = vadd.f32 %v5363_v2, %v5362_v37  ;;  %v5365_v33 = vpop.f32.mrb[146].mxu1  ;;  %5514 = vmatpush3.bf16.msra.mxu1 %v3896_v40 }
 0xcdd   :  { %v5366_v57 = vpop.f32.mrb[147].mxu1  ;;  %5515 = vmatprep.subr.bf16.mxu1 %v9515_v47 }
 0xcde   :  { %v5367_v50 = vadd.f32 %v5366_v57, %v5365_v33  ;;  %v3889_v38 = vmul.f32 %v5364_v4, %v8439_v36 }
 0xce0   :  { %v3890_v21 = vmul.f32 %v5367_v50, %v8441_v7 }
 0xce2   :  { %v3897_v1 = vpack.c.bf16 %v3890_v21, %v3889_v38  ;;  %v5368_v46 = vpop.f32.mrb[148].mxu1 }
 0xce3   :  { %v5369_v10 = vpop.f32.mrb[149].mxu1 }
 0xce4   :  { %v5370_v24 = vadd.f32 %v5369_v10, %v5368_v46  ;;  %v5371_v29 = vpop.f32.mrb[150].mxu1  ;;  %5516 = vmatpush3.bf16.msra.mxu1 %v3897_v1 }
 0xce5   :  { %v5372_v11 = vpop.f32.mrb[151].mxu1  ;;  %5517 = vmatprep.subr.bf16.mxu1 %v9515_v47 }
 0xce6   :  { %v5373_v59 = vadd.f32 %v5372_v11, %v5371_v29  ;;  %v3891_v3 = vmul.f32 %v5370_v24, %v9531_v22 }
 0xce8   :  { %v3892_v0 = vmul.f32 %v5373_v59, %v9532_v9 }
 0xcea   :  { %v3898_v13 = vpack.c.bf16 %v3892_v0, %v3891_v3  ;;  %v5374_v34 = vpop.f32.mrb[152].mxu1 }
 0xceb   :  { %v5375_v5 = vpop.f32.mrb[153].mxu1 }
 0xcec   :  { %v5376_v36 = vadd.f32 %v5375_v5, %v5374_v34  ;;  %v5377_v35 = vpop.f32.mrb[154].mxu1  ;;  %5518 = vmatpush3.bf16.msra.mxu1 %v3898_v13 }
 0xced   :  { %v5378_v7 = vpop.f32.mrb[155].mxu1  ;;  %5519 = vmatprep.subr.bf16.mxu1 %v9515_v47 }
 0xcee   :  { %v5379_v55 = vadd.f32 %v5378_v7, %v5377_v35  ;;  %v3893_v18 = vmul.f32 %v5376_v36, %v9533_v8  ;;  %v4087_v36 = vld [vmem:[%s9262_s16] sm:$0xff]  ;;  %v4088_v35 = vld [vmem:[%s9262_s16 + $0x8] sm:$0xff]  ;;  %v4089_v7 = vld [vmem:[%s9262_s16 + $0x10] sm:$0xff] }
 0xcef   :  { %v4090_v8 = vld [vmem:[%s9262_s16 + $0x18] sm:$0xff] }
 0xcf0   :  { %v3894_v23 = vmul.f32 %v5379_v55, %v9534_v12  ;;  %v4092_v55 = vpack.c.bf16 %v4088_v35, %v4087_v36  ;;  %v4093_v12 = vpack.c.bf16 %v4090_v8, %v4089_v7  ;;  %v4170_v35 = vld [vmem:[%s9263_s17 + $0xc8] sm:$0xff]  ;;  %v4172_v7 = vld [vmem:[%s9263_s17 + $0xd8] sm:$0xff]  ;;  %v4169_v8 = vld [vmem:[%s9263_s17 + $0xc0] sm:$0xff] }
 0xcf2   :  { %v3899_v25 = vpack.c.bf16 %v3894_v23, %v3893_v18  ;;  %v5380_v17 = vpop.f32.mrb[156].mxu1 }
 0xcf3   :  { %v5381_v26 = vpop.f32.mrb[157].mxu1 }
 0xcf4   :  { %v5382_v63 = vadd.f32 %v5381_v26, %v5380_v17  ;;  %v5383_v54 = vpop.f32.mrb[158].mxu1  ;;  %5520 = vmatpush3.bf16.msra.mxu1 %v3899_v25  ;;  %v4146_v25 = vld [vmem:[%s9263_s17 + $0x8] sm:$0xff]  ;;  %v4148_v17 = vld [vmem:[%s9263_s17 + $0x18] sm:$0xff] }
 0xcf5   :  { %v5384_v60 = vpop.f32.mrb[159].mxu1  ;;  %5521 = vmatprep.subr.bf16.mxu1 %v9515_v47 }
 0xcf6   :  { %v3895_v61 = vmul.f32 %v5382_v63, %v9535_v16  ;;  %v4179_v63 = vpack.c.bf16 %v4148_v17, %v4146_v25  ;;  %v4176_v25 = vld [vmem:[%s9263_s17 + $0xf8] sm:$0xff]  ;;  %v4173_v17 = vld [vmem:[%s9263_s17 + $0xe0] sm:$0xff] }
 0xcf8   :  { %v3900_v41 = vpack.c.bf16 %v3895_v61, %v3895_v61 }
 0xcfa   :  { %v3902_v30 = vsel %vm3445_vm15, %v3900_v41, 0 }
 0xcfb   :  { %5522 = vmatpush3.bf16.msra.mxu1 %v3902_v30 }
 0xcfc   :  { %5527 = vmatprep.subr.bf16.mxu1 %v9515_v47 }
 0xcfe   :  { %5524 = vmatmul.mubr.msk.bf16.vlgmr.msra.gmra.mrb[160].mxu1 %vm3441_vm0, %v9536_v56 }
 0xcff   :  { %5528 = vmatpush3.bf16.msra.mxu1 %v9537_v42  ;;  %5529 = vmatprep.mubr.msk.bf16.mxu1 %vm6187_vm1, %v9515_v47 }
 0xd00   :  { %5533 = vmatprep.subr.bf16.mxu1 %v9515_v47 }
 0xdd1   :  { %v3938_v6 = vpop.f32.mrb[160].mxu1 }
 0xdd2   :  { %v5525_v51 = vpop.f32.mrb[161].mxu1 }
 0xdd3   :  { %v3941_v53 = vpop.f32.mrb[162].mxu1 }
 0xdd4   :  { %v3945_v28 = vpack.c.bf16 %v3941_v53, %v3938_v6  ;;  %v5526_v43 = vpop.f32.mrb[163].mxu1  ;;  %v4145_v53 = vld [vmem:[%s9263_s17] sm:$0xff] }
 0xdd5   :  { %v4150_v43 = vld [vmem:[%s9263_s17 + $0x28] sm:$0xff] }
 0xdd6   :  { %5530 = vmatmul.mubr.msk.bf16.vlgmr.msra.gmra.mrb[164].mxu1 %vm2981_vm12, %v3945_v28  ;;  %v4147_v28 = vld [vmem:[%s9263_s17 + $0x10] sm:$0xff] }
 0xdd7   :  { %5534 = vmatpush3.bf16.msra.mxu1 %v9538_v49  ;;  %5535 = vmatprep.mubr.msk.bf16.mxu1 %vm6187_vm1, %v9515_v47  ;;  %v9541_v49 = vld [vmem:[#allocation5_spill] sm:$0xff] }
 0xdd8   :  { %5539 = vmatprep.subr.bf16.mxu1 %v9515_v47 }
 0xdde   :  { %5536 = vmatmul.mubr.msk.bf16.vlgmr.msra.gmra.mrb[168].mxu1 %vm2981_vm12, %v8562_v14  ;;  %v9540_v14 = vld [vmem:[#allocation33_spill] sm:$0xff] }
 0xddf   :  { %5543 = vmatprep.mubr.msk.bf16.mxu1 %vm6187_vm1, %v9515_v47  ;;  %5540 = vmatpush3.bf16.msra.mxu1 %v4092_v55  ;;  %v4191_v55 = vpack.c.bf16 %v4172_v7, %v4170_v35  ;;  %v4277_v35 = vld [vmem:[%s9264_s18 + $0xe0] sm:$0xff]  ;;  %v4278_v7 = vld [vmem:[%s9264_s18 + $0xe8] sm:$0xff] }
 0xde0   :  { %5541 = vmatprep.subr.bf16.mxu1 %v9515_v47 }
 0xde3   :  { %5542 = vmatpush3.bf16.msra.mxu1 %v4093_v12  ;;  %v4174_v12 = vld [vmem:[%s9263_s17 + $0xe8] sm:$0xff] }
 0xde4   :  { %4202 = vmatprep.subr.bf16.mxu1 %v4179_v63  ;;  %v4193_v63 = vpack.c.bf16 %v4176_v25, %v4174_v12  ;;  %v4279_v12 = vld [vmem:[%s9264_s18 + $0xf0] sm:$0xff] }
 0xea9   :  { %v3983_v20 = vpop.f32.mrb[164].mxu1 }
 0xeaa   :  { %v5531_v39 = vpop.f32.mrb[165].mxu1  ;;  %v3984_v4 = vadd.f32 %v3983_v20, %v9540_v14 }
 0xeab   :  { %v3986_v27 = vpop.f32.mrb[166].mxu1  ;;  %v9542_v39 = vld [vmem:[#allocation32_spill] sm:$0xff] }
 0xeac   :  { %v5532_v15 = vpop.f32.mrb[167].mxu1  ;;  %v3987_v33 = vadd.f32 %v3986_v27, %v9540_v14 }
 0xeb1   :  { %v4024_v32 = vpop.f32.mrb[168].mxu1 }
 0xeb2   :  { %v4025_v44 = vadd.f32 %v4024_v32, %v9539_v48  ;;  %v5537_v31 = vpop.f32.mrb[169].mxu1  ;;  %v4178_v32 = vpack.c.bf16 %v4147_v28, %v4145_v53 }
 0xeb3   :  { %v4027_v40 = vpop.f32.mrb[170].mxu1  ;;  %v4149_v31 = vld [vmem:[%s9263_s17 + $0x20] sm:$0xff] }
 0xeb4   :  { %v4028_v37 = vadd.f32 %v4027_v40, %v9539_v48  ;;  %4047 = vrot.lane.b32.xlu0 %v4025_v44, %s6189_s12  ;;  %v5538_v2 = vpop.f32.mrb[171].mxu1  ;;  %v4031_v57 = vadd.f32 %v4025_v44, %v3984_v4  ;;  %v4151_v40 = vld [vmem:[%s9263_s17 + $0x30] sm:$0xff] }
 0xeb5   :  { %v4156_v2 = vld [vmem:[%s9263_s17 + $0x58] sm:$0xff]  ;;  %v4180_v14 = vpack.c.bf16 %v4151_v40, %v4149_v31  ;;  %v4251_v31 = vld [vmem:[%s9264_s18 + $0x10] sm:$0xff] }
 0xeb6   :  { %4049 = vrot.lane.b32.xlu1 %v4028_v37, %s6189_s12  ;;  %v4032_v50 = vadd.f32 %v4028_v37, %v3987_v33  ;;  %v5224_v38 = vmul.f32 -1.442695, %v4031_v57  ;;  %v4154_v37 = vld [vmem:[%s9263_s17 + $0x48] sm:$0xff]  ;;  %v4155_v57 = vld [vmem:[%s9263_s17 + $0x50] sm:$0xff]  ;;  %v4252_v40 = vld [vmem:[%s9264_s18 + $0x18] sm:$0xff] }
 0xeb8   :  { %v5225_v21 = vmul.f32 -1.442695, %v4032_v50  ;;  %6153 = vpow2.f32 %v5224_v38  ;;  %v4158_v50 = vld [vmem:[%s9263_s17 + $0x68] sm:$0xff]  ;;  %v4160_v38 = vld [vmem:[%s9263_s17 + $0x78] sm:$0xff] }
 0xeba   :  { %6155 = vpow2.f32 %v5225_v21  ;;  %v4185_v21 = vpack.c.bf16 %v4160_v38, %v4158_v50  ;;  %v4271_v50 = vld [vmem:[%s9264_s18 + $0xb0] sm:$0xff]  ;;  %v4272_v38 = vld [vmem:[%s9264_s18 + $0xb8] sm:$0xff] }
 0xec2   :  { %v6154_v1 = vpop.eup %6153 }
 0xec3   :  { %v4039_v10 = vadd.f32 1.0, %v6154_v1  ;;  %v4157_v1 = vld [vmem:[%s9263_s17 + $0x60] sm:$0xff] }
 0xec4   :  { %v6156_v46 = vpop.eup %6155 }
 0xec5   :  { %v4040_v24 = vadd.f32 1.0, %v6156_v46  ;;  %6157 = vrcp.f32 %v4039_v10  ;;  %v4159_v46 = vld [vmem:[%s9263_s17 + $0x70] sm:$0xff]  ;;  %v4162_v10 = vld [vmem:[%s9263_s17 + $0x88] sm:$0xff] }
 0xec7   :  { %6159 = vrcp.f32 %v4040_v24  ;;  %v4164_v24 = vld [vmem:[%s9263_s17 + $0x98] sm:$0xff] }
 0xecf   :  { %v6158_v29 = vpop.eup %6157 }
 0xed0   :  { %v4067_v26 = vsub.f32 1.0, %v6158_v29  ;;  %v4079_v60 = vmul.f32 %v6158_v29, %v8557_v45 }
 0xed1   :  { %v6160_v22 = vpop.eup %6159 }
 0xed2   :  { %v4068_v61 = vsub.f32 1.0, %v6160_v22  ;;  %v4080_v56 = vmul.f32 %v6160_v22, %v8554_v62  ;;  %v4152_v62 = vld [vmem:[%s9263_s17 + $0x38] sm:$0xff] }
 0xed3   :  { %v4181_v44 = vpack.c.bf16 %v4152_v62, %v4150_v43  ;;  %v4249_v62 = vld [vmem:[%s9264_s18] sm:$0xff] }
 0xf26   :  { %v4048_v11 = vpop.permute.xlu0 %4047 }
 0xf27   :  { %v4053_v59 = vmul.f32 %v6158_v29, %v4048_v11  ;;  %v4184_v29 = vpack.c.bf16 %v4159_v46, %v4157_v1  ;;  %v4187_v11 = vpack.c.bf16 %v4164_v24, %v4162_v10  ;;  %v4255_v1 = vld [vmem:[%s9264_s18 + $0x30] sm:$0xff]  ;;  %v4256_v46 = vld [vmem:[%s9264_s18 + $0x38] sm:$0xff]  ;;  %v4273_v10 = vld [vmem:[%s9264_s18 + $0xc0] sm:$0xff] }
 0xf28   :  { %v4050_v3 = vpop.permute.xlu1 %4049  ;;  %v4274_v24 = vld [vmem:[%s9264_s18 + $0xc8] sm:$0xff] }
 0xf29   :  { %v4054_v9 = vmul.f32 %v6160_v22, %v4050_v3  ;;  %4057 = vrot.lane.b32.xlu0 %v4053_v59, %s6190_s4  ;;  %v4161_v59 = vld [vmem:[%s9263_s17 + $0x80] sm:$0xff]  ;;  %v4163_v22 = vld [vmem:[%s9263_s17 + $0x90] sm:$0xff]  ;;  %v4166_v3 = vld [vmem:[%s9263_s17 + $0xa8] sm:$0xff] }
 0xf2b   :  { %4059 = vrot.lane.b32.xlu1 %v4054_v9, %s6190_s4  ;;  %v4168_v9 = vld [vmem:[%s9263_s17 + $0xb8] sm:$0xff] }
 0xf9b   :  { %v4058_v0 = vpop.permute.xlu0 %4057 }
 0xf9c   :  { %v4063_v13 = vadd.f32 %v4058_v0, %v3984_v4  ;;  %v4183_v4 = vpack.c.bf16 %v4156_v2, %v4154_v37  ;;  %v4186_v0 = vpack.c.bf16 %v4163_v22, %v4161_v59  ;;  %v4269_v37 = vld [vmem:[%s9264_s18 + $0xa0] sm:$0xff]  ;;  %v4270_v2 = vld [vmem:[%s9264_s18 + $0xa8] sm:$0xff] }
 0xf9d   :  { %v4060_v34 = vpop.permute.xlu1 %4059  ;;  %v4257_v59 = vld [vmem:[%s9264_s18 + $0x40] sm:$0xff]  ;;  %v4258_v22 = vld [vmem:[%s9264_s18 + $0x48] sm:$0xff] }
 0xf9e   :  { %6161 = vtanh.f32 %v4063_v13  ;;  %v4064_v5 = vadd.f32 %v4060_v34, %v3987_v33  ;;  %v4153_v33 = vld [vmem:[%s9263_s17 + $0x40] sm:$0xff]  ;;  %v4189_v13 = vpack.c.bf16 %v4168_v9, %v4166_v3  ;;  %v4275_v3 = vld [vmem:[%s9264_s18 + $0xd0] sm:$0xff]  ;;  %v4276_v9 = vld [vmem:[%s9264_s18 + $0xd8] sm:$0xff] }
 0xf9f   :  { %v4165_v34 = vld [vmem:[%s9263_s17 + $0xa0] sm:$0xff] }
 0xfa0   :  { %6163 = vtanh.f32 %v4064_v5  ;;  %v4167_v5 = vld [vmem:[%s9263_s17 + $0xb0] sm:$0xff] }
 0xfa1   :  { %v4188_v36 = vpack.c.bf16 %v4167_v5, %v4165_v34  ;;  %v4259_v34 = vld [vmem:[%s9264_s18 + $0x50] sm:$0xff]  ;;  %v4260_v5 = vld [vmem:[%s9264_s18 + $0x58] sm:$0xff] }
 0xfa8   :  { %v6162_v18 = vpop.eup %6161 }
 0xfa9   :  { %4071 = vrot.lane.b32.xlu0 %v6162_v18, %s6191_s0  ;;  %v4171_v18 = vld [vmem:[%s9263_s17 + $0xd0] sm:$0xff] }
 0xfaa   :  { %v6164_v23 = vpop.eup %6163 }
 0xfab   :  { %4073 = vrot.lane.b32.xlu1 %v6164_v23, %s6191_s0  ;;  %v4190_v23 = vpack.c.bf16 %v4171_v18, %v4169_v8  ;;  %v4297_v8 = vpack.c.bf16 %v4278_v7, %v4277_v35  ;;  %v4262_v18 = vld [vmem:[%s9264_s18 + $0x68] sm:$0xff]  ;;  %v4480_v35 = vld [vmem:[%s9266_s21 + $0x38] sm:$0xff] }
0x101b   :  { %v4072_v54 = vpop.permute.xlu0 %4071 }
0x101c   :  { %v4077_v16 = vmul.f32 %v4072_v54, %v4067_v26  ;;  %v4175_v26 = vld [vmem:[%s9263_s17 + $0xf0] sm:$0xff] }
0x101d   :  { %v4074_v41 = vpop.permute.xlu1 %4073  ;;  %v4192_v54 = vpack.c.bf16 %v4175_v26, %v4173_v17  ;;  %v4263_v26 = vld [vmem:[%s9264_s18 + $0x70] sm:$0xff] }
0x101e   :  { %v4081_v30 = vadd.f32 %v4079_v60, %v4077_v16  ;;  %v4078_v42 = vmul.f32 %v4074_v41, %v4068_v61  ;;  %v4265_v60 = vld [vmem:[%s9264_s18 + $0x80] sm:$0xff]  ;;  %v4266_v16 = vld [vmem:[%s9264_s18 + $0x88] sm:$0xff] }
0x101f   :  { %v4291_v61 = vpack.c.bf16 %v4266_v16, %v4265_v60  ;;  %v9543_v41 = vld [vmem:[#allocation2_spill] sm:$0xff] }
0x1020   :  { %v4083_v6 = vmul.f32 %v8551_v52, %v4081_v30  ;;  %v4082_v51 = vadd.f32 %v4080_v56, %v4078_v42  ;;  %v4096_v30 = vsub.s32 6, %v9543_v41  ;;  %v9544_v56 = vld [vmem:[#allocation31_spill] sm:$0xff]  ;;  %v4196_v60 = vsub.s32 7, %v9543_v41 }
0x1022   :  { %v4084_v45 = vmul.f32 %v8548_v19, %v4082_v51  ;;  %v4085_v20 = vsel %vm2981_vm12, %v9541_v49, %v4083_v6  ;;  %v4097_v42 = vrot.slane %v9544_v56, %v4096_v30  ;;  %v4250_v49 = vld [vmem:[%s9264_s18 + $0x8] sm:$0xff]  ;;  %v4197_v16 = vrot.slane %v9544_v56, %v4196_v60 }
0x1023   :  { %v4347_v56 = vld [vmem:[%s9265_s19 + $0x8] sm:$0xff] }
0x1024   :  { %v4086_v27 = vsel %vm2981_vm12, %v9542_v39, %v4084_v45  ;;  %v4418_v15 = vpack.c.bf16 %v4084_v45, %v4083_v6  ;;  %v4268_v39 = vld [vmem:[%s9264_s18 + $0x98] sm:$0xff] }
0x1025   :  { %v4091_v48 = vpack.c.bf16 %v4086_v27, %v4085_v20  ;;  %v4267_v20 = vld [vmem:[%s9264_s18 + $0x90] sm:$0xff] }
0x1026   :  { %4425 = vrot.lane.b32.xlu0 %v4418_v15, %s6191_s0 }
0x1027   :  { %5544 = vmatmul.mubr.msk.bf16.vlgmr.msra.gmra.mrb[172].mxu1 %vm4098_vm5, %v4091_v48 }
0x1028   :  { %4203 = vmatpush1.bf16.msra.mxu1 %v4178_v32  ;;  %4234 = vmatprep.mubr.bf16.mxu1 %v9483_v58  ;;  %v4182_v58 = vpack.c.bf16 %v4155_v57, %v4153_v33  ;;  %v4283_v32 = vpack.c.bf16 %v4250_v49, %v4249_v62  ;;  %v4253_v33 = vld [vmem:[%s9264_s18 + $0x20] sm:$0xff]  ;;  %v4254_v57 = vld [vmem:[%s9264_s18 + $0x28] sm:$0xff] }
0x1029   :  { %4204 = vmatprep.subr.bf16.mxu1 %v4181_v44  ;;  %v4292_v44 = vpack.c.bf16 %v4268_v39, %v4267_v20  ;;  %v4346_v39 = vld [vmem:[%s9265_s19] sm:$0xff] }
0x102c   :  { %4205 = vmatpush1.bf16.msra.mxu1 %v4180_v14  ;;  %v4284_v14 = vpack.c.bf16 %v4252_v40, %v4251_v31  ;;  %v4348_v31 = vld [vmem:[%s9265_s19 + $0x10] sm:$0xff]  ;;  %v4349_v40 = vld [vmem:[%s9265_s19 + $0x18] sm:$0xff] }
0x102d   :  { %4206 = vmatprep.subr.bf16.mxu1 %v4183_v4  ;;  %v4293_v4 = vpack.c.bf16 %v4270_v2, %v4269_v37  ;;  %v4364_v37 = vpack.c.bf16 %v4349_v40, %v4348_v31  ;;  %v4350_v2 = vld [vmem:[%s9265_s19 + $0x20] sm:$0xff] }
0x1030   :  { %4207 = vmatpush1.bf16.msra.mxu1 %v4182_v58  ;;  %v4285_v58 = vpack.c.bf16 %v4254_v57, %v4253_v33  ;;  %v4352_v33 = vld [vmem:[%s9265_s19 + $0x30] sm:$0xff]  ;;  %v4353_v57 = vld [vmem:[%s9265_s19 + $0x38] sm:$0xff] }
0x1031   :  { %4208 = vmatprep.subr.bf16.mxu1 %v4185_v21  ;;  %v4294_v21 = vpack.c.bf16 %v4272_v38, %v4271_v50  ;;  %v4366_v50 = vpack.c.bf16 %v4353_v57, %v4352_v33  ;;  %v4354_v38 = vld [vmem:[%s9265_s19 + $0x40] sm:$0xff]  ;;  %v4491_v57 = vld [vmem:[%s9266_s21 + $0x90] sm:$0xff] }
0x1032   :  { %v4489_v33 = vld [vmem:[%s9266_s21 + $0x80] sm:$0xff] }
0x1034   :  { %4209 = vmatpush1.bf16.msra.mxu1 %v4184_v29  ;;  %v4286_v29 = vpack.c.bf16 %v4256_v46, %v4255_v1  ;;  %v4356_v1 = vld [vmem:[%s9265_s19 + $0x50] sm:$0xff]  ;;  %v4357_v46 = vld [vmem:[%s9265_s19 + $0x58] sm:$0xff] }
0x1035   :  { %4210 = vmatprep.subr.bf16.mxu1 %v4187_v11  ;;  %v4295_v11 = vpack.c.bf16 %v4274_v24, %v4273_v10  ;;  %v4368_v10 = vpack.c.bf16 %v4357_v46, %v4356_v1  ;;  %v4358_v24 = vld [vmem:[%s9265_s19 + $0x60] sm:$0xff]  ;;  %v4495_v1 = vld [vmem:[%s9266_s21 + $0xb0] sm:$0xff] }
0x1038   :  { %4211 = vmatpush1.bf16.msra.mxu1 %v4186_v0  ;;  %v4287_v0 = vpack.c.bf16 %v4258_v22, %v4257_v59  ;;  %v4361_v22 = vld [vmem:[%s9265_s19 + $0x78] sm:$0xff] }
0x1039   :  { %4212 = vmatprep.subr.bf16.mxu1 %v4189_v13  ;;  %v4296_v13 = vpack.c.bf16 %v4276_v9, %v4275_v3  ;;  %v4474_v9 = vld [vmem:[%s9266_s21 + $0x8] sm:$0xff] }
0x103c   :  { %4213 = vmatpush1.bf16.msra.mxu1 %v4188_v36  ;;  %v4288_v36 = vpack.c.bf16 %v4260_v5, %v4259_v34  ;;  %v4475_v5 = vld [vmem:[%s9266_s21 + $0x10] sm:$0xff] }
0x103d   :  { %4214 = vmatprep.subr.bf16.mxu1 %v4191_v55  ;;  %v4261_v55 = vld [vmem:[%s9264_s18 + $0x60] sm:$0xff] }
0x103e   :  { %v4289_v25 = vpack.c.bf16 %v4262_v18, %v4261_v55  ;;  %v4479_v18 = vld [vmem:[%s9266_s21 + $0x30] sm:$0xff] }
0x1040   :  { %4215 = vmatpush1.bf16.msra.mxu1 %v4190_v23  ;;  %v4280_v23 = vld [vmem:[%s9264_s18 + $0xf8] sm:$0xff] }
0x1041   :  { %4216 = vmatprep.subr.bf16.mxu1 %v4193_v63  ;;  %v4298_v17 = vpack.c.bf16 %v4280_v23, %v4279_v12  ;;  %v4264_v63 = vld [vmem:[%s9264_s18 + $0x78] sm:$0xff]  ;;  %v4482_v12 = vld [vmem:[%s9266_s21 + $0x48] sm:$0xff] }
0x1042   :  { %v4484_v23 = vld [vmem:[%s9266_s21 + $0x58] sm:$0xff] }
0x1044   :  { %4217 = vmatpush1.bf16.msra.mxu1 %v4192_v54  ;;  %v4290_v54 = vpack.c.bf16 %v4264_v63, %v4263_v26  ;;  %v4481_v26 = vld [vmem:[%s9266_s21 + $0x40] sm:$0xff]  ;;  %v4483_v63 = vld [vmem:[%s9266_s21 + $0x50] sm:$0xff] }
0x1045   :  { %5399 = vmatprep.subr.bf16.mxu1 %v4291_v61  ;;  %v6185_v61 = vld [vmem:[%s9366_s13 + $0x8] sm:$0xff] }
0x1046   :  { %v4201_v30 = vrot.slane %v6185_v61, %v4196_v60  ;;  %v4488_v60 = vld [vmem:[%s9266_s21 + $0x78] sm:$0xff] }
0x10fa   :  { %v4136_v6 = vpop.f32.mrb[172].mxu1 }
0x10fb   :  { %v4137_v51 = vadd.f32 %v4136_v6, %v4097_v42  ;;  %v5545_v53 = vpop.f32.mrb[173].mxu1 }
0x10fc   :  { %v4139_v28 = vpop.f32.mrb[174].mxu1 }
0x10fd   :  { %v4140_v45 = vadd.f32 %v4139_v28, %v4097_v42  ;;  %v5546_v43 = vpop.f32.mrb[175].mxu1  ;;  %v4143_v27 = vmax.f32 %v4137_v51, 0.0 }
0x10ff   :  { %v4144_v15 = vmax.f32 %v4140_v45, 0.0 }
0x1101   :  { %v4177_v48 = vpack.c.bf16 %v4144_v15, %v4143_v27 }
0x1103   :  { %4235 = vmatmul.mubr.bf16.vlgmr.msra.gmra.mrb[176].mxu1 %v4177_v48 }
0x1104   :  { %5400 = vmatpush3.bf16.msra.mxu1 %v4283_v32 }
0x1105   :  { %5401 = vmatprep.subr.bf16.mxu1 %v4292_v44  ;;  %v4363_v44 = vpack.c.bf16 %v4347_v56, %v4346_v39 }
0x1108   :  { %5402 = vmatpush3.bf16.msra.mxu1 %v4284_v14  ;;  %v4351_v14 = vld [vmem:[%s9265_s19 + $0x28] sm:$0xff] }
0x1109   :  { %5403 = vmatprep.subr.bf16.mxu1 %v4293_v4  ;;  %v4365_v4 = vpack.c.bf16 %v4351_v14, %v4350_v2  ;;  %v4490_v2 = vld [vmem:[%s9266_s21 + $0x88] sm:$0xff]  ;;  %v4492_v14 = vld [vmem:[%s9266_s21 + $0x98] sm:$0xff] }
0x110c   :  { %5404 = vmatpush3.bf16.msra.mxu1 %v4285_v58  ;;  %v4355_v58 = vld [vmem:[%s9265_s19 + $0x48] sm:$0xff] }
0x110d   :  { %5405 = vmatprep.subr.bf16.mxu1 %v4294_v21  ;;  %v4367_v21 = vpack.c.bf16 %v4355_v58, %v4354_v38  ;;  %v4514_v38 = vpack.c.bf16 %v4491_v57, %v4489_v33  ;;  %v4496_v58 = vld [vmem:[%s9266_s21 + $0xb8] sm:$0xff] }
0x1110   :  { %5406 = vmatpush3.bf16.msra.mxu1 %v4286_v29  ;;  %v4359_v29 = vld [vmem:[%s9265_s19 + $0x68] sm:$0xff] }
0x1111   :  { %5407 = vmatprep.subr.bf16.mxu1 %v4295_v11  ;;  %v4360_v11 = vld [vmem:[%s9265_s19 + $0x70] sm:$0xff]  ;;  %v4369_v59 = vpack.c.bf16 %v4359_v29, %v4358_v24  ;;  %v4500_v24 = vld [vmem:[%s9266_s21 + $0xd8] sm:$0xff] }
0x1112   :  { %v4370_v3 = vpack.c.bf16 %v4361_v22, %v4360_v11  ;;  %v4497_v11 = vld [vmem:[%s9266_s21 + $0xc0] sm:$0xff] }
0x1114   :  { %5408 = vmatpush3.bf16.msra.mxu1 %v4287_v0  ;;  %v4476_v0 = vld [vmem:[%s9266_s21 + $0x18] sm:$0xff] }
0x1115   :  { %5409 = vmatprep.subr.bf16.mxu1 %v4296_v13  ;;  %v4473_v13 = vld [vmem:[%s9266_s21] sm:$0xff]  ;;  %v4507_v34 = vpack.c.bf16 %v4476_v0, %v4474_v9  ;;  %v4504_v9 = vld [vmem:[%s9266_s21 + $0xf8] sm:$0xff] }
0x1116   :  { %v4506_v7 = vpack.c.bf16 %v4475_v5, %v4473_v13  ;;  %v4593_v0 = vld [vmem:[%s9268_s22 + $0x80] sm:$0xff]  ;;  %v4594_v13 = vld [vmem:[%s9268_s22 + $0x88] sm:$0xff] }
0x1117   :  { %4530 = vmatprep.subr.bf16.mxu0 %v4507_v34  ;;  %v4577_v34 = vld [vmem:[%s9268_s22] sm:$0xff]  ;;  %v4578_v5 = vld [vmem:[%s9268_s22 + $0x8] sm:$0xff] }
0x1118   :  { %5410 = vmatpush3.bf16.msra.mxu1 %v4288_v36  ;;  %v4478_v36 = vld [vmem:[%s9266_s21 + $0x28] sm:$0xff]  ;;  %4531 = vmatpush1.bf16.msra.mxu0 %v4506_v7  ;;  %v4595_v7 = vld [vmem:[%s9268_s22 + $0x90] sm:$0xff] }
0x1119   :  { %5411 = vmatprep.subr.bf16.mxu1 %v4297_v8  ;;  %v4509_v55 = vpack.c.bf16 %v4480_v35, %v4478_v36  ;;  %v4477_v8 = vld [vmem:[%s9266_s21 + $0x20] sm:$0xff]  ;;  %v4619_v36 = vpack.c.bf16 %v4594_v13, %v4593_v0  ;;  %v4611_v35 = vpack.c.bf16 %v4578_v5, %v4577_v34  ;;  %v4590_v13 = vld [vmem:[%s9268_s22 + $0x68] sm:$0xff]  ;;  %v4607_v34 = vld [vmem:[%s9268_s22 + $0xf0] sm:$0xff] }
0x111a   :  { %v4608_v5 = vld [vmem:[%s9268_s22 + $0xf8] sm:$0xff] }
0x111b   :  { %4532 = vmatprep.subr.bf16.mxu0 %v4509_v55  ;;  %v4596_v55 = vld [vmem:[%s9268_s22 + $0x98] sm:$0xff] }
0x111c   :  { %5412 = vmatpush3.bf16.msra.mxu1 %v4289_v25  ;;  %v4508_v25 = vpack.c.bf16 %v4479_v18, %v4477_v8  ;;  %v4579_v8 = vld [vmem:[%s9268_s22 + $0x10] sm:$0xff] }
0x111d   :  { %5413 = vmatprep.subr.bf16.mxu1 %v4298_v17  ;;  %v4511_v17 = vpack.c.bf16 %v4484_v23, %v4482_v12  ;;  %v4620_v12 = vpack.c.bf16 %v4596_v55, %v4595_v7  ;;  %v4580_v23 = vld [vmem:[%s9268_s22 + $0x18] sm:$0xff]  ;;  %v4591_v7 = vld [vmem:[%s9268_s22 + $0x70] sm:$0xff] }
0x111e   :  { %4533 = vmatpush1.bf16.msra.mxu0 %v4508_v25  ;;  %v4597_v25 = vld [vmem:[%s9268_s22 + $0xa0] sm:$0xff]  ;;  %v4592_v55 = vld [vmem:[%s9268_s22 + $0x78] sm:$0xff] }
0x111f   :  { %4534 = vmatprep.subr.bf16.mxu0 %v4511_v17  ;;  %v4598_v17 = vld [vmem:[%s9268_s22 + $0xa8] sm:$0xff] }
0x1120   :  { %5414 = vmatpush3.bf16.msra.mxu1 %v4290_v54  ;;  %v4486_v54 = vld [vmem:[%s9266_s21 + $0x68] sm:$0xff] }
0x1121   :  { %5547 = vmatprep.subr.bf16.mxu1 %v9515_v47  ;;  %v4513_v61 = vpack.c.bf16 %v4488_v60, %v4486_v54  ;;  %v4503_v54 = vld [vmem:[%s9266_s21 + $0xf0] sm:$0xff]  ;;  %v4612_v60 = vpack.c.bf16 %v4580_v23, %v4579_v8  ;;  %v4618_v8 = vpack.c.bf16 %v4592_v55, %v4591_v7  ;;  %v9549_v55 = vld [vmem:[#allocation3_spill] sm:$0xff] }
0x1122   :  { %v4676_v23 = vld [vmem:[%s9269_s23 + $0x10] sm:$0xff] }
0x11d6   :  { %v4236_v42 = vpop.f32.mrb[176].mxu1 }
0x11d7   :  { %v4237_v6 = vadd.f32 %v4236_v42, %v4197_v16  ;;  %v4238_v51 = vpop.f32.mrb[177].mxu1  ;;  %v4487_v42 = vld [vmem:[%s9266_s21 + $0x70] sm:$0xff] }
0x11d8   :  { %v4239_v53 = vadd.f32 %v4238_v51, %v4201_v30  ;;  %v4240_v28 = vpop.f32.mrb[178].mxu1  ;;  %v8994_v51 = vld [vmem:[%s9366_s13 + $0x10] sm:$0x3f] }
0x11d9   :  { %v4241_v45 = vadd.f32 %v4240_v28, %v4197_v16  ;;  %v4242_v43 = vpop.f32.mrb[179].mxu1  ;;  %v4245_v49 = vmax.f32 %v4237_v6, 0.0  ;;  %v4510_v16 = vpack.c.bf16 %v4483_v63, %v4481_v26  ;;  %v9545_v28 = vsub.s32 0, %v9543_v41  ;;  %v4501_v63 = vld [vmem:[%s9266_s21 + $0xe0] sm:$0xff] }
0x11da   :  { %v4243_v62 = vadd.f32 %v4242_v43, %v4201_v30  ;;  %v4246_v27 = vmax.f32 %v4239_v53, 0.0  ;;  %v4485_v30 = vld [vmem:[%s9266_s21 + $0x60] sm:$0xff] }
0x11db   :  { %v4247_v20 = vmax.f32 %v4241_v45, 0.0  ;;  %4535 = vmatpush1.bf16.msra.mxu0 %v4510_v16  ;;  %v4512_v6 = vpack.c.bf16 %v4487_v42, %v4485_v30  ;;  %v4302_v45 = vrot.slane %v8994_v51, %v9545_v28  ;;  %v4621_v16 = vpack.c.bf16 %v4598_v17, %v4597_v25  ;;  %v4582_v30 = vld [vmem:[%s9268_s22 + $0x28] sm:$0xff]  ;;  %v4677_v17 = vld [vmem:[%s9269_s23 + $0x18] sm:$0xff] }
0x11dc   :  { %v4248_v15 = vmax.f32 %v4243_v62, 0.0  ;;  %4536 = vmatprep.subr.bf16.mxu0 %v4513_v61  ;;  %v4581_v61 = vld [vmem:[%s9268_s22 + $0x20] sm:$0xff]  ;;  %v4520_v42 = vpack.c.bf16 %v4503_v54, %v4501_v63  ;;  %v4679_v54 = vld [vmem:[%s9269_s23 + $0x28] sm:$0xff] }
0x11dd   :  { %v4281_v32 = vpack.c.bf16 %v4247_v20, %v4245_v49  ;;  %v4613_v28 = vpack.c.bf16 %v4582_v30, %v4581_v61  ;;  %v4678_v63 = vld [vmem:[%s9269_s23 + $0x20] sm:$0xff]  ;;  %v4681_v61 = vld [vmem:[%s9269_s23 + $0x38] sm:$0xff] }
0x11de   :  { %v4282_v48 = vpack.c.bf16 %v4248_v15, %v4246_v27  ;;  %v4416_v15 = vld [vmem:[%s9267_s20] sm:$0xff] }
0x11df   :  { %4537 = vmatpush1.bf16.msra.mxu0 %v4512_v6  ;;  %v4599_v6 = vld [vmem:[%s9268_s22 + $0xb0] sm:$0xff] }
0x11e0   :  { %4335 = vmatprep.mubr.bf16.mxu1 %v4282_v48 }
0x11e1   :  { %4336 = vmatmul.mubr.bf16.vlgmr.msra.gmra.mrb[180].mxu1 %v4281_v32  ;;  %v4417_v32 = vld [vmem:[%s9267_s20 + $0x8] sm:$0xff] }
0x11e2   :  { %5548 = vmatpush3.bf16.msra.mxu1 %v4363_v44  ;;  %5563 = vmatprep.mubr.msk.bf16.mxu1 %vm6187_vm1, %v9515_v47  ;;  %v4419_v31 = vpack.c.bf16 %v4417_v32, %v4416_v15  ;;  %v4586_v15 = vld [vmem:[%s9268_s22 + $0x48] sm:$0xff]  ;;  %v4603_v32 = vld [vmem:[%s9268_s22 + $0xd0] sm:$0xff] }
0x11e3   :  { %5549 = vmatprep.subr.bf16.mxu1 %v9515_v47 }
0x11e6   :  { %5550 = vmatpush3.bf16.msra.mxu1 %v4364_v37  ;;  %v4426_v37 = vpop.permute.xlu0 %4425 }
0x11e7   :  { %5551 = vmatprep.subr.bf16.mxu1 %v9515_v47 }
0x11ea   :  { %5552 = vmatpush3.bf16.msra.mxu1 %v4365_v4  ;;  %v4515_v4 = vpack.c.bf16 %v4492_v14, %v4490_v2 }
0x11eb   :  { %5553 = vmatprep.subr.bf16.mxu1 %v9515_v47 }
0x11ec   :  { %4538 = vmatprep.subr.bf16.mxu0 %v4515_v4  ;;  %v9546_v4 = vsub.s32 2, %v9543_v41 }
0x11ed   :  { %4539 = vmatpush1.bf16.msra.mxu0 %v4514_v38 }
0x11ee   :  { %5554 = vmatpush3.bf16.msra.mxu1 %v4366_v50  ;;  %v4494_v50 = vld [vmem:[%s9266_s21 + $0xa8] sm:$0xff]  ;;  %v4423_v33 = vrot.slane %v8994_v51, %v9546_v4 }
0x11ef   :  { %5555 = vmatprep.subr.bf16.mxu1 %v9515_v47  ;;  %v4517_v46 = vpack.c.bf16 %v4496_v58, %v4494_v50 }
0x11f1   :  { %4540 = vmatprep.subr.bf16.mxu0 %v4517_v46 }
0x11f2   :  { %5556 = vmatpush3.bf16.msra.mxu1 %v4367_v21  ;;  %v4493_v21 = vld [vmem:[%s9266_s21 + $0xa0] sm:$0xff] }
0x11f3   :  { %5557 = vmatprep.subr.bf16.mxu1 %v9515_v47  ;;  %v4516_v29 = vpack.c.bf16 %v4495_v1, %v4493_v21 }
0x11f5   :  { %4541 = vmatpush1.bf16.msra.mxu0 %v4516_v29  ;;  %v4587_v29 = vld [vmem:[%s9268_s22 + $0x50] sm:$0xff] }
0x11f6   :  { %5558 = vmatpush3.bf16.msra.mxu1 %v4368_v10  ;;  %v4498_v10 = vld [vmem:[%s9266_s21 + $0xc8] sm:$0xff] }
0x11f7   :  { %5559 = vmatprep.subr.bf16.mxu1 %v9515_v47  ;;  %v4519_v22 = vpack.c.bf16 %v4500_v24, %v4498_v10 }
0x11f9   :  { %4542 = vmatprep.subr.bf16.mxu0 %v4519_v22  ;;  %v4605_v22 = vld [vmem:[%s9268_s22 + $0xe0] sm:$0xff] }
0x11fa   :  { %5560 = vmatpush3.bf16.msra.mxu1 %v4369_v59  ;;  %v4499_v59 = vld [vmem:[%s9266_s21 + $0xd0] sm:$0xff] }
0x11fb   :  { %5561 = vmatprep.subr.bf16.mxu1 %v9515_v47  ;;  %v4518_v18 = vpack.c.bf16 %v4499_v59, %v4497_v11  ;;  %v4588_v11 = vld [vmem:[%s9268_s22 + $0x58] sm:$0xff] }
0x11fc   :  { %v4616_v59 = vpack.c.bf16 %v4588_v11, %v4587_v29  ;;  %v9548_v11 = vsub.s32 4, %v9543_v41 }
0x11fd   :  { %4543 = vmatpush1.bf16.msra.mxu0 %v4518_v18  ;;  %v4674_v18 = vld [vmem:[%s9269_s23] sm:$0xff] }
0x11fe   :  { %5562 = vmatpush3.bf16.msra.mxu1 %v4370_v3  ;;  %v4502_v3 = vld [vmem:[%s9266_s21 + $0xe8] sm:$0xff] }
0x11ff   :  { %5567 = vmatprep.subr.bf16.mxu1 %v9515_v47  ;;  %v4521_v26 = vpack.c.bf16 %v4504_v9, %v4502_v3  ;;  %v4606_v3 = vld [vmem:[%s9268_s22 + $0xe8] sm:$0xff]  ;;  %v4589_v9 = vld [vmem:[%s9268_s22 + $0x60] sm:$0xff] }
0x1200   :  { %v4625_v0 = vpack.c.bf16 %v4606_v3, %v4605_v22 }
0x1201   :  { %4544 = vmatprep.subr.bf16.mxu0 %v4521_v26  ;;  %v4692_v26 = vpack.c.bf16 %v4677_v17, %v4676_v23 }
0x1202   :  { %4545 = vmatpush1.bf16.msra.mxu0 %v4520_v42  ;;  %v4682_v42 = vld [vmem:[%s9269_s23 + $0x40] sm:$0xff] }
0x1203   :  { %5573 = vmatprep.subr.bf16.mxu0 %v9515_v47 }
0x12b4   :  { %v5415_v53 = vpop.f32.mrb[180].mxu1 }
0x12b5   :  { %v5416_v43 = vpop.f32.mrb[181].mxu1 }
0x12b6   :  { %v5417_v62 = vadd.f32 %v5416_v43, %v5415_v53  ;;  %v5418_v49 = vpop.f32.mrb[182].mxu1  ;;  %v4600_v53 = vld [vmem:[%s9268_s22 + $0xb8] sm:$0xff]  ;;  %v4583_v43 = vld [vmem:[%s9268_s22 + $0x30] sm:$0xff] }
0x12b7   :  { %v5419_v20 = vpop.f32.mrb[183].mxu1 }
0x12b8   :  { %v4338_v39 = vadd.f32 %v5417_v62, %v4302_v45  ;;  %v5420_v56 = vadd.f32 %v5419_v20, %v5418_v49  ;;  %v4584_v62 = vld [vmem:[%s9268_s22 + $0x38] sm:$0xff]  ;;  %v4601_v49 = vld [vmem:[%s9268_s22 + $0xc0] sm:$0xff]  ;;  %v4602_v20 = vld [vmem:[%s9268_s22 + $0xc8] sm:$0xff] }
0x12ba   :  { %v4341_v27 = vadd.f32 %v5420_v56, %v4302_v45  ;;  %v4344_v48 = vmax.f32 %v4338_v39, 0.0  ;;  %v4622_v45 = vpack.c.bf16 %v4600_v53, %v4599_v6  ;;  %v4614_v39 = vpack.c.bf16 %v4584_v62, %v4583_v43  ;;  %v4683_v6 = vld [vmem:[%s9269_s23 + $0x48] sm:$0xff] }
0x12bb   :  { %v4623_v56 = vpack.c.bf16 %v4602_v20, %v4601_v49  ;;  %v4695_v53 = vpack.c.bf16 %v4683_v6, %v4682_v42 }
0x12bc   :  { %v4345_v44 = vmax.f32 %v4341_v27, 0.0  ;;  %v4585_v27 = vld [vmem:[%s9268_s22 + $0x40] sm:$0xff] }
0x12be   :  { %v4362_v40 = vpack.c.bf16 %v4345_v44, %v4344_v48  ;;  %v4604_v48 = vld [vmem:[%s9268_s22 + $0xd8] sm:$0xff]  ;;  %v4615_v44 = vpack.c.bf16 %v4586_v15, %v4585_v27 }
0x12c0   :  { %5564 = vmatmul.mubr.bf16.vlgmr.msra.gmra.mrb[184].mxu1 %v4362_v40 }
0x12c1   :  { %5568 = vmatpush3.bf16.msra.mxu1 %v4419_v31  ;;  %5569 = vmatprep.mubr.msk.bf16.mxu1 %vm6187_vm1, %v9515_v47  ;;  %v4624_v31 = vpack.c.bf16 %v4604_v48, %v4603_v32 }
0x12c2   :  { %5432 = vmatprep.subr.bf16.mxu1 %v4619_v36  ;;  %v4617_v36 = vpack.c.bf16 %v4590_v13, %v4589_v9 }
0x12c8   :  { %5570 = vmatmul.mubr.msk.bf16.vlgmr.msra.gmra.mrb[188].mxu1 %vm2981_vm12, %v4426_v37 }
0x12c9   :  { %5433 = vmatpush3.bf16.msra.mxu1 %v4611_v35  ;;  %v4626_v35 = vpack.c.bf16 %v4608_v5, %v4607_v34 }
0x12ca   :  { %5434 = vmatprep.subr.bf16.mxu1 %v4620_v12  ;;  %v4675_v12 = vld [vmem:[%s9269_s23 + $0x8] sm:$0xff] }
0x12cb   :  { %v4691_v25 = vpack.c.bf16 %v4675_v12, %v4674_v18 }
0x12cd   :  { %5435 = vmatpush3.bf16.msra.mxu1 %v4612_v60  ;;  %v4693_v60 = vpack.c.bf16 %v4679_v54, %v4678_v63  ;;  %v9550_v54 = vsub.s32 5, %v9543_v41  ;;  %v4760_v41 = vld [vmem:[%s9270_s9] sm:$0x1] }
0x12ce   :  { %5436 = vmatprep.subr.bf16.mxu1 %v4621_v16  ;;  %v4680_v16 = vld [vmem:[%s9269_s23 + $0x30] sm:$0xff] }
0x12cf   :  { %v4694_v30 = vpack.c.bf16 %v4681_v61, %v4680_v16 }
0x12d1   :  { %5437 = vmatpush3.bf16.msra.mxu1 %v4613_v28  ;;  %v84_v28 = vld [vmem:[%s9366_s13 + $0x18] sm:$0x3f] }
0x12d2   :  { %5438 = vmatprep.subr.bf16.mxu1 %v4622_v45  ;;  %v9547_v45 = vld [vmem:[#allocation6_spill] sm:$0xff] }
0x12d3   :  { %v4525_v43 = vrot.slane %v8994_v51, %v9547_v45  ;;  %v4529_v62 = vrot.slane %v84_v28, %v9547_v45 }
0x12d5   :  { %5439 = vmatpush3.bf16.msra.mxu1 %v4614_v39 }
0x12d6   :  { %5440 = vmatprep.subr.bf16.mxu1 %v4623_v56 }
0x12d9   :  { %5441 = vmatpush3.bf16.msra.mxu1 %v4615_v44 }
0x12da   :  { %5442 = vmatprep.subr.bf16.mxu1 %v4624_v31 }
0x12dd   :  { %5443 = vmatpush3.bf16.msra.mxu1 %v4616_v59  ;;  %v4630_v59 = vrot.slane %v8994_v51, %v9548_v11 }
0x12de   :  { %5444 = vmatprep.subr.bf16.mxu1 %v4625_v0 }
0x12e1   :  { %5445 = vmatpush3.bf16.msra.mxu1 %v4617_v36 }
0x12e2   :  { %5446 = vmatprep.subr.bf16.mxu1 %v4626_v35 }
0x12e5   :  { %5447 = vmatpush3.bf16.msra.mxu1 %v4618_v8 }
0x12e6   :  { %5593 = vmatprep.subr.bf16.mxu1 %v9515_v47 }
0x1393   :  { %v9123_v40 = vpop.f32.mrb[184].mxu1 }
0x1394   :  { %v5565_v37 = vpop.f32.mrb[185].mxu1 }
0x1395   :  { %v9125_v2 = vpop.f32.mrb[186].mxu1 }
0x1396   :  { %v5566_v14 = vpop.f32.mrb[187].mxu1 }
0x139b   :  { %v4464_v57 = vpop.f32.mrb[188].mxu1 }
0x139c   :  { %v4465_v50 = vadd.f32 %v4464_v57, %v4423_v33  ;;  %v5571_v38 = vpop.f32.mrb[189].mxu1  ;;  %v4684_v57 = vld [vmem:[%s9269_s23 + $0x50] sm:$0xff] }
0x139d   :  { %v4467_v58 = vpop.f32.mrb[190].mxu1 }
0x139e   :  { %v4468_v21 = vadd.f32 %v4467_v58, %v4423_v33  ;;  %v5572_v1 = vpop.f32.mrb[191].mxu1  ;;  %v4471_v46 = vmax.f32 %v4465_v50, 0.0  ;;  %v4685_v50 = vld [vmem:[%s9269_s23 + $0x58] sm:$0xff]  ;;  %v4686_v58 = vld [vmem:[%s9269_s23 + $0x60] sm:$0xff] }
0x139f   :  { %v4696_v38 = vpack.c.bf16 %v4685_v50, %v4684_v57  ;;  %v4688_v1 = vld [vmem:[%s9269_s23 + $0x70] sm:$0xff] }
0x13a0   :  { %v4472_v10 = vmax.f32 %v4468_v21, 0.0  ;;  %v4687_v21 = vld [vmem:[%s9269_s23 + $0x68] sm:$0xff] }
0x13a2   :  { %v4505_v24 = vpack.c.bf16 %v4472_v10, %v4471_v46  ;;  %v4697_v46 = vpack.c.bf16 %v4687_v21, %v4686_v58  ;;  %v4689_v10 = vld [vmem:[%s9269_s23 + $0x78] sm:$0xff] }
0x13a4   :  { %4563 = vmatmul.mubr.bf16.vlgmr.msra.gmra.mrb[40].mxu0 %v4505_v24  ;;  %v4698_v24 = vpack.c.bf16 %v4689_v10, %v4688_v1 }
0x13a5   :  { %5589 = vmatprep.mubr.msk.bf16.mxu0 %vm6187_vm1, %v9515_v47  ;;  %5574 = vmatpush3.bf16.msra.mxu0 %v4691_v25 }
0x13a6   :  { %5575 = vmatprep.subr.bf16.mxu0 %v9515_v47 }
0x13a9   :  { %5576 = vmatpush3.bf16.msra.mxu0 %v4692_v26 }
0x13aa   :  { %5577 = vmatprep.subr.bf16.mxu0 %v9515_v47 }
0x13ad   :  { %5578 = vmatpush3.bf16.msra.mxu0 %v4693_v60  ;;  %v4702_v60 = vrot.slane %v8994_v51, %v9550_v54 }
0x13ae   :  { %5579 = vmatprep.subr.bf16.mxu0 %v9515_v47 }
0x13b1   :  { %5580 = vmatpush3.bf16.msra.mxu0 %v4694_v30 }
0x13b2   :  { %5581 = vmatprep.subr.bf16.mxu0 %v9515_v47 }
0x13b5   :  { %5582 = vmatpush3.bf16.msra.mxu0 %v4695_v53 }
0x13b6   :  { %5583 = vmatprep.subr.bf16.mxu0 %v9515_v47 }
0x13b9   :  { %5584 = vmatpush3.bf16.msra.mxu0 %v4696_v38 }
0x13ba   :  { %5585 = vmatprep.subr.bf16.mxu0 %v9515_v47 }
0x13bd   :  { %5586 = vmatpush3.bf16.msra.mxu0 %v4697_v46 }
0x13be   :  { %5587 = vmatprep.subr.bf16.mxu0 %v9515_v47 }
0x13c1   :  { %5588 = vmatpush3.bf16.msra.mxu0 %v4698_v24 }
0x1477   :  { %v4564_v49 = vpop.f32.mrb[40].mxu0 }
0x1478   :  { %v4565_v20 = vadd.f32 %v4564_v49, %v4525_v43  ;;  %v4566_v39 = vpop.f32.mrb[41].mxu0 }
0x1479   :  { %v4567_v56 = vadd.f32 %v4566_v39, %v4529_v62  ;;  %v4568_v27 = vpop.f32.mrb[42].mxu0 }
0x147a   :  { %v4569_v15 = vadd.f32 %v4568_v27, %v4525_v43  ;;  %v4570_v32 = vpop.f32.mrb[43].mxu0  ;;  %v4573_v44 = vmax.f32 %v4565_v20, 0.0 }
0x147b   :  { %v4571_v48 = vadd.f32 %v4570_v32, %v4529_v62  ;;  %v4574_v37 = vmax.f32 %v4567_v56, 0.0 }
0x147c   :  { %v4575_v31 = vmax.f32 %v4569_v15, 0.0 }
0x147d   :  { %v4576_v14 = vmax.f32 %v4571_v48, 0.0 }
0x147e   :  { %v4609_v4 = vpack.c.bf16 %v4575_v31, %v4573_v44 }
0x147f   :  { %v4610_v33 = vpack.c.bf16 %v4576_v14, %v4574_v37 }
0x1481   :  { %4663 = vmatprep.mubr.bf16.mxu1 %v4610_v33 }
0x1482   :  { %4664 = vmatmul.mubr.bf16.vlgmr.msra.gmra.mrb[192].mxu1 %v4609_v4 }
0x1483   :  { %5595 = vmatprep.mubr.msk.bf16.mxu1 %vm6187_vm1, %v9515_v47  ;;  %v4374_v47 = vrot.slane %v8994_v51, %v9549_v55 }
0x1485   :  { %v4410_v8 = vadd.f32 %v9123_v40, %v4374_v47  ;;  %v4413_v18 = vadd.f32 %v9125_v2, %v4374_v47 }
0x1487   :  { %v5228_v12 = vmul.f32 -1.442695, %v4410_v8  ;;  %v5229_v23 = vmul.f32 -1.442695, %v4413_v18 }
0x1489   :  { %6165 = vpow2.f32 %v5228_v12 }
0x148a   :  { %6167 = vpow2.f32 %v5229_v23 }
0x1493   :  { %v6166_v25 = vpop.eup %6165 }
0x1494   :  { %v6168_v17 = vpop.eup %6167  ;;  %v4750_v26 = vadd.f32 1.0, %v6166_v25 }
0x1495   :  { %v4751_v63 = vadd.f32 1.0, %v6168_v17 }
0x1496   :  { %6169 = vrcp.f32 %v4750_v26 }
0x1497   :  { %6171 = vrcp.f32 %v4751_v63 }
0x14a0   :  { %v6170_v40 = vpop.eup %6169 }
0x14a1   :  { %v6172_v28 = vpop.eup %6171 }
0x1555   :  { %v5448_v29 = vpop.f32.mrb[192].mxu1 }
0x1556   :  { %v5449_v22 = vpop.f32.mrb[193].mxu1 }
0x1557   :  { %v5450_v3 = vadd.f32 %v5449_v22, %v5448_v29  ;;  %v5451_v9 = vpop.f32.mrb[194].mxu1 }
0x1558   :  { %v5452_v0 = vpop.f32.mrb[195].mxu1 }
0x1559   :  { %v4666_v13 = vadd.f32 %v5450_v3, %v4630_v59  ;;  %v5453_v34 = vadd.f32 %v5452_v0, %v5451_v9 }
0x155b   :  { %v4669_v5 = vadd.f32 %v5453_v34, %v4630_v59  ;;  %v4672_v36 = vmax.f32 %v4666_v13, 0.0 }
0x155d   :  { %v4673_v35 = vmax.f32 %v4669_v5, 0.0 }
0x155f   :  { %v4690_v7 = vpack.c.bf16 %v4673_v35, %v4672_v36 }
0x1561   :  { %5590 = vmatmul.mubr.bf16.vlgmr.msra.gmra.mrb[44].mxu0 %v4690_v7 }
0x1634   :  { %v4737_v16 = vpop.f32.mrb[44].mxu0 }
0x1635   :  { %v4738_v61 = vadd.f32 %v4737_v16, %v4702_v60  ;;  %v5591_v30 = vpop.f32.mrb[45].mxu0 }
0x1636   :  { %v4740_v42 = vpop.f32.mrb[46].mxu0 }
0x1637   :  { %v4756_v2 = vmul.f32 %v6170_v40, %v4738_v61  ;;  %v4741_v6 = vadd.f32 %v4740_v42, %v4702_v60  ;;  %v5592_v53 = vpop.f32.mrb[47].mxu0 }
0x1639   :  { %v4757_v45 = vmul.f32 %v6172_v28, %v4741_v6  ;;  %v4758_v43 = vmul.f32 %v8551_v52, %v4756_v2 }
0x163b   :  { %v4759_v62 = vmul.f32 %v8548_v19, %v4757_v45 }
0x163d   :  { %v4761_v49 = vpack.c.bf16 %v4759_v62, %v4758_v43 }
0x163f   :  { %v4766_v20 = vsel %vm3093_vm13, %v4761_v49, 0 }
0x1640   :  { %5594 = vmatpush3.bf16.msra.mxu1 %v4766_v20 }
0x1643   :  { %5596 = vmatmul.mubr.msk.bf16.vlgmr.msra.gmra.mrb[196].mxu1 %vm3077_vm14, %v4760_v41 }
0x1716   :  { %v4802_v51 = vpop.f32.mrb[196].mxu1 }
0x1717   :  { %v5231_v39 = vmul.f32 -1.442695, %v4802_v51  ;;  %v5597_v56 = vpop.f32.mrb[197].mxu1 }
0x1718   :  { %v4805_v27 = vpop.f32.mrb[198].mxu1 }
0x1719   :  { %6173 = vpow2.f32 %v5231_v39  ;;  %v5598_v15 = vpop.f32.mrb[199].mxu1 }
0x1723   :  { %v6174_v32 = vpop.eup %6173 }
0x1724   :  { %v4811_v52 = vadd.f32 1.0, %v6174_v32 }
0x1726   :  { %6175 = vrcp.f32 %v4811_v52 }
0x1730   :  { %v6176_v19 = vpop.eup %6175 }
0x1731   :  { %4814 = vst [vmem:[%s9271_s25] sm:$0x3] %v6176_v19 }

// kernel: _lambda_.3
= control target key start
LH: loop header
LB: loop body
LE: loop exit
PB: predicated region body
PF: predicated region fallthrough
CT: control target
= control target key end

     0   :  { %v3493_v0 = vmov 0.0   ;;  %vm3494_vm0 = vmmov 0   ;;  %vm54_vm1 = vcmask 130048   ;;  %v50_v8 = vlaneseq  ;;  %s3496_s15 = smov 64   ;;  %s3497_s16 = smov 112   ;;  %s4306_s5 = inlined_call_operand.vmem [shape: f32[16,32], index: 5, kind: input, shape index: {}]   ;;  %s4307_s0 = inlined_call_operand.vmem [shape: f32[16,16], index: 0, kind: input, shape index: {}]   ;;  %s4308_s2 = inlined_call_operand.vmem [shape: bf16[18,16], index: 2, kind: input, shape index: {}]   ;;  %s4309_s11 = inlined_call_operand.vmem [shape: f32[16,128], index: 11, kind: input, shape index: {}]   ;;  %s4310_s1 = inlined_call_operand.vmem [shape: f32[18,32], index: 1, kind: input, shape index: {}]   ;;  %s4311_s6 = inlined_call_operand.vmem [shape: f32[2,32,192], index: 6, kind: input, shape index: {}]   ;;  %s4312_s3 = inlined_call_operand.vmem [shape: f32[18,18], index: 3, kind: input, shape index: {}]   ;;  %s4313_s7 = inlined_call_operand.vmem [shape: f32[2,64,32], index: 7, kind: input, shape index: {}]   ;;  %s4314_s8 = inlined_call_operand.vmem [shape: f32[2,32,64], index: 8, kind: input, shape index: {}]   ;;  %s4315_s9 = inlined_call_operand.vmem [shape: f32[2,64,32], index: 9, kind: input, shape index: {}]   ;;  %s4316_s10 = inlined_call_operand.vmem [shape: f32[32,128], index: 10, kind: input, shape index: {}]   ;;  %s4317_s4 = inlined_call_operand.vmem [shape: bf16[2,18], index: 4, kind: input, shape index: {}]   ;;  %s4318_s12 = inlined_call_operand.vmem [shape: f32[2,128], index: 12, kind: output, shape index: {}]  }
   0x1   :  { %3071 = vmatprep.subr.bf16.mxu0 %v3493_v0  ;;  %v46_v1 = vld [vmem:[%s4306_s5] sm:$0xff]  ;;  %v47_v2 = vld [vmem:[%s4306_s5 + $0x8] sm:$0xff]  ;;  %3073 = vmatprep.mubr.msk.bf16.mxu0 %vm3494_vm0, %v3493_v0  ;;  %v105_v21 = vld [vmem:[%s4310_s1 + $0x10] sm:$0x3]  ;;  %vm178_vm2 = vcmask 254976   ;;  %vm171_vm3 = vcmask 261120  }
   0x2   :  { %v44_v3 = vld [vmem:[%s4307_s0] sm:$0xff]  ;;  %v49_v4 = vpack.c.bf16 %v47_v2, %v46_v1  ;;  %v45_v5 = vld [vmem:[%s4307_s0 + $0x8] sm:$0xff]  ;;  %v3588_v9 = vshrl.u32 %v50_v8, 7  ;;  %v230_v50 = vld [vmem:[%s4311_s6 + $0x18] sm:$0xff]  ;;  %v3495_v61 = vmov 0   ;;  %vm425_vm4 = vcmask 1040384  }
   0x3   :  { %v48_v6 = vpack.c.bf16 %v45_v5, %v44_v3  ;;  %v3349_v7 = vld [vmem:[%s4308_s2] sm:$0xff]   ;;  %v3350_v20 = vld [vmem:[%s4308_s2 + $0x8] ss:$0 sps:$4 sm:$0x11]   ;;  %v229_v53 = vld [vmem:[%s4311_s6 + $0x10] sm:$0xff]  ;;  %s3498_s17 = smov 48  }
   0x4   :  { %3072 = vmatpush3.bf16.msra.mxu0 %v49_v4  ;;  %3079 = vmatprep.mubr.msk.bf16.mxu1 %vm54_vm1, %v3349_v7  ;;  %v52_v10 = vsub.s32 0, %v3588_v9  ;;  %v3594_v11 = vld [vmem:[%s4309_s11] sm:$0xff]  ;;  %v104_v26 = vld [vmem:[%s4310_s1 + $0x8] sm:$0xff]  ;;  %v234_v56 = vld [vmem:[%s4311_s6 + $0x38] sm:$0xff]  ;;  %v215_v8 = vsub.s32 2, %v3588_v9  ;;  %vm380_vm5 = vcmask 146432  }
   0x5   :  { %v103_v22 = vld [vmem:[%s4310_s1] sm:$0xff]  ;;  %v228_v49 = vld [vmem:[%s4311_s6 + $0x8] sm:$0xff]  ;;  %v233_v59 = vld [vmem:[%s4311_s6 + $0x30] sm:$0xff]  ;;  %vm387_vm6 = vcmask 140288   ;;  %s3499_s22 = smov 32   ;;  %s3500_s23 = smov 96  }
   0x6   :  { %v53_v12 = vrot.slane %v3594_v11, %v52_v10  ;;  %v238_v51 = vpack.c.bf16 %v230_v50, %v228_v49  ;;  %v227_v52 = vld [vmem:[%s4311_s6] sm:$0xff]  ;;  %v232_v55 = vld [vmem:[%s4311_s6 + $0x28] sm:$0xff]  ;;  %s3501_s24 = smov 16   ;;  %s3502_s25 = smov 80   ;;  %vm1400_vm7 = vcmask 523264  }
   0x7   :  { %3074 = vmatmul.mubr.msk.bf16.vlgmr.msra.gmra.mrb[0].mxu0 %vm54_vm1, %v48_v6  ;;  %v237_v54 = vpack.c.bf16 %v229_v53, %v227_v52  ;;  %v240_v57 = vpack.c.bf16 %v234_v56, %v232_v55  ;;  %v231_v58 = vld [vmem:[%s4311_s6 + $0x20] sm:$0xff] }
   0x8   :  { %247 = vmatprep.subr.bf16.mxu0 %v238_v51  ;;  %v239_v60 = vpack.c.bf16 %v233_v59, %v231_v58  ;;  %279 = vmatprep.mubr.bf16.mxu0 %v3495_v61 }
   0x9   :  { %248 = vmatpush1.bf16.msra.mxu0 %v237_v54 }
   0xa   :  { %249 = vmatprep.subr.bf16.mxu0 %v240_v57  ;;  %v3709_v57 = vld [vmem:[%s4312_s3] sm:$0xff] }
   0xd   :  { %250 = vmatpush1.bf16.msra.mxu0 %v239_v60 }
  0xda   :  { %v92_v13 = vpop.f32.mrb[0].mxu0 }
  0xdb   :  { %v3075_v14 = vpop.f32.mrb[1].mxu0  ;;  %v93_v16 = vadd.f32 %v92_v13, %v53_v12  ;;  %v216_v13 = vrot.slane %v3594_v11, %v215_v8 }
  0xdc   :  { %v95_v15 = vpop.f32.mrb[2].mxu0 }
  0xdd   :  { %v96_v17 = vadd.f32 %v95_v15, %v53_v12  ;;  %v3076_v18 = vpop.f32.mrb[3].mxu0  ;;  %v222_v15 = vsub.s32 3, %v3588_v9 }
  0xdf   :  { %v102_v19 = vpack.c.bf16 %v96_v17, %v93_v16 }
  0xe1   :  { %3077 = vmatprep.subr.bf16.mxu1 %v102_v19 }
  0xe2   :  { %3078 = vmatpush3.bf16.msra.mxu1 %v102_v19 }
  0xe5   :  { %3080 = vmatmul.mubr.msk.bf16.vlgmr.msra.gmra.mrb[0].mxu1 %vm54_vm1, %v3350_v20  ;;  %v223_v20 = vrot.slane %v3594_v11, %v222_v15 }
 0x1b8   :  { %v3081_v23 = vpop.f32.mrb[0].mxu1 }
 0x1b9   :  { %v3609_v24 = vadd.f32 %v3081_v23, %v105_v21  ;;  %v154_v25 = vpop.f32.mrb[1].mxu1 }
 0x1ba   :  { %v3614_v27 = vadd.f32 %v154_v25, %v103_v22  ;;  %v3082_v28 = vpop.f32.mrb[2].mxu1 }
 0x1bb   :  { %v157_v29 = vpop.f32.mrb[3].mxu1  ;;  %v179_v30 = vsel %vm178_vm2, %v3609_v24, 0.0 }
 0x1bc   :  { %v3618_v31 = vadd.f32 %v157_v29, %v104_v26  ;;  %180 = vadd.xlane.f32.xlu1 %v179_v30  ;;  %v172_v32 = vsel %vm171_vm3, %v3614_v27, 0.0 }
 0x1bd   :  { %173 = vadd.xlane.f32.xlu0 %v172_v32 }
 0x1be   :  { %v175_v33 = vsel %vm171_vm3, %v3618_v31, 0.0 }
 0x1c1   :  { %176 = vadd.xlane.f32.xlu0 %v175_v33 }
 0x249   :  { %v181_v34 = vpop.xlane.xlu1 %180 }
 0x24a   :  { %v185_v35 = vmul.f32 0.03125, %v181_v34  ;;  %v174_v36 = vpop.xlane.xlu0 %173 }
 0x24b   :  { %v183_v37 = vmul.f32 0.03125, %v174_v36 }
 0x24c   :  { %v188_v38 = vsub.f32 %v3609_v24, %v185_v35 }
 0x24d   :  { %v186_v39 = vsub.f32 %v3614_v27, %v183_v37 }
 0x24e   :  { %v177_v40 = vpop.xlane.xlu0 %176  ;;  %v191_v45 = vmul.f32 %v188_v38, %v188_v38 }
 0x24f   :  { %v184_v41 = vmul.f32 0.03125, %v177_v40  ;;  %v189_v42 = vmul.f32 %v186_v39, %v186_v39 }
 0x250   :  { %v198_v47 = vsel %vm178_vm2, %v191_v45, 0.0 }
 0x251   :  { %v187_v43 = vsub.f32 %v3618_v31, %v184_v41  ;;  %v192_v44 = vsel %vm171_vm3, %v189_v42, 0.0 }
 0x252   :  { %193 = vadd.xlane.f32.xlu1 %v192_v44 }
 0x253   :  { %v190_v46 = vmul.f32 %v187_v43, %v187_v43 }
 0x255   :  { %v195_v48 = vsel %vm171_vm3, %v190_v46, 0.0 }
 0x256   :  { %199 = vadd.xlane.f32.xlu1 %v198_v47  ;;  %196 = vadd.xlane.f32.xlu0 %v195_v48 }
 0x2df   :  { %v194_v62 = vpop.xlane.xlu1 %193 }
 0x2e0   :  { %v201_v63 = vmul.f32 0.03125, %v194_v62 }
 0x2e2   :  { %v204_v1 = vadd.f32 1e-05, %v201_v63  ;;  %v3714_v63 = vld [vmem:[%s4312_s3 + $0x8] sm:$0xff] }
 0x2e3   :  { %v200_v2 = vpop.xlane.xlu1 %199  ;;  %v197_v3 = vpop.xlane.xlu0 %196 }
 0x2e4   :  { %3351 = vrsqrt.f32 %v204_v1  ;;  %v203_v4 = vmul.f32 0.03125, %v200_v2  ;;  %v202_v5 = vmul.f32 0.03125, %v197_v3  ;;  %v3719_v1 = vld [vmem:[%s4312_s3 + $0x10] sm:$0x3] }
 0x2e6   :  { %v206_v6 = vadd.f32 1e-05, %v203_v4  ;;  %v205_v7 = vadd.f32 1e-05, %v202_v5 }
 0x2e8   :  { %3353 = vrsqrt.f32 %v206_v6 }
 0x2e9   :  { %3355 = vrsqrt.f32 %v205_v7 }
 0x2ee   :  { %v3352_v12 = vpop.eup %3351 }
 0x2ef   :  { %v210_v14 = vmul.f32 %v3352_v12, %v186_v39 }
 0x2f1   :  { %v217_v18 = vmul.f32 %v216_v13, %v210_v14 }
 0x2f2   :  { %v3354_v16 = vpop.eup %3353 }
 0x2f3   :  { %v3356_v17 = vpop.eup %3355  ;;  %v212_v22 = vmul.f32 %v3354_v16, %v188_v38  ;;  %v224_v23 = vadd.f32 %v223_v20, %v217_v18 }
 0x2f4   :  { %v211_v19 = vmul.f32 %v3356_v17, %v187_v43 }
 0x2f5   :  { %v219_v28 = vmul.f32 %v216_v13, %v212_v22 }
 0x2f6   :  { %v218_v21 = vmul.f32 %v216_v13, %v211_v19 }
 0x2f7   :  { %v226_v29 = vadd.f32 %v223_v20, %v219_v28 }
 0x2f8   :  { %v225_v25 = vadd.f32 %v223_v20, %v218_v21 }
 0x2f9   :  { %v236_v30 = vpack.c.bf16 %v226_v29, %v226_v29 }
 0x2fa   :  { %v235_v26 = vpack.c.bf16 %v225_v25, %v224_v23 }
 0x2fc   :  { %2861 = vmatmul.mubr.msk.bf16.vlgmr.msra.gmra.mrb[4].mxu0 %vm171_vm3, %v235_v26 }
 0x2fd   :  { %289 = vmatprep.mubr.bf16.mxu0 %v3495_v61 }
 0x304   :  { %2862 = vmatmul.mubr.msk.bf16.gmra.mrb[8].mxu0 %vm171_vm3, %v236_v30 }
 0x3cf   :  { %v281_v32 = vpop.f32.mrb[4].mxu0 }
 0x3d0   :  { %v283_v33 = vpop.f32.mrb[5].mxu0 }
 0x3d1   :  { %v285_v34 = vpop.f32.mrb[6].mxu0 }
 0x3d2   :  { %v3666_v35 = vpack.c.bf16 %v285_v34, %v281_v32  ;;  %v287_v36 = vpop.f32.mrb[7].mxu0 }
 0x3d3   :  { %v3668_v37 = vpack.c.bf16 %v287_v36, %v283_v33 }
 0x3d4   :  { %310 = vrot.lane.b32.xlu0 %v3666_v35, %s3496_s15  ;;  %3087 = vmatprep.mubr.msk.bf16.mxu1 %vm54_vm1, %v3666_v35 }
 0x3d5   :  { %3091 = vmatprep.subr.bf16.mxu0 %v3668_v37 }
 0x3d6   :  { %3092 = vmatpush3.bf16.msra.mxu0 %v3668_v37 }
 0x3d7   :  { %v291_v38 = vpop.f32.mrb[8].mxu0 }
 0x3d8   :  { %v3676_v39 = vpack.c.bf16 %v291_v38, %v291_v38  ;;  %480 = vrot.lane.b32.xlu0 %v3666_v35, %s3497_s16  ;;  %v293_v40 = vpop.f32.mrb[9].mxu0 }
 0x3d9   :  { %v3680_v41 = vpack.c.bf16 %v293_v40, %v293_v40  ;;  %v295_v42 = vpop.f32.mrb[10].mxu0 }
 0x3da   :  { %312 = vrot.lane.b32.xlu1 %v3676_v39, %s3496_s15  ;;  %v296_v43 = vpop.f32.mrb[11].mxu0 }
 0x3db   :  { %3317 = vmatprep.subr.msk.bf16.mxu0 %vm425_vm4, %v3680_v41  ;;  %v427_v44 = vsel %vm425_vm4, %v3680_v41, 0 }
 0x3dc   :  { %3094 = vmatpush3.bf16.msra.mxu0 %v427_v44 }
 0x3de   :  { %484 = vrot.lane.b32.xlu1 %v3666_v35, %s3498_s17 }
 0x3e2   :  { %486 = vrot.lane.b32.xlu1 %v3676_v39, %s3498_s17 }
 0x3e6   :  { %482 = vrot.lane.b32.xlu1 %v3676_v39, %s3497_s16 }
 0x446   :  { %v311_v45 = vpop.permute.xlu0 %310 }
 0x447   :  { %3315 = vmatprep.subr.msk.bf16.mxu1 %vm54_vm1, %v311_v45  ;;  %v321_v46 = vsel %vm54_vm1, %v311_v45, 0 }
 0x448   :  { %3084 = vmatpush3.bf16.xpose.msra.mxu1 %v321_v46 }
 0x44a   :  { %v481_v50 = vpop.permute.xlu0 %480 }
 0x44c   :  { %v313_v47 = vpop.permute.xlu1 %312 }
 0x44d   :  { %3316 = vmatprep.subr.msk.bf16.mxu1 %vm54_vm1, %v313_v47  ;;  %v324_v48 = vsel %vm54_vm1, %v313_v47, 0 }
 0x450   :  { %3086 = vmatpush3.bf16.xpose.msra.mxu1 %v324_v48  ;;  %v485_v49 = vpop.permute.xlu1 %484 }
 0x451   :  { %3318 = vmatprep.subr.msk.bf16.mxu1 %vm54_vm1, %v485_v49  ;;  %v495_v51 = vsel %vm54_vm1, %v485_v49, 0 }
 0x454   :  { %v487_v52 = vpop.permute.xlu1 %486 }
 0x455   :  { %v498_v53 = vsel %vm54_vm1, %v487_v52, 0 }
 0x457   :  { %3088 = vmatmul.mubr.msk.bf16.vlgmr.msra.gmra.mrb[4].mxu1 %vm54_vm1, %v3676_v39 }
 0x458   :  { %3100 = vmatpush3.bf16.xpose.msra.mxu1 %v495_v51  ;;  %3103 = vmatprep.mubr.msk.bf16.mxu1 %vm54_vm1, %v481_v50  ;;  %v483_v54 = vpop.permute.xlu1 %482 }
 0x459   :  { %3319 = vmatprep.subr.msk.bf16.mxu1 %vm54_vm1, %v487_v52 }
 0x460   :  { %3102 = vmatpush3.bf16.xpose.msra.mxu1 %v498_v53 }
 0x467   :  { %3104 = vmatmul.mubr.msk.bf16.vlgmr.msra.gmra.mrb[8].mxu1 %vm54_vm1, %v483_v54 }
 0x52a   :  { %v3089_v55 = vpop.f32.mrb[4].mxu1 }
 0x52b   :  { %v360_v56 = vpop.f32.mrb[5].mxu1  ;;  %v376_v58 = vmul.f32 0.25, %v3089_v55 }
 0x52c   :  { %v374_v59 = vmul.f32 0.25, %v360_v56  ;;  %v3090_v60 = vpop.f32.mrb[6].mxu1 }
 0x52d   :  { %v363_v62 = vpop.f32.mrb[7].mxu1  ;;  %v379_v6 = vadd.f32 %v376_v58, %v3719_v1 }
 0x52e   :  { %v375_v2 = vmul.f32 0.25, %v363_v62  ;;  %v377_v3 = vadd.f32 %v374_v59, %v3709_v57 }
 0x52f   :  { %v388_v12 = vsel %vm387_vm6, %v379_v6, -inf }
 0x530   :  { %v381_v4 = vsel %vm380_vm5, %v377_v3, -inf  ;;  %v378_v5 = vadd.f32 %v375_v2, %v3714_v63 }
 0x531   :  { %382 = vmax.xlane.f32.xlu0 %v381_v4 }
 0x532   :  { %v384_v7 = vsel %vm380_vm5, %v378_v5, -inf }
 0x533   :  { %385 = vmax.xlane.f32.xlu1 %v384_v7 }
 0x535   :  { %389 = vmax.xlane.f32.xlu0 %v388_v12 }
 0x53a   :  { %v3105_v13 = vpop.f32.mrb[8].mxu1 }
 0x53b   :  { %v550_v14 = vmul.f32 0.25, %v3105_v13  ;;  %v534_v16 = vpop.f32.mrb[9].mxu1 }
 0x53c   :  { %v548_v17 = vmul.f32 0.25, %v534_v16  ;;  %v3106_v18 = vpop.f32.mrb[10].mxu1 }
 0x53d   :  { %v537_v19 = vpop.f32.mrb[11].mxu1  ;;  %v553_v20 = vadd.f32 %v550_v14, %v3719_v1 }
 0x53e   :  { %v549_v21 = vmul.f32 0.25, %v537_v19  ;;  %v551_v22 = vadd.f32 %v548_v17, %v3709_v57 }
 0x53f   :  { %v560_v23 = vsel %vm387_vm6, %v553_v20, -inf }
 0x540   :  { %561 = vmax.xlane.f32.xlu1 %v560_v23  ;;  %v554_v25 = vsel %vm380_vm5, %v551_v22, -inf  ;;  %v552_v26 = vadd.f32 %v549_v21, %v3714_v63  ;;  %v300_v23 = vld [vmem:[%s4313_s7 + $0x10] sm:$0xff] }
 0x541   :  { %555 = vmax.xlane.f32.xlu0 %v554_v25  ;;  %v301_v25 = vld [vmem:[%s4313_s7 + $0x18] sm:$0xff] }
 0x542   :  { %v557_v28 = vsel %vm380_vm5, %v552_v26, -inf }
 0x545   :  { %558 = vmax.xlane.f32.xlu0 %v557_v28  ;;  %v655_v28 = vpack.c.bf16 %v301_v25, %v300_v23 }
 0x5be   :  { %v383_v29 = vpop.xlane.xlu0 %382 }
 0x5bf   :  { %v391_v32 = vsub.f32 %v377_v3, %v383_v29 }
 0x5c0   :  { %v386_v30 = vpop.xlane.xlu1 %385 }
 0x5c1   :  { %v392_v33 = vsub.f32 %v378_v5, %v386_v30  ;;  %v394_v40 = vmul.f32 1.442695, %v391_v32 }
 0x5c2   :  { %v390_v34 = vpop.xlane.xlu0 %389 }
 0x5c3   :  { %v396_v36 = vmul.f32 1.442695, %v392_v33  ;;  %v393_v38 = vsub.f32 %v379_v6, %v390_v34 }
 0x5c5   :  { %3357 = vpow2.f32 %v396_v36  ;;  %v398_v42 = vmul.f32 1.442695, %v393_v38 }
 0x5c7   :  { %3359 = vpow2.f32 %v398_v42 }
 0x5c8   :  { %3361 = vpow2.f32 %v394_v40 }
 0x5cd   :  { %v562_v43 = vpop.xlane.xlu1 %561 }
 0x5ce   :  { %v565_v44 = vsub.f32 %v553_v20, %v562_v43  ;;  %v556_v45 = vpop.xlane.xlu0 %555 }
 0x5cf   :  { %v3358_v46 = vpop.eup %3357  ;;  %v563_v47 = vsub.f32 %v551_v22, %v556_v45  ;;  %v299_v45 = vld [vmem:[%s4313_s7 + $0x8] sm:$0xff] }
 0x5d0   :  { %v570_v48 = vmul.f32 1.442695, %v565_v44  ;;  %v403_v49 = vsel %vm380_vm5, %v3358_v46, 0.0  ;;  %v298_v44 = vld [vmem:[%s4313_s7] sm:$0xff] }
 0x5d1   :  { %v3360_v50 = vpop.eup %3359  ;;  %v566_v51 = vmul.f32 1.442695, %v563_v47  ;;  %404 = vadd.xlane.f32.xlu1 %v403_v49 }
 0x5d2   :  { %3363 = vpow2.f32 %v570_v48  ;;  %v559_v52 = vpop.xlane.xlu0 %558  ;;  %v406_v53 = vsel %vm387_vm6, %v3360_v50, 0.0  ;;  %v3362_v54 = vpop.eup %3361 }
 0x5d3   :  { %v564_v55 = vsub.f32 %v552_v26, %v559_v52  ;;  %407 = vadd.xlane.f32.xlu0 %v406_v53  ;;  %3365 = vpow2.f32 %v566_v51  ;;  %v400_v58 = vsel %vm380_vm5, %v3362_v54, 0.0 }
 0x5d5   :  { %v568_v56 = vmul.f32 1.442695, %v564_v55 }
 0x5d7   :  { %3367 = vpow2.f32 %v568_v56  ;;  %401 = vadd.xlane.f32.xlu0 %v400_v58 }
 0x5dc   :  { %v3364_v59 = vpop.eup %3363 }
 0x5dd   :  { %v578_v60 = vsel %vm387_vm6, %v3364_v59, 0.0  ;;  %v3366_v62 = vpop.eup %3365 }
 0x5de   :  { %579 = vadd.xlane.f32.xlu1 %v578_v60  ;;  %v572_v3 = vsel %vm380_vm5, %v3366_v62, 0.0 }
 0x5e1   :  { %v3368_v2 = vpop.eup %3367 }
 0x5e2   :  { %573 = vadd.xlane.f32.xlu1 %v572_v3  ;;  %v575_v4 = vsel %vm380_vm5, %v3368_v2, 0.0 }
 0x5e3   :  { %576 = vadd.xlane.f32.xlu0 %v575_v4 }
 0x5f3   :  { %593 = vrot.lane.b32.xlu1 %v3680_v41, %s3497_s16 }
 0x5f7   :  { %768 = vrot.lane.b32.xlu1 %v3666_v35, %s3499_s22 }
 0x5f9   :  { %591 = vrot.lane.b32.xlu0 %v3668_v37, %s3497_s16 }
 0x5fb   :  { %770 = vrot.lane.b32.xlu1 %v3676_v39, %s3499_s22 }
 0x5fd   :  { %764 = vrot.lane.b32.xlu0 %v3666_v35, %s3500_s23 }
 0x5ff   :  { %766 = vrot.lane.b32.xlu1 %v3676_v39, %s3500_s23 }
 0x601   :  { %999 = vrot.lane.b32.xlu0 %v3666_v35, %s3501_s24 }
 0x603   :  { %1001 = vrot.lane.b32.xlu1 %v3676_v39, %s3501_s24 }
 0x605   :  { %995 = vrot.lane.b32.xlu0 %v3666_v35, %s3502_s25 }
 0x607   :  { %997 = vrot.lane.b32.xlu1 %v3676_v39, %s3502_s25 }
 0x65e   :  { %v405_v5 = vpop.xlane.xlu1 %404 }
 0x660   :  { %v408_v6 = vpop.xlane.xlu0 %407 }
 0x661   :  { %3369 = vrcp.f32 %v408_v6 }
 0x662   :  { %3371 = vrcp.f32 %v405_v5 }
 0x664   :  { %v402_v7 = vpop.xlane.xlu0 %401 }
 0x665   :  { %3373 = vrcp.f32 %v402_v7 }
 0x66b   :  { %v580_v12 = vpop.xlane.xlu1 %579  ;;  %v3370_v13 = vpop.eup %3369 }
 0x66c   :  { %v3372_v14 = vpop.eup %3371  ;;  %3375 = vrcp.f32 %v580_v12  ;;  %v414_v17 = vmul.f32 %v3370_v13, %v3360_v50 }
 0x66d   :  { %v413_v35 = vmul.f32 %v3372_v14, %v3358_v46  ;;  %v479_v46 = vpack.c.bf16 %v299_v45, %v298_v44 }
 0x66e   :  { %v416_v39 = vpack.c.bf16 %v414_v17, %v414_v17 }
 0x66f   :  { %v3374_v16 = vpop.eup %3373  ;;  %v574_v18 = vpop.xlane.xlu1 %573  ;;  %3121 = vmatprep.subr.bf16.mxu1 %v479_v46 }
 0x670   :  { %3377 = vrcp.f32 %v574_v18  ;;  %v577_v19 = vpop.xlane.xlu0 %576  ;;  %v412_v20 = vmul.f32 %v3374_v16, %v3362_v54  ;;  %3122 = vmatpush3.bf16.msra.mxu1 %v479_v46 }
 0x671   :  { %3379 = vrcp.f32 %v577_v19 }
 0x672   :  { %v415_v21 = vpack.c.bf16 %v413_v35, %v412_v20 }
 0x673   :  { %v594_v26 = vpop.permute.xlu1 %593 }
 0x674   :  { %v592_v22 = vpop.permute.xlu0 %591  ;;  %3095 = vmatprep.mubr.msk.bf16.mxu0 %vm380_vm5, %v415_v21  ;;  %v603_v30 = vsel %vm425_vm4, %v594_v26, 0 }
 0x675   :  { %3096 = vmatmul.mubr.msk.bf16.vlgmr.msra.gmra.mrb[12].mxu0 %vm380_vm5, %v416_v39  ;;  %3107 = vmatprep.subr.bf16.mxu0 %v592_v22 }
 0x676   :  { %3108 = vmatpush3.bf16.msra.mxu0 %v592_v22  ;;  %v3376_v29 = vpop.eup %3375 }
 0x677   :  { %3320 = vmatprep.subr.msk.bf16.mxu0 %vm425_vm4, %v594_v26  ;;  %v586_v34 = vmul.f32 %v3376_v29, %v3364_v59  ;;  %v769_v43 = vpop.permute.xlu1 %768 }
 0x678   :  { %v779_v60 = vsel %vm54_vm1, %v769_v43, 0 }
 0x679   :  { %v588_v42 = vpack.c.bf16 %v586_v34, %v586_v34 }
 0x67a   :  { %v3378_v32 = vpop.eup %3377  ;;  %3110 = vmatpush3.bf16.msra.mxu0 %v603_v30 }
 0x67b   :  { %v3380_v33 = vpop.eup %3379  ;;  %v584_v36 = vmul.f32 %v3378_v32, %v3366_v62  ;;  %3115 = vmatprep.subr.bf16.mxu0 %v655_v28  ;;  %v765_v62 = vpop.permute.xlu0 %764 }
 0x67c   :  { %v585_v38 = vmul.f32 %v3380_v33, %v3368_v2  ;;  %v771_v2 = vpop.permute.xlu1 %770 }
 0x67d   :  { %v782_v3 = vsel %vm54_vm1, %v771_v2, 0 }
 0x67e   :  { %v587_v40 = vpack.c.bf16 %v585_v38, %v584_v36 }
 0x67f   :  { %v1000_v4 = vpop.permute.xlu0 %999 }
 0x680   :  { %3111 = vmatprep.mubr.msk.bf16.mxu0 %vm380_vm5, %v587_v40  ;;  %v767_v5 = vpop.permute.xlu1 %766  ;;  %v1010_v6 = vsel %vm54_vm1, %v1000_v4, 0 }
 0x681   :  { %3112 = vmatmul.mubr.msk.bf16.vlgmr.msra.gmra.mrb[16].mxu0 %vm380_vm5, %v588_v42 }
 0x682   :  { %3116 = vmatpush3.bf16.msra.mxu0 %v655_v28 }
 0x683   :  { %3321 = vmatprep.subr.msk.bf16.mxu0 %vm54_vm1, %v769_v43  ;;  %v996_v7 = vpop.permute.xlu0 %995 }
 0x684   :  { %v1002_v12 = vpop.permute.xlu1 %1001 }
 0x685   :  { %v1013_v13 = vsel %vm54_vm1, %v1002_v12, 0 }
 0x688   :  { %v998_v14 = vpop.permute.xlu1 %997 }
 0x748   :  { %v3097_v47 = vpop.f32.mrb[12].mxu0 }
 0x749   :  { %v463_v48 = vpop.f32.mrb[13].mxu0  ;;  %v478_v52 = vpack.c.bf16 %v3097_v47, %v3097_v47 }
 0x74a   :  { %v3098_v49 = vpop.f32.mrb[14].mxu0 }
 0x74b   :  { %v466_v50 = vpop.f32.mrb[15].mxu0 }
 0x74c   :  { %v477_v51 = vpack.c.bf16 %v466_v50, %v463_v48 }
 0x74e   :  { %3123 = vmatprep.mubr.msk.bf16.mxu1 %vm54_vm1, %v477_v51 }
 0x74f   :  { %3124 = vmatmul.mubr.msk.bf16.vlgmr.msra.gmra.mrb[12].mxu1 %vm54_vm1, %v478_v52 }
 0x754   :  { %v3113_v53 = vpop.f32.mrb[16].mxu0 }
 0x755   :  { %v639_v54 = vpop.f32.mrb[17].mxu0  ;;  %v654_v59 = vpack.c.bf16 %v3113_v53, %v3113_v53 }
 0x756   :  { %v3114_v55 = vpop.f32.mrb[18].mxu0 }
 0x757   :  { %v642_v56 = vpop.f32.mrb[19].mxu0 }
 0x758   :  { %v653_v58 = vpack.c.bf16 %v642_v56, %v639_v54 }
 0x75a   :  { %3117 = vmatprep.mubr.msk.bf16.mxu0 %vm54_vm1, %v653_v58 }
 0x75b   :  { %3118 = vmatmul.mubr.msk.bf16.vlgmr.msra.gmra.mrb[20].mxu0 %vm54_vm1, %v654_v59 }
 0x75c   :  { %3128 = vmatpush3.bf16.xpose.msra.mxu0 %v779_v60  ;;  %3131 = vmatprep.mubr.msk.bf16.mxu0 %vm54_vm1, %v765_v62 }
 0x75d   :  { %3322 = vmatprep.subr.msk.bf16.mxu0 %vm54_vm1, %v771_v2 }
 0x764   :  { %3130 = vmatpush3.bf16.xpose.msra.mxu0 %v782_v3 }
 0x765   :  { %3324 = vmatprep.subr.msk.bf16.mxu0 %vm54_vm1, %v1000_v4 }
 0x76b   :  { %3132 = vmatmul.mubr.msk.bf16.vlgmr.msra.gmra.mrb[24].mxu0 %vm54_vm1, %v767_v5 }
 0x76c   :  { %3150 = vmatpush3.bf16.xpose.msra.mxu0 %v1010_v6  ;;  %3153 = vmatprep.mubr.msk.bf16.mxu0 %vm54_vm1, %v996_v7 }
 0x76d   :  { %3325 = vmatprep.subr.msk.bf16.mxu0 %vm54_vm1, %v1002_v12 }
 0x774   :  { %3152 = vmatpush3.bf16.xpose.msra.mxu0 %v1013_v13 }
 0x77b   :  { %3154 = vmatmul.mubr.msk.bf16.vlgmr.msra.gmra.mrb[28].mxu0 %vm54_vm1, %v998_v14 }
 0x822   :  { %v3125_v16 = vpop.f32.mrb[12].mxu1 }
 0x823   :  { %v750_v17 = vpop.f32.mrb[13].mxu1 }
 0x824   :  { %v3126_v18 = vpop.f32.mrb[14].mxu1 }
 0x825   :  { %v753_v19 = vpop.f32.mrb[15].mxu1 }
 0x82e   :  { %v3119_v20 = vpop.f32.mrb[20].mxu0 }
 0x82f   :  { %v3793_v35 = vadd.f32 %v3125_v16, %v3119_v20  ;;  %v696_v21 = vpop.f32.mrb[21].mxu0 }
 0x830   :  { %v3795_v39 = vadd.f32 %v750_v17, %v696_v21  ;;  %v3120_v22 = vpop.f32.mrb[22].mxu0 }
 0x831   :  { %v699_v23 = vpop.f32.mrb[23].mxu0 }
 0x832   :  { %v3797_v25 = vadd.f32 %v753_v19, %v699_v23 }
 0x83e   :  { %v3133_v26 = vpop.f32.mrb[24].mxu0 }
 0x83f   :  { %v818_v28 = vpop.f32.mrb[25].mxu0  ;;  %v834_v29 = vmul.f32 0.25, %v3133_v26 }
 0x840   :  { %v832_v30 = vmul.f32 0.25, %v818_v28  ;;  %v3134_v32 = vpop.f32.mrb[26].mxu0 }
 0x841   :  { %v821_v33 = vpop.f32.mrb[27].mxu0  ;;  %v837_v42 = vadd.f32 %v834_v29, %v3719_v1 }
 0x842   :  { %v833_v34 = vmul.f32 0.25, %v821_v33  ;;  %v835_v36 = vadd.f32 %v832_v30, %v3709_v57 }
 0x843   :  { %v844_v44 = vsel %vm387_vm6, %v837_v42, -inf }
 0x844   :  { %v838_v38 = vsel %vm380_vm5, %v835_v36, -inf  ;;  %v836_v40 = vadd.f32 %v833_v34, %v3714_v63 }
 0x845   :  { %839 = vmax.xlane.f32.xlu0 %v838_v38 }
 0x846   :  { %v841_v43 = vsel %vm380_vm5, %v836_v40, -inf }
 0x847   :  { %842 = vmax.xlane.f32.xlu1 %v841_v43 }
 0x849   :  { %845 = vmax.xlane.f32.xlu0 %v844_v44 }
 0x84e   :  { %v3155_v45 = vpop.f32.mrb[28].mxu0 }
 0x84f   :  { %v1049_v46 = vpop.f32.mrb[29].mxu0  ;;  %v1065_v7 = vmul.f32 0.25, %v3155_v45 }
 0x850   :  { %v3156_v47 = vpop.f32.mrb[30].mxu0  ;;  %v1063_v5 = vmul.f32 0.25, %v1049_v46 }
 0x851   :  { %v1052_v48 = vpop.f32.mrb[31].mxu0  ;;  %v1068_v17 = vadd.f32 %v1065_v7, %v3719_v1 }
 0x852   :  { %v1064_v6 = vmul.f32 0.25, %v1052_v48  ;;  %v1066_v12 = vadd.f32 %v1063_v5, %v3709_v57 }
 0x853   :  { %v1075_v18 = vsel %vm387_vm6, %v1068_v17, -inf }
 0x854   :  { %v1067_v13 = vadd.f32 %v1064_v6, %v3714_v63  ;;  %v1069_v14 = vsel %vm380_vm5, %v1066_v12, -inf }
 0x856   :  { %v1072_v16 = vsel %vm380_vm5, %v1067_v13, -inf }
 0x8d2   :  { %v840_v49 = vpop.xlane.xlu0 %839 }
 0x8d3   :  { %v847_v50 = vsub.f32 %v835_v36, %v840_v49 }
 0x8d4   :  { %v843_v51 = vpop.xlane.xlu1 %842 }
 0x8d5   :  { %v850_v52 = vmul.f32 1.442695, %v847_v50  ;;  %v848_v53 = vsub.f32 %v836_v40, %v843_v51 }
 0x8d6   :  { %v846_v54 = vpop.xlane.xlu0 %845 }
 0x8d7   :  { %3381 = vpow2.f32 %v850_v52  ;;  %v852_v55 = vmul.f32 1.442695, %v848_v53  ;;  %v849_v56 = vsub.f32 %v837_v42, %v846_v54  ;;  %v302_v53 = vld [vmem:[%s4313_s7 + $0x20] sm:$0xff]  ;;  %v303_v54 = vld [vmem:[%s4313_s7 + $0x28] sm:$0xff] }
 0x8d9   :  { %3383 = vpow2.f32 %v852_v55  ;;  %v854_v58 = vmul.f32 1.442695, %v849_v56  ;;  %v937_v55 = vpack.c.bf16 %v303_v54, %v302_v53 }
 0x8db   :  { %3385 = vpow2.f32 %v854_v58 }
 0x8e1   :  { %v3382_v59 = vpop.eup %3381 }
 0x8e2   :  { %v856_v60 = vsel %vm380_vm5, %v3382_v59, 0.0 }
 0x8e3   :  { %v3384_v62 = vpop.eup %3383  ;;  %857 = vadd.xlane.f32.xlu0 %v856_v60 }
 0x8e4   :  { %v859_v4 = vsel %vm380_vm5, %v3384_v62, 0.0 }
 0x8e5   :  { %v3386_v2 = vpop.eup %3385 }
 0x8e6   :  { %v862_v3 = vsel %vm387_vm6, %v3386_v2, 0.0 }
 0x8e7   :  { %863 = vadd.xlane.f32.xlu1 %v862_v3  ;;  %860 = vadd.xlane.f32.xlu0 %v859_v4 }
 0x8f8   :  { %875 = vrot.lane.b32.xlu1 %v3680_v41, %s3500_s23 }
 0x8fd   :  { %873 = vrot.lane.b32.xlu0 %v3668_v37, %s3500_s23 }
 0x91c   :  { %1070 = vmax.xlane.f32.xlu1 %v1069_v14  ;;  %1073 = vmax.xlane.f32.xlu0 %v1072_v16 }
 0x920   :  { %1076 = vmax.xlane.f32.xlu0 %v1075_v18 }
 0x970   :  { %v858_v19 = vpop.xlane.xlu0 %857 }
 0x971   :  { %3387 = vrcp.f32 %v858_v19 }
 0x974   :  { %v861_v20 = vpop.xlane.xlu0 %860  ;;  %v864_v21 = vpop.xlane.xlu1 %863 }
 0x975   :  { %3389 = vrcp.f32 %v861_v20  ;;  %v304_v20 = vld [vmem:[%s4313_s7 + $0x30] sm:$0xff] }
 0x976   :  { %3391 = vrcp.f32 %v864_v21  ;;  %v305_v21 = vld [vmem:[%s4313_s7 + $0x38] sm:$0xff] }
 0x978   :  { %v874_v57 = vpop.permute.xlu0 %873  ;;  %v876_v63 = vpop.permute.xlu1 %875 }
 0x979   :  { %3135 = vmatprep.subr.bf16.mxu1 %v874_v57  ;;  %v885_v1 = vsel %vm425_vm4, %v876_v63, 0 }
 0x97a   :  { %3136 = vmatpush3.bf16.msra.mxu1 %v874_v57  ;;  %v1168_v57 = vpack.c.bf16 %v305_v21, %v304_v20 }
 0x97b   :  { %3323 = vmatprep.subr.msk.bf16.mxu1 %vm425_vm4, %v876_v63  ;;  %v3388_v22 = vpop.eup %3387 }
 0x97c   :  { %v868_v28 = vmul.f32 %v3388_v22, %v3382_v59 }
 0x97e   :  { %3138 = vmatpush3.bf16.msra.mxu1 %v885_v1 }
 0x97f   :  { %v3390_v23 = vpop.eup %3389  ;;  %3143 = vmatprep.subr.bf16.mxu1 %v937_v55 }
 0x980   :  { %v3392_v26 = vpop.eup %3391  ;;  %v869_v29 = vmul.f32 %v3390_v23, %v3384_v62 }
 0x981   :  { %v870_v30 = vmul.f32 %v3392_v26, %v3386_v2 }
 0x982   :  { %v871_v32 = vpack.c.bf16 %v869_v29, %v868_v28 }
 0x983   :  { %v872_v33 = vpack.c.bf16 %v870_v30, %v870_v30 }
 0x984   :  { %3139 = vmatprep.mubr.msk.bf16.mxu1 %vm380_vm5, %v871_v32 }
 0x985   :  { %3140 = vmatmul.mubr.msk.bf16.vlgmr.msra.gmra.mrb[16].mxu1 %vm380_vm5, %v872_v33 }
 0x986   :  { %3144 = vmatpush3.bf16.msra.mxu1 %v937_v55 }
 0x9a9   :  { %v1074_v34 = vpop.xlane.xlu0 %1073  ;;  %v1071_v36 = vpop.xlane.xlu1 %1070 }
 0x9aa   :  { %v1079_v38 = vsub.f32 %v1067_v13, %v1074_v34  ;;  %v1078_v42 = vsub.f32 %v1066_v12, %v1071_v36 }
 0x9ac   :  { %v1083_v40 = vmul.f32 1.442695, %v1079_v38  ;;  %v1081_v45 = vmul.f32 1.442695, %v1078_v42 }
 0x9ad   :  { %v1077_v43 = vpop.xlane.xlu0 %1076 }
 0x9ae   :  { %3393 = vpow2.f32 %v1083_v40  ;;  %v1080_v44 = vsub.f32 %v1068_v17, %v1077_v43  ;;  %v1228_v40 = vsub.s32 6, %v3588_v9 }
 0x9b0   :  { %v1085_v46 = vmul.f32 1.442695, %v1080_v44 }
 0x9b2   :  { %3395 = vpow2.f32 %v1085_v46 }
 0x9b3   :  { %3397 = vpow2.f32 %v1081_v45 }
 0x9b8   :  { %v3394_v47 = vpop.eup %3393 }
 0x9b9   :  { %v1090_v48 = vsel %vm380_vm5, %v3394_v47, 0.0 }
 0x9ba   :  { %1091 = vadd.xlane.f32.xlu0 %v1090_v48 }
 0x9bc   :  { %v3396_v49 = vpop.eup %3395 }
 0x9bd   :  { %v1093_v50 = vsel %vm387_vm6, %v3396_v49, 0.0  ;;  %v3398_v51 = vpop.eup %3397 }
 0x9be   :  { %1094 = vadd.xlane.f32.xlu1 %v1093_v50  ;;  %v1087_v52 = vsel %vm380_vm5, %v3398_v51, 0.0 }
 0x9c2   :  { %1088 = vadd.xlane.f32.xlu1 %v1087_v52 }
 0x9d0   :  { %1104 = vrot.lane.b32.xlu0 %v3668_v37, %s3502_s25 }
 0x9d3   :  { %1106 = vrot.lane.b32.xlu1 %v3680_v41, %s3502_s25 }
 0xa47   :  { %v1092_v56 = vpop.xlane.xlu0 %1091 }
 0xa48   :  { %3399 = vrcp.f32 %v1092_v56 }
 0xa4b   :  { %v1105_v58 = vpop.permute.xlu0 %1104  ;;  %v1095_v59 = vpop.xlane.xlu1 %1094 }
 0xa4c   :  { %3157 = vmatprep.subr.bf16.mxu1 %v1105_v58 }
 0xa4f   :  { %v1089_v60 = vpop.xlane.xlu1 %1088 }
 0xa50   :  { %3401 = vrcp.f32 %v1089_v60 }
 0xa51   :  { %3403 = vrcp.f32 %v1095_v59 }
 0xa52   :  { %v3400_v62 = vpop.eup %3399 }
 0xa53   :  { %v1100_v12 = vmul.f32 %v3400_v62, %v3394_v47  ;;  %v1107_v16 = vpop.permute.xlu1 %1106 }
 0xa54   :  { %v1116_v18 = vsel %vm425_vm4, %v1107_v16, 0 }
 0xa58   :  { %v3141_v2 = vpop.f32.mrb[16].mxu1 }
 0xa59   :  { %v921_v3 = vpop.f32.mrb[17].mxu1  ;;  %v936_v13 = vpack.c.bf16 %v3141_v2, %v3141_v2 }
 0xa5a   :  { %v3402_v4 = vpop.eup %3401  ;;  %v3142_v5 = vpop.f32.mrb[18].mxu1 }
 0xa5b   :  { %v924_v6 = vpop.f32.mrb[19].mxu1  ;;  %v1099_v7 = vmul.f32 %v3402_v4, %v3398_v51  ;;  %v3404_v41 = vpop.eup %3403 }
 0xa5c   :  { %v935_v37 = vpack.c.bf16 %v924_v6, %v921_v3  ;;  %v1101_v17 = vmul.f32 %v3404_v41, %v3396_v49  ;;  %v1292_v41 = vld [vmem:[%s4314_s8 + $0x18] sm:$0xff] }
 0xa5d   :  { %v1102_v14 = vpack.c.bf16 %v1100_v12, %v1099_v7  ;;  %v1289_v12 = vld [vmem:[%s4314_s8] sm:$0xff] }
 0xa5e   :  { %3145 = vmatprep.mubr.msk.bf16.mxu1 %vm54_vm1, %v935_v37  ;;  %v1103_v19 = vpack.c.bf16 %v1101_v17, %v1101_v17  ;;  %v1290_v37 = vld [vmem:[%s4314_s8 + $0x8] sm:$0xff] }
 0xa5f   :  { %3146 = vmatmul.mubr.msk.bf16.vlgmr.msra.gmra.mrb[20].mxu1 %vm54_vm1, %v936_v13  ;;  %v1295_v13 = vpack.c.bf16 %v1290_v37, %v1289_v12 }
 0xa60   :  { %3158 = vmatpush3.bf16.msra.mxu1 %v1105_v58  ;;  %3161 = vmatprep.mubr.msk.bf16.mxu1 %vm380_vm5, %v1102_v14  ;;  %v1291_v14 = vld [vmem:[%s4314_s8 + $0x10] sm:$0xff] }
 0xa61   :  { %3326 = vmatprep.subr.msk.bf16.mxu1 %vm425_vm4, %v1107_v16  ;;  %3171 = vmatprep.subr.bf16.mxu0 %v1295_v13  ;;  %v1296_v16 = vpack.c.bf16 %v1292_v41, %v1291_v14 }
 0xa62   :  { %3172 = vmatpush3.bf16.msra.mxu0 %v1295_v13 }
 0xa63   :  { %3173 = vmatprep.subr.bf16.mxu0 %v1296_v16 }
 0xa64   :  { %3160 = vmatpush3.bf16.msra.mxu1 %v1116_v18 }
 0xa65   :  { %3165 = vmatprep.subr.bf16.mxu1 %v1168_v57 }
 0xa66   :  { %3174 = vmatpush3.bf16.msra.mxu0 %v1296_v16 }
 0xa67   :  { %3162 = vmatmul.mubr.msk.bf16.vlgmr.msra.gmra.mrb[24].mxu1 %vm380_vm5, %v1103_v19 }
 0xa68   :  { %3166 = vmatpush3.bf16.msra.mxu1 %v1168_v57 }
 0xb32   :  { %v3147_v63 = vpop.f32.mrb[20].mxu1 }
 0xb33   :  { %v994_v22 = vadd.f32 %v3147_v63, %v3793_v35  ;;  %v978_v1 = vpop.f32.mrb[21].mxu1 }
 0xb34   :  { %v992_v23 = vadd.f32 %v978_v1, %v3795_v39  ;;  %v3148_v26 = vpop.f32.mrb[22].mxu1  ;;  %v1229_v39 = vrot.slane %v3594_v11, %v1228_v40 }
 0xb35   :  { %v981_v28 = vpop.f32.mrb[23].mxu1  ;;  %v3487_v26 = vld [vmem:[%s4309_s11] sm:$0xff] }
 0xb36   :  { %v993_v29 = vadd.f32 %v981_v28, %v3797_v25 }
 0xb3a   :  { %v3163_v30 = vpop.f32.mrb[24].mxu1 }
 0xb3b   :  { %v1152_v32 = vpop.f32.mrb[25].mxu1  ;;  %v1167_v38 = vpack.c.bf16 %v3163_v30, %v3163_v30 }
 0xb3c   :  { %v3164_v33 = vpop.f32.mrb[26].mxu1 }
 0xb3d   :  { %v1155_v34 = vpop.f32.mrb[27].mxu1 }
 0xb3e   :  { %v1166_v36 = vpack.c.bf16 %v1155_v34, %v1152_v32 }
 0xb40   :  { %3167 = vmatprep.mubr.msk.bf16.mxu1 %vm54_vm1, %v1166_v36 }
 0xb41   :  { %3168 = vmatmul.mubr.msk.bf16.vlgmr.msra.gmra.mrb[28].mxu1 %vm54_vm1, %v1167_v38 }
 0xc14   :  { %v3169_v35 = vpop.f32.mrb[28].mxu1 }
 0xc15   :  { %v1225_v42 = vadd.f32 %v3169_v35, %v994_v22  ;;  %v1209_v43 = vpop.f32.mrb[29].mxu1 }
 0xc16   :  { %v1223_v25 = vadd.f32 %v1209_v43, %v992_v23  ;;  %v3170_v44 = vpop.f32.mrb[30].mxu1  ;;  %v1277_v23 = vsub.s32 4, %v3588_v9 }
 0xc17   :  { %v1212_v45 = vpop.f32.mrb[31].mxu1  ;;  %v1232_v48 = vadd.f32 %v1229_v39, %v1225_v42 }
 0xc18   :  { %v1230_v46 = vadd.f32 %v1229_v39, %v1223_v25  ;;  %v1224_v47 = vadd.f32 %v1212_v45, %v993_v29  ;;  %v1278_v28 = vrot.slane %v3487_v26, %v1277_v23  ;;  %v1284_v29 = vsub.s32 5, %v3588_v9 }
 0xc19   :  { %v3865_v11 = vadd.f32 %v1232_v48, %v3609_v24  ;;  %v1382_v48 = vld [vmem:[%s4315_s9] sm:$0xff] }
 0xc1a   :  { %v3857_v49 = vadd.f32 %v1230_v46, %v3614_v27  ;;  %v1231_v50 = vadd.f32 %v1229_v39, %v1224_v47  ;;  %v1285_v38 = vrot.slane %v3487_v26, %v1284_v29 }
 0xc1b   :  { %v1242_v54 = vsel %vm178_vm2, %v3865_v11, 0.0 }
 0xc1c   :  { %v3860_v51 = vadd.f32 %v1231_v50, %v3618_v31  ;;  %v1236_v52 = vsel %vm171_vm3, %v3857_v49, 0.0  ;;  %v1383_v50 = vld [vmem:[%s4315_s9 + $0x8] sm:$0xff] }
 0xc1d   :  { %1237 = vadd.xlane.f32.xlu1 %v1236_v52  ;;  %v1392_v52 = vpack.c.bf16 %v1383_v50, %v1382_v48 }
 0xc1e   :  { %v1239_v53 = vsel %vm171_vm3, %v3860_v51, 0.0 }
 0xc1f   :  { %1240 = vadd.xlane.f32.xlu0 %v1239_v53  ;;  %3179 = vmatprep.subr.bf16.mxu1 %v1392_v52  ;;  %v1384_v53 = vld [vmem:[%s4315_s9 + $0x10] sm:$0xff] }
 0xc20   :  { %3180 = vmatpush3.bf16.msra.mxu1 %v1392_v52 }
 0xc23   :  { %1243 = vadd.xlane.f32.xlu0 %v1242_v54  ;;  %v1385_v54 = vld [vmem:[%s4315_s9 + $0x18] sm:$0xff] }
 0xcaa   :  { %v1238_v27 = vpop.xlane.xlu1 %1237 }
 0xcab   :  { %v1245_v55 = vmul.f32 0.03125, %v1238_v27  ;;  %v1393_v27 = vpack.c.bf16 %v1385_v54, %v1384_v53 }
 0xcac   :  { %v1241_v56 = vpop.xlane.xlu0 %1240 }
 0xcad   :  { %v1248_v31 = vsub.f32 %v3857_v49, %v1245_v55  ;;  %v1246_v58 = vmul.f32 0.03125, %v1241_v56  ;;  %3181 = vmatprep.subr.bf16.mxu1 %v1393_v27  ;;  %v1386_v55 = vld [vmem:[%s4315_s9 + $0x20] sm:$0xff]  ;;  %v1387_v56 = vld [vmem:[%s4315_s9 + $0x28] sm:$0xff] }
 0xcae   :  { %3182 = vmatpush3.bf16.msra.mxu1 %v1393_v27 }
 0xcaf   :  { %v1249_v59 = vsub.f32 %v3860_v51, %v1246_v58  ;;  %v1251_v60 = vmul.f32 %v1248_v31, %v1248_v31  ;;  %v1388_v58 = vld [vmem:[%s4315_s9 + $0x30] sm:$0xff] }
 0xcb0   :  { %v1244_v62 = vpop.xlane.xlu0 %1243 }
 0xcb1   :  { %v1247_v24 = vmul.f32 0.03125, %v1244_v62  ;;  %v1254_v2 = vsel %vm171_vm3, %v1251_v60, 0.0  ;;  %v1252_v3 = vmul.f32 %v1249_v59, %v1249_v59  ;;  %v1299_v62 = vsub.s32 7, %v3588_v9 }
 0xcb2   :  { %1255 = vadd.xlane.f32.xlu1 %v1254_v2 }
 0xcb3   :  { %v1250_v4 = vsub.f32 %v3865_v11, %v1247_v24  ;;  %v1257_v5 = vsel %vm171_vm3, %v1252_v3, 0.0  ;;  %v1300_v24 = vrot.slane %v3487_v26, %v1299_v62 }
 0xcb4   :  { %1258 = vadd.xlane.f32.xlu0 %v1257_v5 }
 0xcb5   :  { %v1253_v6 = vmul.f32 %v1250_v4, %v1250_v4 }
 0xcb7   :  { %v1260_v7 = vsel %vm178_vm2, %v1253_v6, 0.0 }
 0xcb8   :  { %1261 = vadd.xlane.f32.xlu1 %v1260_v7 }
 0xd3f   :  { %v1256_v17 = vpop.xlane.xlu1 %1255 }
 0xd40   :  { %v1263_v18 = vmul.f32 0.03125, %v1256_v17 }
 0xd41   :  { %v1259_v19 = vpop.xlane.xlu0 %1258 }
 0xd42   :  { %v1266_v20 = vadd.f32 1e-05, %v1263_v18  ;;  %v1264_v21 = vmul.f32 0.03125, %v1259_v19 }
 0xd44   :  { %3405 = vrsqrt.f32 %v1266_v20  ;;  %v1267_v57 = vadd.f32 1e-05, %v1264_v21 }
 0xd45   :  { %v1262_v63 = vpop.xlane.xlu1 %1261 }
 0xd46   :  { %3407 = vrsqrt.f32 %v1267_v57  ;;  %v1265_v22 = vmul.f32 0.03125, %v1262_v63 }
 0xd48   :  { %v1268_v1 = vadd.f32 1e-05, %v1265_v22 }
 0xd4a   :  { %3409 = vrsqrt.f32 %v1268_v1 }
 0xd4e   :  { %v3406_v30 = vpop.eup %3405 }
 0xd4f   :  { %v1272_v32 = vmul.f32 %v3406_v30, %v1248_v31  ;;  %v1394_v31 = vpack.c.bf16 %v1387_v56, %v1386_v55 }
 0xd50   :  { %v3408_v33 = vpop.eup %3407 }
 0xd51   :  { %v1273_v34 = vmul.f32 %v3408_v33, %v1249_v59  ;;  %v1279_v36 = vmul.f32 %v1278_v28, %v1272_v32  ;;  %3183 = vmatprep.subr.bf16.mxu1 %v1394_v31  ;;  %v1389_v59 = vld [vmem:[%s4315_s9 + $0x38] sm:$0xff] }
 0xd52   :  { %3184 = vmatpush3.bf16.msra.mxu1 %v1394_v31  ;;  %v1395_v60 = vpack.c.bf16 %v1389_v59, %v1388_v58 }
 0xd53   :  { %v1280_v35 = vmul.f32 %v1278_v28, %v1273_v34  ;;  %v1286_v43 = vadd.f32 %v1285_v38, %v1279_v36 }
 0xd54   :  { %v3410_v39 = vpop.eup %3409  ;;  %3185 = vmatprep.subr.bf16.mxu1 %v1395_v60 }
 0xd55   :  { %v1274_v42 = vmul.f32 %v3410_v39, %v1250_v4  ;;  %v1287_v25 = vadd.f32 %v1285_v38, %v1280_v35 }
 0xd56   :  { %3186 = vmatpush3.bf16.msra.mxu1 %v1395_v60 }
 0xd57   :  { %v1293_v44 = vpack.c.bf16 %v1287_v25, %v1286_v43  ;;  %v1281_v45 = vmul.f32 %v1278_v28, %v1274_v42 }
 0xd59   :  { %3175 = vmatprep.mubr.msk.bf16.mxu0 %vm171_vm3, %v1293_v44  ;;  %v1288_v46 = vadd.f32 %v1285_v38, %v1281_v45 }
 0xd5b   :  { %v1294_v47 = vpack.c.bf16 %v1288_v46, %v1288_v46  ;;  %v3933_v46 = vld [vmem:[%s4309_s11 + $0x8] sm:$0xff] }
 0xd5d   :  { %3176 = vmatmul.mubr.msk.bf16.vlgmr.msra.gmra.mrb[32].mxu0 %vm171_vm3, %v1294_v47  ;;  %v1399_v47 = vrot.slane %v3933_v46, %v52_v10 }
 0xd5e   :  { %1564 = vmatprep.mubr.bf16.mxu0 %v3495_v61 }
 0xe30   :  { %v3177_v2 = vpop.f32.mrb[32].mxu0 }
 0xe31   :  { %v1350_v3 = vadd.f32 %v3177_v2, %v1300_v24  ;;  %v1341_v4 = vpop.f32.mrb[33].mxu0 }
 0xe32   :  { %v1342_v5 = vadd.f32 %v1341_v4, %v1300_v24  ;;  %v3178_v6 = vpop.f32.mrb[34].mxu0 }
 0xe33   :  { %v1357_v7 = vmul.f32 %v1350_v3, %v1350_v3  ;;  %v1344_v12 = vpop.f32.mrb[35].mxu0 }
 0xe34   :  { %v1355_v37 = vmul.f32 %v1342_v5, %v1342_v5  ;;  %v1345_v13 = vadd.f32 %v1344_v12, %v1300_v24 }
 0xe35   :  { %v1360_v14 = vmul.f32 %v1357_v7, %v1350_v3 }
 0xe36   :  { %v1358_v41 = vmul.f32 %v1355_v37, %v1342_v5  ;;  %v1356_v16 = vmul.f32 %v1345_v13, %v1345_v13 }
 0xe37   :  { %v1363_v17 = vmul.f32 0.044715, %v1360_v14 }
 0xe38   :  { %v1361_v18 = vmul.f32 0.044715, %v1358_v41  ;;  %v1359_v19 = vmul.f32 %v1356_v16, %v1345_v13  ;;  %v2892_v16 = vld [vmem:[%s4311_s6 + $0x48] sm:$0xff] }
 0xe39   :  { %v1366_v20 = vadd.f32 %v1363_v17, %v1350_v3  ;;  %v2894_v17 = vld [vmem:[%s4311_s6 + $0x58] sm:$0xff] }
 0xe3a   :  { %v1364_v21 = vadd.f32 %v1361_v18, %v1342_v5  ;;  %v1362_v57 = vmul.f32 0.044715, %v1359_v19  ;;  %v1523_v18 = vpack.c.bf16 %v2894_v17, %v2892_v16  ;;  %v2891_v19 = vld [vmem:[%s4311_s6 + $0x40] sm:$0xff] }
 0xe3b   :  { %v1369_v63 = vmul.f32 0.7978846, %v1366_v20  ;;  %v2893_v20 = vld [vmem:[%s4311_s6 + $0x50] sm:$0xff] }
 0xe3c   :  { %v1367_v22 = vmul.f32 0.7978846, %v1364_v21  ;;  %v1365_v1 = vadd.f32 %v1362_v57, %v1345_v13  ;;  %v1522_v21 = vpack.c.bf16 %v2893_v20, %v2891_v19  ;;  %1532 = vmatprep.subr.bf16.mxu0 %v1523_v18  ;;  %v2896_v57 = vld [vmem:[%s4311_s6 + $0x68] sm:$0xff] }
 0xe3d   :  { %3411 = vtanh.f32 %v1369_v63  ;;  %v2898_v63 = vld [vmem:[%s4311_s6 + $0x78] sm:$0xff] }
 0xe3e   :  { %3413 = vtanh.f32 %v1367_v22  ;;  %v1368_v26 = vmul.f32 0.7978846, %v1365_v1  ;;  %1533 = vmatpush1.bf16.msra.mxu0 %v1522_v21  ;;  %v2895_v22 = vld [vmem:[%s4311_s6 + $0x60] sm:$0xff]  ;;  %v1525_v1 = vpack.c.bf16 %v2898_v63, %v2896_v57 }
 0xe40   :  { %3415 = vtanh.f32 %v1368_v26  ;;  %v2897_v26 = vld [vmem:[%s4311_s6 + $0x70] sm:$0xff]  ;;  %1534 = vmatprep.subr.bf16.mxu0 %v1525_v1  ;;  %v4022_v1 = vld [vmem:[%s4312_s3] sm:$0xff] }
 0xe47   :  { %v3412_v28 = vpop.eup %3411 }
 0xe48   :  { %v3414_v30 = vpop.eup %3413  ;;  %v1375_v32 = vadd.f32 1.0, %v3412_v28  ;;  %v1524_v28 = vpack.c.bf16 %v2897_v26, %v2895_v22 }
 0xe49   :  { %v1373_v33 = vadd.f32 1.0, %v3414_v30 }
 0xe4a   :  { %v3416_v34 = vpop.eup %3415  ;;  %v1378_v36 = vmul.f32 0.5, %v1375_v32  ;;  %1535 = vmatpush1.bf16.msra.mxu0 %v1524_v28 }
 0xe4b   :  { %v1376_v38 = vmul.f32 0.5, %v1373_v33  ;;  %v1374_v35 = vadd.f32 1.0, %v3416_v34 }
 0xe4c   :  { %v1381_v42 = vmul.f32 %v1378_v36, %v1350_v3 }
 0xe4d   :  { %v1377_v39 = vmul.f32 0.5, %v1374_v35  ;;  %v1379_v43 = vmul.f32 %v1376_v38, %v1342_v5 }
 0xe4e   :  { %v1391_v45 = vpack.c.bf16 %v1381_v42, %v1381_v42 }
 0xe4f   :  { %v1380_v25 = vmul.f32 %v1377_v39, %v1345_v13 }
 0xe51   :  { %v1390_v44 = vpack.c.bf16 %v1380_v25, %v1379_v43  ;;  %v1499_v43 = vsub.s32 1, %v3588_v9 }
 0xe53   :  { %3187 = vmatprep.mubr.msk.bf16.mxu1 %vm1400_vm7, %v1390_v44  ;;  %v1500_v25 = vrot.slane %v3933_v46, %v1499_v43 }
 0xe54   :  { %3188 = vmatmul.mubr.msk.bf16.vlgmr.msra.gmra.mrb[32].mxu1 %vm1400_vm7, %v1391_v45 }
 0xf27   :  { %v3189_v48 = vpop.f32.mrb[32].mxu1 }
 0xf28   :  { %v1441_v50 = vpop.f32.mrb[33].mxu1  ;;  %v1450_v52 = vadd.f32 %v3189_v48, %v1399_v47 }
 0xf29   :  { %v1442_v53 = vadd.f32 %v1441_v50, %v1399_v47  ;;  %v3190_v54 = vpop.f32.mrb[34].mxu1 }
 0xf2a   :  { %v1444_v27 = vpop.f32.mrb[35].mxu1  ;;  %v3942_v31 = vadd.f32 %v1450_v52, %v3865_v11  ;;  %v1507_v52 = vrot.slane %v3933_v46, %v215_v8 }
 0xf2b   :  { %v3939_v55 = vadd.f32 %v1442_v53, %v3857_v49  ;;  %v1445_v56 = vadd.f32 %v1444_v27, %v1399_v47 }
 0xf2c   :  { %v1464_v60 = vsel %vm178_vm2, %v3942_v31, 0.0 }
 0xf2d   :  { %v3945_v58 = vadd.f32 %v1445_v56, %v3860_v51  ;;  %v1458_v59 = vsel %vm171_vm3, %v3939_v55, 0.0 }
 0xf2e   :  { %1459 = vadd.xlane.f32.xlu0 %v1458_v59 }
 0xf2f   :  { %v1461_v10 = vsel %vm171_vm3, %v3945_v58, 0.0 }
 0xf30   :  { %1462 = vadd.xlane.f32.xlu1 %v1461_v10 }
 0xf32   :  { %1465 = vadd.xlane.f32.xlu0 %v1464_v60 }
 0xfbb   :  { %v1460_v49 = vpop.xlane.xlu0 %1459 }
 0xfbc   :  { %v1467_v24 = vmul.f32 0.03125, %v1460_v49 }
 0xfbd   :  { %v1463_v2 = vpop.xlane.xlu1 %1462 }
 0xfbe   :  { %v1470_v11 = vsub.f32 %v3939_v55, %v1467_v24  ;;  %v1468_v3 = vmul.f32 0.03125, %v1463_v2 }
 0xfbf   :  { %v1466_v51 = vpop.xlane.xlu0 %1465 }
 0xfc0   :  { %v1471_v4 = vsub.f32 %v3945_v58, %v1468_v3  ;;  %v1469_v5 = vmul.f32 0.03125, %v1466_v51  ;;  %v1473_v6 = vmul.f32 %v1470_v11, %v1470_v11 }
 0xfc2   :  { %v1472_v7 = vsub.f32 %v3942_v31, %v1469_v5  ;;  %v1476_v12 = vsel %vm171_vm3, %v1473_v6, 0.0  ;;  %v1474_v37 = vmul.f32 %v1471_v4, %v1471_v4 }
 0xfc3   :  { %1477 = vadd.xlane.f32.xlu1 %v1476_v12 }
 0xfc4   :  { %v1479_v13 = vsel %vm171_vm3, %v1474_v37, 0.0  ;;  %v1475_v14 = vmul.f32 %v1472_v7, %v1472_v7 }
 0xfc5   :  { %1480 = vadd.xlane.f32.xlu0 %v1479_v13 }
 0xfc6   :  { %v1482_v41 = vsel %vm178_vm2, %v1475_v14, 0.0 }
 0xfc7   :  { %1483 = vadd.xlane.f32.xlu1 %v1482_v41 }
0x1050   :  { %v1478_v30 = vpop.xlane.xlu1 %1477 }
0x1051   :  { %v1485_v32 = vmul.f32 0.03125, %v1478_v30  ;;  %v4029_v30 = vld [vmem:[%s4312_s3 + $0x8] sm:$0xff] }
0x1052   :  { %v1481_v33 = vpop.xlane.xlu0 %1480 }
0x1053   :  { %v1488_v34 = vadd.f32 1e-05, %v1485_v32  ;;  %v1486_v36 = vmul.f32 0.03125, %v1481_v33 }
0x1054   :  { %v1484_v38 = vpop.xlane.xlu1 %1483 }
0x1055   :  { %3417 = vrsqrt.f32 %v1488_v34  ;;  %v1489_v35 = vadd.f32 1e-05, %v1486_v36  ;;  %v1487_v39 = vmul.f32 0.03125, %v1484_v38  ;;  %v4036_v34 = vld [vmem:[%s4312_s3 + $0x10] sm:$0x3] }
0x1057   :  { %3419 = vrsqrt.f32 %v1489_v35  ;;  %v1490_v42 = vadd.f32 1e-05, %v1487_v39 }
0x1059   :  { %3421 = vrsqrt.f32 %v1490_v42 }
0x105f   :  { %v3418_v44 = vpop.eup %3417 }
0x1060   :  { %v1494_v45 = vmul.f32 %v3418_v44, %v1470_v11 }
0x1061   :  { %v3420_v47 = vpop.eup %3419 }
0x1062   :  { %v1501_v48 = vmul.f32 %v1500_v25, %v1494_v45  ;;  %v1495_v50 = vmul.f32 %v3420_v47, %v1471_v4 }
0x1063   :  { %v3422_v53 = vpop.eup %3421 }
0x1064   :  { %v1502_v54 = vmul.f32 %v1500_v25, %v1495_v50  ;;  %v1496_v27 = vmul.f32 %v3422_v53, %v1472_v7  ;;  %v1508_v56 = vadd.f32 %v1507_v52, %v1501_v48 }
0x1066   :  { %v1509_v59 = vadd.f32 %v1507_v52, %v1502_v54  ;;  %v1503_v60 = vmul.f32 %v1500_v25, %v1496_v27 }
0x1068   :  { %v1520_v10 = vpack.c.bf16 %v1509_v59, %v1508_v56  ;;  %v1510_v49 = vadd.f32 %v1507_v52, %v1503_v60 }
0x106a   :  { %2899 = vmatmul.mubr.msk.bf16.vlgmr.msra.gmra.mrb[36].mxu0 %vm171_vm3, %v1520_v10  ;;  %v1521_v24 = vpack.c.bf16 %v1510_v49, %v1510_v49 }
0x106b   :  { %1574 = vmatprep.mubr.bf16.mxu0 %v3495_v61 }
0x1072   :  { %2900 = vmatmul.mubr.msk.bf16.gmra.mrb[40].mxu0 %vm171_vm3, %v1521_v24 }
0x113d   :  { %v1566_v2 = vpop.f32.mrb[36].mxu0 }
0x113e   :  { %v1568_v11 = vpop.f32.mrb[37].mxu0 }
0x113f   :  { %v1570_v3 = vpop.f32.mrb[38].mxu0 }
0x1140   :  { %v3993_v51 = vpack.c.bf16 %v1570_v3, %v1566_v2  ;;  %v1572_v8 = vpop.f32.mrb[39].mxu0 }
0x1141   :  { %v3995_v4 = vpack.c.bf16 %v1572_v8, %v1568_v11 }
0x1142   :  { %1596 = vrot.lane.b32.xlu0 %v3993_v51, %s3496_s15  ;;  %3195 = vmatprep.mubr.msk.bf16.mxu0 %vm54_vm1, %v3993_v51 }
0x1143   :  { %3199 = vmatprep.subr.bf16.mxu1 %v3995_v4 }
0x1144   :  { %3200 = vmatpush3.bf16.msra.mxu1 %v3995_v4 }
0x1145   :  { %v1576_v61 = vpop.f32.mrb[40].mxu0 }
0x1146   :  { %v4003_v5 = vpack.c.bf16 %v1576_v61, %v1576_v61  ;;  %v1578_v6 = vpop.f32.mrb[41].mxu0 }
0x1147   :  { %v4005_v7 = vpack.c.bf16 %v1578_v6, %v1578_v6  ;;  %v1580_v12 = vpop.f32.mrb[42].mxu0 }
0x1148   :  { %1598 = vrot.lane.b32.xlu1 %v4003_v5, %s3496_s15  ;;  %v1581_v37 = vpop.f32.mrb[43].mxu0 }
0x1149   :  { %3329 = vmatprep.subr.msk.bf16.mxu1 %vm425_vm4, %v4005_v7  ;;  %v1710_v13 = vsel %vm425_vm4, %v4005_v7, 0 }
0x114a   :  { %3202 = vmatpush3.bf16.msra.mxu1 %v1710_v13 }
0x11b4   :  { %v1597_v14 = vpop.permute.xlu0 %1596 }
0x11b5   :  { %v1607_v41 = vsel %vm54_vm1, %v1597_v14, 0  ;;  %3327 = vmatprep.subr.msk.bf16.mxu0 %vm54_vm1, %v1597_v14 }
0x11b6   :  { %3192 = vmatpush3.bf16.xpose.msra.mxu0 %v1607_v41 }
0x11ba   :  { %v1599_v16 = vpop.permute.xlu1 %1598 }
0x11bb   :  { %3328 = vmatprep.subr.msk.bf16.mxu0 %vm54_vm1, %v1599_v16  ;;  %v1610_v17 = vsel %vm54_vm1, %v1599_v16, 0 }
0x11be   :  { %3194 = vmatpush3.bf16.xpose.msra.mxu0 %v1610_v17 }
0x11c5   :  { %3196 = vmatmul.mubr.msk.bf16.vlgmr.msra.gmra.mrb[44].mxu0 %vm54_vm1, %v4003_v5 }
0x1298   :  { %v3197_v18 = vpop.f32.mrb[44].mxu0 }
0x1299   :  { %v1646_v19 = vpop.f32.mrb[45].mxu0  ;;  %v1662_v63 = vmul.f32 0.25, %v3197_v18  ;;  %v2901_v18 = vld [vmem:[%s4313_s7 + $0x40] sm:$0xff] }
0x129a   :  { %v1660_v20 = vmul.f32 0.25, %v1646_v19  ;;  %v3198_v21 = vpop.f32.mrb[46].mxu0  ;;  %v2902_v19 = vld [vmem:[%s4313_s7 + $0x48] sm:$0xff] }
0x129b   :  { %v1649_v57 = vpop.f32.mrb[47].mxu0  ;;  %v1665_v36 = vadd.f32 %v4036_v34, %v1662_v63 }
0x129c   :  { %v1661_v22 = vmul.f32 0.25, %v1649_v57  ;;  %v1663_v26 = vadd.f32 %v4022_v1, %v1660_v20  ;;  %v1762_v20 = vpack.c.bf16 %v2902_v19, %v2901_v18  ;;  %v2903_v18 = vld [vmem:[%s4313_s7 + $0x50] sm:$0xff] }
0x129d   :  { %v1672_v38 = vsel %vm387_vm6, %v1665_v36, -inf }
0x129e   :  { %v1666_v28 = vsel %vm380_vm5, %v1663_v26, -inf  ;;  %v1664_v32 = vadd.f32 %v4029_v30, %v1661_v22 }
0x129f   :  { %1667 = vmax.xlane.f32.xlu1 %v1666_v28 }
0x12a0   :  { %v1669_v33 = vsel %vm380_vm5, %v1664_v32, -inf }
0x12a1   :  { %1670 = vmax.xlane.f32.xlu0 %v1669_v33 }
0x12a5   :  { %1673 = vmax.xlane.f32.xlu0 %v1672_v38 }
0x132c   :  { %v1668_v35 = vpop.xlane.xlu1 %1667 }
0x132d   :  { %v1675_v39 = vsub.f32 %v1663_v26, %v1668_v35 }
0x132e   :  { %v1671_v42 = vpop.xlane.xlu0 %1670 }
0x132f   :  { %v1678_v25 = vmul.f32 1.442695, %v1675_v39  ;;  %v1676_v44 = vsub.f32 %v1664_v32, %v1671_v42 }
0x1331   :  { %3423 = vpow2.f32 %v1678_v25  ;;  %v1680_v45 = vmul.f32 1.442695, %v1676_v44 }
0x1332   :  { %v1674_v47 = vpop.xlane.xlu0 %1673 }
0x1333   :  { %3425 = vpow2.f32 %v1680_v45  ;;  %v1677_v48 = vsub.f32 %v1665_v36, %v1674_v47 }
0x1335   :  { %v1682_v50 = vmul.f32 1.442695, %v1677_v48 }
0x1337   :  { %3427 = vpow2.f32 %v1682_v50 }
0x133b   :  { %v3424_v52 = vpop.eup %3423 }
0x133c   :  { %v1684_v53 = vsel %vm380_vm5, %v3424_v52, 0.0 }
0x133d   :  { %v3426_v54 = vpop.eup %3425  ;;  %1685 = vadd.xlane.f32.xlu1 %v1684_v53 }
0x133e   :  { %v1687_v27 = vsel %vm380_vm5, %v3426_v54, 0.0 }
0x133f   :  { %1688 = vadd.xlane.f32.xlu0 %v1687_v27 }
0x1341   :  { %v3428_v56 = vpop.eup %3427 }
0x1342   :  { %v1690_v59 = vsel %vm387_vm6, %v3428_v56, 0.0 }
0x1343   :  { %1691 = vadd.xlane.f32.xlu1 %v1690_v59 }
0x1354   :  { %1769 = vrot.lane.b32.xlu1 %v4003_v5, %s3498_s17 }
0x1355   :  { %1767 = vrot.lane.b32.xlu0 %v3993_v51, %s3498_s17 }
0x1358   :  { %1763 = vrot.lane.b32.xlu1 %v3993_v51, %s3497_s16 }
0x135c   :  { %1765 = vrot.lane.b32.xlu1 %v4003_v5, %s3497_s16 }
0x13ca   :  { %v1686_v10 = vpop.xlane.xlu1 %1685 }
0x13cb   :  { %3429 = vrcp.f32 %v1686_v10 }
0x13cc   :  { %v1689_v60 = vpop.xlane.xlu0 %1688 }
0x13cd   :  { %3431 = vrcp.f32 %v1689_v60 }
0x13d0   :  { %v1692_v49 = vpop.xlane.xlu1 %1691  ;;  %v1768_v24 = vpop.permute.xlu0 %1767 }
0x13d1   :  { %3433 = vrcp.f32 %v1692_v49  ;;  %3330 = vmatprep.subr.msk.bf16.mxu1 %vm54_vm1, %v1768_v24  ;;  %v1778_v14 = vsel %vm54_vm1, %v1768_v24, 0 }
0x13d4   :  { %v1770_v61 = vpop.permute.xlu1 %1769 }
0x13d5   :  { %v3430_v2 = vpop.eup %3429  ;;  %v1781_v16 = vsel %vm54_vm1, %v1770_v61, 0 }
0x13d6   :  { %v1696_v3 = vmul.f32 %v3430_v2, %v3424_v52 }
0x13d7   :  { %v3432_v11 = vpop.eup %3431 }
0x13d8   :  { %v1697_v8 = vmul.f32 %v3432_v11, %v3426_v54  ;;  %v1764_v41 = vpop.permute.xlu1 %1763 }
0x13da   :  { %v1699_v6 = vpack.c.bf16 %v1697_v8, %v1696_v3 }
0x13db   :  { %v3434_v12 = vpop.eup %3433 }
0x13dc   :  { %v1698_v37 = vmul.f32 %v3434_v12, %v3428_v56  ;;  %3203 = vmatprep.mubr.msk.bf16.mxu1 %vm380_vm5, %v1699_v6  ;;  %v1766_v17 = vpop.permute.xlu1 %1765 }
0x13de   :  { %v1700_v13 = vpack.c.bf16 %v1698_v37, %v1698_v37 }
0x13e0   :  { %3204 = vmatmul.mubr.msk.bf16.vlgmr.msra.gmra.mrb[36].mxu1 %vm380_vm5, %v1700_v13 }
0x13e1   :  { %3208 = vmatpush3.bf16.xpose.msra.mxu1 %v1778_v14  ;;  %3211 = vmatprep.mubr.msk.bf16.mxu1 %vm54_vm1, %v1764_v41 }
0x13e2   :  { %3331 = vmatprep.subr.msk.bf16.mxu1 %vm54_vm1, %v1770_v61 }
0x13e9   :  { %3210 = vmatpush3.bf16.xpose.msra.mxu1 %v1781_v16 }
0x13ea   :  { %3229 = vmatprep.subr.bf16.mxu1 %v1762_v20 }
0x13f0   :  { %3212 = vmatmul.mubr.msk.bf16.vlgmr.msra.gmra.mrb[40].mxu1 %vm54_vm1, %v1766_v17 }
0x13f1   :  { %3230 = vmatpush3.bf16.msra.mxu1 %v1762_v20 }
0x14b3   :  { %v3205_v21 = vpop.f32.mrb[36].mxu1 }
0x14b4   :  { %v1746_v57 = vpop.f32.mrb[37].mxu1  ;;  %v1761_v28 = vpack.c.bf16 %v3205_v21, %v3205_v21 }
0x14b5   :  { %v3206_v63 = vpop.f32.mrb[38].mxu1 }
0x14b6   :  { %v1749_v22 = vpop.f32.mrb[39].mxu1 }
0x14b7   :  { %v1760_v26 = vpack.c.bf16 %v1749_v22, %v1746_v57 }
0x14b9   :  { %3231 = vmatprep.mubr.msk.bf16.mxu1 %vm54_vm1, %v1760_v26 }
0x14ba   :  { %3232 = vmatmul.mubr.msk.bf16.vlgmr.msra.gmra.mrb[44].mxu1 %vm54_vm1, %v1761_v28 }
0x14c3   :  { %v3213_v32 = vpop.f32.mrb[40].mxu1 }
0x14c4   :  { %v1817_v33 = vpop.f32.mrb[41].mxu1  ;;  %v1833_v36 = vmul.f32 0.25, %v3213_v32 }
0x14c5   :  { %v1831_v38 = vmul.f32 0.25, %v1817_v33  ;;  %v3214_v35 = vpop.f32.mrb[42].mxu1 }
0x14c6   :  { %v1820_v39 = vpop.f32.mrb[43].mxu1  ;;  %v1836_v47 = vadd.f32 %v4036_v34, %v1833_v36 }
0x14c7   :  { %v1832_v42 = vmul.f32 0.25, %v1820_v39  ;;  %v1834_v25 = vadd.f32 %v4022_v1, %v1831_v38 }
0x14c8   :  { %v1843_v50 = vsel %vm387_vm6, %v1836_v47, -inf }
0x14c9   :  { %v1837_v44 = vsel %vm380_vm5, %v1834_v25, -inf  ;;  %v1835_v45 = vadd.f32 %v4029_v30, %v1832_v42 }
0x14ca   :  { %1838 = vmax.xlane.f32.xlu0 %v1837_v44 }
0x14cb   :  { %v1840_v48 = vsel %vm380_vm5, %v1835_v45, -inf }
0x14cc   :  { %1841 = vmax.xlane.f32.xlu1 %v1840_v48 }
0x14ce   :  { %1844 = vmax.xlane.f32.xlu0 %v1843_v50 }
0x1557   :  { %v1839_v52 = vpop.xlane.xlu0 %1838 }
0x1558   :  { %v1846_v53 = vsub.f32 %v1834_v25, %v1839_v52 }
0x1559   :  { %v1842_v54 = vpop.xlane.xlu1 %1841 }
0x155a   :  { %v1849_v27 = vmul.f32 1.442695, %v1846_v53  ;;  %v1847_v56 = vsub.f32 %v1835_v45, %v1842_v54 }
0x155b   :  { %v1845_v59 = vpop.xlane.xlu0 %1844 }
0x155c   :  { %3435 = vpow2.f32 %v1849_v27  ;;  %v1851_v10 = vmul.f32 1.442695, %v1847_v56  ;;  %v1848_v60 = vsub.f32 %v1836_v47, %v1845_v59 }
0x155e   :  { %3437 = vpow2.f32 %v1851_v10  ;;  %v1853_v49 = vmul.f32 1.442695, %v1848_v60 }
0x1560   :  { %3439 = vpow2.f32 %v1853_v49 }
0x1566   :  { %v3436_v24 = vpop.eup %3435 }
0x1567   :  { %v1855_v2 = vsel %vm380_vm5, %v3436_v24, 0.0 }
0x1568   :  { %v3438_v11 = vpop.eup %3437  ;;  %1856 = vadd.xlane.f32.xlu0 %v1855_v2 }
0x1569   :  { %v1858_v61 = vsel %vm380_vm5, %v3438_v11, 0.0 }
0x156a   :  { %v3440_v3 = vpop.eup %3439 }
0x156b   :  { %v1861_v8 = vsel %vm387_vm6, %v3440_v3, 0.0 }
0x156c   :  { %1862 = vadd.xlane.f32.xlu1 %v1861_v8  ;;  %1859 = vadd.xlane.f32.xlu0 %v1858_v61 }
0x157d   :  { %1876 = vrot.lane.b32.xlu1 %v4005_v7, %s3497_s16 }
0x1581   :  { %2051 = vrot.lane.b32.xlu1 %v3993_v51, %s3499_s22 }
0x1582   :  { %1874 = vrot.lane.b32.xlu0 %v3995_v4, %s3497_s16 }
0x1585   :  { %2053 = vrot.lane.b32.xlu1 %v4003_v5, %s3499_s22 }
0x1586   :  { %2047 = vrot.lane.b32.xlu0 %v3993_v51, %s3500_s23 }
0x1589   :  { %2049 = vrot.lane.b32.xlu1 %v4003_v5, %s3500_s23 }
0x158a   :  { %2282 = vrot.lane.b32.xlu0 %v3993_v51, %s3501_s24 }
0x158d   :  { %2284 = vrot.lane.b32.xlu1 %v4003_v5, %s3501_s24  ;;  %v4092_v6 = vpop.f32.mrb[44].mxu1 }
0x158e   :  { %2278 = vrot.lane.b32.xlu0 %v3993_v51, %s3502_s25  ;;  %v4096_v12 = vpop.f32.mrb[45].mxu1  ;;  %v2904_v51 = vld [vmem:[%s4313_s7 + $0x58] sm:$0xff] }
0x158f   :  { %v3234_v37 = vpop.f32.mrb[46].mxu1 }
0x1590   :  { %v4098_v13 = vpop.f32.mrb[47].mxu1 }
0x1591   :  { %2280 = vrot.lane.b32.xlu1 %v4003_v5, %s3502_s25  ;;  %v1938_v5 = vpack.c.bf16 %v2904_v51, %v2903_v18 }
0x15f5   :  { %v1857_v14 = vpop.xlane.xlu0 %1856 }
0x15f6   :  { %3441 = vrcp.f32 %v1857_v14 }
0x15f9   :  { %v1860_v41 = vpop.xlane.xlu0 %1859  ;;  %v1863_v16 = vpop.xlane.xlu1 %1862 }
0x15fa   :  { %3443 = vrcp.f32 %v1860_v41 }
0x15fb   :  { %3445 = vrcp.f32 %v1863_v16 }
0x15fd   :  { %v1875_v17 = vpop.permute.xlu0 %1874  ;;  %v1877_v19 = vpop.permute.xlu1 %1876 }
0x15fe   :  { %3215 = vmatprep.subr.bf16.mxu0 %v1875_v17  ;;  %v1886_v21 = vsel %vm425_vm4, %v1877_v19, 0 }
0x15ff   :  { %3216 = vmatpush3.bf16.msra.mxu0 %v1875_v17 }
0x1600   :  { %3332 = vmatprep.subr.msk.bf16.mxu0 %vm425_vm4, %v1877_v19  ;;  %v3442_v20 = vpop.eup %3441 }
0x1601   :  { %v1867_v22 = vmul.f32 %v3442_v20, %v3436_v24  ;;  %v2052_v36 = vpop.permute.xlu1 %2051  ;;  %v2048_v45 = vpop.permute.xlu0 %2047 }
0x1602   :  { %v2062_v47 = vsel %vm54_vm1, %v2052_v36, 0 }
0x1603   :  { %3218 = vmatpush3.bf16.msra.mxu0 %v1886_v21 }
0x1604   :  { %v3444_v57 = vpop.eup %3443  ;;  %3223 = vmatprep.subr.bf16.mxu0 %v1938_v5 }
0x1605   :  { %v3446_v63 = vpop.eup %3445  ;;  %v1868_v26 = vmul.f32 %v3444_v57, %v3438_v11  ;;  %v2054_v48 = vpop.permute.xlu1 %2053 }
0x1606   :  { %v1869_v28 = vmul.f32 %v3446_v63, %v3440_v3  ;;  %v2065_v50 = vsel %vm54_vm1, %v2054_v48, 0  ;;  %v2283_v52 = vpop.permute.xlu0 %2282 }
0x1607   :  { %v1870_v32 = vpack.c.bf16 %v1868_v26, %v1867_v22  ;;  %v2293_v54 = vsel %vm54_vm1, %v2283_v52, 0 }
0x1608   :  { %v1871_v33 = vpack.c.bf16 %v1869_v28, %v1869_v28 }
0x1609   :  { %3219 = vmatprep.mubr.msk.bf16.mxu0 %vm380_vm5, %v1870_v32  ;;  %v2050_v53 = vpop.permute.xlu1 %2049 }
0x160a   :  { %3220 = vmatmul.mubr.msk.bf16.vlgmr.msra.gmra.mrb[48].mxu0 %vm380_vm5, %v1871_v33  ;;  %v2279_v27 = vpop.permute.xlu0 %2278 }
0x160b   :  { %3224 = vmatpush3.bf16.msra.mxu0 %v1938_v5 }
0x160c   :  { %3333 = vmatprep.subr.msk.bf16.mxu0 %vm54_vm1, %v2052_v36 }
0x160d   :  { %v2285_v56 = vpop.permute.xlu1 %2284 }
0x160e   :  { %v2296_v59 = vsel %vm54_vm1, %v2285_v56, 0 }
0x1611   :  { %v2281_v10 = vpop.permute.xlu1 %2280 }
0x16dd   :  { %v3221_v38 = vpop.f32.mrb[48].mxu0 }
0x16de   :  { %v1922_v35 = vpop.f32.mrb[49].mxu0  ;;  %v1937_v44 = vpack.c.bf16 %v3221_v38, %v3221_v38 }
0x16df   :  { %v3222_v39 = vpop.f32.mrb[50].mxu0 }
0x16e0   :  { %v1925_v42 = vpop.f32.mrb[51].mxu0 }
0x16e1   :  { %v1936_v25 = vpack.c.bf16 %v1925_v42, %v1922_v35 }
0x16e3   :  { %3225 = vmatprep.mubr.msk.bf16.mxu0 %vm54_vm1, %v1936_v25 }
0x16e4   :  { %3226 = vmatmul.mubr.msk.bf16.vlgmr.msra.gmra.mrb[52].mxu0 %vm54_vm1, %v1937_v44 }
0x16e5   :  { %3236 = vmatpush3.bf16.xpose.msra.mxu0 %v2062_v47  ;;  %3239 = vmatprep.mubr.msk.bf16.mxu0 %vm54_vm1, %v2048_v45 }
0x16e6   :  { %3334 = vmatprep.subr.msk.bf16.mxu0 %vm54_vm1, %v2054_v48 }
0x16ed   :  { %3238 = vmatpush3.bf16.xpose.msra.mxu0 %v2065_v50 }
0x16ee   :  { %3336 = vmatprep.subr.msk.bf16.mxu0 %vm54_vm1, %v2283_v52 }
0x16f4   :  { %3240 = vmatmul.mubr.msk.bf16.vlgmr.msra.gmra.mrb[56].mxu0 %vm54_vm1, %v2050_v53 }
0x16f5   :  { %3258 = vmatpush3.bf16.xpose.msra.mxu0 %v2293_v54  ;;  %3261 = vmatprep.mubr.msk.bf16.mxu0 %vm54_vm1, %v2279_v27 }
0x16f6   :  { %3337 = vmatprep.subr.msk.bf16.mxu0 %vm54_vm1, %v2285_v56 }
0x16fd   :  { %3260 = vmatpush3.bf16.xpose.msra.mxu0 %v2296_v59 }
0x1704   :  { %3262 = vmatmul.mubr.msk.bf16.vlgmr.msra.gmra.mrb[60].mxu0 %vm54_vm1, %v2281_v10 }
0x17b7   :  { %v3227_v60 = vpop.f32.mrb[52].mxu0 }
0x17b8   :  { %v4127_v49 = vadd.f32 %v4092_v6, %v3227_v60  ;;  %v1979_v24 = vpop.f32.mrb[53].mxu0 }
0x17b9   :  { %v4130_v2 = vadd.f32 %v4096_v12, %v1979_v24  ;;  %v3228_v11 = vpop.f32.mrb[54].mxu0 }
0x17ba   :  { %v1982_v3 = vpop.f32.mrb[55].mxu0 }
0x17bb   :  { %v4133_v8 = vadd.f32 %v4098_v13, %v1982_v3 }
0x17c7   :  { %v3241_v61 = vpop.f32.mrb[56].mxu0 }
0x17c8   :  { %v2101_v37 = vpop.f32.mrb[57].mxu0  ;;  %v2117_v14 = vmul.f32 0.25, %v3241_v61 }
0x17c9   :  { %v2115_v41 = vmul.f32 0.25, %v2101_v37  ;;  %v3242_v16 = vpop.f32.mrb[58].mxu0 }
0x17ca   :  { %v2104_v17 = vpop.f32.mrb[59].mxu0  ;;  %v2120_v12 = vadd.f32 %v4036_v34, %v2117_v14 }
0x17cb   :  { %v2116_v18 = vmul.f32 0.25, %v2104_v17  ;;  %v2118_v51 = vadd.f32 %v4022_v1, %v2115_v41 }
0x17cc   :  { %v2127_v13 = vsel %vm387_vm6, %v2120_v12, -inf }
0x17cd   :  { %v2121_v6 = vsel %vm380_vm5, %v2118_v51, -inf  ;;  %v2119_v19 = vadd.f32 %v4029_v30, %v2116_v18 }
0x17ce   :  { %2122 = vmax.xlane.f32.xlu0 %v2121_v6 }
0x17cf   :  { %v2124_v5 = vsel %vm380_vm5, %v2119_v19, -inf }
0x17d0   :  { %2125 = vmax.xlane.f32.xlu1 %v2124_v5 }
0x17d2   :  { %2128 = vmax.xlane.f32.xlu0 %v2127_v13 }
0x17d7   :  { %v3263_v20 = vpop.f32.mrb[60].mxu0 }
0x17d8   :  { %v2332_v21 = vpop.f32.mrb[61].mxu0  ;;  %v2348_v53 = vmul.f32 0.25, %v3263_v20 }
0x17d9   :  { %v3264_v57 = vpop.f32.mrb[62].mxu0  ;;  %v2346_v50 = vmul.f32 0.25, %v2332_v21 }
0x17da   :  { %v2335_v63 = vpop.f32.mrb[63].mxu0  ;;  %v2351_v56 = vadd.f32 %v4036_v34, %v2348_v53 }
0x17db   :  { %v2347_v52 = vmul.f32 0.25, %v2335_v63  ;;  %v2349_v54 = vadd.f32 %v4022_v1, %v2346_v50 }
0x17dc   :  { %v2358_v60 = vsel %vm387_vm6, %v2351_v56, -inf }
0x17dd   :  { %v2350_v27 = vadd.f32 %v4029_v30, %v2347_v52  ;;  %v2352_v59 = vsel %vm380_vm5, %v2349_v54, -inf }
0x17df   :  { %v2355_v10 = vsel %vm380_vm5, %v2350_v27, -inf }
0x185b   :  { %v2123_v22 = vpop.xlane.xlu0 %2122 }
0x185c   :  { %v2130_v26 = vsub.f32 %v2118_v51, %v2123_v22 }
0x185d   :  { %v2126_v28 = vpop.xlane.xlu1 %2125 }
0x185e   :  { %v2133_v32 = vmul.f32 1.442695, %v2130_v26  ;;  %v2131_v33 = vsub.f32 %v2119_v19, %v2126_v28 }
0x185f   :  { %v2129_v36 = vpop.xlane.xlu0 %2128 }
0x1860   :  { %3447 = vpow2.f32 %v2133_v32  ;;  %v2135_v38 = vmul.f32 1.442695, %v2131_v33  ;;  %v2132_v35 = vsub.f32 %v2120_v12, %v2129_v36 }
0x1862   :  { %3449 = vpow2.f32 %v2135_v38  ;;  %v2137_v39 = vmul.f32 1.442695, %v2132_v35  ;;  %v2905_v38 = vld [vmem:[%s4313_s7 + $0x60] sm:$0xff]  ;;  %v2906_v35 = vld [vmem:[%s4313_s7 + $0x68] sm:$0xff] }
0x1864   :  { %3451 = vpow2.f32 %v2137_v39  ;;  %v2220_v39 = vpack.c.bf16 %v2906_v35, %v2905_v38 }
0x186a   :  { %v3448_v42 = vpop.eup %3447 }
0x186b   :  { %v2139_v25 = vsel %vm380_vm5, %v3448_v42, 0.0 }
0x186c   :  { %v3450_v44 = vpop.eup %3449  ;;  %2140 = vadd.xlane.f32.xlu0 %v2139_v25 }
0x186d   :  { %v2142_v48 = vsel %vm380_vm5, %v3450_v44, 0.0 }
0x186e   :  { %v3452_v45 = vpop.eup %3451 }
0x186f   :  { %v2145_v47 = vsel %vm387_vm6, %v3452_v45, 0.0 }
0x1870   :  { %2146 = vadd.xlane.f32.xlu1 %v2145_v47  ;;  %2143 = vadd.xlane.f32.xlu0 %v2142_v48 }
0x1881   :  { %2158 = vrot.lane.b32.xlu1 %v4005_v7, %s3500_s23 }
0x1886   :  { %2156 = vrot.lane.b32.xlu0 %v3995_v4, %s3500_s23 }
0x18a5   :  { %2353 = vmax.xlane.f32.xlu1 %v2352_v59  ;;  %2356 = vmax.xlane.f32.xlu0 %v2355_v10 }
0x18a9   :  { %2359 = vmax.xlane.f32.xlu0 %v2358_v60 }
0x18f9   :  { %v2141_v24 = vpop.xlane.xlu0 %2140 }
0x18fa   :  { %3453 = vrcp.f32 %v2141_v24 }
0x18fd   :  { %v2144_v11 = vpop.xlane.xlu0 %2143  ;;  %v2147_v3 = vpop.xlane.xlu1 %2146 }
0x18fe   :  { %3455 = vrcp.f32 %v2144_v11 }
0x18ff   :  { %3457 = vrcp.f32 %v2147_v3 }
0x1901   :  { %v2157_v1 = vpop.permute.xlu0 %2156  ;;  %v2159_v30 = vpop.permute.xlu1 %2158 }
0x1902   :  { %3243 = vmatprep.subr.bf16.mxu1 %v2157_v1  ;;  %v2168_v61 = vsel %vm425_vm4, %v2159_v30, 0 }
0x1903   :  { %3244 = vmatpush3.bf16.msra.mxu1 %v2157_v1  ;;  %v2907_v1 = vld [vmem:[%s4313_s7 + $0x70] sm:$0xff] }
0x1904   :  { %3335 = vmatprep.subr.msk.bf16.mxu1 %vm425_vm4, %v2159_v30  ;;  %v3454_v34 = vpop.eup %3453  ;;  %v2908_v30 = vld [vmem:[%s4313_s7 + $0x78] sm:$0xff] }
0x1905   :  { %v2151_v41 = vmul.f32 %v3454_v34, %v3448_v42  ;;  %v2451_v34 = vpack.c.bf16 %v2908_v30, %v2907_v1 }
0x1907   :  { %3246 = vmatpush3.bf16.msra.mxu1 %v2168_v61 }
0x1908   :  { %v3456_v37 = vpop.eup %3455  ;;  %3251 = vmatprep.subr.bf16.mxu1 %v2220_v39 }
0x1909   :  { %v3458_v14 = vpop.eup %3457  ;;  %v2152_v16 = vmul.f32 %v3456_v37, %v3450_v44 }
0x190a   :  { %v2153_v17 = vmul.f32 %v3458_v14, %v3452_v45 }
0x190b   :  { %v2154_v18 = vpack.c.bf16 %v2152_v16, %v2151_v41 }
0x190c   :  { %v2155_v51 = vpack.c.bf16 %v2153_v17, %v2153_v17 }
0x190d   :  { %3247 = vmatprep.mubr.msk.bf16.mxu1 %vm380_vm5, %v2154_v18 }
0x190e   :  { %3248 = vmatmul.mubr.msk.bf16.vlgmr.msra.gmra.mrb[48].mxu1 %vm380_vm5, %v2155_v51 }
0x190f   :  { %3252 = vmatpush3.bf16.msra.mxu1 %v2220_v39 }
0x1932   :  { %v2357_v6 = vpop.xlane.xlu0 %2356  ;;  %v2354_v19 = vpop.xlane.xlu1 %2353 }
0x1933   :  { %v2362_v12 = vsub.f32 %v2350_v27, %v2357_v6  ;;  %v2361_v13 = vsub.f32 %v2349_v54, %v2354_v19 }
0x1935   :  { %v2366_v5 = vmul.f32 1.442695, %v2362_v12  ;;  %v2364_v57 = vmul.f32 1.442695, %v2361_v13 }
0x1936   :  { %v2360_v20 = vpop.xlane.xlu0 %2359 }
0x1937   :  { %3459 = vpow2.f32 %v2366_v5  ;;  %v2363_v21 = vsub.f32 %v2351_v56, %v2360_v20 }
0x1939   :  { %v2368_v63 = vmul.f32 1.442695, %v2363_v21 }
0x193b   :  { %3461 = vpow2.f32 %v2368_v63 }
0x193c   :  { %3463 = vpow2.f32 %v2364_v57 }
0x1941   :  { %v3460_v22 = vpop.eup %3459 }
0x1942   :  { %v2373_v26 = vsel %vm380_vm5, %v3460_v22, 0.0 }
0x1943   :  { %2374 = vadd.xlane.f32.xlu0 %v2373_v26 }
0x1945   :  { %v3462_v28 = vpop.eup %3461 }
0x1946   :  { %v2376_v32 = vsel %vm387_vm6, %v3462_v28, 0.0  ;;  %v3464_v33 = vpop.eup %3463 }
0x1947   :  { %2377 = vadd.xlane.f32.xlu1 %v2376_v32  ;;  %v2370_v36 = vsel %vm380_vm5, %v3464_v33, 0.0 }
0x194b   :  { %2371 = vadd.xlane.f32.xlu1 %v2370_v36 }
0x1959   :  { %2387 = vrot.lane.b32.xlu0 %v3995_v4, %s3502_s25 }
0x195c   :  { %2389 = vrot.lane.b32.xlu1 %v4005_v7, %s3502_s25 }
0x19d0   :  { %v2375_v42 = vpop.xlane.xlu0 %2374 }
0x19d1   :  { %3465 = vrcp.f32 %v2375_v42 }
0x19d4   :  { %v2388_v25 = vpop.permute.xlu0 %2387  ;;  %v2378_v44 = vpop.xlane.xlu1 %2377 }
0x19d5   :  { %3265 = vmatprep.subr.bf16.mxu1 %v2388_v25 }
0x19d8   :  { %v2372_v45 = vpop.xlane.xlu1 %2371 }
0x19d9   :  { %3467 = vrcp.f32 %v2372_v45 }
0x19da   :  { %3469 = vrcp.f32 %v2378_v44 }
0x19db   :  { %v3466_v47 = vpop.eup %3465 }
0x19dc   :  { %v2383_v56 = vmul.f32 %v3466_v47, %v3460_v22  ;;  %v2390_v60 = vpop.permute.xlu1 %2389 }
0x19dd   :  { %v2399_v11 = vsel %vm425_vm4, %v2390_v60, 0 }
0x19e1   :  { %v3249_v48 = vpop.f32.mrb[48].mxu1 }
0x19e2   :  { %v2204_v50 = vpop.f32.mrb[49].mxu1  ;;  %v2219_v59 = vpack.c.bf16 %v3249_v48, %v3249_v48 }
0x19e3   :  { %v3468_v52 = vpop.eup %3467  ;;  %v3250_v53 = vpop.f32.mrb[50].mxu1 }
0x19e4   :  { %v2207_v54 = vpop.f32.mrb[51].mxu1  ;;  %v2382_v27 = vmul.f32 %v3468_v52, %v3464_v33  ;;  %v3470_v7 = vpop.eup %3469 }
0x19e5   :  { %v2218_v4 = vpack.c.bf16 %v2207_v54, %v2204_v50  ;;  %v2384_v24 = vmul.f32 %v3470_v7, %v3462_v28  ;;  %v2936_v7 = vld [vmem:[%s4314_s8 + $0x38] sm:$0xff] }
0x19e6   :  { %v2385_v10 = vpack.c.bf16 %v2383_v56, %v2382_v27  ;;  %v2933_v56 = vld [vmem:[%s4314_s8 + $0x20] sm:$0xff] }
0x19e7   :  { %3253 = vmatprep.mubr.msk.bf16.mxu1 %vm54_vm1, %v2218_v4  ;;  %v2386_v3 = vpack.c.bf16 %v2384_v24, %v2384_v24  ;;  %v2934_v4 = vld [vmem:[%s4314_s8 + $0x28] sm:$0xff] }
0x19e8   :  { %3254 = vmatmul.mubr.msk.bf16.vlgmr.msra.gmra.mrb[52].mxu1 %vm54_vm1, %v2219_v59  ;;  %v2579_v59 = vpack.c.bf16 %v2934_v4, %v2933_v56 }
0x19e9   :  { %3266 = vmatpush3.bf16.msra.mxu1 %v2388_v25  ;;  %3269 = vmatprep.mubr.msk.bf16.mxu1 %vm380_vm5, %v2385_v10  ;;  %v2935_v10 = vld [vmem:[%s4314_s8 + $0x30] sm:$0xff] }
0x19ea   :  { %3338 = vmatprep.subr.msk.bf16.mxu1 %vm425_vm4, %v2390_v60  ;;  %3279 = vmatprep.subr.bf16.mxu0 %v2579_v59  ;;  %v2580_v60 = vpack.c.bf16 %v2936_v7, %v2935_v10 }
0x19eb   :  { %3280 = vmatpush3.bf16.msra.mxu0 %v2579_v59 }
0x19ec   :  { %3281 = vmatprep.subr.bf16.mxu0 %v2580_v60 }
0x19ed   :  { %3268 = vmatpush3.bf16.msra.mxu1 %v2399_v11 }
0x19ee   :  { %3273 = vmatprep.subr.bf16.mxu1 %v2451_v34 }
0x19ef   :  { %3282 = vmatpush3.bf16.msra.mxu0 %v2580_v60 }
0x19f0   :  { %3270 = vmatmul.mubr.msk.bf16.vlgmr.msra.gmra.mrb[56].mxu1 %vm380_vm5, %v2386_v3  ;;  %3299 = vmatprep.subr.bf16.mxu0 %v3493_v0 }
0x19f1   :  { %3274 = vmatpush3.bf16.msra.mxu1 %v2451_v34 }
0x1abb   :  { %v3255_v61 = vpop.f32.mrb[52].mxu1 }
0x1abc   :  { %v2277_v37 = vadd.f32 %v3255_v61, %v4127_v49  ;;  %v2261_v14 = vpop.f32.mrb[53].mxu1  ;;  %v2512_v49 = vrot.slane %v3933_v46, %v1284_v29 }
0x1abd   :  { %v2275_v41 = vadd.f32 %v2261_v14, %v4130_v2  ;;  %v3256_v16 = vpop.f32.mrb[54].mxu1 }
0x1abe   :  { %v2264_v17 = vpop.f32.mrb[55].mxu1 }
0x1abf   :  { %v2276_v18 = vadd.f32 %v2264_v17, %v4133_v8 }
0x1ac3   :  { %v3271_v51 = vpop.f32.mrb[56].mxu1 }
0x1ac4   :  { %v2435_v6 = vpop.f32.mrb[57].mxu1  ;;  %v2450_v13 = vpack.c.bf16 %v3271_v51, %v3271_v51 }
0x1ac5   :  { %v3272_v19 = vpop.f32.mrb[58].mxu1 }
0x1ac6   :  { %v2438_v12 = vpop.f32.mrb[59].mxu1 }
0x1ac7   :  { %v2449_v5 = vpack.c.bf16 %v2438_v12, %v2435_v6 }
0x1ac9   :  { %3275 = vmatprep.mubr.msk.bf16.mxu1 %vm54_vm1, %v2449_v5 }
0x1aca   :  { %3276 = vmatmul.mubr.msk.bf16.vlgmr.msra.gmra.mrb[60].mxu1 %vm54_vm1, %v2450_v13 }
0x1b9d   :  { %v3277_v20 = vpop.f32.mrb[60].mxu1 }
0x1b9e   :  { %v2508_v2 = vadd.f32 %v3277_v20, %v2277_v37  ;;  %v2492_v21 = vpop.f32.mrb[61].mxu1 }
0x1b9f   :  { %v2506_v57 = vadd.f32 %v2492_v21, %v2275_v41  ;;  %v3278_v63 = vpop.f32.mrb[62].mxu1  ;;  %v4228_v41 = vld [vmem:[%s4309_s11 + $0x8] sm:$0xff] }
0x1ba0   :  { %v2495_v8 = vpop.f32.mrb[63].mxu1  ;;  %v2515_v28 = vadd.f32 %v2512_v49, %v2508_v2  ;;  %v2561_v16 = vrot.slane %v4228_v41, %v222_v15  ;;  %v2568_v12 = vrot.slane %v4228_v41, %v1277_v23  ;;  %v2939_v23 = vld [vmem:[%s4315_s9 + $0x40] sm:$0xff] }
0x1ba1   :  { %v2513_v22 = vadd.f32 %v2512_v49, %v2506_v57  ;;  %v2507_v26 = vadd.f32 %v2495_v8, %v2276_v18  ;;  %v2940_v8 = vld [vmem:[%s4315_s9 + $0x48] sm:$0xff] }
0x1ba2   :  { %v4200_v29 = vadd.f32 %v2515_v28, %v3942_v31  ;;  %v2942_v28 = vld [vmem:[%s4315_s9 + $0x58] sm:$0xff] }
0x1ba3   :  { %v4192_v32 = vadd.f32 %v2513_v22, %v3939_v55  ;;  %v2514_v33 = vadd.f32 %v2512_v49, %v2507_v26  ;;  %v2677_v22 = vpack.c.bf16 %v2940_v8, %v2939_v23  ;;  %v2941_v26 = vld [vmem:[%s4315_s9 + $0x50] sm:$0xff] }
0x1ba4   :  { %v2525_v35 = vsel %vm178_vm2, %v4200_v29, 0.0 }
0x1ba5   :  { %v4195_v36 = vadd.f32 %v2514_v33, %v3945_v58  ;;  %v2519_v38 = vsel %vm171_vm3, %v4192_v32, 0.0  ;;  %3287 = vmatprep.subr.bf16.mxu1 %v2677_v22  ;;  %v2678_v33 = vpack.c.bf16 %v2942_v28, %v2941_v26 }
0x1ba6   :  { %2520 = vadd.xlane.f32.xlu1 %v2519_v38  ;;  %3288 = vmatpush3.bf16.msra.mxu1 %v2677_v22  ;;  %v2943_v38 = vld [vmem:[%s4315_s9 + $0x60] sm:$0xff] }
0x1ba7   :  { %v2522_v46 = vsel %vm171_vm3, %v4195_v36, 0.0  ;;  %3289 = vmatprep.subr.bf16.mxu1 %v2678_v33 }
0x1ba8   :  { %2523 = vadd.xlane.f32.xlu0 %v2522_v46  ;;  %v2944_v46 = vld [vmem:[%s4315_s9 + $0x68] sm:$0xff] }
0x1baa   :  { %3290 = vmatpush3.bf16.msra.mxu1 %v2678_v33 }
0x1bac   :  { %2526 = vadd.xlane.f32.xlu0 %v2525_v35  ;;  %v2679_v35 = vpack.c.bf16 %v2944_v46, %v2943_v38  ;;  %v2794_v46 = vld [vmem:[%s4316_s10 + $0x18] sm:$0xff] }
0x1bae   :  { %3291 = vmatprep.subr.bf16.mxu1 %v2679_v35 }
0x1baf   :  { %3292 = vmatpush3.bf16.msra.mxu1 %v2679_v35 }
0x1c33   :  { %v2521_v55 = vpop.xlane.xlu1 %2520 }
0x1c34   :  { %v2528_v39 = vmul.f32 0.03125, %v2521_v55  ;;  %v2945_v55 = vld [vmem:[%s4315_s9 + $0x70] sm:$0xff] }
0x1c35   :  { %v2524_v42 = vpop.xlane.xlu0 %2523 }
0x1c36   :  { %v2531_v58 = vsub.f32 %v4192_v32, %v2528_v39  ;;  %v2529_v25 = vmul.f32 0.03125, %v2524_v42  ;;  %v2946_v39 = vld [vmem:[%s4315_s9 + $0x78] sm:$0xff] }
0x1c37   :  { %v2680_v42 = vpack.c.bf16 %v2946_v39, %v2945_v55 }
0x1c38   :  { %v2532_v44 = vsub.f32 %v4195_v36, %v2529_v25  ;;  %v2534_v45 = vmul.f32 %v2531_v58, %v2531_v58 }
0x1c39   :  { %v2527_v47 = vpop.xlane.xlu0 %2526  ;;  %3293 = vmatprep.subr.bf16.mxu1 %v2680_v42 }
0x1c3a   :  { %v2530_v31 = vmul.f32 0.03125, %v2527_v47  ;;  %v2537_v48 = vsel %vm171_vm3, %v2534_v45, 0.0  ;;  %v2535_v50 = vmul.f32 %v2532_v44, %v2532_v44  ;;  %3294 = vmatpush3.bf16.msra.mxu1 %v2680_v42 }
0x1c3b   :  { %2538 = vadd.xlane.f32.xlu1 %v2537_v48 }
0x1c3c   :  { %v2533_v52 = vsub.f32 %v4200_v29, %v2530_v31  ;;  %v2540_v53 = vsel %vm171_vm3, %v2535_v50, 0.0 }
0x1c3d   :  { %2541 = vadd.xlane.f32.xlu0 %v2540_v53 }
0x1c3e   :  { %v2536_v54 = vmul.f32 %v2533_v52, %v2533_v52 }
0x1c40   :  { %v2543_v27 = vsel %vm178_vm2, %v2536_v54, 0.0 }
0x1c41   :  { %2544 = vadd.xlane.f32.xlu1 %v2543_v27 }
0x1cc8   :  { %v2539_v24 = vpop.xlane.xlu1 %2538 }
0x1cc9   :  { %v2546_v11 = vmul.f32 0.03125, %v2539_v24 }
0x1cca   :  { %v2542_v3 = vpop.xlane.xlu0 %2541 }
0x1ccb   :  { %v2549_v1 = vadd.f32 1e-05, %v2546_v11  ;;  %v2547_v30 = vmul.f32 0.03125, %v2542_v3 }
0x1ccd   :  { %3471 = vrsqrt.f32 %v2549_v1  ;;  %v2550_v34 = vadd.f32 1e-05, %v2547_v30 }
0x1cce   :  { %v2545_v61 = vpop.xlane.xlu1 %2544 }
0x1ccf   :  { %3473 = vrsqrt.f32 %v2550_v34  ;;  %v2548_v37 = vmul.f32 0.03125, %v2545_v61 }
0x1cd1   :  { %v2551_v14 = vadd.f32 1e-05, %v2548_v37 }
0x1cd3   :  { %3475 = vrsqrt.f32 %v2551_v14 }
0x1cd7   :  { %v3472_v17 = vpop.eup %3471 }
0x1cd8   :  { %v2555_v18 = vmul.f32 %v3472_v17, %v2531_v58  ;;  %v2584_v58 = vrot.slane %v4228_v41, %v1228_v40 }
0x1cd9   :  { %v3474_v51 = vpop.eup %3473 }
0x1cda   :  { %v2556_v6 = vmul.f32 %v3474_v51, %v2532_v44  ;;  %v2562_v19 = vmul.f32 %v2561_v16, %v2555_v18 }
0x1cdc   :  { %v2563_v5 = vmul.f32 %v2561_v16, %v2556_v6  ;;  %v2569_v49 = vadd.f32 %v2568_v12, %v2562_v19 }
0x1cdd   :  { %v3476_v13 = vpop.eup %3475 }
0x1cde   :  { %v2557_v20 = vmul.f32 %v3476_v13, %v2533_v52  ;;  %v2570_v2 = vadd.f32 %v2568_v12, %v2563_v5 }
0x1ce0   :  { %v2564_v21 = vmul.f32 %v2561_v16, %v2557_v20  ;;  %v2577_v57 = vpack.c.bf16 %v2570_v2, %v2569_v49  ;;  %v2684_v20 = vrot.slane %v4228_v41, %v1299_v62  ;;  %v2791_v62 = vld [vmem:[%s4316_s10] sm:$0xff]  ;;  %v2792_v41 = vld [vmem:[%s4316_s10 + $0x8] sm:$0xff] }
0x1ce2   :  { %3283 = vmatprep.mubr.msk.bf16.mxu0 %vm171_vm3, %v2577_v57  ;;  %v2571_v63 = vadd.f32 %v2568_v12, %v2564_v21 }
0x1ce4   :  { %v2578_v15 = vpack.c.bf16 %v2571_v63, %v2571_v63 }
0x1ce6   :  { %3284 = vmatmul.mubr.msk.bf16.vlgmr.msra.gmra.mrb[64].mxu0 %vm171_vm3, %v2578_v15 }
0x1ce7   :  { %3303 = vmatprep.mubr.msk.bf16.mxu0 %vm3494_vm0, %v3493_v0 }
0x1db9   :  { %v3285_v25 = vpop.f32.mrb[64].mxu0 }
0x1dba   :  { %v2634_v44 = vadd.f32 %v3285_v25, %v2584_v58  ;;  %v2625_v45 = vpop.f32.mrb[65].mxu0 }
0x1dbb   :  { %v2626_v47 = vadd.f32 %v2625_v45, %v2584_v58  ;;  %v3286_v31 = vpop.f32.mrb[66].mxu0 }
0x1dbc   :  { %v2641_v48 = vmul.f32 %v2634_v44, %v2634_v44  ;;  %v2628_v50 = vpop.f32.mrb[67].mxu0 }
0x1dbd   :  { %v2639_v52 = vmul.f32 %v2626_v47, %v2626_v47  ;;  %v2629_v53 = vadd.f32 %v2628_v50, %v2584_v58 }
0x1dbe   :  { %v2644_v54 = vmul.f32 %v2641_v48, %v2634_v44 }
0x1dbf   :  { %v2642_v27 = vmul.f32 %v2639_v52, %v2626_v47  ;;  %v2640_v56 = vmul.f32 %v2629_v53, %v2629_v53 }
0x1dc0   :  { %v2647_v4 = vmul.f32 0.044715, %v2644_v54 }
0x1dc1   :  { %v2645_v59 = vmul.f32 0.044715, %v2642_v27  ;;  %v2643_v10 = vmul.f32 %v2640_v56, %v2629_v53 }
0x1dc2   :  { %v2650_v7 = vadd.f32 %v2647_v4, %v2634_v44 }
0x1dc3   :  { %v2648_v60 = vadd.f32 %v2645_v59, %v2626_v47  ;;  %v2646_v24 = vmul.f32 0.044715, %v2643_v10 }
0x1dc4   :  { %v2653_v11 = vmul.f32 0.7978846, %v2650_v7 }
0x1dc5   :  { %v2651_v40 = vmul.f32 0.7978846, %v2648_v60  ;;  %v2649_v3 = vadd.f32 %v2646_v24, %v2629_v53 }
0x1dc6   :  { %3477 = vtanh.f32 %v2653_v11 }
0x1dc7   :  { %3479 = vtanh.f32 %v2651_v40  ;;  %v2652_v1 = vmul.f32 0.7978846, %v2649_v3 }
0x1dc9   :  { %3481 = vtanh.f32 %v2652_v1 }
0x1dd0   :  { %v3478_v30 = vpop.eup %3477 }
0x1dd1   :  { %v3480_v34 = vpop.eup %3479  ;;  %v2659_v61 = vadd.f32 1.0, %v3478_v30 }
0x1dd2   :  { %v2657_v37 = vadd.f32 1.0, %v3480_v34 }
0x1dd3   :  { %v3482_v14 = vpop.eup %3481  ;;  %v2662_v16 = vmul.f32 0.5, %v2659_v61 }
0x1dd4   :  { %v2660_v17 = vmul.f32 0.5, %v2657_v37  ;;  %v2658_v18 = vadd.f32 1.0, %v3482_v14 }
0x1dd5   :  { %v2665_v6 = vmul.f32 %v2662_v16, %v2634_v44 }
0x1dd6   :  { %v2661_v51 = vmul.f32 0.5, %v2658_v18  ;;  %v2663_v19 = vmul.f32 %v2660_v17, %v2626_v47 }
0x1dd7   :  { %v2676_v13 = vpack.c.bf16 %v2665_v6, %v2665_v6 }
0x1dd8   :  { %v2664_v12 = vmul.f32 %v2661_v51, %v2629_v53 }
0x1dda   :  { %v2675_v5 = vpack.c.bf16 %v2664_v12, %v2663_v19 }
0x1ddc   :  { %3295 = vmatprep.mubr.msk.bf16.mxu1 %vm1400_vm7, %v2675_v5 }
0x1ddd   :  { %3296 = vmatmul.mubr.msk.bf16.vlgmr.msra.gmra.mrb[64].mxu1 %vm1400_vm7, %v2676_v13 }
0x1eb0   :  { %v3297_v49 = vpop.f32.mrb[64].mxu1 }
0x1eb1   :  { %v2734_v2 = vadd.f32 %v3297_v49, %v2684_v20  ;;  %v2725_v21 = vpop.f32.mrb[65].mxu1 }
0x1eb2   :  { %v2726_v57 = vadd.f32 %v2725_v21, %v2684_v20  ;;  %v3298_v63 = vpop.f32.mrb[66].mxu1 }
0x1eb3   :  { %v2728_v15 = vpop.f32.mrb[67].mxu1  ;;  %v2741_v8 = vadd.f32 %v2734_v2, %v4200_v29  ;;  %v2793_v29 = vld [vmem:[%s4316_s10 + $0x10] sm:$0xff] }
0x1eb4   :  { %v2729_v23 = vadd.f32 %v2728_v15, %v2684_v20  ;;  %v2739_v22 = vadd.f32 %v2726_v57, %v4192_v32  ;;  %v2742_v32 = vld [vmem:[%s4317_s4] sm:$0x1]  ;;  %v2797_v35 = vpack.c.bf16 %v2794_v46, %v2793_v29 }
0x1eb5   :  { %v2744_v33 = vpack.c.bf16 %v2741_v8, %v2741_v8 }
0x1eb6   :  { %v2740_v26 = vadd.f32 %v2729_v23, %v4195_v36  ;;  %v2796_v36 = vpack.c.bf16 %v2792_v41, %v2791_v62 }
0x1eb7   :  { %v2749_v38 = vsel %vm425_vm4, %v2744_v33, 0 }
0x1eb8   :  { %v2743_v28 = vpack.c.bf16 %v2740_v26, %v2739_v22 }
0x1eba   :  { %3300 = vmatpush3.bf16.msra.mxu0 %v2743_v28 }
0x1ebb   :  { %3301 = vmatprep.subr.bf16.mxu0 %v3493_v0 }
0x1ebe   :  { %3302 = vmatpush3.bf16.msra.mxu0 %v2749_v38 }
0x1ebf   :  { %3307 = vmatprep.subr.bf16.mxu0 %v3493_v0 }
0x1ec1   :  { %3304 = vmatmul.mubr.msk.bf16.vlgmr.msra.gmra.mrb[68].mxu0 %vm380_vm5, %v2742_v32 }
0x1ec2   :  { %3308 = vmatpush3.bf16.msra.mxu0 %v2796_v36  ;;  %3311 = vmatprep.mubr.msk.bf16.mxu0 %vm3494_vm0, %v3493_v0 }
0x1ec3   :  { %3309 = vmatprep.subr.bf16.mxu0 %v3493_v0  ;;  %v3492_v0 = vld [vmem:[%s4309_s11] sm:$0xff] }
0x1ec4   :  { %v2801_v44 = vrot.slane %v3492_v0, %v1499_v43 }
0x1ec6   :  { %3310 = vmatpush3.bf16.msra.mxu0 %v2797_v35 }
0x1f94   :  { %v2785_v55 = vpop.f32.mrb[68].mxu0 }
0x1f95   :  { %v2795_v39 = vpack.c.bf16 %v2785_v55, %v2785_v55  ;;  %v3305_v42 = vpop.f32.mrb[69].mxu0 }
0x1f96   :  { %v2788_v58 = vpop.f32.mrb[70].mxu0 }
0x1f97   :  { %v3306_v25 = vpop.f32.mrb[71].mxu0  ;;  %3312 = vmatmul.mubr.msk.bf16.vlgmr.msra.gmra.mrb[72].mxu0 %vm171_vm3, %v2795_v39 }
0x206a   :  { %v2839_v45 = vpop.f32.mrb[72].mxu0 }
0x206b   :  { %v2840_v47 = vadd.f32 %v2839_v45, %v2801_v44  ;;  %v3313_v31 = vpop.f32.mrb[73].mxu0 }
0x206c   :  { %v2842_v48 = vpop.f32.mrb[74].mxu0 }
0x206d   :  { %v2951_v50 = vmul.f32 -1.442695, %v2840_v47  ;;  %v3314_v52 = vpop.f32.mrb[75].mxu0 }
0x206f   :  { %3483 = vpow2.f32 %v2951_v50 }
0x2079   :  { %v3484_v53 = vpop.eup %3483 }
0x207a   :  { %v2848_v54 = vadd.f32 1.0, %v3484_v53 }
0x207c   :  { %3485 = vrcp.f32 %v2848_v54 }
0x2086   :  { %v3486_v27 = vpop.eup %3485 }
0x2087   :  { %2851 = vst [vmem:[%s4318_s12] sm:$0x3] %v3486_v27 }

</bundles_post_ra>
